<compile_context>
chip_gen: v7x
topology: tpu7x:2x2x1
jax: 0.10.0
libtpu: 0.0.40
codegen_flags: <defaults>
</compile_context>

<pallas_src>
import math

import jax
import jax.numpy as jnp
import numpy as np
from jax.experimental import pallas as pl
from jax.experimental.pallas import tpu as pltpu


# ---------------------------------------------------------------------------
# helpers
# ---------------------------------------------------------------------------
def _phase_taps(phase, pad, k):
    """Taps of one output phase (per axis) of a stride-2 transposed conv.

    k is the ORIGINAL (odd) kernel size; effective kernel = k + 1.
    Returns [(input_offset_relative_to_m, kernel_index), ...] such that
      out[2m + phase] += sum_t  in[m + offset_t] * w_eff[kidx_t]
    """
    r = (phase + pad) % 2
    base = (phase + pad - r) // 2
    n_taps = (k - r) // 2 + 1
    return [(base - t, r + 2 * t) for t in range(n_taps)]


def _round_up(x, m):
    return ((x + m - 1) // m) * m


def _vmem_footprint(shape, itemsize):
    """Approximate VMEM footprint of a buffer with (8, 128) tiling on the
    trailing two dims (lane padding dominates for narrow channel counts)."""
    if len(shape) < 2:
        return _round_up(int(np.prod(shape)) * itemsize, 512)
    lead = 1
    for d in shape[:-2]:
        lead *= int(d)
    return (lead * _round_up(int(shape[-2]), 8)
            * _round_up(int(shape[-1]), 128) * itemsize)


def _tpu_vmem_info():
    """(vmem_capacity_bytes, has_two_tensorcores); v5e/v6e-like fallback."""
    cap = 128 << 20
    try:
        info = pltpu.get_tpu_info()
        cap = int(getattr(info, "vmem_capacity_bytes", cap)) or cap
    except Exception:
        pass
    # v7x: 64 MiB VMEM per TensorCore and 2 TCs/chip; v5e/v6e: 128 MiB, 1 TC.
    return cap, cap <= (64 << 20)


# ---------------------------------------------------------------------------
# kernel
# ---------------------------------------------------------------------------
def _make_kernel(bt, H, W, Cin, Cout, offsets, packed):
    """offsets[py][px] = list of (dy, dx) offsets into the padded NHWC input,
    aligned with the tap axis (packed: K blocks; unpacked: leading axis) of
    the packed weight tensor."""
    M = bt * H * W

    def kernel(x_ref, w_ref, b_ref, o_ref, *scratch):
        # x_ref : (bt, Hp, Wp, Cin)           zero-padded input, NHWC
        # w_ref : packed   (2, 2, n_tap2*Cin, Cout)
        #         unpacked (2, 2, n_tap2, Cin, Cout)
        # b_ref : (1, Cout)                    f32, lane-aligned
        # o_ref : (bt, H, 2, W, 2*Cout)        phase-interleaved output
        # scratch (packed only): (M, n_tap2*Cin) K-packing buffer
        bias = b_ref[...].astype(jnp.float32)   # (1, Cout); loaded once, the
        # broadcast is folded into the per-phase add (no per-tap re-loads).

        if not packed:
            # Deduplicate the distinct (dy, dx) tap slices: only 9 exist for
            # k=3 but the 2x2 phase loops would touch 16.  Each slice is a
            # materialized copy (Wp != W), so load each one exactly once.
            slabs = {}
            for o_row in offsets:
                for o_ph in o_row:
                    for (dy, dx) in o_ph:
                        if (dy, dx) not in slabs:
                            xs = x_ref[:, dy:dy + H, dx:dx + W, :]
                            slabs[(dy, dx)] = xs.reshape(M, Cin)

        for py in range(2):
            for px in range(2):
                taps = offsets[py][px]
                if packed:
                    # Pack this phase's taps along K -> one MXU matmul with
                    # K = n_tap2*Cin instead of n_tap2 small dots + adds.
                    # (Slices feed straight into the pack buffer, so keeping
                    #  the 9-slab dedup dict live here would only inflate the
                    #  VMEM working set.)
                    xpack = scratch[0]
                    for t, (dy, dx) in enumerate(taps):
                        xs = x_ref[:, dy:dy + H, dx:dx + W, :]
                        xpack[:, t * Cin:(t + 1) * Cin] = xs.reshape(M, Cin)
                    acc = jnp.dot(xpack[...], w_ref[py, px],
                                  preferred_element_type=jnp.float32)
                else:
                    acc = None
                    for t, (dy, dx) in enumerate(taps):
                        part = jnp.dot(slabs[(dy, dx)], w_ref[py, px, t],
                                       preferred_element_type=jnp.float32)
                        acc = part if acc is None else acc + part
                res = (acc + bias).astype(o_ref.dtype).reshape(bt, H, W, Cout)
                # Phase-interleaved store: lane offset px*Cout inside the
                # 2*Cout-wide output block (fully unmasked when Cout >= 128).
                # TODO(synk): for Cout < 64 the per-phase stores are still
                # lane-masked; widen further if this shows up in profiles.
                o_ref[:, :, py, :, px * Cout:(px + 1) * Cout] = res

    return kernel


# ---------------------------------------------------------------------------
# wrappers
# ---------------------------------------------------------------------------
def _fused_upsample_raw(x_nhwc, weight, bias, padding):
    """Runs the kernel on NHWC input; returns (B, H, 2, W, 2*Cout) phase-
    interleaved output (a free reshape away from NHWC)."""
    B, H, W, Cin = x_nhwc.shape
    Cin_w, Cout, k, k2 = weight.shape
    assert Cin_w == Cin and k == k2
    # TODO(synk): only the standard exact-2x configuration (odd k, padding ==
    # (k-1)//2, e.g. k=3 / pad=1 as in StyleGAN) is implemented; other
    # (kernel_size, padding) combos need per-phase output lengths.
    assert k % 2 == 1 and padding == (k - 1) // 2

    dtype = x_nhwc.dtype
    itemsize = jnp.dtype(dtype).itemsize
    # bf16 weights when x is bf16: native fast MXU path and half the weight
    # VMEM; accumulation stays f32 via preferred_element_type.
    w_dt = jnp.bfloat16 if dtype == jnp.bfloat16 else jnp.float32
    w_itemsize = jnp.dtype(w_dt).itemsize
    multiplier = math.sqrt(2.0 / (Cin * k * k))

    # ---- effective (blur-averaged) transposed-conv weight, as in PyTorch ---
    w = weight.astype(jnp.float32) * multiplier
    w = jnp.pad(w, ((0, 0), (0, 0), (1, 1), (1, 1)))
    w_eff = (w[:, :, 1:, 1:] + w[:, :, :-1, 1:]
             + w[:, :, 1:, :-1] + w[:, :, :-1, :-1]) * 0.25  # (Cin,Cout,k+1,k+1)

    # ---- sub-pixel (per output phase) decomposition of the stride-2 deconv -
    taps = [_phase_taps(ph, padding, k) for ph in range(2)]   # same for y, x
    rel = [o for ph in taps for (o, _) in ph]
    pad_lo, pad_hi = max(0, -min(rel)), max(0, max(rel))
    Hp, Wp = H + pad_lo + pad_hi, W + pad_lo + pad_hi
    n_tap2 = len(taps[0]) * len(taps[0])

    # Pack taps along K when the packed K stays modest (small/medium Cin).
    packed = (n_tap2 * Cin) <= 1024

    offsets, w_rows = [], []
    for py in range(2):
        o_row, w_row = [], []
        for px in range(2):
            o_ph, w_ph = [], []
            for (oy, ky) in taps[py]:
                for (ox, kx) in taps[px]:
                    o_ph.append((oy + pad_lo, ox + pad_lo))
                    w_ph.append(w_eff[:, :, ky, kx])          # (Cin, Cout)
            o_row.append(o_ph)
            if packed:
                w_row.append(jnp.concatenate(w_ph, axis=0))   # (n_tap2*Cin,Cout)
            else:
                w_row.append(jnp.stack(w_ph))                 # (n_tap2,Cin,Cout)
        offsets.append(o_row)
        w_rows.append(jnp.stack(w_row))
    wsub = jnp.stack(w_rows).astype(w_dt)
    b_lane = bias.astype(jnp.float32).reshape(1, Cout)        # lane-aligned

    # ---- zero-padded spatial border (XLA side; fuses with any caller-side
    #      layout transpose) ----
    x_pad = jnp.pad(x_nhwc, ((0, 0), (pad_lo, pad_hi), (pad_lo, pad_hi), (0, 0)))

    # ---- generation-aware batch tile + honest, padding-aware VMEM budget ---
    vmem_cap, two_tc = _tpu_vmem_info()
    in_img = _vmem_footprint((Hp, Wp, Cin), itemsize)
    out_img = _vmem_footprint((H, 2, W, 2 * Cout), itemsize)
    acc_img = (_vmem_footprint((H * W, Cout), 4)
               + _vmem_footprint((H, W, Cout), itemsize))
    if packed:
        temp_img = 2 * _vmem_footprint((H * W, n_tap2 * Cin), itemsize) + acc_img
    else:
        temp_img = 9 * _vmem_footprint((H * W, Cin), itemsize) + acc_img
    # double-buffered input + output blocks plus in-kernel temporaries
    per_img = 2 * in_img + 2 * out_img + temp_img
    block_budget = (6 << 20) if two_tc else (8 << 20)
    bt = max(1, min(B, block_budget // max(per_img, 1)))
    if two_tc and B >= 2:
        # keep >= 2 grid steps so both v7x TensorCores get work (v5e/v6e have
        # a single TC, so no halving there).
        bt = min(bt, max(1, B // 2))
    while B % bt:
        bt -= 1
    grid = (B // bt,)
    # TODO(synk): for B == 1 / very large H*W additionally tile H with a 1-row
    # halo (manual DMA) so both v7x cores get work and blocks fit 64 MiB VMEM.

    # Weight slab: its index_map is constant, so double-buffering only wastes
    # VMEM; single-buffer it once it is a significant VMEM fraction (e.g. the
    # 512x512-channel slab is ~8-16 MiB).  Below that, default buffering lets
    # the first grid step overlap the weight DMA and costs little.
    w_resident = int(np.prod(wsub.shape)) * w_itemsize
    if packed:
        w_block, w_imap = (2, 2, n_tap2 * Cin, Cout), (lambda b: (0, 0, 0, 0))
    else:
        w_block, w_imap = (2, 2, n_tap2, Cin, Cout), (lambda b: (0, 0, 0, 0, 0))
    if w_resident > (4 << 20):
        w_spec = pl.BlockSpec(w_block, w_imap, pipeline_mode=pl.Buffered(1))
        w_bufs = 1
    else:
        w_spec = pl.BlockSpec(w_block, w_imap)
        w_bufs = 2

    vmem_need = (2 * bt * in_img + 2 * bt * out_img + bt * temp_img
                 + w_bufs * w_resident
                 + 2 * _vmem_footprint((1, Cout), 4)
                 + (4 << 20))                                  # compiler slack
    # Leave headroom below physical capacity (v7x: 64 MiB/TC, v5e/v6e: 128).
    vmem_ceiling = (48 << 20) if vmem_cap <= (64 << 20) else (96 << 20)
    vmem_limit = int(min(max(vmem_need, 32 << 20), vmem_ceiling))

    scratch_shapes = []
    if packed:
        scratch_shapes.append(pltpu.VMEM((bt * H * W, n_tap2 * Cin), dtype))

    kernel = _make_kernel(bt, H, W, Cin, Cout, offsets, packed)

    out = pl.pallas_call(
        kernel,
        out_shape=jax.ShapeDtypeStruct((B, H, 2, W, 2 * Cout), dtype),
        grid_spec=pltpu.PrefetchScalarGridSpec(
            num_scalar_prefetch=0,
            grid=grid,
            in_specs=[
                pl.BlockSpec((bt, Hp, Wp, Cin), lambda b: (b, 0, 0, 0)),
                w_spec,
                pl.BlockSpec((1, Cout), lambda b: (0, 0)),
            ],
            out_specs=pl.BlockSpec((bt, H, 2, W, 2 * Cout),
                                   lambda b: (b, 0, 0, 0, 0)),
            scratch_shapes=scratch_shapes,
        ),
        compiler_params=pltpu.CompilerParams(
            dimension_semantics=("parallel",),
            vmem_limit_bytes=vmem_limit),
    )(x_pad, wsub, b_lane)
    return out


def fused_upsample_nhwc(x_nhwc, weight, bias, padding):
    """NHWC-in / NHWC-out variant: no layout permutes around the kernel (the
    phase interleave is a free reshape).  x_nhwc: (B, H, W, Cin)."""
    B, H, W, _ = x_nhwc.shape
    Cout = weight.shape[1]
    raw = _fused_upsample_raw(x_nhwc, weight, bias, padding)
    return raw.reshape(B, 2 * H, 2 * W, Cout)      # pure (free) reshape


def fused_upsample(x, weight, bias, padding):
    """PyTorch-layout API: x (B, Cin, H, W), weight (Cin, Cout, k, k)
    [conv_transpose layout], bias (Cout,).  Returns (B, Cout, 2H, 2W)."""
    x_nhwc = jnp.transpose(x, (0, 2, 3, 1))
    out_nhwc = fused_upsample_nhwc(x_nhwc, weight, bias, padding)
    return jnp.transpose(out_nhwc, (0, 3, 1, 2))


# ---------------------------------------------------------------------------
# pure-JAX reference (matches the PyTorch FusedUpsample forward)
# ---------------------------------------------------------------------------
def fused_upsample_ref(x, weight, bias, padding):
    Cin, Cout, k, _ = weight.shape
    multiplier = math.sqrt(2.0 / (Cin * k * k))
    w = weight.astype(jnp.float32) * multiplier
    w = jnp.pad(w, ((0, 0), (0, 0), (1, 1), (1, 1)))
    w = (w[:, :, 1:, 1:] + w[:, :, :-1, 1:]
         + w[:, :, 1:, :-1] + w[:, :, :-1, :-1]) * 0.25       # (Cin,Cout,k+1,k+1)
    ke = k + 1
    # transposed conv == zero-dilated-input conv with transposed+flipped kernel
    wf = jnp.flip(jnp.transpose(w, (1, 0, 2, 3)), axis=(2, 3))  # (Cout,Cin,ke,ke)
    out = jax.lax.conv_general_dilated(
        x.astype(jnp.float32), wf,
        window_strides=(1, 1),
        padding=[(ke - 1 - padding, ke - 1 - padding)] * 2,
        lhs_dilation=(2, 2),
        dimension_numbers=("NCHW", "OIHW", "NCHW"),
        precision=jax.lax.Precision.HIGHEST)
    return out + bias.reshape(1, -1, 1, 1)


# ---------------------------------------------------------------------------
# self-test
# ---------------------------------------------------------------------------
if __name__ == "__main__":
    def run_case(B, Cin, Cout, H, W, k, padding, dtype, rtol, atol, key):
        kx, kw, kb = jax.random.split(key, 3)
        x = jax.random.normal(kx, (B, Cin, H, W), dtype=jnp.float32).astype(dtype)
        weight = jax.random.normal(kw, (Cin, Cout, k, k), dtype=jnp.float32)
        bias = 0.1 * jax.random.normal(kb, (Cout,), dtype=jnp.float32)

        out = jax.block_until_ready(fused_upsample(x, weight, bias, padding))
        assert out.shape == (B, Cout, 2 * H, 2 * W)

        ref = fused_upsample_ref(x.astype(jnp.float32), weight, bias, padding)
        np.testing.assert_allclose(np.asarray(out, dtype=np.float32),
                                   np.asarray(ref), rtol=rtol, atol=atol)

    key = jax.random.PRNGKey(0)
    k1, k2, k3 = jax.random.split(key, 3)
    # small f32 config: packed (K = 4*Cin) path, sub-128 Cout
    run_case(2, 8, 16, 16, 16, 3, 1, jnp.float32, 1e-4, 1e-4, k1)
    # bf16 inputs: bf16 weights on the MXU, f32 accumulation
    run_case(2, 8, 16, 16, 16, 3, 1, jnp.bfloat16, 5e-2, 5e-2, k2)
    # larger-Cin config: unpacked path with 9-slice dedup, lane-aligned stores
    run_case(1, 288, 128, 8, 8, 3, 1, jnp.float32, 1e-3, 1e-3, k3)

    print("KERNEL_OK")
</pallas_src>

<mosaic_0001>
module attributes {stable_mosaic.version = 11 : i64} {
  func.func @kernel(%arg0: i32, %arg1: memref<2x18x18x8xf32, #tpu.memory_space<vmem>>, %arg2: memref<2x2x32x16xf32, #tpu.memory_space<vmem>>, %arg3: memref<1x16xf32, #tpu.memory_space<vmem>>, %arg4: memref<2x16x2x16x32xf32, #tpu.memory_space<vmem>>, %arg5: memref<512x32xf32, #tpu.memory_space<vmem>>) attributes {dimension_semantics = [#tpu.dimension_semantics<parallel>], iteration_bounds = array<i64: 1>, scalar_prefetch = 0 : i64, scratch_operands = 1 : i64, tpu.core_type = #tpu.core_type<tc>, window_params = [{transform_indices = @transform_0, window_bounds = array<i64: 2, 18, 18, 8>}, {pipeline_mode = #tpu.pipeline_mode<synchronous>, transform_indices = @transform_1, window_bounds = array<i64: 2, 2, 32, 16>}, {pipeline_mode = #tpu.pipeline_mode<synchronous>, transform_indices = @transform_2, window_bounds = array<i64: 1, 16>}, {transform_indices = @transform_3, window_bounds = array<i64: 2, 16, 2, 16, 32>}]} {
    %c0 = arith.constant 0 : index
    %c0_0 = arith.constant 0 : index
    %0 = vector.load %arg3[%c0, %c0_0] : memref<1x16xf32, #tpu.memory_space<vmem>>, vector<1x16xf32>
    %c0_1 = arith.constant 0 : index
    %c1 = arith.constant 1 : index
    %c1_2 = arith.constant 1 : index
    %c0_3 = arith.constant 0 : index
    %1 = vector.load %arg1[%c0_1, %c1, %c1_2, %c0_3] : memref<2x18x18x8xf32, #tpu.memory_space<vmem>>, vector<2x16x16x8xf32>
    %2 = vector.shape_cast %1 : vector<2x16x16x8xf32> to vector<512x8xf32>
    %c0_4 = arith.constant 0 : index
    %c0_5 = arith.constant 0 : index
    %3 = vector.load %arg5[%c0_4, %c0_5] : memref<512x32xf32, #tpu.memory_space<vmem>>, vector<512x8xf32>
    tpu.vector_store %arg5[%c0_4, %c0_5], %2 {strides = array<i32>} : memref<512x32xf32, #tpu.memory_space<vmem>>, vector<512x8xf32>,
    %c0_6 = arith.constant 0 : index
    %c1_7 = arith.constant 1 : index
    %c0_8 = arith.constant 0 : index
    %c0_9 = arith.constant 0 : index
    %4 = vector.load %arg1[%c0_6, %c1_7, %c0_8, %c0_9] : memref<2x18x18x8xf32, #tpu.memory_space<vmem>>, vector<2x16x16x8xf32>
    %5 = vector.shape_cast %4 : vector<2x16x16x8xf32> to vector<512x8xf32>
    %c0_10 = arith.constant 0 : index
    %c8 = arith.constant 8 : index
    %6 = vector.load %arg5[%c0_10, %c8] : memref<512x32xf32, #tpu.memory_space<vmem>>, vector<512x8xf32>
    tpu.vector_store %arg5[%c0_10, %c8], %5 {strides = array<i32>} : memref<512x32xf32, #tpu.memory_space<vmem>>, vector<512x8xf32>,
    %c0_11 = arith.constant 0 : index
    %c0_12 = arith.constant 0 : index
    %c1_13 = arith.constant 1 : index
    %c0_14 = arith.constant 0 : index
    %7 = vector.load %arg1[%c0_11, %c0_12, %c1_13, %c0_14] : memref<2x18x18x8xf32, #tpu.memory_space<vmem>>, vector<2x16x16x8xf32>
    %8 = vector.shape_cast %7 : vector<2x16x16x8xf32> to vector<512x8xf32>
    %c0_15 = arith.constant 0 : index
    %c16 = arith.constant 16 : index
    %9 = vector.load %arg5[%c0_15, %c16] : memref<512x32xf32, #tpu.memory_space<vmem>>, vector<512x8xf32>
    tpu.vector_store %arg5[%c0_15, %c16], %8 {strides = array<i32>} : memref<512x32xf32, #tpu.memory_space<vmem>>, vector<512x8xf32>,
    %c0_16 = arith.constant 0 : index
    %c0_17 = arith.constant 0 : index
    %c0_18 = arith.constant 0 : index
    %c0_19 = arith.constant 0 : index
    %10 = vector.load %arg1[%c0_16, %c0_17, %c0_18, %c0_19] : memref<2x18x18x8xf32, #tpu.memory_space<vmem>>, vector<2x16x16x8xf32>
    %11 = vector.shape_cast %10 : vector<2x16x16x8xf32> to vector<512x8xf32>
    %c0_20 = arith.constant 0 : index
    %c24 = arith.constant 24 : index
    %12 = vector.load %arg5[%c0_20, %c24] : memref<512x32xf32, #tpu.memory_space<vmem>>, vector<512x8xf32>
    tpu.vector_store %arg5[%c0_20, %c24], %11 {strides = array<i32>} : memref<512x32xf32, #tpu.memory_space<vmem>>, vector<512x8xf32>,
    %c0_21 = arith.constant 0 : index
    %c0_22 = arith.constant 0 : index
    %13 = vector.load %arg5[%c0_21, %c0_22] : memref<512x32xf32, #tpu.memory_space<vmem>>, vector<512x32xf32>
    %c0_23 = arith.constant 0 : index
    %c0_24 = arith.constant 0 : index
    %c0_25 = arith.constant 0 : index
    %c0_26 = arith.constant 0 : index
    %14 = vector.load %arg2[%c0_23, %c0_24, %c0_25, %c0_26] : memref<2x2x32x16xf32, #tpu.memory_space<vmem>>, vector<1x1x32x16xf32>
    %15 = vector.shape_cast %14 : vector<1x1x32x16xf32> to vector<32x16xf32>
    %cst = arith.constant dense<0.000000e+00> : vector<512x16xf32>
    %16 = tpu.matmul %13, %15, %cst {dimension_numbers = #tpu.dot_dimension_numbers<[1], [0], [0], [1], [0, 0, 1, 1], [], []>} : vector<512x32xf32>, vector<32x16xf32>, vector<512x16xf32> -> vector<512x16xf32>
    %17 = vector.broadcast %0 : vector<1x16xf32> to vector<512x16xf32>
    %18 = arith.addf %16, %17 : vector<512x16xf32>
    %19 = vector.shape_cast %18 : vector<512x16xf32> to vector<2x16x16x16xf32>
    %c0_27 = arith.constant 0 : index
    %c0_28 = arith.constant 0 : index
    %c0_29 = arith.constant 0 : index
    %c0_30 = arith.constant 0 : index
    %c0_31 = arith.constant 0 : index
    %20 = vector.load %arg4[%c0_27, %c0_28, %c0_29, %c0_30, %c0_31] : memref<2x16x2x16x32xf32, #tpu.memory_space<vmem>>, vector<2x16x1x16x16xf32>
    %21 = vector.shape_cast %20 : vector<2x16x1x16x16xf32> to vector<2x16x16x16xf32>
    %22 = vector.shape_cast %19 : vector<2x16x16x16xf32> to vector<2x16x1x16x16xf32>
    tpu.vector_store %arg4[%c0_27, %c0_28, %c0_29, %c0_30, %c0_31], %22 {strides = array<i32>} : memref<2x16x2x16x32xf32, #tpu.memory_space<vmem>>, vector<2x16x1x16x16xf32>,
    %c0_32 = arith.constant 0 : index
    %c1_33 = arith.constant 1 : index
    %c2 = arith.constant 2 : index
    %c0_34 = arith.constant 0 : index
    %23 = vector.load %arg1[%c0_32, %c1_33, %c2, %c0_34] : memref<2x18x18x8xf32, #tpu.memory_space<vmem>>, vector<2x16x16x8xf32>
    %24 = vector.shape_cast %23 : vector<2x16x16x8xf32> to vector<512x8xf32>
    %c0_35 = arith.constant 0 : index
    %c0_36 = arith.constant 0 : index
    %25 = vector.load %arg5[%c0_35, %c0_36] : memref<512x32xf32, #tpu.memory_space<vmem>>, vector<512x8xf32>
    tpu.vector_store %arg5[%c0_35, %c0_36], %24 {strides = array<i32>} : memref<512x32xf32, #tpu.memory_space<vmem>>, vector<512x8xf32>,
    %c0_37 = arith.constant 0 : index
    %c1_38 = arith.constant 1 : index
    %c1_39 = arith.constant 1 : index
    %c0_40 = arith.constant 0 : index
    %26 = vector.load %arg1[%c0_37, %c1_38, %c1_39, %c0_40] : memref<2x18x18x8xf32, #tpu.memory_space<vmem>>, vector<2x16x16x8xf32>
    %27 = vector.shape_cast %26 : vector<2x16x16x8xf32> to vector<512x8xf32>
    %c0_41 = arith.constant 0 : index
    %c8_42 = arith.constant 8 : index
    %28 = vector.load %arg5[%c0_41, %c8_42] : memref<512x32xf32, #tpu.memory_space<vmem>>, vector<512x8xf32>
    tpu.vector_store %arg5[%c0_41, %c8_42], %27 {strides = array<i32>} : memref<512x32xf32, #tpu.memory_space<vmem>>, vector<512x8xf32>,
    %c0_43 = arith.constant 0 : index
    %c0_44 = arith.constant 0 : index
    %c2_45 = arith.constant 2 : index
    %c0_46 = arith.constant 0 : index
    %29 = vector.load %arg1[%c0_43, %c0_44, %c2_45, %c0_46] : memref<2x18x18x8xf32, #tpu.memory_space<vmem>>, vector<2x16x16x8xf32>
    %30 = vector.shape_cast %29 : vector<2x16x16x8xf32> to vector<512x8xf32>
    %c0_47 = arith.constant 0 : index
    %c16_48 = arith.constant 16 : index
    %31 = vector.load %arg5[%c0_47, %c16_48] : memref<512x32xf32, #tpu.memory_space<vmem>>, vector<512x8xf32>
    tpu.vector_store %arg5[%c0_47, %c16_48], %30 {strides = array<i32>} : memref<512x32xf32, #tpu.memory_space<vmem>>, vector<512x8xf32>,
    %c0_49 = arith.constant 0 : index
    %c0_50 = arith.constant 0 : index
    %c1_51 = arith.constant 1 : index
    %c0_52 = arith.constant 0 : index
    %32 = vector.load %arg1[%c0_49, %c0_50, %c1_51, %c0_52] : memref<2x18x18x8xf32, #tpu.memory_space<vmem>>, vector<2x16x16x8xf32>
    %33 = vector.shape_cast %32 : vector<2x16x16x8xf32> to vector<512x8xf32>
    %c0_53 = arith.constant 0 : index
    %c24_54 = arith.constant 24 : index
    %34 = vector.load %arg5[%c0_53, %c24_54] : memref<512x32xf32, #tpu.memory_space<vmem>>, vector<512x8xf32>
    tpu.vector_store %arg5[%c0_53, %c24_54], %33 {strides = array<i32>} : memref<512x32xf32, #tpu.memory_space<vmem>>, vector<512x8xf32>,
    %c0_55 = arith.constant 0 : index
    %c0_56 = arith.constant 0 : index
    %35 = vector.load %arg5[%c0_55, %c0_56] : memref<512x32xf32, #tpu.memory_space<vmem>>, vector<512x32xf32>
    %c0_57 = arith.constant 0 : index
    %c1_58 = arith.constant 1 : index
    %c0_59 = arith.constant 0 : index
    %c0_60 = arith.constant 0 : index
    %36 = vector.load %arg2[%c0_57, %c1_58, %c0_59, %c0_60] : memref<2x2x32x16xf32, #tpu.memory_space<vmem>>, vector<1x1x32x16xf32>
    %37 = vector.shape_cast %36 : vector<1x1x32x16xf32> to vector<32x16xf32>
    %cst_61 = arith.constant dense<0.000000e+00> : vector<512x16xf32>
    %38 = tpu.matmul %35, %37, %cst_61 {dimension_numbers = #tpu.dot_dimension_numbers<[1], [0], [0], [1], [0, 0, 1, 1], [], []>} : vector<512x32xf32>, vector<32x16xf32>, vector<512x16xf32> -> vector<512x16xf32>
    %39 = vector.broadcast %0 : vector<1x16xf32> to vector<512x16xf32>
    %40 = arith.addf %38, %39 : vector<512x16xf32>
    %41 = vector.shape_cast %40 : vector<512x16xf32> to vector<2x16x16x16xf32>
    %c0_62 = arith.constant 0 : index
    %c0_63 = arith.constant 0 : index
    %c0_64 = arith.constant 0 : index
    %c0_65 = arith.constant 0 : index
    %c16_66 = arith.constant 16 : index
    %42 = vector.load %arg4[%c0_62, %c0_63, %c0_64, %c0_65, %c16_66] : memref<2x16x2x16x32xf32, #tpu.memory_space<vmem>>, vector<2x16x1x16x16xf32>
    %43 = vector.shape_cast %42 : vector<2x16x1x16x16xf32> to vector<2x16x16x16xf32>
    %44 = vector.shape_cast %41 : vector<2x16x16x16xf32> to vector<2x16x1x16x16xf32>
    tpu.vector_store %arg4[%c0_62, %c0_63, %c0_64, %c0_65, %c16_66], %44 {strides = array<i32>} : memref<2x16x2x16x32xf32, #tpu.memory_space<vmem>>, vector<2x16x1x16x16xf32>,
    %c0_67 = arith.constant 0 : index
    %c2_68 = arith.constant 2 : index
    %c1_69 = arith.constant 1 : index
    %c0_70 = arith.constant 0 : index
    %45 = vector.load %arg1[%c0_67, %c2_68, %c1_69, %c0_70] : memref<2x18x18x8xf32, #tpu.memory_space<vmem>>, vector<2x16x16x8xf32>
    %46 = vector.shape_cast %45 : vector<2x16x16x8xf32> to vector<512x8xf32>
    %c0_71 = arith.constant 0 : index
    %c0_72 = arith.constant 0 : index
    %47 = vector.load %arg5[%c0_71, %c0_72] : memref<512x32xf32, #tpu.memory_space<vmem>>, vector<512x8xf32>
    tpu.vector_store %arg5[%c0_71, %c0_72], %46 {strides = array<i32>} : memref<512x32xf32, #tpu.memory_space<vmem>>, vector<512x8xf32>,
    %c0_73 = arith.constant 0 : index
    %c2_74 = arith.constant 2 : index
    %c0_75 = arith.constant 0 : index
    %c0_76 = arith.constant 0 : index
    %48 = vector.load %arg1[%c0_73, %c2_74, %c0_75, %c0_76] : memref<2x18x18x8xf32, #tpu.memory_space<vmem>>, vector<2x16x16x8xf32>
    %49 = vector.shape_cast %48 : vector<2x16x16x8xf32> to vector<512x8xf32>
    %c0_77 = arith.constant 0 : index
    %c8_78 = arith.constant 8 : index
    %50 = vector.load %arg5[%c0_77, %c8_78] : memref<512x32xf32, #tpu.memory_space<vmem>>, vector<512x8xf32>
    tpu.vector_store %arg5[%c0_77, %c8_78], %49 {strides = array<i32>} : memref<512x32xf32, #tpu.memory_space<vmem>>, vector<512x8xf32>,
    %c0_79 = arith.constant 0 : index
    %c1_80 = arith.constant 1 : index
    %c1_81 = arith.constant 1 : index
    %c0_82 = arith.constant 0 : index
    %51 = vector.load %arg1[%c0_79, %c1_80, %c1_81, %c0_82] : memref<2x18x18x8xf32, #tpu.memory_space<vmem>>, vector<2x16x16x8xf32>
    %52 = vector.shape_cast %51 : vector<2x16x16x8xf32> to vector<512x8xf32>
    %c0_83 = arith.constant 0 : index
    %c16_84 = arith.constant 16 : index
    %53 = vector.load %arg5[%c0_83, %c16_84] : memref<512x32xf32, #tpu.memory_space<vmem>>, vector<512x8xf32>
    tpu.vector_store %arg5[%c0_83, %c16_84], %52 {strides = array<i32>} : memref<512x32xf32, #tpu.memory_space<vmem>>, vector<512x8xf32>,
    %c0_85 = arith.constant 0 : index
    %c1_86 = arith.constant 1 : index
    %c0_87 = arith.constant 0 : index
    %c0_88 = arith.constant 0 : index
    %54 = vector.load %arg1[%c0_85, %c1_86, %c0_87, %c0_88] : memref<2x18x18x8xf32, #tpu.memory_space<vmem>>, vector<2x16x16x8xf32>
    %55 = vector.shape_cast %54 : vector<2x16x16x8xf32> to vector<512x8xf32>
    %c0_89 = arith.constant 0 : index
    %c24_90 = arith.constant 24 : index
    %56 = vector.load %arg5[%c0_89, %c24_90] : memref<512x32xf32, #tpu.memory_space<vmem>>, vector<512x8xf32>
    tpu.vector_store %arg5[%c0_89, %c24_90], %55 {strides = array<i32>} : memref<512x32xf32, #tpu.memory_space<vmem>>, vector<512x8xf32>,
    %c0_91 = arith.constant 0 : index
    %c0_92 = arith.constant 0 : index
    %57 = vector.load %arg5[%c0_91, %c0_92] : memref<512x32xf32, #tpu.memory_space<vmem>>, vector<512x32xf32>
    %c1_93 = arith.constant 1 : index
    %c0_94 = arith.constant 0 : index
    %c0_95 = arith.constant 0 : index
    %c0_96 = arith.constant 0 : index
    %58 = vector.load %arg2[%c1_93, %c0_94, %c0_95, %c0_96] : memref<2x2x32x16xf32, #tpu.memory_space<vmem>>, vector<1x1x32x16xf32>
    %59 = vector.shape_cast %58 : vector<1x1x32x16xf32> to vector<32x16xf32>
    %cst_97 = arith.constant dense<0.000000e+00> : vector<512x16xf32>
    %60 = tpu.matmul %57, %59, %cst_97 {dimension_numbers = #tpu.dot_dimension_numbers<[1], [0], [0], [1], [0, 0, 1, 1], [], []>} : vector<512x32xf32>, vector<32x16xf32>, vector<512x16xf32> -> vector<512x16xf32>
    %61 = vector.broadcast %0 : vector<1x16xf32> to vector<512x16xf32>
    %62 = arith.addf %60, %61 : vector<512x16xf32>
    %63 = vector.shape_cast %62 : vector<512x16xf32> to vector<2x16x16x16xf32>
    %c0_98 = arith.constant 0 : index
    %c0_99 = arith.constant 0 : index
    %c1_100 = arith.constant 1 : index
    %c0_101 = arith.constant 0 : index
    %c0_102 = arith.constant 0 : index
    %64 = vector.load %arg4[%c0_98, %c0_99, %c1_100, %c0_101, %c0_102] : memref<2x16x2x16x32xf32, #tpu.memory_space<vmem>>, vector<2x16x1x16x16xf32>
    %65 = vector.shape_cast %64 : vector<2x16x1x16x16xf32> to vector<2x16x16x16xf32>
    %66 = vector.shape_cast %63 : vector<2x16x16x16xf32> to vector<2x16x1x16x16xf32>
    tpu.vector_store %arg4[%c0_98, %c0_99, %c1_100, %c0_101, %c0_102], %66 {strides = array<i32>} : memref<2x16x2x16x32xf32, #tpu.memory_space<vmem>>, vector<2x16x1x16x16xf32>,
    %c0_103 = arith.constant 0 : index
    %c2_104 = arith.constant 2 : index
    %c2_105 = arith.constant 2 : index
    %c0_106 = arith.constant 0 : index
    %67 = vector.load %arg1[%c0_103, %c2_104, %c2_105, %c0_106] : memref<2x18x18x8xf32, #tpu.memory_space<vmem>>, vector<2x16x16x8xf32>
    %68 = vector.shape_cast %67 : vector<2x16x16x8xf32> to vector<512x8xf32>
    %c0_107 = arith.constant 0 : index
    %c0_108 = arith.constant 0 : index
    %69 = vector.load %arg5[%c0_107, %c0_108] : memref<512x32xf32, #tpu.memory_space<vmem>>, vector<512x8xf32>
    tpu.vector_store %arg5[%c0_107, %c0_108], %68 {strides = array<i32>} : memref<512x32xf32, #tpu.memory_space<vmem>>, vector<512x8xf32>,
    %c0_109 = arith.constant 0 : index
    %c2_110 = arith.constant 2 : index
    %c1_111 = arith.constant 1 : index
    %c0_112 = arith.constant 0 : index
    %70 = vector.load %arg1[%c0_109, %c2_110, %c1_111, %c0_112] : memref<2x18x18x8xf32, #tpu.memory_space<vmem>>, vector<2x16x16x8xf32>
    %71 = vector.shape_cast %70 : vector<2x16x16x8xf32> to vector<512x8xf32>
    %c0_113 = arith.constant 0 : index
    %c8_114 = arith.constant 8 : index
    %72 = vector.load %arg5[%c0_113, %c8_114] : memref<512x32xf32, #tpu.memory_space<vmem>>, vector<512x8xf32>
    tpu.vector_store %arg5[%c0_113, %c8_114], %71 {strides = array<i32>} : memref<512x32xf32, #tpu.memory_space<vmem>>, vector<512x8xf32>,
    %c0_115 = arith.constant 0 : index
    %c1_116 = arith.constant 1 : index
    %c2_117 = arith.constant 2 : index
    %c0_118 = arith.constant 0 : index
    %73 = vector.load %arg1[%c0_115, %c1_116, %c2_117, %c0_118] : memref<2x18x18x8xf32, #tpu.memory_space<vmem>>, vector<2x16x16x8xf32>
    %74 = vector.shape_cast %73 : vector<2x16x16x8xf32> to vector<512x8xf32>
    %c0_119 = arith.constant 0 : index
    %c16_120 = arith.constant 16 : index
    %75 = vector.load %arg5[%c0_119, %c16_120] : memref<512x32xf32, #tpu.memory_space<vmem>>, vector<512x8xf32>
    tpu.vector_store %arg5[%c0_119, %c16_120], %74 {strides = array<i32>} : memref<512x32xf32, #tpu.memory_space<vmem>>, vector<512x8xf32>,
    %c0_121 = arith.constant 0 : index
    %c1_122 = arith.constant 1 : index
    %c1_123 = arith.constant 1 : index
    %c0_124 = arith.constant 0 : index
    %76 = vector.load %arg1[%c0_121, %c1_122, %c1_123, %c0_124] : memref<2x18x18x8xf32, #tpu.memory_space<vmem>>, vector<2x16x16x8xf32>
    %77 = vector.shape_cast %76 : vector<2x16x16x8xf32> to vector<512x8xf32>
    %c0_125 = arith.constant 0 : index
    %c24_126 = arith.constant 24 : index
    %78 = vector.load %arg5[%c0_125, %c24_126] : memref<512x32xf32, #tpu.memory_space<vmem>>, vector<512x8xf32>
    tpu.vector_store %arg5[%c0_125, %c24_126], %77 {strides = array<i32>} : memref<512x32xf32, #tpu.memory_space<vmem>>, vector<512x8xf32>,
    %c0_127 = arith.constant 0 : index
    %c0_128 = arith.constant 0 : index
    %79 = vector.load %arg5[%c0_127, %c0_128] : memref<512x32xf32, #tpu.memory_space<vmem>>, vector<512x32xf32>
    %c1_129 = arith.constant 1 : index
    %c1_130 = arith.constant 1 : index
    %c0_131 = arith.constant 0 : index
    %c0_132 = arith.constant 0 : index
    %80 = vector.load %arg2[%c1_129, %c1_130, %c0_131, %c0_132] : memref<2x2x32x16xf32, #tpu.memory_space<vmem>>, vector<1x1x32x16xf32>
    %81 = vector.shape_cast %80 : vector<1x1x32x16xf32> to vector<32x16xf32>
    %cst_133 = arith.constant dense<0.000000e+00> : vector<512x16xf32>
    %82 = tpu.matmul %79, %81, %cst_133 {dimension_numbers = #tpu.dot_dimension_numbers<[1], [0], [0], [1], [0, 0, 1, 1], [], []>} : vector<512x32xf32>, vector<32x16xf32>, vector<512x16xf32> -> vector<512x16xf32>
    %83 = vector.broadcast %0 : vector<1x16xf32> to vector<512x16xf32>
    %84 = arith.addf %82, %83 : vector<512x16xf32>
    %85 = vector.shape_cast %84 : vector<512x16xf32> to vector<2x16x16x16xf32>
    %c0_134 = arith.constant 0 : index
    %c0_135 = arith.constant 0 : index
    %c1_136 = arith.constant 1 : index
    %c0_137 = arith.constant 0 : index
    %c16_138 = arith.constant 16 : index
    %86 = vector.load %arg4[%c0_134, %c0_135, %c1_136, %c0_137, %c16_138] : memref<2x16x2x16x32xf32, #tpu.memory_space<vmem>>, vector<2x16x1x16x16xf32>
    %87 = vector.shape_cast %86 : vector<2x16x1x16x16xf32> to vector<2x16x16x16xf32>
    %88 = vector.shape_cast %85 : vector<2x16x16x16xf32> to vector<2x16x1x16x16xf32>
    tpu.vector_store %arg4[%c0_134, %c0_135, %c1_136, %c0_137, %c16_138], %88 {strides = array<i32>} : memref<2x16x2x16x32xf32, #tpu.memory_space<vmem>>, vector<2x16x1x16x16xf32>,
    return
  }
  func.func @transform_0(%arg0: i32) -> (i32, i32, i32, i32) {
    %c0_i32 = arith.constant 0 : i32
    %c0_i32_0 = arith.constant 0 : i32
    %c0_i32_1 = arith.constant 0 : i32
    %c0_i32_2 = arith.constant 0 : i32
    return %arg0, %c0_i32, %c0_i32_0, %c0_i32_1 : i32, i32, i32, i32
  }
  func.func @transform_1(%arg0: i32) -> (i32, i32, i32, i32) {
    %c0_i32 = arith.constant 0 : i32
    %c0_i32_0 = arith.constant 0 : i32
    %c0_i32_1 = arith.constant 0 : i32
    %c0_i32_2 = arith.constant 0 : i32
    %c0_i32_3 = arith.constant 0 : i32
    return %c0_i32, %c0_i32_0, %c0_i32_1, %c0_i32_2 : i32, i32, i32, i32
  }
  func.func @transform_2(%arg0: i32) -> (i32, i32) {
    %c0_i32 = arith.constant 0 : i32
    %c0_i32_0 = arith.constant 0 : i32
    %c0_i32_1 = arith.constant 0 : i32
    return %c0_i32, %c0_i32_0 : i32, i32
  }
  func.func @transform_3(%arg0: i32) -> (i32, i32, i32, i32, i32) {
    %c0_i32 = arith.constant 0 : i32
    %c0_i32_0 = arith.constant 0 : i32
    %c0_i32_1 = arith.constant 0 : i32
    %c0_i32_2 = arith.constant 0 : i32
    %c0_i32_3 = arith.constant 0 : i32
    return %arg0, %c0_i32, %c0_i32_0, %c0_i32_1, %c0_i32_2 : i32, i32, i32, i32, i32
  }
}

</mosaic_0001>

<bundles_post_ra>
// kernel: tpu_custom_call.1
= control target key start
LH: loop header
LB: loop body
LE: loop exit
PB: predicated region body
PF: predicated region fallthrough
CT: control target
= control target key end

     0   :  { %s10308_s16 = smov 8   ;;  %vm81_vm0 = vcmask 64512   ;;  %s16422_s0 = inlined_call_operand.vmem [shape: f32[2,18,18,8], index: 0, kind: input, shape index: {}]   ;;  %s16423_s1 = inlined_call_operand.vmem [shape: f32[2,2,32,16], index: 1, kind: input, shape index: {}]   ;;  %s16424_s2 = inlined_call_operand.vmem [shape: f32[1,16], index: 2, kind: input, shape index: {}]   ;;  %s16425_s3 = inlined_call_operand.hbm [shape: f32[2,16,2,16,32], index: 3, kind: output, shape index: {}]  }
   0x1   :  { %v8583_v0 = vld [vmem:[%s16422_s0 + $0x18] sm:$0xff]  ;;  %v8585_v1 = vld [vmem:[%s16422_s0 + $0x30] sm:$0xff]  ;;  %v8584_v2 = vld [vmem:[%s16422_s0 + $0x20] sm:$0xff] }
   0x2   :  { %274 = vrot.lane.b32.xlu0 %v8583_v0, %s10308_s16  ;;  %278 = vrot.lane.b32.xlu1 %v8585_v1, %s10308_s16  ;;  %v8586_v3 = vld [vmem:[%s16422_s0 + $0x38] sm:$0xff]  ;;  %v8587_v4 = vld [vmem:[%s16422_s0 + $0x48] sm:$0xff] }
   0x3   :  { %v8588_v5 = vld [vmem:[%s16422_s0 + $0x50] sm:$0xff]  ;;  %v8589_v6 = vld [vmem:[%s16422_s0 + $0x60] sm:$0xff]  ;;  %v8590_v7 = vld [vmem:[%s16422_s0 + $0x68] sm:$0xff] }
   0x4   :  { %v8591_v8 = vld [vmem:[%s16422_s0 + $0x78] sm:$0xff]  ;;  %v8592_v9 = vld [vmem:[%s16422_s0 + $0x80] sm:$0xff]  ;;  %v8593_v10 = vld [vmem:[%s16422_s0 + $0x90] sm:$0xff] }
   0x5   :  { %v8594_v11 = vld [vmem:[%s16422_s0 + $0x98] sm:$0xff]  ;;  %v8595_v14 = vld [vmem:[%s16422_s0 + $0xa8] sm:$0xff]  ;;  %v8596_v15 = vld [vmem:[%s16422_s0 + $0xb0] sm:$0xff] }
   0x6   :  { %276 = vrot.lane.b32.xlu0 %v8584_v2, %s10308_s16  ;;  %280 = vrot.lane.b32.xlu1 %v8586_v3, %s10308_s16  ;;  %v10384_v12 = vld [vmem:[%s16422_s0 + $0x19] sm:$0xff]  ;;  %v10389_v13 = vld [vmem:[%s16422_s0 + $0x31] sm:$0xff] }
   0x7   :  { %82 = vst.msk [vmem:[#allocation2] sm:$0xff] %vm81_vm0, %v10384_v12  ;;  %84 = vst.msk [vmem:[#allocation2 + $0x10] sm:$0xff] %vm81_vm0, %v10389_v13  ;;  %v10404_v16 = vld [vmem:[%s16422_s0 + $0x21] sm:$0xff]  ;;  %v10411_v17 = vld [vmem:[%s16422_s0 + $0x39] sm:$0xff] }
   0x8   :  { %83 = vst.msk [vmem:[#allocation2 + $0x8] sm:$0xff] %vm81_vm0, %v10404_v16  ;;  %85 = vst.msk [vmem:[#allocation2 + $0x18] sm:$0xff] %vm81_vm0, %v10411_v17  ;;  %v10418_v18 = vld [vmem:[%s16422_s0 + $0x49] sm:$0xff]  ;;  %v10423_v19 = vld [vmem:[%s16422_s0 + $0x51] sm:$0xff] }
   0x9   :  { %86 = vst.msk [vmem:[#allocation2 + $0x20] sm:$0xff] %vm81_vm0, %v10418_v18  ;;  %87 = vst.msk [vmem:[#allocation2 + $0x28] sm:$0xff] %vm81_vm0, %v10423_v19  ;;  %v10434_v20 = vld [vmem:[%s16422_s0 + $0x61] sm:$0xff]  ;;  %v10447_v23 = vld [vmem:[%s16422_s0 + $0x69] sm:$0xff] }
   0xa   :  { %282 = vrot.lane.b32.xlu0 %v8587_v4, %s10308_s16  ;;  %284 = vrot.lane.b32.xlu1 %v8588_v5, %s10308_s16  ;;  %v8597_v21 = vld [vmem:[%s16422_s0 + $0xc0] sm:$0xff]  ;;  %v8598_v22 = vld [vmem:[%s16422_s0 + $0xc8] sm:$0xff]  ;;  %88 = vst.msk [vmem:[#allocation2 + $0x30] sm:$0xff] %vm81_vm0, %v10434_v20  ;;  %89 = vst.msk [vmem:[#allocation2 + $0x38] sm:$0xff] %vm81_vm0, %v10447_v23 }
   0xb   :  { %v10454_v24 = vld [vmem:[%s16422_s0 + $0x79] sm:$0xff]  ;;  %v10459_v25 = vld [vmem:[%s16422_s0 + $0x81] sm:$0xff]  ;;  %v10464_v26 = vld [vmem:[%s16422_s0 + $0x91] sm:$0xff] }
   0xc   :  { %v8599_v27 = vld [vmem:[%s16422_s0 + $0xd8] sm:$0xff]  ;;  %v8600_v28 = vld [vmem:[%s16422_s0 + $0xe0] sm:$0xff]  ;;  %90 = vst.msk [vmem:[#allocation2 + $0x40] sm:$0xff] %vm81_vm0, %v10454_v24  ;;  %91 = vst.msk [vmem:[#allocation2 + $0x48] sm:$0xff] %vm81_vm0, %v10459_v25 }
   0xd   :  { %92 = vst.msk [vmem:[#allocation2 + $0x50] sm:$0xff] %vm81_vm0, %v10464_v26  ;;  %v10481_v29 = vld [vmem:[%s16422_s0 + $0x99] sm:$0xff]  ;;  %v10486_v30 = vld [vmem:[%s16422_s0 + $0xa9] sm:$0xff]  ;;  %v10491_v31 = vld [vmem:[%s16422_s0 + $0xb1] sm:$0xff] }
   0xe   :  { %286 = vrot.lane.b32.xlu0 %v8589_v6, %s10308_s16  ;;  %288 = vrot.lane.b32.xlu1 %v8590_v7, %s10308_s16  ;;  %93 = vst.msk [vmem:[#allocation2 + $0x58] sm:$0xff] %vm81_vm0, %v10481_v29  ;;  %94 = vst.msk [vmem:[#allocation2 + $0x60] sm:$0xff] %vm81_vm0, %v10486_v30  ;;  %v10504_v32 = vld [vmem:[%s16422_s0 + $0xc1] sm:$0xff]  ;;  %v10509_v33 = vld [vmem:[%s16422_s0 + $0xc9] sm:$0xff] }
   0xf   :  { %95 = vst.msk [vmem:[#allocation2 + $0x68] sm:$0xff] %vm81_vm0, %v10491_v31  ;;  %96 = vst.msk [vmem:[#allocation2 + $0x70] sm:$0xff] %vm81_vm0, %v10504_v32  ;;  %v10518_v34 = vld [vmem:[%s16422_s0 + $0xd9] sm:$0xff]  ;;  %v10523_v35 = vld [vmem:[%s16422_s0 + $0xe1] sm:$0xff] }
  0x10   :  { %97 = vst.msk [vmem:[#allocation2 + $0x78] sm:$0xff] %vm81_vm0, %v10509_v33  ;;  %v10528_v36 = vld [vmem:[%s16422_s0 + $0xf1] sm:$0xff]  ;;  %98 = vst.msk [vmem:[#allocation2 + $0x80] sm:$0xff] %vm81_vm0, %v10518_v34  ;;  %v10539_v37 = vld [vmem:[%s16422_s0 + $0xf9] sm:$0xff] }
  0x11   :  { %99 = vst.msk [vmem:[#allocation2 + $0x88] sm:$0xff] %vm81_vm0, %v10523_v35  ;;  %100 = vst.msk [vmem:[#allocation2 + $0x90] sm:$0xff] %vm81_vm0, %v10528_v36  ;;  %v10544_v38 = vld [vmem:[%s16422_s0 + $0x109] sm:$0xff]  ;;  %v10549_v39 = vld [vmem:[%s16422_s0 + $0x111] sm:$0xff] }
  0x12   :  { %290 = vrot.lane.b32.xlu0 %v8591_v8, %s10308_s16  ;;  %292 = vrot.lane.b32.xlu1 %v8592_v9, %s10308_s16  ;;  %101 = vst.msk [vmem:[#allocation2 + $0x98] sm:$0xff] %vm81_vm0, %v10539_v37  ;;  %102 = vst.msk [vmem:[#allocation2 + $0xa0] sm:$0xff] %vm81_vm0, %v10544_v38  ;;  %v10560_v40 = vld [vmem:[%s16422_s0 + $0x121] sm:$0xff]  ;;  %v10565_v41 = vld [vmem:[%s16422_s0 + $0x129] sm:$0xff] }
  0x13   :  { %103 = vst.msk [vmem:[#allocation2 + $0xa8] sm:$0xff] %vm81_vm0, %v10549_v39 }
  0x16   :  { %294 = vrot.lane.b32.xlu0 %v8593_v10, %s10308_s16  ;;  %296 = vrot.lane.b32.xlu1 %v8594_v11, %s10308_s16 }
  0x1a   :  { %298 = vrot.lane.b32.xlu0 %v8595_v14, %s10308_s16  ;;  %300 = vrot.lane.b32.xlu1 %v8596_v15, %s10308_s16 }
  0x1e   :  { %302 = vrot.lane.b32.xlu0 %v8597_v21, %s10308_s16  ;;  %304 = vrot.lane.b32.xlu1 %v8598_v22, %s10308_s16 }
  0x1f   :  { %8 = vsyncpa [#allocation4], 0  ;;  %104 = vst.msk [vmem:[#allocation2 + $0xb0] sm:$0xff] %vm81_vm0, %v10560_v40  ;;  %v8601_v42 = vld [vmem:[%s16422_s0 + $0xf0] sm:$0xff]  ;;  %v8602_v43 = vld [vmem:[%s16422_s0 + $0xf8] sm:$0xff]  ;;  %vm466_vm1 = vcmask 130112  }
  0x20   :  { %105 = vst.msk [vmem:[#allocation2 + $0xb8] sm:$0xff] %vm81_vm0, %v10565_v41  ;;  %v10582_v44 = vld [vmem:[%s16422_s0 + $0x139] sm:$0xff]  ;;  %v10589_v45 = vld [vmem:[%s16422_s0 + $0x141] sm:$0xff]  ;;  %v8604_v47 = vld [vmem:[%s16422_s0 + $0x110] sm:$0xff]  ;;  %s10309_s12 = smov 16   ;;  %vm851_vm2 = vcmask 195712  }
  0x21   :  { %106 = vst.msk [vmem:[#allocation2 + $0xc0] sm:$0xff] %vm81_vm0, %v10582_v44  ;;  %107 = vst.msk [vmem:[#allocation2 + $0xc8] sm:$0xff] %vm81_vm0, %v10589_v45  ;;  %v8603_v46 = vld [vmem:[%s16422_s0 + $0x108] sm:$0xff]  ;;  %v10604_v48 = vld [vmem:[%s16422_s0 + $0x151] sm:$0xff]  ;;  %s10310_s30 = smov 24   ;;  %vm1236_vm3 = vcmask 261312  }
  0x22   :  { %306 = vrot.lane.b32.xlu0 %v8599_v27, %s10308_s16  ;;  %308 = vrot.lane.b32.xlu1 %v8600_v28, %s10308_s16  ;;  %108 = vst.msk [vmem:[#allocation2 + $0xd0] sm:$0xff] %vm81_vm0, %v10604_v48  ;;  %v10611_v49 = vld [vmem:[%s16422_s0 + $0x159] sm:$0xff]  ;;  %v8606_v51 = vld [vmem:[%s16422_s0 + $0x128] sm:$0xff]  ;;  %vm1375_vm4 = vcmask 261120   ;;  %vm1953_vm5 = vcmask 130048   ;;  %vm4200_vm6 = vcmask 261248  }
  0x23   :  { %109 = vst.msk [vmem:[#allocation2 + $0xd8] sm:$0xff] %vm81_vm0, %v10611_v49  ;;  %v8605_v50 = vld [vmem:[%s16422_s0 + $0x120] sm:$0xff]  ;;  %v10626_v52 = vld [vmem:[%s16422_s0 + $0x169] sm:$0xff]  ;;  %v10633_v53 = vld [vmem:[%s16422_s0 + $0x171] sm:$0xff] }
  0x24   :  { %110 = vst.msk [vmem:[#allocation2 + $0xe0] sm:$0xff] %vm81_vm0, %v10626_v52  ;;  %111 = vst.msk [vmem:[#allocation2 + $0xe8] sm:$0xff] %vm81_vm0, %v10633_v53  ;;  %v8607_v54 = vld [vmem:[%s16422_s0 + $0x138] sm:$0xff]  ;;  %v8608_v55 = vld [vmem:[%s16422_s0 + $0x140] sm:$0xff] }
  0x25   :  { %v8549_v56 = vld [vmem:[%s16422_s0 + $0x181] sm:$0xff]  ;;  %v8550_v57 = vld [vmem:[%s16422_s0 + $0x189] sm:$0xff]  ;;  %v8610_v59 = vld [vmem:[%s16422_s0 + $0x158] sm:$0xff] }
  0x26   :  { %310 = vrot.lane.b32.xlu0 %v8601_v42, %s10308_s16  ;;  %312 = vrot.lane.b32.xlu1 %v8602_v43, %s10308_s16  ;;  %112 = vst.msk [vmem:[#allocation2 + $0xf0] sm:$0xff] %vm81_vm0, %v8549_v56  ;;  %113 = vst.msk [vmem:[#allocation2 + $0xf8] sm:$0xff] %vm81_vm0, %v8550_v57  ;;  %v8609_v58 = vld [vmem:[%s16422_s0 + $0x150] sm:$0xff]  ;;  %v8611_v62 = vld [vmem:[%s16422_s0 + $0x168] sm:$0xff] }
  0x27   :  { %v10664_v60 = vld [vmem:[%s16422_s0 + $0x1c9] sm:$0xff]  ;;  %v10671_v61 = vld [vmem:[%s16422_s0 + $0x1d1] sm:$0xff]  ;;  %v10686_v0 = vld [vmem:[%s16422_s0 + $0x1e1] sm:$0xff] }
  0x28   :  { %114 = vst.msk [vmem:[#allocation2 + $0x100] sm:$0xff] %vm81_vm0, %v10664_v60  ;;  %115 = vst.msk [vmem:[#allocation2 + $0x108] sm:$0xff] %vm81_vm0, %v10671_v61  ;;  %v8612_v63 = vld [vmem:[%s16422_s0 + $0x170] sm:$0xff]  ;;  %v8613_v2 = vld [vmem:[%s16422_s0 + $0x180] sm:$0xff] }
  0x29   :  { %116 = vst.msk [vmem:[#allocation2 + $0x110] sm:$0xff] %vm81_vm0, %v10686_v0  ;;  %v10693_v1 = vld [vmem:[%s16422_s0 + $0x1e9] sm:$0xff]  ;;  %v10708_v4 = vld [vmem:[%s16422_s0 + $0x1f9] sm:$0xff]  ;;  %v10715_v5 = vld [vmem:[%s16422_s0 + $0x201] sm:$0xff] }
  0x2a   :  { %314 = vrot.lane.b32.xlu0 %v8603_v46, %s10308_s16  ;;  %316 = vrot.lane.b32.xlu1 %v8604_v47, %s10308_s16  ;;  %117 = vst.msk [vmem:[#allocation2 + $0x118] sm:$0xff] %vm81_vm0, %v10693_v1  ;;  %v8614_v3 = vld [vmem:[%s16422_s0 + $0x188] sm:$0xff]  ;;  %118 = vst.msk [vmem:[#allocation2 + $0x120] sm:$0xff] %vm81_vm0, %v10708_v4  ;;  %v8616_v7 = vld [vmem:[%s16422_s0 + $0x1d0] sm:$0xff] }
  0x2b   :  { %119 = vst.msk [vmem:[#allocation2 + $0x128] sm:$0xff] %vm81_vm0, %v10715_v5  ;;  %v8615_v6 = vld [vmem:[%s16422_s0 + $0x1c8] sm:$0xff]  ;;  %v10730_v8 = vld [vmem:[%s16422_s0 + $0x211] sm:$0xff]  ;;  %v10737_v9 = vld [vmem:[%s16422_s0 + $0x219] sm:$0xff] }
  0x2c   :  { %120 = vst.msk [vmem:[#allocation2 + $0x130] sm:$0xff] %vm81_vm0, %v10730_v8  ;;  %121 = vst.msk [vmem:[#allocation2 + $0x138] sm:$0xff] %vm81_vm0, %v10737_v9  ;;  %v8617_v10 = vld [vmem:[%s16422_s0 + $0x1e0] sm:$0xff]  ;;  %v8618_v11 = vld [vmem:[%s16422_s0 + $0x1e8] sm:$0xff] }
  0x2d   :  { %v10752_v14 = vld [vmem:[%s16422_s0 + $0x229] sm:$0xff]  ;;  %v10759_v15 = vld [vmem:[%s16422_s0 + $0x231] sm:$0xff]  ;;  %v8620_v22 = vld [vmem:[%s16422_s0 + $0x200] sm:$0xff] }
  0x2e   :  { %318 = vrot.lane.b32.xlu0 %v8605_v50, %s10308_s16  ;;  %320 = vrot.lane.b32.xlu1 %v8606_v51, %s10308_s16  ;;  %122 = vst.msk [vmem:[#allocation2 + $0x140] sm:$0xff] %vm81_vm0, %v10752_v14  ;;  %123 = vst.msk [vmem:[#allocation2 + $0x148] sm:$0xff] %vm81_vm0, %v10759_v15  ;;  %v8619_v21 = vld [vmem:[%s16422_s0 + $0x1f8] sm:$0xff]  ;;  %v10774_v27 = vld [vmem:[%s16422_s0 + $0x241] sm:$0xff] }
  0x2f   :  { %124 = vst.msk [vmem:[#allocation2 + $0x150] sm:$0xff] %vm81_vm0, %v10774_v27  ;;  %v10781_v28 = vld [vmem:[%s16422_s0 + $0x249] sm:$0xff]  ;;  %v8622_v43 = vld [vmem:[%s16422_s0 + $0x218] sm:$0xff]  ;;  %v10803_v47 = vld [vmem:[%s16422_s0 + $0x261] sm:$0xff] }
  0x30   :  { %125 = vst.msk [vmem:[#allocation2 + $0x158] sm:$0xff] %vm81_vm0, %v10781_v28  ;;  %v8621_v42 = vld [vmem:[%s16422_s0 + $0x210] sm:$0xff]  ;;  %v10796_v46 = vld [vmem:[%s16422_s0 + $0x259] sm:$0xff]  ;;  %127 = vst.msk [vmem:[#allocation2 + $0x168] sm:$0xff] %vm81_vm0, %v10803_v47 }
  0x31   :  { %126 = vst.msk [vmem:[#allocation2 + $0x160] sm:$0xff] %vm81_vm0, %v10796_v46  ;;  %v8623_v50 = vld [vmem:[%s16422_s0 + $0x228] sm:$0xff]  ;;  %v8624_v51 = vld [vmem:[%s16422_s0 + $0x230] sm:$0xff]  ;;  %v8625_v56 = vld [vmem:[%s16422_s0 + $0x240] sm:$0xff] }
  0x32   :  { %322 = vrot.lane.b32.xlu0 %v8607_v54, %s10308_s16  ;;  %324 = vrot.lane.b32.xlu1 %v8608_v55, %s10308_s16  ;;  %v10818_v54 = vld [vmem:[%s16422_s0 + $0x271] sm:$0xff]  ;;  %v10825_v55 = vld [vmem:[%s16422_s0 + $0x279] sm:$0xff] }
  0x33   :  { %128 = vst.msk [vmem:[#allocation2 + $0x170] sm:$0xff] %vm81_vm0, %v10818_v54  ;;  %129 = vst.msk [vmem:[#allocation2 + $0x178] sm:$0xff] %vm81_vm0, %v10825_v55  ;;  %v8626_v57 = vld [vmem:[%s16422_s0 + $0x248] sm:$0xff] }
  0x36   :  { %326 = vrot.lane.b32.xlu0 %v8609_v58, %s10308_s16  ;;  %328 = vrot.lane.b32.xlu1 %v8610_v59, %s10308_s16  ;;  %v10840_v58 = vld [vmem:[%s16422_s0 + $0x289] sm:$0xff]  ;;  %v10847_v59 = vld [vmem:[%s16422_s0 + $0x291] sm:$0xff] }
  0x37   :  { %130 = vst.msk [vmem:[#allocation2 + $0x180] sm:$0xff] %vm81_vm0, %v10840_v58  ;;  %131 = vst.msk [vmem:[#allocation2 + $0x188] sm:$0xff] %vm81_vm0, %v10847_v59 }
  0x3a   :  { %330 = vrot.lane.b32.xlu0 %v8611_v62, %s10308_s16  ;;  %332 = vrot.lane.b32.xlu1 %v8612_v63, %s10308_s16  ;;  %v8627_v62 = vld [vmem:[%s16422_s0 + $0x258] sm:$0xff]  ;;  %v8628_v63 = vld [vmem:[%s16422_s0 + $0x260] sm:$0xff] }
  0x3e   :  { %334 = vrot.lane.b32.xlu0 %v8613_v2, %s10308_s16  ;;  %336 = vrot.lane.b32.xlu1 %v8614_v3, %s10308_s16  ;;  %v10862_v2 = vld [vmem:[%s16422_s0 + $0x2a1] sm:$0xff]  ;;  %v10869_v3 = vld [vmem:[%s16422_s0 + $0x2a9] sm:$0xff] }
  0x3f   :  { %132 = vst.msk [vmem:[#allocation2 + $0x190] sm:$0xff] %vm81_vm0, %v10862_v2  ;;  %133 = vst.msk [vmem:[#allocation2 + $0x198] sm:$0xff] %vm81_vm0, %v10869_v3 }
  0x42   :  { %338 = vrot.lane.b32.xlu0 %v8615_v6, %s10308_s16  ;;  %340 = vrot.lane.b32.xlu1 %v8616_v7, %s10308_s16  ;;  %v8629_v6 = vld [vmem:[%s16422_s0 + $0x270] sm:$0xff]  ;;  %v8630_v7 = vld [vmem:[%s16422_s0 + $0x278] sm:$0xff] }
  0x46   :  { %342 = vrot.lane.b32.xlu0 %v8617_v10, %s10308_s16  ;;  %344 = vrot.lane.b32.xlu1 %v8618_v11, %s10308_s16  ;;  %v10884_v10 = vld [vmem:[%s16422_s0 + $0x2b9] sm:$0xff]  ;;  %v10891_v11 = vld [vmem:[%s16422_s0 + $0x2c1] sm:$0xff] }
  0x47   :  { %134 = vst.msk [vmem:[#allocation2 + $0x1a0] sm:$0xff] %vm81_vm0, %v10884_v10  ;;  %135 = vst.msk [vmem:[#allocation2 + $0x1a8] sm:$0xff] %vm81_vm0, %v10891_v11 }
  0x4a   :  { %346 = vrot.lane.b32.xlu0 %v8619_v21, %s10308_s16  ;;  %348 = vrot.lane.b32.xlu1 %v8620_v22, %s10308_s16  ;;  %v8631_v21 = vld [vmem:[%s16422_s0 + $0x288] sm:$0xff]  ;;  %v8632_v22 = vld [vmem:[%s16422_s0 + $0x290] sm:$0xff] }
  0x4e   :  { %350 = vrot.lane.b32.xlu0 %v8621_v42, %s10308_s16  ;;  %352 = vrot.lane.b32.xlu1 %v8622_v43, %s10308_s16  ;;  %v10906_v42 = vld [vmem:[%s16422_s0 + $0x2d1] sm:$0xff]  ;;  %v10913_v43 = vld [vmem:[%s16422_s0 + $0x2d9] sm:$0xff] }
  0x4f   :  { %136 = vst.msk [vmem:[#allocation2 + $0x1b0] sm:$0xff] %vm81_vm0, %v10906_v42  ;;  %137 = vst.msk [vmem:[#allocation2 + $0x1b8] sm:$0xff] %vm81_vm0, %v10913_v43 }
  0x52   :  { %354 = vrot.lane.b32.xlu0 %v8623_v50, %s10308_s16  ;;  %356 = vrot.lane.b32.xlu1 %v8624_v51, %s10308_s16  ;;  %v8633_v50 = vld [vmem:[%s16422_s0 + $0x2a0] sm:$0xff]  ;;  %v8634_v51 = vld [vmem:[%s16422_s0 + $0x2a8] sm:$0xff] }
  0x56   :  { %358 = vrot.lane.b32.xlu0 %v8625_v56, %s10308_s16  ;;  %360 = vrot.lane.b32.xlu1 %v8626_v57, %s10308_s16  ;;  %v10928_v56 = vld [vmem:[%s16422_s0 + $0x2e9] sm:$0xff]  ;;  %v10935_v57 = vld [vmem:[%s16422_s0 + $0x2f1] sm:$0xff] }
  0x57   :  { %138 = vst.msk [vmem:[#allocation2 + $0x1c0] sm:$0xff] %vm81_vm0, %v10928_v56  ;;  %139 = vst.msk [vmem:[#allocation2 + $0x1c8] sm:$0xff] %vm81_vm0, %v10935_v57 }
  0x5a   :  { %362 = vrot.lane.b32.xlu0 %v8627_v62, %s10308_s16  ;;  %364 = vrot.lane.b32.xlu1 %v8628_v63, %s10308_s16  ;;  %v8635_v62 = vld [vmem:[%s16422_s0 + $0x2b8] sm:$0xff]  ;;  %v8636_v63 = vld [vmem:[%s16422_s0 + $0x2c0] sm:$0xff] }
  0x5e   :  { %366 = vrot.lane.b32.xlu0 %v8629_v6, %s10308_s16  ;;  %368 = vrot.lane.b32.xlu1 %v8630_v7, %s10308_s16  ;;  %v10950_v6 = vld [vmem:[%s16422_s0 + $0x301] sm:$0xff]  ;;  %v10957_v7 = vld [vmem:[%s16422_s0 + $0x309] sm:$0xff] }
  0x5f   :  { %16439 = vst [vmem:[#allocation6_spill] sm:$0xff] %v10950_v6  ;;  %140 = vst.msk [vmem:[#allocation2 + $0x1d0] sm:$0xff] %vm81_vm0, %v10950_v6 }
  0x60   :  { %16440 = vst [vmem:[#allocation7_spill] sm:$0xff] %v10957_v7  ;;  %141 = vst.msk [vmem:[#allocation2 + $0x1d8] sm:$0xff] %vm81_vm0, %v10957_v7 }
  0x62   :  { %370 = vrot.lane.b32.xlu0 %v8631_v21, %s10308_s16  ;;  %372 = vrot.lane.b32.xlu1 %v8632_v22, %s10308_s16  ;;  %v8637_v21 = vld [vmem:[%s16422_s0 + $0x2d0] sm:$0xff]  ;;  %v8638_v22 = vld [vmem:[%s16422_s0 + $0x2d8] sm:$0xff] }
  0x66   :  { %374 = vrot.lane.b32.xlu0 %v8633_v50, %s10308_s16  ;;  %376 = vrot.lane.b32.xlu1 %v8634_v51, %s10308_s16  ;;  %v10972_v50 = vld [vmem:[%s16422_s0 + $0x319] sm:$0xff]  ;;  %v10979_v51 = vld [vmem:[%s16422_s0 + $0x321] sm:$0xff] }
  0x67   :  { %16441 = vst [vmem:[#allocation8_spill] sm:$0xff] %v10972_v50  ;;  %142 = vst.msk [vmem:[#allocation2 + $0x1e0] sm:$0xff] %vm81_vm0, %v10972_v50  ;;  %v8581_v50 = vld [vmem:[%s16422_s0 + $0x331] sm:$0xff] }
  0x68   :  { %16442 = vst [vmem:[#allocation9_spill] sm:$0xff] %v10979_v51  ;;  %143 = vst.msk [vmem:[#allocation2 + $0x1e8] sm:$0xff] %vm81_vm0, %v10979_v51  ;;  %v8642_v51 = vld [vmem:[%s16422_s0 + $0x308] sm:$0xff] }
  0x69   :  { %144 = vst.msk [vmem:[#allocation2 + $0x1f0] sm:$0xff] %vm81_vm0, %v8581_v50 }
  0x6a   :  { %378 = vrot.lane.b32.xlu0 %v8635_v62, %s10308_s16  ;;  %380 = vrot.lane.b32.xlu1 %v8636_v63, %s10308_s16  ;;  %v8639_v62 = vld [vmem:[%s16422_s0 + $0x2e8] sm:$0xff]  ;;  %v8640_v63 = vld [vmem:[%s16422_s0 + $0x2f0] sm:$0xff] }
  0x6e   :  { %382 = vrot.lane.b32.xlu0 %v8637_v21, %s10308_s16  ;;  %384 = vrot.lane.b32.xlu1 %v8638_v22, %s10308_s16  ;;  %v8582_v21 = vld [vmem:[%s16422_s0 + $0x339] sm:$0xff] }
  0x6f   :  { %145 = vst.msk [vmem:[#allocation2 + $0x1f8] sm:$0xff] %vm81_vm0, %v8582_v21  ;;  %v8641_v22 = vld [vmem:[%s16422_s0 + $0x300] sm:$0xff] }
  0x72   :  { %386 = vrot.lane.b32.xlu0 %v8639_v62, %s10308_s16  ;;  %388 = vrot.lane.b32.xlu1 %v8640_v63, %s10308_s16  ;;  %v8643_v62 = vld [vmem:[%s16422_s0 + $0x318] sm:$0xff]  ;;  %v8644_v63 = vld [vmem:[%s16422_s0 + $0x320] sm:$0xff] }
  0x74   :  { %v275_v50 = vpop.permute.xlu0 %274  ;;  %v279_v7 = vpop.permute.xlu1 %278 }
  0x75   :  { %467 = vst.msk [vmem:[#allocation2] sm:$0xff] %vm466_vm1, %v275_v50  ;;  %469 = vst.msk [vmem:[#allocation2 + $0x10] sm:$0xff] %vm466_vm1, %v279_v7  ;;  %v8645_v7 = vld [vmem:[%s16422_s0 + $0x330] sm:$0xff] }
  0x76   :  { %390 = vrot.lane.b32.xlu0 %v8641_v22, %s10308_s16  ;;  %392 = vrot.lane.b32.xlu1 %v8642_v51, %s10308_s16  ;;  %v8646_v51 = vld [vmem:[%s16422_s0 + $0x338] sm:$0xff] }
  0x78   :  { %v277_v21 = vpop.permute.xlu0 %276  ;;  %v281_v6 = vpop.permute.xlu1 %280 }
  0x79   :  { %468 = vst.msk [vmem:[#allocation2 + $0x8] sm:$0xff] %vm466_vm1, %v277_v21  ;;  %470 = vst.msk [vmem:[#allocation2 + $0x18] sm:$0xff] %vm466_vm1, %v281_v6  ;;  %v531_v6 = vld [vmem:[%s16422_s0 + $0x1] sm:$0xff] }
  0x7a   :  { %394 = vrot.lane.b32.xlu0 %v8643_v62, %s10308_s16  ;;  %396 = vrot.lane.b32.xlu1 %v8644_v63, %s10308_s16  ;;  %v532_v62 = vld [vmem:[%s16422_s0 + $0x9] sm:$0xff] }
  0x7c   :  { %v283_v22 = vpop.permute.xlu0 %282  ;;  %v285_v50 = vpop.permute.xlu1 %284 }
  0x7d   :  { %471 = vst.msk [vmem:[#allocation2 + $0x20] sm:$0xff] %vm466_vm1, %v283_v22  ;;  %472 = vst.msk [vmem:[#allocation2 + $0x28] sm:$0xff] %vm466_vm1, %v285_v50 }
  0x7e   :  { %398 = vrot.lane.b32.xlu0 %v8645_v7, %s10308_s16  ;;  %400 = vrot.lane.b32.xlu1 %v8646_v51, %s10308_s16 }
  0x80   :  { %v287_v63 = vpop.permute.xlu0 %286  ;;  %v289_v21 = vpop.permute.xlu1 %288 }
  0x81   :  { %473 = vst.msk [vmem:[#allocation2 + $0x30] sm:$0xff] %vm466_vm1, %v287_v63  ;;  %474 = vst.msk [vmem:[#allocation2 + $0x38] sm:$0xff] %vm466_vm1, %v289_v21 }
  0x82   :  { %659 = vrot.lane.b32.xlu0 %v531_v6, %s10309_s12  ;;  %661 = vrot.lane.b32.xlu1 %v532_v62, %s10309_s12 }
  0x84   :  { %v291_v7 = vpop.permute.xlu0 %290  ;;  %v293_v51 = vpop.permute.xlu1 %292 }
  0x85   :  { %475 = vst.msk [vmem:[#allocation2 + $0x40] sm:$0xff] %vm466_vm1, %v291_v7  ;;  %476 = vst.msk [vmem:[#allocation2 + $0x48] sm:$0xff] %vm466_vm1, %v293_v51 }
  0x86   :  { %663 = vrot.lane.b32.xlu0 %v10384_v12, %s10309_s12  ;;  %665 = vrot.lane.b32.xlu1 %v10404_v16, %s10309_s12 }
  0x88   :  { %v295_v22 = vpop.permute.xlu0 %294  ;;  %v297_v50 = vpop.permute.xlu1 %296 }
  0x89   :  { %477 = vst.msk [vmem:[#allocation2 + $0x50] sm:$0xff] %vm466_vm1, %v295_v22  ;;  %478 = vst.msk [vmem:[#allocation2 + $0x58] sm:$0xff] %vm466_vm1, %v297_v50 }
  0x8a   :  { %667 = vrot.lane.b32.xlu0 %v10389_v13, %s10309_s12  ;;  %669 = vrot.lane.b32.xlu1 %v10411_v17, %s10309_s12 }
  0x8c   :  { %v299_v6 = vpop.permute.xlu0 %298  ;;  %v301_v62 = vpop.permute.xlu1 %300 }
  0x8d   :  { %479 = vst.msk [vmem:[#allocation2 + $0x60] sm:$0xff] %vm466_vm1, %v299_v6  ;;  %480 = vst.msk [vmem:[#allocation2 + $0x68] sm:$0xff] %vm466_vm1, %v301_v62 }
  0x8e   :  { %671 = vrot.lane.b32.xlu0 %v10418_v18, %s10309_s12  ;;  %673 = vrot.lane.b32.xlu1 %v10423_v19, %s10309_s12 }
  0x90   :  { %v303_v12 = vpop.permute.xlu0 %302  ;;  %v305_v16 = vpop.permute.xlu1 %304 }
  0x91   :  { %481 = vst.msk [vmem:[#allocation2 + $0x70] sm:$0xff] %vm466_vm1, %v303_v12  ;;  %482 = vst.msk [vmem:[#allocation2 + $0x78] sm:$0xff] %vm466_vm1, %v305_v16 }
  0x92   :  { %675 = vrot.lane.b32.xlu0 %v10434_v20, %s10309_s12  ;;  %677 = vrot.lane.b32.xlu1 %v10447_v23, %s10309_s12 }
  0x94   :  { %v307_v13 = vpop.permute.xlu0 %306  ;;  %v309_v17 = vpop.permute.xlu1 %308 }
  0x95   :  { %483 = vst.msk [vmem:[#allocation2 + $0x80] sm:$0xff] %vm466_vm1, %v307_v13  ;;  %484 = vst.msk [vmem:[#allocation2 + $0x88] sm:$0xff] %vm466_vm1, %v309_v17  ;;  %v16445_v13 = vld [vmem:[#allocation8_spill] sm:$0xff]  ;;  %v16446_v17 = vld [vmem:[#allocation9_spill] sm:$0xff] }
  0x96   :  { %679 = vrot.lane.b32.xlu0 %v10454_v24, %s10309_s12  ;;  %681 = vrot.lane.b32.xlu1 %v10459_v25, %s10309_s12 }
  0x98   :  { %v311_v18 = vpop.permute.xlu0 %310  ;;  %v313_v19 = vpop.permute.xlu1 %312 }
  0x99   :  { %485 = vst.msk [vmem:[#allocation2 + $0x90] sm:$0xff] %vm466_vm1, %v311_v18  ;;  %486 = vst.msk [vmem:[#allocation2 + $0x98] sm:$0xff] %vm466_vm1, %v313_v19  ;;  %v916_v18 = vld [vmem:[%s16422_s0] sm:$0xff]  ;;  %v917_v19 = vld [vmem:[%s16422_s0 + $0x8] sm:$0xff] }
  0x9a   :  { %683 = vrot.lane.b32.xlu0 %v10464_v26, %s10309_s12  ;;  %685 = vrot.lane.b32.xlu1 %v10481_v29, %s10309_s12 }
  0x9c   :  { %v315_v20 = vpop.permute.xlu0 %314  ;;  %v317_v23 = vpop.permute.xlu1 %316 }
  0x9d   :  { %487 = vst.msk [vmem:[#allocation2 + $0xa0] sm:$0xff] %vm466_vm1, %v315_v20  ;;  %488 = vst.msk [vmem:[#allocation2 + $0xa8] sm:$0xff] %vm466_vm1, %v317_v23 }
  0x9e   :  { %687 = vrot.lane.b32.xlu0 %v10486_v30, %s10309_s12  ;;  %689 = vrot.lane.b32.xlu1 %v10491_v31, %s10309_s12 }
  0xa0   :  { %v319_v24 = vpop.permute.xlu0 %318  ;;  %v321_v25 = vpop.permute.xlu1 %320 }
  0xa1   :  { %489 = vst.msk [vmem:[#allocation2 + $0xb0] sm:$0xff] %vm466_vm1, %v319_v24  ;;  %490 = vst.msk [vmem:[#allocation2 + $0xb8] sm:$0xff] %vm466_vm1, %v321_v25  ;;  %v918_v24 = vld [vmem:[%s16422_s0 + $0x18] sm:$0xff]  ;;  %v919_v25 = vld [vmem:[%s16422_s0 + $0x20] sm:$0xff] }
  0xa2   :  { %691 = vrot.lane.b32.xlu0 %v10504_v32, %s10309_s12  ;;  %693 = vrot.lane.b32.xlu1 %v10509_v33, %s10309_s12 }
  0xa4   :  { %v323_v26 = vpop.permute.xlu0 %322  ;;  %v325_v29 = vpop.permute.xlu1 %324 }
  0xa5   :  { %491 = vst.msk [vmem:[#allocation2 + $0xc0] sm:$0xff] %vm466_vm1, %v323_v26  ;;  %492 = vst.msk [vmem:[#allocation2 + $0xc8] sm:$0xff] %vm466_vm1, %v325_v29 }
  0xa6   :  { %695 = vrot.lane.b32.xlu0 %v10518_v34, %s10309_s12  ;;  %697 = vrot.lane.b32.xlu1 %v10523_v35, %s10309_s12 }
  0xa8   :  { %v327_v30 = vpop.permute.xlu0 %326  ;;  %v329_v31 = vpop.permute.xlu1 %328 }
  0xa9   :  { %493 = vst.msk [vmem:[#allocation2 + $0xd0] sm:$0xff] %vm466_vm1, %v327_v30  ;;  %494 = vst.msk [vmem:[#allocation2 + $0xd8] sm:$0xff] %vm466_vm1, %v329_v31  ;;  %v920_v30 = vld [vmem:[%s16422_s0 + $0x30] sm:$0xff]  ;;  %v921_v31 = vld [vmem:[%s16422_s0 + $0x38] sm:$0xff] }
  0xaa   :  { %699 = vrot.lane.b32.xlu0 %v10528_v36, %s10309_s12  ;;  %701 = vrot.lane.b32.xlu1 %v10539_v37, %s10309_s12 }
  0xac   :  { %v331_v32 = vpop.permute.xlu0 %330  ;;  %v333_v33 = vpop.permute.xlu1 %332 }
  0xad   :  { %495 = vst.msk [vmem:[#allocation2 + $0xe0] sm:$0xff] %vm466_vm1, %v331_v32  ;;  %496 = vst.msk [vmem:[#allocation2 + $0xe8] sm:$0xff] %vm466_vm1, %v333_v33 }
  0xae   :  { %703 = vrot.lane.b32.xlu0 %v10544_v38, %s10309_s12  ;;  %705 = vrot.lane.b32.xlu1 %v10549_v39, %s10309_s12 }
  0xb0   :  { %v335_v34 = vpop.permute.xlu0 %334  ;;  %v337_v35 = vpop.permute.xlu1 %336 }
  0xb1   :  { %497 = vst.msk [vmem:[#allocation2 + $0xf0] sm:$0xff] %vm466_vm1, %v335_v34  ;;  %498 = vst.msk [vmem:[#allocation2 + $0xf8] sm:$0xff] %vm466_vm1, %v337_v35  ;;  %v922_v34 = vld [vmem:[%s16422_s0 + $0x48] sm:$0xff]  ;;  %v923_v35 = vld [vmem:[%s16422_s0 + $0x50] sm:$0xff] }
  0xb2   :  { %707 = vrot.lane.b32.xlu0 %v10560_v40, %s10309_s12  ;;  %709 = vrot.lane.b32.xlu1 %v10565_v41, %s10309_s12 }
  0xb4   :  { %v339_v36 = vpop.permute.xlu0 %338  ;;  %v341_v37 = vpop.permute.xlu1 %340 }
  0xb5   :  { %499 = vst.msk [vmem:[#allocation2 + $0x100] sm:$0xff] %vm466_vm1, %v339_v36  ;;  %500 = vst.msk [vmem:[#allocation2 + $0x108] sm:$0xff] %vm466_vm1, %v341_v37 }
  0xb6   :  { %711 = vrot.lane.b32.xlu0 %v10582_v44, %s10309_s12  ;;  %713 = vrot.lane.b32.xlu1 %v10589_v45, %s10309_s12  ;;  %v563_v44 = vld [vmem:[%s16422_s0 + $0x1b1] sm:$0xff]  ;;  %v564_v45 = vld [vmem:[%s16422_s0 + $0x1b9] sm:$0xff] }
  0xb8   :  { %v343_v38 = vpop.permute.xlu0 %342  ;;  %v345_v39 = vpop.permute.xlu1 %344 }
  0xb9   :  { %501 = vst.msk [vmem:[#allocation2 + $0x110] sm:$0xff] %vm466_vm1, %v343_v38  ;;  %502 = vst.msk [vmem:[#allocation2 + $0x118] sm:$0xff] %vm466_vm1, %v345_v39  ;;  %v924_v38 = vld [vmem:[%s16422_s0 + $0x60] sm:$0xff]  ;;  %v925_v39 = vld [vmem:[%s16422_s0 + $0x68] sm:$0xff] }
  0xba   :  { %715 = vrot.lane.b32.xlu0 %v10604_v48, %s10309_s12  ;;  %717 = vrot.lane.b32.xlu1 %v10611_v49, %s10309_s12 }
  0xbc   :  { %v347_v40 = vpop.permute.xlu0 %346  ;;  %v349_v41 = vpop.permute.xlu1 %348 }
  0xbd   :  { %503 = vst.msk [vmem:[#allocation2 + $0x120] sm:$0xff] %vm466_vm1, %v347_v40  ;;  %504 = vst.msk [vmem:[#allocation2 + $0x128] sm:$0xff] %vm466_vm1, %v349_v41 }
  0xbe   :  { %719 = vrot.lane.b32.xlu0 %v10626_v52, %s10309_s12  ;;  %721 = vrot.lane.b32.xlu1 %v10633_v53, %s10309_s12 }
  0xc0   :  { %v351_v48 = vpop.permute.xlu0 %350  ;;  %v353_v49 = vpop.permute.xlu1 %352 }
  0xc1   :  { %505 = vst.msk [vmem:[#allocation2 + $0x130] sm:$0xff] %vm466_vm1, %v351_v48  ;;  %506 = vst.msk [vmem:[#allocation2 + $0x138] sm:$0xff] %vm466_vm1, %v353_v49 }
  0xc2   :  { %723 = vrot.lane.b32.xlu0 %v563_v44, %s10309_s12  ;;  %725 = vrot.lane.b32.xlu1 %v564_v45, %s10309_s12  ;;  %v926_v44 = vld [vmem:[%s16422_s0 + $0x78] sm:$0xff]  ;;  %v927_v45 = vld [vmem:[%s16422_s0 + $0x80] sm:$0xff] }
  0xc4   :  { %v355_v52 = vpop.permute.xlu0 %354  ;;  %v357_v53 = vpop.permute.xlu1 %356 }
  0xc5   :  { %507 = vst.msk [vmem:[#allocation2 + $0x140] sm:$0xff] %vm466_vm1, %v355_v52  ;;  %508 = vst.msk [vmem:[#allocation2 + $0x148] sm:$0xff] %vm466_vm1, %v357_v53  ;;  %v928_v52 = vld [vmem:[%s16422_s0 + $0x90] sm:$0xff]  ;;  %v929_v53 = vld [vmem:[%s16422_s0 + $0x98] sm:$0xff] }
  0xc6   :  { %727 = vrot.lane.b32.xlu0 %v10664_v60, %s10309_s12  ;;  %729 = vrot.lane.b32.xlu1 %v10671_v61, %s10309_s12 }
  0xc8   :  { %v359_v63 = vpop.permute.xlu0 %358  ;;  %v361_v21 = vpop.permute.xlu1 %360 }
  0xc9   :  { %509 = vst.msk [vmem:[#allocation2 + $0x150] sm:$0xff] %vm466_vm1, %v359_v63  ;;  %510 = vst.msk [vmem:[#allocation2 + $0x158] sm:$0xff] %vm466_vm1, %v361_v21 }
  0xca   :  { %731 = vrot.lane.b32.xlu0 %v10686_v0, %s10309_s12  ;;  %733 = vrot.lane.b32.xlu1 %v10693_v1, %s10309_s12 }
  0xcc   :  { %v363_v7 = vpop.permute.xlu0 %362  ;;  %v365_v51 = vpop.permute.xlu1 %364 }
  0xcd   :  { %511 = vst.msk [vmem:[#allocation2 + $0x160] sm:$0xff] %vm466_vm1, %v363_v7  ;;  %512 = vst.msk [vmem:[#allocation2 + $0x168] sm:$0xff] %vm466_vm1, %v365_v51  ;;  %v930_v7 = vld [vmem:[%s16422_s0 + $0xa8] sm:$0xff]  ;;  %v931_v51 = vld [vmem:[%s16422_s0 + $0xb0] sm:$0xff] }
  0xce   :  { %735 = vrot.lane.b32.xlu0 %v10708_v4, %s10309_s12  ;;  %737 = vrot.lane.b32.xlu1 %v10715_v5, %s10309_s12 }
  0xd0   :  { %v367_v60 = vpop.permute.xlu0 %366  ;;  %v369_v61 = vpop.permute.xlu1 %368 }
  0xd1   :  { %513 = vst.msk [vmem:[#allocation2 + $0x170] sm:$0xff] %vm466_vm1, %v367_v60  ;;  %514 = vst.msk [vmem:[#allocation2 + $0x178] sm:$0xff] %vm466_vm1, %v369_v61 }
  0xd2   :  { %739 = vrot.lane.b32.xlu0 %v10730_v8, %s10309_s12  ;;  %741 = vrot.lane.b32.xlu1 %v10737_v9, %s10309_s12 }
  0xd4   :  { %v371_v0 = vpop.permute.xlu0 %370  ;;  %v373_v1 = vpop.permute.xlu1 %372 }
  0xd5   :  { %515 = vst.msk [vmem:[#allocation2 + $0x180] sm:$0xff] %vm466_vm1, %v371_v0  ;;  %516 = vst.msk [vmem:[#allocation2 + $0x188] sm:$0xff] %vm466_vm1, %v373_v1  ;;  %v932_v0 = vld [vmem:[%s16422_s0 + $0xc0] sm:$0xff]  ;;  %v933_v1 = vld [vmem:[%s16422_s0 + $0xc8] sm:$0xff] }
  0xd6   :  { %743 = vrot.lane.b32.xlu0 %v10752_v14, %s10309_s12  ;;  %745 = vrot.lane.b32.xlu1 %v10759_v15, %s10309_s12 }
  0xd8   :  { %v375_v4 = vpop.permute.xlu0 %374  ;;  %v377_v5 = vpop.permute.xlu1 %376 }
  0xd9   :  { %517 = vst.msk [vmem:[#allocation2 + $0x190] sm:$0xff] %vm466_vm1, %v375_v4  ;;  %518 = vst.msk [vmem:[#allocation2 + $0x198] sm:$0xff] %vm466_vm1, %v377_v5 }
  0xda   :  { %747 = vrot.lane.b32.xlu0 %v10774_v27, %s10309_s12  ;;  %749 = vrot.lane.b32.xlu1 %v10781_v28, %s10309_s12 }
  0xdc   :  { %v379_v8 = vpop.permute.xlu0 %378  ;;  %v381_v9 = vpop.permute.xlu1 %380 }
  0xdd   :  { %519 = vst.msk [vmem:[#allocation2 + $0x1a0] sm:$0xff] %vm466_vm1, %v379_v8  ;;  %520 = vst.msk [vmem:[#allocation2 + $0x1a8] sm:$0xff] %vm466_vm1, %v381_v9  ;;  %v934_v8 = vld [vmem:[%s16422_s0 + $0xd8] sm:$0xff]  ;;  %v935_v9 = vld [vmem:[%s16422_s0 + $0xe0] sm:$0xff] }
  0xde   :  { %751 = vrot.lane.b32.xlu0 %v10796_v46, %s10309_s12  ;;  %753 = vrot.lane.b32.xlu1 %v10803_v47, %s10309_s12 }
  0xe0   :  { %v383_v14 = vpop.permute.xlu0 %382  ;;  %v385_v15 = vpop.permute.xlu1 %384 }
  0xe1   :  { %521 = vst.msk [vmem:[#allocation2 + $0x1b0] sm:$0xff] %vm466_vm1, %v383_v14  ;;  %522 = vst.msk [vmem:[#allocation2 + $0x1b8] sm:$0xff] %vm466_vm1, %v385_v15 }
  0xe2   :  { %755 = vrot.lane.b32.xlu0 %v10818_v54, %s10309_s12  ;;  %757 = vrot.lane.b32.xlu1 %v10825_v55, %s10309_s12 }
  0xe4   :  { %v387_v27 = vpop.permute.xlu0 %386  ;;  %v389_v28 = vpop.permute.xlu1 %388 }
  0xe5   :  { %523 = vst.msk [vmem:[#allocation2 + $0x1c0] sm:$0xff] %vm466_vm1, %v387_v27  ;;  %524 = vst.msk [vmem:[#allocation2 + $0x1c8] sm:$0xff] %vm466_vm1, %v389_v28  ;;  %v936_v27 = vld [vmem:[%s16422_s0 + $0xf0] sm:$0xff]  ;;  %v937_v28 = vld [vmem:[%s16422_s0 + $0xf8] sm:$0xff] }
  0xe6   :  { %759 = vrot.lane.b32.xlu0 %v10840_v58, %s10309_s12  ;;  %761 = vrot.lane.b32.xlu1 %v10847_v59, %s10309_s12 }
  0xe8   :  { %v391_v46 = vpop.permute.xlu0 %390  ;;  %v393_v47 = vpop.permute.xlu1 %392 }
  0xe9   :  { %525 = vst.msk [vmem:[#allocation2 + $0x1d0] sm:$0xff] %vm466_vm1, %v391_v46  ;;  %526 = vst.msk [vmem:[#allocation2 + $0x1d8] sm:$0xff] %vm466_vm1, %v393_v47 }
  0xea   :  { %763 = vrot.lane.b32.xlu0 %v10862_v2, %s10309_s12  ;;  %765 = vrot.lane.b32.xlu1 %v10869_v3, %s10309_s12  ;;  %v1365_v2 = vld [vmem:[%s16423_s1] sm:$0xff]  ;;  %v1366_v3 = vld [vmem:[%s16423_s1 + $0x8] sm:$0xff] }
  0xeb   :  { %v10244_v22 = vpack.c.bf16 %v1366_v3, %v1365_v2  ;;  %v940_v2 = vld [vmem:[%s16422_s0 + $0x120] sm:$0xff]  ;;  %v941_v3 = vld [vmem:[%s16422_s0 + $0x128] sm:$0xff] }
  0xec   :  { %v395_v54 = vpop.permute.xlu0 %394  ;;  %v397_v55 = vpop.permute.xlu1 %396 }
  0xed   :  { %527 = vst.msk [vmem:[#allocation2 + $0x1e0] sm:$0xff] %vm466_vm1, %v395_v54  ;;  %528 = vst.msk [vmem:[#allocation2 + $0x1e8] sm:$0xff] %vm466_vm1, %v397_v55  ;;  %10245 = vmatprep.subr.bf16.mxu0 %v10244_v22  ;;  %v938_v54 = vld [vmem:[%s16422_s0 + $0x108] sm:$0xff]  ;;  %v939_v55 = vld [vmem:[%s16422_s0 + $0x110] sm:$0xff] }
  0xee   :  { %767 = vrot.lane.b32.xlu0 %v10884_v10, %s10309_s12  ;;  %769 = vrot.lane.b32.xlu1 %v10891_v11, %s10309_s12 }
  0xef   :  { %10247 = vmatpush3.bf16.msra.mxu0 %v10244_v22  ;;  %v942_v22 = vld [vmem:[%s16422_s0 + $0x138] sm:$0xff] }
  0xf0   :  { %v399_v58 = vpop.permute.xlu0 %398  ;;  %v401_v59 = vpop.permute.xlu1 %400 }
  0xf1   :  { %529 = vst.msk [vmem:[#allocation2 + $0x1f0] sm:$0xff] %vm466_vm1, %v399_v58  ;;  %530 = vst.msk [vmem:[#allocation2 + $0x1f8] sm:$0xff] %vm466_vm1, %v401_v59 }
  0xf2   :  { %771 = vrot.lane.b32.xlu0 %v10906_v42, %s10309_s12  ;;  %773 = vrot.lane.b32.xlu1 %v10913_v43, %s10309_s12  ;;  %v1367_v42 = vld [vmem:[%s16423_s1 + $0x10] sm:$0xff]  ;;  %v1368_v43 = vld [vmem:[%s16423_s1 + $0x18] sm:$0xff] }
  0xf3   :  { %v10248_v62 = vpack.c.bf16 %v1368_v43, %v1367_v42  ;;  %v943_v42 = vld [vmem:[%s16422_s0 + $0x140] sm:$0xff] }
  0xf4   :  { %v660_v10 = vpop.permute.xlu0 %659  ;;  %v662_v11 = vpop.permute.xlu1 %661 }
  0xf5   :  { %852 = vst.msk [vmem:[#allocation2] sm:$0xff] %vm851_vm2, %v660_v10  ;;  %853 = vst.msk [vmem:[#allocation2 + $0x8] sm:$0xff] %vm851_vm2, %v662_v11  ;;  %10249 = vmatprep.subr.bf16.mxu0 %v10248_v62 }
  0xf6   :  { %775 = vrot.lane.b32.xlu0 %v10928_v56, %s10309_s12  ;;  %777 = vrot.lane.b32.xlu1 %v10935_v57, %s10309_s12  ;;  %v16443_v56 = vld [vmem:[#allocation6_spill] sm:$0xff]  ;;  %v16444_v57 = vld [vmem:[#allocation7_spill] sm:$0xff] }
  0xf7   :  { %10251 = vmatpush3.bf16.msra.mxu0 %v10248_v62  ;;  %v945_v62 = vld [vmem:[%s16422_s0 + $0x158] sm:$0xff] }
  0xf8   :  { %v664_v50 = vpop.permute.xlu0 %663  ;;  %v666_v6 = vpop.permute.xlu1 %665 }
  0xf9   :  { %854 = vst.msk [vmem:[#allocation2 + $0x10] sm:$0xff] %vm851_vm2, %v664_v50  ;;  %855 = vst.msk [vmem:[#allocation2 + $0x18] sm:$0xff] %vm851_vm2, %v666_v6  ;;  %v944_v6 = vld [vmem:[%s16422_s0 + $0x150] sm:$0xff] }
  0xfa   :  { %779 = vrot.lane.b32.xlu0 %v16443_v56, %s10309_s12  ;;  %781 = vrot.lane.b32.xlu1 %v16444_v57, %s10309_s12 }
  0xfc   :  { %v668_v12 = vpop.permute.xlu0 %667  ;;  %v670_v16 = vpop.permute.xlu1 %669 }
  0xfd   :  { %856 = vst.msk [vmem:[#allocation2 + $0x20] sm:$0xff] %vm851_vm2, %v668_v12  ;;  %857 = vst.msk [vmem:[#allocation2 + $0x28] sm:$0xff] %vm851_vm2, %v670_v16  ;;  %v946_v12 = vld [vmem:[%s16422_s0 + $0x168] sm:$0xff]  ;;  %v947_v16 = vld [vmem:[%s16422_s0 + $0x170] sm:$0xff] }
  0xfe   :  { %783 = vrot.lane.b32.xlu0 %v16445_v13, %s10309_s12  ;;  %785 = vrot.lane.b32.xlu1 %v16446_v17, %s10309_s12 }
 0x100   :  { %v672_v20 = vpop.permute.xlu0 %671  ;;  %v674_v23 = vpop.permute.xlu1 %673 }
 0x101   :  { %858 = vst.msk [vmem:[#allocation2 + $0x30] sm:$0xff] %vm851_vm2, %v672_v20  ;;  %859 = vst.msk [vmem:[#allocation2 + $0x38] sm:$0xff] %vm851_vm2, %v674_v23 }
 0x102   :  { %1044 = vrot.lane.b32.xlu0 %v916_v18, %s10310_s30  ;;  %1046 = vrot.lane.b32.xlu1 %v917_v19, %s10310_s30  ;;  %v948_v18 = vld [vmem:[%s16422_s0 + $0x1b0] sm:$0xff]  ;;  %v949_v19 = vld [vmem:[%s16422_s0 + $0x1b8] sm:$0xff] }
 0x104   :  { %v676_v26 = vpop.permute.xlu0 %675  ;;  %v678_v29 = vpop.permute.xlu1 %677 }
 0x105   :  { %860 = vst.msk [vmem:[#allocation2 + $0x40] sm:$0xff] %vm851_vm2, %v676_v26  ;;  %861 = vst.msk [vmem:[#allocation2 + $0x48] sm:$0xff] %vm851_vm2, %v678_v29 }
 0x106   :  { %1048 = vrot.lane.b32.xlu0 %v918_v24, %s10310_s30  ;;  %1050 = vrot.lane.b32.xlu1 %v919_v25, %s10310_s30  ;;  %v950_v24 = vld [vmem:[%s16422_s0 + $0x1c8] sm:$0xff]  ;;  %v951_v25 = vld [vmem:[%s16422_s0 + $0x1d0] sm:$0xff] }
 0x108   :  { %v680_v32 = vpop.permute.xlu0 %679  ;;  %v682_v33 = vpop.permute.xlu1 %681 }
 0x109   :  { %862 = vst.msk [vmem:[#allocation2 + $0x50] sm:$0xff] %vm851_vm2, %v680_v32  ;;  %863 = vst.msk [vmem:[#allocation2 + $0x58] sm:$0xff] %vm851_vm2, %v682_v33 }
 0x10a   :  { %1052 = vrot.lane.b32.xlu0 %v920_v30, %s10310_s30  ;;  %1054 = vrot.lane.b32.xlu1 %v921_v31, %s10310_s30  ;;  %v952_v30 = vld [vmem:[%s16422_s0 + $0x1e0] sm:$0xff]  ;;  %v953_v31 = vld [vmem:[%s16422_s0 + $0x1e8] sm:$0xff] }
 0x10c   :  { %v684_v36 = vpop.permute.xlu0 %683  ;;  %v686_v37 = vpop.permute.xlu1 %685 }
 0x10d   :  { %864 = vst.msk [vmem:[#allocation2 + $0x60] sm:$0xff] %vm851_vm2, %v684_v36  ;;  %865 = vst.msk [vmem:[#allocation2 + $0x68] sm:$0xff] %vm851_vm2, %v686_v37 }
 0x10e   :  { %1056 = vrot.lane.b32.xlu0 %v922_v34, %s10310_s30  ;;  %1058 = vrot.lane.b32.xlu1 %v923_v35, %s10310_s30  ;;  %v954_v34 = vld [vmem:[%s16422_s0 + $0x1f8] sm:$0xff]  ;;  %v955_v35 = vld [vmem:[%s16422_s0 + $0x200] sm:$0xff] }
 0x110   :  { %v688_v40 = vpop.permute.xlu0 %687  ;;  %v690_v41 = vpop.permute.xlu1 %689 }
 0x111   :  { %866 = vst.msk [vmem:[#allocation2 + $0x70] sm:$0xff] %vm851_vm2, %v688_v40  ;;  %867 = vst.msk [vmem:[#allocation2 + $0x78] sm:$0xff] %vm851_vm2, %v690_v41 }
 0x112   :  { %1060 = vrot.lane.b32.xlu0 %v924_v38, %s10310_s30  ;;  %1062 = vrot.lane.b32.xlu1 %v925_v39, %s10310_s30  ;;  %v956_v38 = vld [vmem:[%s16422_s0 + $0x210] sm:$0xff]  ;;  %v957_v39 = vld [vmem:[%s16422_s0 + $0x218] sm:$0xff] }
 0x114   :  { %v692_v48 = vpop.permute.xlu0 %691  ;;  %v694_v49 = vpop.permute.xlu1 %693 }
 0x115   :  { %868 = vst.msk [vmem:[#allocation2 + $0x80] sm:$0xff] %vm851_vm2, %v692_v48  ;;  %869 = vst.msk [vmem:[#allocation2 + $0x88] sm:$0xff] %vm851_vm2, %v694_v49 }
 0x116   :  { %1064 = vrot.lane.b32.xlu0 %v926_v44, %s10310_s30  ;;  %1066 = vrot.lane.b32.xlu1 %v927_v45, %s10310_s30  ;;  %v958_v44 = vld [vmem:[%s16422_s0 + $0x228] sm:$0xff]  ;;  %v959_v45 = vld [vmem:[%s16422_s0 + $0x230] sm:$0xff] }
 0x118   :  { %v696_v63 = vpop.permute.xlu0 %695  ;;  %v698_v21 = vpop.permute.xlu1 %697 }
 0x119   :  { %870 = vst.msk [vmem:[#allocation2 + $0x90] sm:$0xff] %vm851_vm2, %v696_v63  ;;  %871 = vst.msk [vmem:[#allocation2 + $0x98] sm:$0xff] %vm851_vm2, %v698_v21 }
 0x11a   :  { %1068 = vrot.lane.b32.xlu0 %v928_v52, %s10310_s30  ;;  %1070 = vrot.lane.b32.xlu1 %v929_v53, %s10310_s30  ;;  %v960_v52 = vld [vmem:[%s16422_s0 + $0x240] sm:$0xff]  ;;  %v961_v53 = vld [vmem:[%s16422_s0 + $0x248] sm:$0xff] }
 0x11c   :  { %v700_v60 = vpop.permute.xlu0 %699  ;;  %v702_v61 = vpop.permute.xlu1 %701 }
 0x11d   :  { %872 = vst.msk [vmem:[#allocation2 + $0xa0] sm:$0xff] %vm851_vm2, %v700_v60  ;;  %873 = vst.msk [vmem:[#allocation2 + $0xa8] sm:$0xff] %vm851_vm2, %v702_v61 }
 0x11e   :  { %1072 = vrot.lane.b32.xlu0 %v930_v7, %s10310_s30  ;;  %1074 = vrot.lane.b32.xlu1 %v931_v51, %s10310_s30  ;;  %v962_v7 = vld [vmem:[%s16422_s0 + $0x258] sm:$0xff]  ;;  %v963_v51 = vld [vmem:[%s16422_s0 + $0x260] sm:$0xff] }
 0x120   :  { %v704_v4 = vpop.permute.xlu0 %703  ;;  %v706_v5 = vpop.permute.xlu1 %705 }
 0x121   :  { %874 = vst.msk [vmem:[#allocation2 + $0xb0] sm:$0xff] %vm851_vm2, %v704_v4  ;;  %875 = vst.msk [vmem:[#allocation2 + $0xb8] sm:$0xff] %vm851_vm2, %v706_v5 }
 0x122   :  { %1076 = vrot.lane.b32.xlu0 %v932_v0, %s10310_s30  ;;  %1078 = vrot.lane.b32.xlu1 %v933_v1, %s10310_s30  ;;  %v964_v0 = vld [vmem:[%s16422_s0 + $0x270] sm:$0xff]  ;;  %v965_v1 = vld [vmem:[%s16422_s0 + $0x278] sm:$0xff] }
 0x124   :  { %v708_v14 = vpop.permute.xlu0 %707  ;;  %v710_v15 = vpop.permute.xlu1 %709 }
 0x125   :  { %876 = vst.msk [vmem:[#allocation2 + $0xc0] sm:$0xff] %vm851_vm2, %v708_v14  ;;  %877 = vst.msk [vmem:[#allocation2 + $0xc8] sm:$0xff] %vm851_vm2, %v710_v15 }
 0x126   :  { %1080 = vrot.lane.b32.xlu0 %v934_v8, %s10310_s30  ;;  %1082 = vrot.lane.b32.xlu1 %v935_v9, %s10310_s30  ;;  %v966_v8 = vld [vmem:[%s16422_s0 + $0x288] sm:$0xff]  ;;  %v967_v9 = vld [vmem:[%s16422_s0 + $0x290] sm:$0xff] }
 0x128   :  { %v712_v46 = vpop.permute.xlu0 %711  ;;  %v714_v47 = vpop.permute.xlu1 %713 }
 0x129   :  { %878 = vst.msk [vmem:[#allocation2 + $0xd0] sm:$0xff] %vm851_vm2, %v712_v46  ;;  %879 = vst.msk [vmem:[#allocation2 + $0xd8] sm:$0xff] %vm851_vm2, %v714_v47 }
 0x12a   :  { %1084 = vrot.lane.b32.xlu0 %v936_v27, %s10310_s30  ;;  %1086 = vrot.lane.b32.xlu1 %v937_v28, %s10310_s30  ;;  %v968_v27 = vld [vmem:[%s16422_s0 + $0x2a0] sm:$0xff]  ;;  %v969_v28 = vld [vmem:[%s16422_s0 + $0x2a8] sm:$0xff] }
 0x12c   :  { %v716_v58 = vpop.permute.xlu0 %715  ;;  %v718_v59 = vpop.permute.xlu1 %717 }
 0x12d   :  { %880 = vst.msk [vmem:[#allocation2 + $0xe0] sm:$0xff] %vm851_vm2, %v716_v58  ;;  %881 = vst.msk [vmem:[#allocation2 + $0xe8] sm:$0xff] %vm851_vm2, %v718_v59 }
 0x12e   :  { %1088 = vrot.lane.b32.xlu0 %v938_v54, %s10310_s30  ;;  %1090 = vrot.lane.b32.xlu1 %v939_v55, %s10310_s30  ;;  %v970_v54 = vld [vmem:[%s16422_s0 + $0x2b8] sm:$0xff]  ;;  %v971_v55 = vld [vmem:[%s16422_s0 + $0x2c0] sm:$0xff] }
 0x130   :  { %v720_v10 = vpop.permute.xlu0 %719  ;;  %v722_v11 = vpop.permute.xlu1 %721 }
 0x131   :  { %882 = vst.msk [vmem:[#allocation2 + $0xf0] sm:$0xff] %vm851_vm2, %v720_v10  ;;  %883 = vst.msk [vmem:[#allocation2 + $0xf8] sm:$0xff] %vm851_vm2, %v722_v11 }
 0x132   :  { %1092 = vrot.lane.b32.xlu0 %v940_v2, %s10310_s30  ;;  %1094 = vrot.lane.b32.xlu1 %v941_v3, %s10310_s30  ;;  %v972_v2 = vld [vmem:[%s16422_s0 + $0x2d0] sm:$0xff]  ;;  %v973_v3 = vld [vmem:[%s16422_s0 + $0x2d8] sm:$0xff] }
 0x134   :  { %v724_v43 = vpop.permute.xlu0 %723  ;;  %v726_v50 = vpop.permute.xlu1 %725 }
 0x135   :  { %884 = vst.msk [vmem:[#allocation2 + $0x100] sm:$0xff] %vm851_vm2, %v724_v43  ;;  %885 = vst.msk [vmem:[#allocation2 + $0x108] sm:$0xff] %vm851_vm2, %v726_v50 }
 0x136   :  { %1096 = vrot.lane.b32.xlu0 %v942_v22, %s10310_s30  ;;  %1098 = vrot.lane.b32.xlu1 %v943_v42, %s10310_s30  ;;  %v974_v22 = vld [vmem:[%s16422_s0 + $0x2e8] sm:$0xff]  ;;  %v975_v42 = vld [vmem:[%s16422_s0 + $0x2f0] sm:$0xff] }
 0x138   :  { %v728_v56 = vpop.permute.xlu0 %727  ;;  %v730_v57 = vpop.permute.xlu1 %729 }
 0x139   :  { %886 = vst.msk [vmem:[#allocation2 + $0x110] sm:$0xff] %vm851_vm2, %v728_v56  ;;  %887 = vst.msk [vmem:[#allocation2 + $0x118] sm:$0xff] %vm851_vm2, %v730_v57 }
 0x13a   :  { %1100 = vrot.lane.b32.xlu0 %v944_v6, %s10310_s30  ;;  %1102 = vrot.lane.b32.xlu1 %v945_v62, %s10310_s30  ;;  %v976_v6 = vld [vmem:[%s16422_s0 + $0x300] sm:$0xff]  ;;  %v977_v62 = vld [vmem:[%s16422_s0 + $0x308] sm:$0xff] }
 0x13c   :  { %v732_v13 = vpop.permute.xlu0 %731  ;;  %v734_v17 = vpop.permute.xlu1 %733 }
 0x13d   :  { %888 = vst.msk [vmem:[#allocation2 + $0x120] sm:$0xff] %vm851_vm2, %v732_v13  ;;  %889 = vst.msk [vmem:[#allocation2 + $0x128] sm:$0xff] %vm851_vm2, %v734_v17  ;;  %v978_v13 = vld [vmem:[%s16422_s0 + $0x318] sm:$0xff] }
 0x13e   :  { %1104 = vrot.lane.b32.xlu0 %v946_v12, %s10310_s30  ;;  %1106 = vrot.lane.b32.xlu1 %v947_v16, %s10310_s30  ;;  %v11556_v12 = vld [vmem:[%s16422_s0 + $0x1a] sm:$0xff]  ;;  %v11561_v16 = vld [vmem:[%s16422_s0 + $0x22] sm:$0xff] }
 0x140   :  { %v736_v20 = vpop.permute.xlu0 %735  ;;  %v738_v23 = vpop.permute.xlu1 %737 }
 0x141   :  { %890 = vst.msk [vmem:[#allocation2 + $0x130] sm:$0xff] %vm851_vm2, %v736_v20  ;;  %891 = vst.msk [vmem:[#allocation2 + $0x138] sm:$0xff] %vm851_vm2, %v738_v23  ;;  %v979_v23 = vld [vmem:[%s16422_s0 + $0x320] sm:$0xff] }
 0x142   :  { %1108 = vrot.lane.b32.xlu0 %v948_v18, %s10310_s30  ;;  %1110 = vrot.lane.b32.xlu1 %v949_v19, %s10310_s30 }
 0x144   :  { %v740_v26 = vpop.permute.xlu0 %739  ;;  %v742_v29 = vpop.permute.xlu1 %741 }
 0x145   :  { %892 = vst.msk [vmem:[#allocation2 + $0x140] sm:$0xff] %vm851_vm2, %v740_v26  ;;  %893 = vst.msk [vmem:[#allocation2 + $0x148] sm:$0xff] %vm851_vm2, %v742_v29  ;;  %v8776_v26 = vld [vmem:[%s16422_s0 + $0x19] sm:$0xff] }
 0x146   :  { %1112 = vrot.lane.b32.xlu0 %v950_v24, %s10310_s30  ;;  %1114 = vrot.lane.b32.xlu1 %v951_v25, %s10310_s30  ;;  %v11581_v24 = vld [vmem:[%s16422_s0 + $0x32] sm:$0xff]  ;;  %v11586_v25 = vld [vmem:[%s16422_s0 + $0x3a] sm:$0xff] }
 0x148   :  { %v744_v32 = vpop.permute.xlu0 %743  ;;  %v746_v33 = vpop.permute.xlu1 %745 }
 0x149   :  { %894 = vst.msk [vmem:[#allocation2 + $0x150] sm:$0xff] %vm851_vm2, %v744_v32  ;;  %895 = vst.msk [vmem:[#allocation2 + $0x158] sm:$0xff] %vm851_vm2, %v746_v33  ;;  %v8777_v33 = vld [vmem:[%s16422_s0 + $0x21] sm:$0xff] }
 0x14a   :  { %1116 = vrot.lane.b32.xlu0 %v952_v30, %s10310_s30  ;;  %1118 = vrot.lane.b32.xlu1 %v953_v31, %s10310_s30 }
 0x14c   :  { %v748_v36 = vpop.permute.xlu0 %747  ;;  %v750_v37 = vpop.permute.xlu1 %749 }
 0x14d   :  { %896 = vst.msk [vmem:[#allocation2 + $0x160] sm:$0xff] %vm851_vm2, %v748_v36  ;;  %897 = vst.msk [vmem:[#allocation2 + $0x168] sm:$0xff] %vm851_vm2, %v750_v37  ;;  %v8778_v36 = vld [vmem:[%s16422_s0 + $0x31] sm:$0xff] }
 0x14e   :  { %1120 = vrot.lane.b32.xlu0 %v954_v34, %s10310_s30  ;;  %1122 = vrot.lane.b32.xlu1 %v955_v35, %s10310_s30  ;;  %v11607_v34 = vld [vmem:[%s16422_s0 + $0x4a] sm:$0xff]  ;;  %v11612_v35 = vld [vmem:[%s16422_s0 + $0x52] sm:$0xff] }
 0x150   :  { %v752_v40 = vpop.permute.xlu0 %751  ;;  %v754_v41 = vpop.permute.xlu1 %753 }
 0x151   :  { %898 = vst.msk [vmem:[#allocation2 + $0x170] sm:$0xff] %vm851_vm2, %v752_v40  ;;  %899 = vst.msk [vmem:[#allocation2 + $0x178] sm:$0xff] %vm851_vm2, %v754_v41  ;;  %v8779_v41 = vld [vmem:[%s16422_s0 + $0x39] sm:$0xff] }
 0x152   :  { %1124 = vrot.lane.b32.xlu0 %v956_v38, %s10310_s30  ;;  %1126 = vrot.lane.b32.xlu1 %v957_v39, %s10310_s30 }
 0x154   :  { %v756_v48 = vpop.permute.xlu0 %755  ;;  %v758_v49 = vpop.permute.xlu1 %757 }
 0x155   :  { %900 = vst.msk [vmem:[#allocation2 + $0x180] sm:$0xff] %vm851_vm2, %v756_v48  ;;  %901 = vst.msk [vmem:[#allocation2 + $0x188] sm:$0xff] %vm851_vm2, %v758_v49  ;;  %v8780_v48 = vld [vmem:[%s16422_s0 + $0x49] sm:$0xff] }
 0x156   :  { %1128 = vrot.lane.b32.xlu0 %v958_v44, %s10310_s30  ;;  %1130 = vrot.lane.b32.xlu1 %v959_v45, %s10310_s30  ;;  %v11633_v44 = vld [vmem:[%s16422_s0 + $0x62] sm:$0xff]  ;;  %v11638_v45 = vld [vmem:[%s16422_s0 + $0x6a] sm:$0xff] }
 0x158   :  { %v760_v63 = vpop.permute.xlu0 %759  ;;  %v762_v21 = vpop.permute.xlu1 %761 }
 0x159   :  { %902 = vst.msk [vmem:[#allocation2 + $0x190] sm:$0xff] %vm851_vm2, %v760_v63  ;;  %903 = vst.msk [vmem:[#allocation2 + $0x198] sm:$0xff] %vm851_vm2, %v762_v21  ;;  %v8781_v21 = vld [vmem:[%s16422_s0 + $0x51] sm:$0xff] }
 0x15a   :  { %1132 = vrot.lane.b32.xlu0 %v960_v52, %s10310_s30  ;;  %1134 = vrot.lane.b32.xlu1 %v961_v53, %s10310_s30 }
 0x15c   :  { %v764_v60 = vpop.permute.xlu0 %763  ;;  %v766_v61 = vpop.permute.xlu1 %765 }
 0x15d   :  { %904 = vst.msk [vmem:[#allocation2 + $0x1a0] sm:$0xff] %vm851_vm2, %v764_v60  ;;  %905 = vst.msk [vmem:[#allocation2 + $0x1a8] sm:$0xff] %vm851_vm2, %v766_v61  ;;  %v8782_v60 = vld [vmem:[%s16422_s0 + $0x61] sm:$0xff] }
 0x15e   :  { %1136 = vrot.lane.b32.xlu0 %v962_v7, %s10310_s30  ;;  %1138 = vrot.lane.b32.xlu1 %v963_v51, %s10310_s30  ;;  %v11659_v7 = vld [vmem:[%s16422_s0 + $0x7a] sm:$0xff]  ;;  %v11664_v51 = vld [vmem:[%s16422_s0 + $0x82] sm:$0xff] }
 0x160   :  { %v768_v4 = vpop.permute.xlu0 %767  ;;  %v770_v5 = vpop.permute.xlu1 %769 }
 0x161   :  { %906 = vst.msk [vmem:[#allocation2 + $0x1b0] sm:$0xff] %vm851_vm2, %v768_v4  ;;  %907 = vst.msk [vmem:[#allocation2 + $0x1b8] sm:$0xff] %vm851_vm2, %v770_v5  ;;  %v8783_v5 = vld [vmem:[%s16422_s0 + $0x69] sm:$0xff] }
 0x162   :  { %1140 = vrot.lane.b32.xlu0 %v964_v0, %s10310_s30  ;;  %1142 = vrot.lane.b32.xlu1 %v965_v1, %s10310_s30 }
 0x164   :  { %v772_v14 = vpop.permute.xlu0 %771  ;;  %v774_v15 = vpop.permute.xlu1 %773 }
 0x165   :  { %908 = vst.msk [vmem:[#allocation2 + $0x1c0] sm:$0xff] %vm851_vm2, %v772_v14  ;;  %909 = vst.msk [vmem:[#allocation2 + $0x1c8] sm:$0xff] %vm851_vm2, %v774_v15  ;;  %v8784_v14 = vld [vmem:[%s16422_s0 + $0x79] sm:$0xff] }
 0x166   :  { %1144 = vrot.lane.b32.xlu0 %v966_v8, %s10310_s30  ;;  %1146 = vrot.lane.b32.xlu1 %v967_v9, %s10310_s30  ;;  %v11685_v8 = vld [vmem:[%s16422_s0 + $0x92] sm:$0xff]  ;;  %v11690_v9 = vld [vmem:[%s16422_s0 + $0x9a] sm:$0xff] }
 0x168   :  { %v776_v46 = vpop.permute.xlu0 %775  ;;  %v778_v47 = vpop.permute.xlu1 %777 }
 0x169   :  { %910 = vst.msk [vmem:[#allocation2 + $0x1d0] sm:$0xff] %vm851_vm2, %v776_v46  ;;  %911 = vst.msk [vmem:[#allocation2 + $0x1d8] sm:$0xff] %vm851_vm2, %v778_v47  ;;  %v8785_v47 = vld [vmem:[%s16422_s0 + $0x81] sm:$0xff] }
 0x16a   :  { %1148 = vrot.lane.b32.xlu0 %v968_v27, %s10310_s30  ;;  %1150 = vrot.lane.b32.xlu1 %v969_v28, %s10310_s30 }
 0x16c   :  { %v780_v58 = vpop.permute.xlu0 %779  ;;  %v782_v59 = vpop.permute.xlu1 %781 }
 0x16d   :  { %912 = vst.msk [vmem:[#allocation2 + $0x1e0] sm:$0xff] %vm851_vm2, %v780_v58  ;;  %913 = vst.msk [vmem:[#allocation2 + $0x1e8] sm:$0xff] %vm851_vm2, %v782_v59  ;;  %v8786_v58 = vld [vmem:[%s16422_s0 + $0x91] sm:$0xff] }
 0x16e   :  { %1152 = vrot.lane.b32.xlu0 %v970_v54, %s10310_s30  ;;  %1154 = vrot.lane.b32.xlu1 %v971_v55, %s10310_s30  ;;  %v11711_v54 = vld [vmem:[%s16422_s0 + $0xaa] sm:$0xff]  ;;  %v11716_v55 = vld [vmem:[%s16422_s0 + $0xb2] sm:$0xff] }
 0x170   :  { %v784_v10 = vpop.permute.xlu0 %783  ;;  %v786_v11 = vpop.permute.xlu1 %785 }
 0x171   :  { %914 = vst.msk [vmem:[#allocation2 + $0x1f0] sm:$0xff] %vm851_vm2, %v784_v10  ;;  %915 = vst.msk [vmem:[#allocation2 + $0x1f8] sm:$0xff] %vm851_vm2, %v786_v11  ;;  %v8787_v11 = vld [vmem:[%s16422_s0 + $0x99] sm:$0xff] }
 0x172   :  { %1156 = vrot.lane.b32.xlu0 %v972_v2, %s10310_s30  ;;  %1158 = vrot.lane.b32.xlu1 %v973_v3, %s10310_s30 }
 0x174   :  { %v1045_v43 = vpop.permute.xlu0 %1044  ;;  %v1047_v50 = vpop.permute.xlu1 %1046 }
 0x175   :  { %1237 = vst.msk [vmem:[#allocation2] sm:$0xff] %vm1236_vm3, %v1045_v43  ;;  %1238 = vst.msk [vmem:[#allocation2 + $0x8] sm:$0xff] %vm1236_vm3, %v1047_v50  ;;  %v8788_v43 = vld [vmem:[%s16422_s0 + $0xa9] sm:$0xff] }
 0x176   :  { %1160 = vrot.lane.b32.xlu0 %v974_v22, %s10310_s30  ;;  %1162 = vrot.lane.b32.xlu1 %v975_v42, %s10310_s30  ;;  %v11737_v22 = vld [vmem:[%s16422_s0 + $0xc2] sm:$0xff]  ;;  %v11742_v42 = vld [vmem:[%s16422_s0 + $0xca] sm:$0xff] }
 0x178   :  { %v1049_v56 = vpop.permute.xlu0 %1048  ;;  %v1051_v57 = vpop.permute.xlu1 %1050 }
 0x179   :  { %1239 = vst.msk [vmem:[#allocation2 + $0x10] sm:$0xff] %vm1236_vm3, %v1049_v56  ;;  %1240 = vst.msk [vmem:[#allocation2 + $0x18] sm:$0xff] %vm1236_vm3, %v1051_v57  ;;  %v8789_v57 = vld [vmem:[%s16422_s0 + $0xb1] sm:$0xff] }
 0x17a   :  { %1164 = vrot.lane.b32.xlu0 %v976_v6, %s10310_s30  ;;  %1166 = vrot.lane.b32.xlu1 %v977_v62, %s10310_s30 }
 0x17c   :  { %v1053_v17 = vpop.permute.xlu0 %1052  ;;  %v1055_v18 = vpop.permute.xlu1 %1054  ;;  %v1301_v19 = vld [vmem:[#allocation2] sm:$0xff]  ;;  %v1302_v20 = vld [vmem:[#allocation2 + $0x8] sm:$0xff] }
 0x17d   :  { %1241 = vst.msk [vmem:[#allocation2 + $0x20] sm:$0xff] %vm1236_vm3, %v1053_v17  ;;  %1242 = vst.msk [vmem:[#allocation2 + $0x28] sm:$0xff] %vm1236_vm3, %v1055_v18  ;;  %9836 = vmatprep.mubr.msk.f32.mxu0 %vm1375_vm4, %v1301_v19  ;;  %v11768_v17 = vld [vmem:[%s16422_s0 + $0xe2] sm:$0xff] }
 0x17e   :  { %2082 = vst.msk [vmem:[#allocation2] sm:$0xff] %vm81_vm0, %v11556_v12  ;;  %2083 = vst.msk [vmem:[#allocation2 + $0x8] sm:$0xff] %vm81_vm0, %v11561_v16  ;;  %1168 = vrot.lane.b32.xlu0 %v978_v13, %s10310_s30  ;;  %9837 = vmatmul.mubr.msk.f32.vlgmr.msra.gmra.mrb[0].mxu0 %vm1375_vm4, %v1302_v20  ;;  %v11763_v13 = vld [vmem:[%s16422_s0 + $0xda] sm:$0xff] }
 0x17f   :  { %1170 = vrot.lane.b32.xlu1 %v979_v23, %s10310_s30  ;;  %v8790_v18 = vld [vmem:[%s16422_s0 + $0xc1] sm:$0xff] }
 0x180   :  { %v1057_v29 = vpop.permute.xlu0 %1056  ;;  %v1059_v30 = vpop.permute.xlu1 %1058  ;;  %v1303_v31 = vld [vmem:[#allocation2 + $0x10] sm:$0xff]  ;;  %v1304_v32 = vld [vmem:[#allocation2 + $0x18] sm:$0xff] }
 0x181   :  { %1243 = vst.msk [vmem:[#allocation2 + $0x30] sm:$0xff] %vm1236_vm3, %v1057_v29  ;;  %1244 = vst.msk [vmem:[#allocation2 + $0x38] sm:$0xff] %vm1236_vm3, %v1059_v30  ;;  %9839 = vmatprep.mubr.msk.f32.mxu0 %vm1375_vm4, %v1303_v31  ;;  %v8791_v29 = vld [vmem:[%s16422_s0 + $0xc9] sm:$0xff]  ;;  %v11789_v30 = vld [vmem:[%s16422_s0 + $0xf2] sm:$0xff] }
 0x182   :  { %2084 = vst.msk [vmem:[#allocation2 + $0x10] sm:$0xff] %vm81_vm0, %v11581_v24  ;;  %2085 = vst.msk [vmem:[#allocation2 + $0x18] sm:$0xff] %vm81_vm0, %v11586_v25  ;;  %2274 = vrot.lane.b32.xlu0 %v8776_v26, %s10308_s16  ;;  %9840 = vmatmul.mubr.msk.f32.gmra.mrb[2].mxu0 %vm1375_vm4, %v1304_v32  ;;  %v11794_v31 = vld [vmem:[%s16422_s0 + $0xfa] sm:$0xff] }
 0x183   :  { %2276 = vrot.lane.b32.xlu1 %v8777_v33, %s10308_s16  ;;  %v8792_v32 = vld [vmem:[%s16422_s0 + $0xd9] sm:$0xff] }
 0x184   :  { %v1061_v37 = vpop.permute.xlu0 %1060  ;;  %v1063_v38 = vpop.permute.xlu1 %1062  ;;  %v1305_v39 = vld [vmem:[#allocation2 + $0x20] sm:$0xff]  ;;  %v1306_v40 = vld [vmem:[#allocation2 + $0x28] sm:$0xff] }
 0x185   :  { %1245 = vst.msk [vmem:[#allocation2 + $0x40] sm:$0xff] %vm1236_vm3, %v1061_v37  ;;  %1246 = vst.msk [vmem:[#allocation2 + $0x48] sm:$0xff] %vm1236_vm3, %v1063_v38  ;;  %9842 = vmatprep.mubr.msk.f32.mxu0 %vm1375_vm4, %v1305_v39  ;;  %v8793_v39 = vld [vmem:[%s16422_s0 + $0xe1] sm:$0xff] }
 0x186   :  { %2086 = vst.msk [vmem:[#allocation2 + $0x20] sm:$0xff] %vm81_vm0, %v11607_v34  ;;  %2087 = vst.msk [vmem:[#allocation2 + $0x28] sm:$0xff] %vm81_vm0, %v11612_v35  ;;  %2278 = vrot.lane.b32.xlu0 %v8778_v36, %s10308_s16  ;;  %9843 = vmatmul.mubr.msk.f32.gmra.mrb[4].mxu0 %vm1375_vm4, %v1306_v40  ;;  %v11815_v40 = vld [vmem:[%s16422_s0 + $0x10a] sm:$0xff] }
 0x187   :  { %2280 = vrot.lane.b32.xlu1 %v8779_v41, %s10308_s16  ;;  %v11820_v41 = vld [vmem:[%s16422_s0 + $0x112] sm:$0xff] }
 0x188   :  { %v1065_v49 = vpop.permute.xlu0 %1064  ;;  %v1067_v52 = vpop.permute.xlu1 %1066  ;;  %v1307_v53 = vld [vmem:[#allocation2 + $0x30] sm:$0xff]  ;;  %v1308_v63 = vld [vmem:[#allocation2 + $0x38] sm:$0xff] }
 0x189   :  { %1247 = vst.msk [vmem:[#allocation2 + $0x50] sm:$0xff] %vm1236_vm3, %v1065_v49  ;;  %1248 = vst.msk [vmem:[#allocation2 + $0x58] sm:$0xff] %vm1236_vm3, %v1067_v52  ;;  %9845 = vmatprep.mubr.msk.f32.mxu0 %vm1375_vm4, %v1307_v53 }
 0x18a   :  { %2088 = vst.msk [vmem:[#allocation2 + $0x30] sm:$0xff] %vm81_vm0, %v11633_v44  ;;  %2089 = vst.msk [vmem:[#allocation2 + $0x38] sm:$0xff] %vm81_vm0, %v11638_v45  ;;  %2282 = vrot.lane.b32.xlu0 %v8780_v48, %s10308_s16  ;;  %9846 = vmatmul.mubr.msk.f32.gmra.mrb[6].mxu0 %vm1375_vm4, %v1308_v63  ;;  %v8794_v48 = vld [vmem:[%s16422_s0 + $0xf1] sm:$0xff] }
 0x18b   :  { %2284 = vrot.lane.b32.xlu1 %v8781_v21, %s10308_s16  ;;  %v8795_v21 = vld [vmem:[%s16422_s0 + $0xf9] sm:$0xff] }
 0x18c   :  { %v1069_v61 = vpop.permute.xlu0 %1068  ;;  %v1071_v0 = vpop.permute.xlu1 %1070  ;;  %v1309_v1 = vld [vmem:[#allocation2 + $0x40] sm:$0xff]  ;;  %v1310_v4 = vld [vmem:[#allocation2 + $0x48] sm:$0xff] }
 0x18d   :  { %1249 = vst.msk [vmem:[#allocation2 + $0x60] sm:$0xff] %vm1236_vm3, %v1069_v61  ;;  %1250 = vst.msk [vmem:[#allocation2 + $0x68] sm:$0xff] %vm1236_vm3, %v1071_v0  ;;  %9848 = vmatprep.mubr.msk.f32.mxu0 %vm1375_vm4, %v1309_v1  ;;  %v11846_v61 = vld [vmem:[%s16422_s0 + $0x12a] sm:$0xff] }
 0x18e   :  { %2090 = vst.msk [vmem:[#allocation2 + $0x40] sm:$0xff] %vm81_vm0, %v11659_v7  ;;  %2091 = vst.msk [vmem:[#allocation2 + $0x48] sm:$0xff] %vm81_vm0, %v11664_v51  ;;  %2286 = vrot.lane.b32.xlu0 %v8782_v60, %s10308_s16  ;;  %9849 = vmatmul.mubr.msk.f32.gmra.mrb[8].mxu0 %vm1375_vm4, %v1310_v4  ;;  %v11841_v60 = vld [vmem:[%s16422_s0 + $0x122] sm:$0xff] }
 0x18f   :  { %2288 = vrot.lane.b32.xlu1 %v8783_v5, %s10308_s16  ;;  %v8796_v0 = vld [vmem:[%s16422_s0 + $0x109] sm:$0xff] }
 0x190   :  { %v1073_v15 = vpop.permute.xlu0 %1072  ;;  %v1075_v27 = vpop.permute.xlu1 %1074  ;;  %v1311_v28 = vld [vmem:[#allocation2 + $0x50] sm:$0xff]  ;;  %v1312_v46 = vld [vmem:[#allocation2 + $0x58] sm:$0xff] }
 0x191   :  { %1251 = vst.msk [vmem:[#allocation2 + $0x70] sm:$0xff] %vm1236_vm3, %v1073_v15  ;;  %1252 = vst.msk [vmem:[#allocation2 + $0x78] sm:$0xff] %vm1236_vm3, %v1075_v27  ;;  %9851 = vmatprep.mubr.msk.f32.mxu0 %vm1375_vm4, %v1311_v28  ;;  %v8797_v15 = vld [vmem:[%s16422_s0 + $0x111] sm:$0xff]  ;;  %v11867_v27 = vld [vmem:[%s16422_s0 + $0x13a] sm:$0xff] }
 0x192   :  { %2092 = vst.msk [vmem:[#allocation2 + $0x50] sm:$0xff] %vm81_vm0, %v11685_v8  ;;  %2093 = vst.msk [vmem:[#allocation2 + $0x58] sm:$0xff] %vm81_vm0, %v11690_v9  ;;  %2290 = vrot.lane.b32.xlu0 %v8784_v14, %s10308_s16  ;;  %9852 = vmatmul.mubr.msk.f32.gmra.mrb[10].mxu0 %vm1375_vm4, %v1312_v46  ;;  %v11872_v28 = vld [vmem:[%s16422_s0 + $0x142] sm:$0xff] }
 0x193   :  { %2292 = vrot.lane.b32.xlu1 %v8785_v47, %s10308_s16  ;;  %v8798_v46 = vld [vmem:[%s16422_s0 + $0x121] sm:$0xff] }
 0x194   :  { %v1077_v59 = vpop.permute.xlu0 %1076  ;;  %v1079_v2 = vpop.permute.xlu1 %1078  ;;  %v1313_v3 = vld [vmem:[#allocation2 + $0x60] sm:$0xff]  ;;  %v1314_v10 = vld [vmem:[#allocation2 + $0x68] sm:$0xff] }
 0x195   :  { %1253 = vst.msk [vmem:[#allocation2 + $0x80] sm:$0xff] %vm1236_vm3, %v1077_v59  ;;  %1254 = vst.msk [vmem:[#allocation2 + $0x88] sm:$0xff] %vm1236_vm3, %v1079_v2  ;;  %9854 = vmatprep.mubr.msk.f32.mxu0 %vm1375_vm4, %v1313_v3  ;;  %v8799_v3 = vld [vmem:[%s16422_s0 + $0x129] sm:$0xff] }
 0x196   :  { %2094 = vst.msk [vmem:[#allocation2 + $0x60] sm:$0xff] %vm81_vm0, %v11711_v54  ;;  %2095 = vst.msk [vmem:[#allocation2 + $0x68] sm:$0xff] %vm81_vm0, %v11716_v55  ;;  %2294 = vrot.lane.b32.xlu0 %v8786_v58, %s10308_s16  ;;  %9855 = vmatmul.mubr.msk.f32.gmra.mrb[12].mxu0 %vm1375_vm4, %v1314_v10  ;;  %v11893_v10 = vld [vmem:[%s16422_s0 + $0x152] sm:$0xff] }
 0x197   :  { %2296 = vrot.lane.b32.xlu1 %v8787_v11, %s10308_s16  ;;  %v11898_v11 = vld [vmem:[%s16422_s0 + $0x15a] sm:$0xff] }
 0x198   :  { %v1081_v50 = vpop.permute.xlu0 %1080  ;;  %v1083_v6 = vpop.permute.xlu1 %1082  ;;  %v1315_v62 = vld [vmem:[#allocation2 + $0x70] sm:$0xff]  ;;  %v1316_v56 = vld [vmem:[#allocation2 + $0x78] sm:$0xff] }
 0x199   :  { %1255 = vst.msk [vmem:[#allocation2 + $0x90] sm:$0xff] %vm1236_vm3, %v1081_v50  ;;  %1256 = vst.msk [vmem:[#allocation2 + $0x98] sm:$0xff] %vm1236_vm3, %v1083_v6  ;;  %9857 = vmatprep.mubr.msk.f32.mxu0 %vm1375_vm4, %v1315_v62 }
 0x19a   :  { %2096 = vst.msk [vmem:[#allocation2 + $0x70] sm:$0xff] %vm81_vm0, %v11737_v22  ;;  %2097 = vst.msk [vmem:[#allocation2 + $0x78] sm:$0xff] %vm81_vm0, %v11742_v42  ;;  %2298 = vrot.lane.b32.xlu0 %v8788_v43, %s10308_s16  ;;  %9858 = vmatmul.mubr.msk.f32.gmra.mrb[14].mxu0 %vm1375_vm4, %v1316_v56  ;;  %v8800_v43 = vld [vmem:[%s16422_s0 + $0x139] sm:$0xff] }
 0x19b   :  { %2300 = vrot.lane.b32.xlu1 %v8789_v57, %s10308_s16  ;;  %v8801_v57 = vld [vmem:[%s16422_s0 + $0x141] sm:$0xff] }
 0x19c   :  { %v1085_v19 = vpop.permute.xlu0 %1084  ;;  %v1087_v20 = vpop.permute.xlu1 %1086  ;;  %v1317_v23 = vld [vmem:[#allocation2 + $0x80] sm:$0xff]  ;;  %v1318_v26 = vld [vmem:[#allocation2 + $0x88] sm:$0xff] }
 0x19d   :  { %1257 = vst.msk [vmem:[#allocation2 + $0xa0] sm:$0xff] %vm1236_vm3, %v1085_v19  ;;  %1258 = vst.msk [vmem:[#allocation2 + $0xa8] sm:$0xff] %vm1236_vm3, %v1087_v20  ;;  %9860 = vmatprep.mubr.msk.f32.mxu0 %vm1375_vm4, %v1317_v23  ;;  %v11924_v19 = vld [vmem:[%s16422_s0 + $0x172] sm:$0xff] }
 0x19e   :  { %2098 = vst.msk [vmem:[#allocation2 + $0x80] sm:$0xff] %vm81_vm0, %v11763_v13  ;;  %2099 = vst.msk [vmem:[#allocation2 + $0x88] sm:$0xff] %vm81_vm0, %v11768_v17  ;;  %2302 = vrot.lane.b32.xlu0 %v8790_v18, %s10308_s16  ;;  %9861 = vmatmul.mubr.msk.f32.gmra.mrb[16].mxu0 %vm1375_vm4, %v1318_v26  ;;  %v11919_v18 = vld [vmem:[%s16422_s0 + $0x16a] sm:$0xff] }
 0x19f   :  { %2304 = vrot.lane.b32.xlu1 %v8791_v29, %s10308_s16  ;;  %v8802_v20 = vld [vmem:[%s16422_s0 + $0x151] sm:$0xff] }
 0x1a0   :  { %v1089_v33 = vpop.permute.xlu0 %1088  ;;  %v1091_v36 = vpop.permute.xlu1 %1090  ;;  %v1319_v37 = vld [vmem:[#allocation2 + $0x90] sm:$0xff]  ;;  %v1320_v38 = vld [vmem:[#allocation2 + $0x98] sm:$0xff] }
 0x1a1   :  { %1259 = vst.msk [vmem:[#allocation2 + $0xb0] sm:$0xff] %vm1236_vm3, %v1089_v33  ;;  %1260 = vst.msk [vmem:[#allocation2 + $0xb8] sm:$0xff] %vm1236_vm3, %v1091_v36  ;;  %9863 = vmatprep.mubr.msk.f32.mxu0 %vm1375_vm4, %v1319_v37  ;;  %v8803_v33 = vld [vmem:[%s16422_s0 + $0x159] sm:$0xff]  ;;  %v8742_v36 = vld [vmem:[%s16422_s0 + $0x182] sm:$0xff] }
 0x1a2   :  { %2100 = vst.msk [vmem:[#allocation2 + $0x90] sm:$0xff] %vm81_vm0, %v11789_v30  ;;  %2101 = vst.msk [vmem:[#allocation2 + $0x98] sm:$0xff] %vm81_vm0, %v11794_v31  ;;  %2306 = vrot.lane.b32.xlu0 %v8792_v32, %s10308_s16  ;;  %9864 = vmatmul.mubr.msk.f32.gmra.mrb[18].mxu0 %vm1375_vm4, %v1320_v38  ;;  %v8743_v37 = vld [vmem:[%s16422_s0 + $0x18a] sm:$0xff] }
 0x1a3   :  { %2308 = vrot.lane.b32.xlu1 %v8793_v39, %s10308_s16  ;;  %v8804_v38 = vld [vmem:[%s16422_s0 + $0x169] sm:$0xff] }
 0x1a4   :  { %v1093_v49 = vpop.permute.xlu0 %1092  ;;  %v1095_v52 = vpop.permute.xlu1 %1094  ;;  %v1321_v53 = vld [vmem:[#allocation2 + $0xa0] sm:$0xff]  ;;  %v1322_v63 = vld [vmem:[#allocation2 + $0xa8] sm:$0xff] }
 0x1a5   :  { %1261 = vst.msk [vmem:[#allocation2 + $0xc0] sm:$0xff] %vm1236_vm3, %v1093_v49  ;;  %1262 = vst.msk [vmem:[#allocation2 + $0xc8] sm:$0xff] %vm1236_vm3, %v1095_v52  ;;  %9866 = vmatprep.mubr.msk.f32.mxu0 %vm1375_vm4, %v1321_v53  ;;  %v8805_v53 = vld [vmem:[%s16422_s0 + $0x171] sm:$0xff] }
 0x1a6   :  { %2102 = vst.msk [vmem:[#allocation2 + $0xa0] sm:$0xff] %vm81_vm0, %v11815_v40  ;;  %2103 = vst.msk [vmem:[#allocation2 + $0xa8] sm:$0xff] %vm81_vm0, %v11820_v41  ;;  %2310 = vrot.lane.b32.xlu0 %v8794_v48, %s10308_s16  ;;  %9867 = vmatmul.mubr.msk.f32.gmra.mrb[20].mxu0 %vm1375_vm4, %v1322_v63  ;;  %v11965_v63 = vld [vmem:[%s16422_s0 + $0x1ca] sm:$0xff] }
 0x1a7   :  { %2312 = vrot.lane.b32.xlu1 %v8795_v21, %s10308_s16  ;;  %v11970_v21 = vld [vmem:[%s16422_s0 + $0x1d2] sm:$0xff] }
 0x1a8   :  { %v1097_v1 = vpop.permute.xlu0 %1096  ;;  %v1099_v4 = vpop.permute.xlu1 %1098  ;;  %v1323_v5 = vld [vmem:[#allocation2 + $0xb0] sm:$0xff]  ;;  %v1324_v14 = vld [vmem:[#allocation2 + $0xb8] sm:$0xff] }
 0x1a9   :  { %1263 = vst.msk [vmem:[#allocation2 + $0xd0] sm:$0xff] %vm1236_vm3, %v1097_v1  ;;  %1264 = vst.msk [vmem:[#allocation2 + $0xd8] sm:$0xff] %vm1236_vm3, %v1099_v4  ;;  %9869 = vmatprep.mubr.msk.f32.mxu0 %vm1375_vm4, %v1323_v5 }
 0x1aa   :  { %2104 = vst.msk [vmem:[#allocation2 + $0xb0] sm:$0xff] %vm81_vm0, %v11841_v60  ;;  %2105 = vst.msk [vmem:[#allocation2 + $0xb8] sm:$0xff] %vm81_vm0, %v11846_v61  ;;  %2314 = vrot.lane.b32.xlu0 %v8796_v0, %s10308_s16  ;;  %9870 = vmatmul.mubr.msk.f32.gmra.mrb[22].mxu0 %vm1375_vm4, %v1324_v14  ;;  %v8806_v0 = vld [vmem:[%s16422_s0 + $0x181] sm:$0xff] }
 0x1ab   :  { %2316 = vrot.lane.b32.xlu1 %v8797_v15, %s10308_s16  ;;  %v8807_v15 = vld [vmem:[%s16422_s0 + $0x189] sm:$0xff] }
 0x1ac   :  { %v1101_v47 = vpop.permute.xlu0 %1100  ;;  %v1103_v58 = vpop.permute.xlu1 %1102  ;;  %v1325_v59 = vld [vmem:[#allocation2 + $0xc0] sm:$0xff]  ;;  %v1326_v2 = vld [vmem:[#allocation2 + $0xc8] sm:$0xff] }
 0x1ad   :  { %1265 = vst.msk [vmem:[#allocation2 + $0xe0] sm:$0xff] %vm1236_vm3, %v1101_v47  ;;  %1266 = vst.msk [vmem:[#allocation2 + $0xe8] sm:$0xff] %vm1236_vm3, %v1103_v58  ;;  %9872 = vmatprep.mubr.msk.f32.mxu0 %vm1375_vm4, %v1325_v59  ;;  %v11996_v47 = vld [vmem:[%s16422_s0 + $0x1ea] sm:$0xff] }
 0x1ae   :  { %2106 = vst.msk [vmem:[#allocation2 + $0xc0] sm:$0xff] %vm81_vm0, %v11867_v27  ;;  %2107 = vst.msk [vmem:[#allocation2 + $0xc8] sm:$0xff] %vm81_vm0, %v11872_v28  ;;  %2318 = vrot.lane.b32.xlu0 %v8798_v46, %s10308_s16  ;;  %9873 = vmatmul.mubr.msk.f32.gmra.mrb[24].mxu0 %vm1375_vm4, %v1326_v2  ;;  %v11991_v46 = vld [vmem:[%s16422_s0 + $0x1e2] sm:$0xff] }
 0x1af   :  { %2320 = vrot.lane.b32.xlu1 %v8799_v3, %s10308_s16  ;;  %v8808_v58 = vld [vmem:[%s16422_s0 + $0x1c9] sm:$0xff] }
 0x1b0   :  { %v1105_v50 = vpop.permute.xlu0 %1104  ;;  %v1107_v6 = vpop.permute.xlu1 %1106  ;;  %v1327_v62 = vld [vmem:[#allocation2 + $0xd0] sm:$0xff]  ;;  %v1328_v56 = vld [vmem:[#allocation2 + $0xd8] sm:$0xff] }
 0x1b1   :  { %1267 = vst.msk [vmem:[#allocation2 + $0xf0] sm:$0xff] %vm1236_vm3, %v1105_v50  ;;  %1268 = vst.msk [vmem:[#allocation2 + $0xf8] sm:$0xff] %vm1236_vm3, %v1107_v6  ;;  %9875 = vmatprep.mubr.msk.f32.mxu0 %vm1375_vm4, %v1327_v62  ;;  %v8809_v50 = vld [vmem:[%s16422_s0 + $0x1d1] sm:$0xff]  ;;  %v12017_v6 = vld [vmem:[%s16422_s0 + $0x1fa] sm:$0xff] }
 0x1b2   :  { %2108 = vst.msk [vmem:[#allocation2 + $0xd0] sm:$0xff] %vm81_vm0, %v11893_v10  ;;  %2109 = vst.msk [vmem:[#allocation2 + $0xd8] sm:$0xff] %vm81_vm0, %v11898_v11  ;;  %2322 = vrot.lane.b32.xlu0 %v8800_v43, %s10308_s16  ;;  %9876 = vmatmul.mubr.msk.f32.gmra.mrb[26].mxu0 %vm1375_vm4, %v1328_v56  ;;  %v12022_v62 = vld [vmem:[%s16422_s0 + $0x202] sm:$0xff] }
 0x1b3   :  { %2324 = vrot.lane.b32.xlu1 %v8801_v57, %s10308_s16  ;;  %v8810_v56 = vld [vmem:[%s16422_s0 + $0x1e1] sm:$0xff] }
 0x1b4   :  { %v1109_v23 = vpop.permute.xlu0 %1108  ;;  %v1111_v26 = vpop.permute.xlu1 %1110  ;;  %v1329_v29 = vld [vmem:[#allocation2 + $0xe0] sm:$0xff]  ;;  %v1330_v32 = vld [vmem:[#allocation2 + $0xe8] sm:$0xff] }
 0x1b5   :  { %1269 = vst.msk [vmem:[#allocation2 + $0x100] sm:$0xff] %vm1236_vm3, %v1109_v23  ;;  %1270 = vst.msk [vmem:[#allocation2 + $0x108] sm:$0xff] %vm1236_vm3, %v1111_v26  ;;  %9878 = vmatprep.mubr.msk.f32.mxu0 %vm1375_vm4, %v1329_v29  ;;  %v8811_v29 = vld [vmem:[%s16422_s0 + $0x1e9] sm:$0xff] }
 0x1b6   :  { %2110 = vst.msk [vmem:[#allocation2 + $0xe0] sm:$0xff] %vm81_vm0, %v11919_v18  ;;  %2111 = vst.msk [vmem:[#allocation2 + $0xe8] sm:$0xff] %vm81_vm0, %v11924_v19  ;;  %2326 = vrot.lane.b32.xlu0 %v8802_v20, %s10308_s16  ;;  %9879 = vmatmul.mubr.msk.f32.gmra.mrb[28].mxu0 %vm1375_vm4, %v1330_v32  ;;  %v12043_v32 = vld [vmem:[%s16422_s0 + $0x212] sm:$0xff] }
 0x1b7   :  { %2328 = vrot.lane.b32.xlu1 %v8803_v33, %s10308_s16  ;;  %v12048_v33 = vld [vmem:[%s16422_s0 + $0x21a] sm:$0xff] }
 0x1b8   :  { %v1113_v39 = vpop.permute.xlu0 %1112  ;;  %v1115_v48 = vpop.permute.xlu1 %1114  ;;  %v1331_v49 = vld [vmem:[#allocation2 + $0xf0] sm:$0xff]  ;;  %v1332_v52 = vld [vmem:[#allocation2 + $0xf8] sm:$0xff] }
 0x1b9   :  { %1271 = vst.msk [vmem:[#allocation2 + $0x110] sm:$0xff] %vm1236_vm3, %v1113_v39  ;;  %1272 = vst.msk [vmem:[#allocation2 + $0x118] sm:$0xff] %vm1236_vm3, %v1115_v48  ;;  %9881 = vmatprep.mubr.msk.f32.mxu0 %vm1375_vm4, %v1331_v49  ;;  %v8813_v49 = vld [vmem:[%s16422_s0 + $0x201] sm:$0xff] }
 0x1ba   :  { %2112 = vst.msk [vmem:[#allocation2 + $0xf0] sm:$0xff] %vm81_vm0, %v8742_v36  ;;  %2113 = vst.msk [vmem:[#allocation2 + $0xf8] sm:$0xff] %vm81_vm0, %v8743_v37  ;;  %2330 = vrot.lane.b32.xlu0 %v8804_v38, %s10308_s16  ;;  %9882 = vmatmul.mubr.msk.f32.gmra.mrb[30].mxu0 %vm1375_vm4, %v1332_v52  ;;  %v8812_v36 = vld [vmem:[%s16422_s0 + $0x1f9] sm:$0xff]  ;;  %v12069_v52 = vld [vmem:[%s16422_s0 + $0x22a] sm:$0xff] }
 0x1bb   :  { %2332 = vrot.lane.b32.xlu1 %v8805_v53, %s10308_s16  ;;  %v12074_v53 = vld [vmem:[%s16422_s0 + $0x232] sm:$0xff] }
 0x1bc   :  { %v1117_v1 = vpop.permute.xlu0 %1116  ;;  %v1119_v4 = vpop.permute.xlu1 %1118  ;;  %v1333_v5 = vld [vmem:[#allocation2 + $0x100] sm:$0xff]  ;;  %v1334_v14 = vld [vmem:[#allocation2 + $0x108] sm:$0xff] }
 0x1bd   :  { %1273 = vst.msk [vmem:[#allocation2 + $0x120] sm:$0xff] %vm1236_vm3, %v1117_v1  ;;  %1274 = vst.msk [vmem:[#allocation2 + $0x128] sm:$0xff] %vm1236_vm3, %v1119_v4  ;;  %9884 = vmatprep.mubr.msk.f32.mxu0 %vm1375_vm4, %v1333_v5 }
 0x1be   :  { %2114 = vst.msk [vmem:[#allocation2 + $0x100] sm:$0xff] %vm81_vm0, %v11965_v63  ;;  %2115 = vst.msk [vmem:[#allocation2 + $0x108] sm:$0xff] %vm81_vm0, %v11970_v21  ;;  %2334 = vrot.lane.b32.xlu0 %v8806_v0, %s10308_s16  ;;  %9885 = vmatmul.mubr.msk.f32.gmra.mrb[32].mxu0 %vm1375_vm4, %v1334_v14  ;;  %v8814_v0 = vld [vmem:[%s16422_s0 + $0x211] sm:$0xff] }
 0x1bf   :  { %2336 = vrot.lane.b32.xlu1 %v8807_v15, %s10308_s16  ;;  %v8815_v15 = vld [vmem:[%s16422_s0 + $0x219] sm:$0xff] }
 0x1c0   :  { %v1121_v59 = vpop.permute.xlu0 %1120  ;;  %v1123_v2 = vpop.permute.xlu1 %1122  ;;  %v1335_v3 = vld [vmem:[#allocation2 + $0x110] sm:$0xff]  ;;  %v1336_v43 = vld [vmem:[#allocation2 + $0x118] sm:$0xff] }
 0x1c1   :  { %1275 = vst.msk [vmem:[#allocation2 + $0x130] sm:$0xff] %vm1236_vm3, %v1121_v59  ;;  %1276 = vst.msk [vmem:[#allocation2 + $0x138] sm:$0xff] %vm1236_vm3, %v1123_v2  ;;  %9887 = vmatprep.mubr.msk.f32.mxu0 %vm1375_vm4, %v1335_v3  ;;  %v12100_v59 = vld [vmem:[%s16422_s0 + $0x24a] sm:$0xff] }
 0x1c2   :  { %2116 = vst.msk [vmem:[#allocation2 + $0x110] sm:$0xff] %vm81_vm0, %v11991_v46  ;;  %2117 = vst.msk [vmem:[#allocation2 + $0x118] sm:$0xff] %vm81_vm0, %v11996_v47  ;;  %2338 = vrot.lane.b32.xlu0 %v8808_v58, %s10308_s16  ;;  %9888 = vmatmul.mubr.msk.f32.gmra.mrb[34].mxu0 %vm1375_vm4, %v1336_v43  ;;  %v12095_v58 = vld [vmem:[%s16422_s0 + $0x242] sm:$0xff] }
 0x1c3   :  { %2340 = vrot.lane.b32.xlu1 %v8809_v50, %s10308_s16  ;;  %v8816_v2 = vld [vmem:[%s16422_s0 + $0x229] sm:$0xff] }
 0x1c4   :  { %v1125_v57 = vpop.permute.xlu0 %1124  ;;  %v1127_v20 = vpop.permute.xlu1 %1126  ;;  %v1337_v23 = vld [vmem:[#allocation2 + $0x120] sm:$0xff]  ;;  %v1338_v26 = vld [vmem:[#allocation2 + $0x128] sm:$0xff] }
 0x1c5   :  { %1277 = vst.msk [vmem:[#allocation2 + $0x140] sm:$0xff] %vm1236_vm3, %v1125_v57  ;;  %1278 = vst.msk [vmem:[#allocation2 + $0x148] sm:$0xff] %vm1236_vm3, %v1127_v20  ;;  %9890 = vmatprep.mubr.msk.f32.mxu0 %vm1375_vm4, %v1337_v23  ;;  %v8817_v57 = vld [vmem:[%s16422_s0 + $0x231] sm:$0xff]  ;;  %v12121_v20 = vld [vmem:[%s16422_s0 + $0x25a] sm:$0xff] }
 0x1c6   :  { %2118 = vst.msk [vmem:[#allocation2 + $0x120] sm:$0xff] %vm81_vm0, %v12017_v6  ;;  %2119 = vst.msk [vmem:[#allocation2 + $0x128] sm:$0xff] %vm81_vm0, %v12022_v62  ;;  %2342 = vrot.lane.b32.xlu0 %v8810_v56, %s10308_s16  ;;  %9891 = vmatmul.mubr.msk.f32.gmra.mrb[36].mxu0 %vm1375_vm4, %v1338_v26  ;;  %v12126_v23 = vld [vmem:[%s16422_s0 + $0x262] sm:$0xff] }
 0x1c7   :  { %2344 = vrot.lane.b32.xlu1 %v8811_v29, %s10308_s16  ;;  %v8818_v26 = vld [vmem:[%s16422_s0 + $0x241] sm:$0xff] }
 0x1c8   :  { %v1129_v37 = vpop.permute.xlu0 %1128  ;;  %v1131_v38 = vpop.permute.xlu1 %1130  ;;  %v1339_v39 = vld [vmem:[#allocation2 + $0x130] sm:$0xff]  ;;  %v1340_v48 = vld [vmem:[#allocation2 + $0x138] sm:$0xff] }
 0x1c9   :  { %1279 = vst.msk [vmem:[#allocation2 + $0x150] sm:$0xff] %vm1236_vm3, %v1129_v37  ;;  %1280 = vst.msk [vmem:[#allocation2 + $0x158] sm:$0xff] %vm1236_vm3, %v1131_v38  ;;  %9893 = vmatprep.mubr.msk.f32.mxu0 %vm1375_vm4, %v1339_v39  ;;  %v8819_v39 = vld [vmem:[%s16422_s0 + $0x249] sm:$0xff] }
 0x1ca   :  { %2120 = vst.msk [vmem:[#allocation2 + $0x130] sm:$0xff] %vm81_vm0, %v12043_v32  ;;  %2121 = vst.msk [vmem:[#allocation2 + $0x138] sm:$0xff] %vm81_vm0, %v12048_v33  ;;  %2346 = vrot.lane.b32.xlu0 %v8812_v36, %s10308_s16  ;;  %9894 = vmatmul.mubr.msk.f32.gmra.mrb[38].mxu0 %vm1375_vm4, %v1340_v48  ;;  %v12147_v48 = vld [vmem:[%s16422_s0 + $0x272] sm:$0xff] }
 0x1cb   :  { %2348 = vrot.lane.b32.xlu1 %v8813_v49, %s10308_s16  ;;  %v12152_v49 = vld [vmem:[%s16422_s0 + $0x27a] sm:$0xff] }
 0x1cc   :  { %v1133_v1 = vpop.permute.xlu0 %1132  ;;  %v1135_v4 = vpop.permute.xlu1 %1134  ;;  %v1341_v5 = vld [vmem:[#allocation2 + $0x140] sm:$0xff]  ;;  %v1342_v14 = vld [vmem:[#allocation2 + $0x148] sm:$0xff] }
 0x1cd   :  { %1281 = vst.msk [vmem:[#allocation2 + $0x160] sm:$0xff] %vm1236_vm3, %v1133_v1  ;;  %1282 = vst.msk [vmem:[#allocation2 + $0x168] sm:$0xff] %vm1236_vm3, %v1135_v4  ;;  %9896 = vmatprep.mubr.msk.f32.mxu0 %vm1375_vm4, %v1341_v5 }
 0x1ce   :  { %2122 = vst.msk [vmem:[#allocation2 + $0x140] sm:$0xff] %vm81_vm0, %v12069_v52  ;;  %2123 = vst.msk [vmem:[#allocation2 + $0x148] sm:$0xff] %vm81_vm0, %v12074_v53  ;;  %2350 = vrot.lane.b32.xlu0 %v8814_v0, %s10308_s16  ;;  %9897 = vmatmul.mubr.msk.f32.gmra.mrb[40].mxu0 %vm1375_vm4, %v1342_v14  ;;  %v8820_v0 = vld [vmem:[%s16422_s0 + $0x259] sm:$0xff] }
 0x1cf   :  { %2352 = vrot.lane.b32.xlu1 %v8815_v15, %s10308_s16  ;;  %v8821_v15 = vld [vmem:[%s16422_s0 + $0x261] sm:$0xff] }
 0x1d0   :  { %v1137_v3 = vpop.permute.xlu0 %1136  ;;  %v1139_v43 = vpop.permute.xlu1 %1138  ;;  %v1343_v50 = vld [vmem:[#allocation2 + $0x150] sm:$0xff]  ;;  %v1344_v56 = vld [vmem:[#allocation2 + $0x158] sm:$0xff] }
 0x1d1   :  { %1283 = vst.msk [vmem:[#allocation2 + $0x170] sm:$0xff] %vm1236_vm3, %v1137_v3  ;;  %1284 = vst.msk [vmem:[#allocation2 + $0x178] sm:$0xff] %vm1236_vm3, %v1139_v43  ;;  %9899 = vmatprep.mubr.msk.f32.mxu0 %vm1375_vm4, %v1343_v50  ;;  %v12178_v3 = vld [vmem:[%s16422_s0 + $0x292] sm:$0xff] }
 0x1d2   :  { %2124 = vst.msk [vmem:[#allocation2 + $0x150] sm:$0xff] %vm81_vm0, %v12095_v58  ;;  %2125 = vst.msk [vmem:[#allocation2 + $0x158] sm:$0xff] %vm81_vm0, %v12100_v59  ;;  %2354 = vrot.lane.b32.xlu0 %v8816_v2, %s10308_s16  ;;  %9900 = vmatmul.mubr.msk.f32.gmra.mrb[42].mxu0 %vm1375_vm4, %v1344_v56  ;;  %v12173_v2 = vld [vmem:[%s16422_s0 + $0x28a] sm:$0xff] }
 0x1d3   :  { %2356 = vrot.lane.b32.xlu1 %v8817_v57, %s10308_s16  ;;  %v8822_v43 = vld [vmem:[%s16422_s0 + $0x271] sm:$0xff] }
 0x1d4   :  { %v1141_v29 = vpop.permute.xlu0 %1140  ;;  %v1143_v36 = vpop.permute.xlu1 %1142  ;;  %v1345_v37 = vld [vmem:[#allocation2 + $0x160] sm:$0xff]  ;;  %v1346_v38 = vld [vmem:[#allocation2 + $0x168] sm:$0xff] }
 0x1d5   :  { %1285 = vst.msk [vmem:[#allocation2 + $0x180] sm:$0xff] %vm1236_vm3, %v1141_v29  ;;  %1286 = vst.msk [vmem:[#allocation2 + $0x188] sm:$0xff] %vm1236_vm3, %v1143_v36  ;;  %9902 = vmatprep.mubr.msk.f32.mxu0 %vm1375_vm4, %v1345_v37  ;;  %v8823_v29 = vld [vmem:[%s16422_s0 + $0x279] sm:$0xff]  ;;  %v12199_v36 = vld [vmem:[%s16422_s0 + $0x2a2] sm:$0xff] }
 0x1d6   :  { %2126 = vst.msk [vmem:[#allocation2 + $0x160] sm:$0xff] %vm81_vm0, %v12121_v20  ;;  %2127 = vst.msk [vmem:[#allocation2 + $0x168] sm:$0xff] %vm81_vm0, %v12126_v23  ;;  %2358 = vrot.lane.b32.xlu0 %v8818_v26, %s10308_s16  ;;  %9903 = vmatmul.mubr.msk.f32.gmra.mrb[44].mxu0 %vm1375_vm4, %v1346_v38  ;;  %v12204_v37 = vld [vmem:[%s16422_s0 + $0x2aa] sm:$0xff] }
 0x1d7   :  { %2360 = vrot.lane.b32.xlu1 %v8819_v39, %s10308_s16  ;;  %v8824_v38 = vld [vmem:[%s16422_s0 + $0x289] sm:$0xff] }
 0x1d8   :  { %v1145_v1 = vpop.permute.xlu0 %1144  ;;  %v1147_v4 = vpop.permute.xlu1 %1146  ;;  %v1347_v5 = vld [vmem:[#allocation2 + $0x170] sm:$0xff]  ;;  %v1348_v14 = vld [vmem:[#allocation2 + $0x178] sm:$0xff] }
 0x1d9   :  { %1287 = vst.msk [vmem:[#allocation2 + $0x190] sm:$0xff] %vm1236_vm3, %v1145_v1  ;;  %1288 = vst.msk [vmem:[#allocation2 + $0x198] sm:$0xff] %vm1236_vm3, %v1147_v4  ;;  %9905 = vmatprep.mubr.msk.f32.mxu0 %vm1375_vm4, %v1347_v5  ;;  %v8825_v5 = vld [vmem:[%s16422_s0 + $0x291] sm:$0xff] }
 0x1da   :  { %2128 = vst.msk [vmem:[#allocation2 + $0x170] sm:$0xff] %vm81_vm0, %v12147_v48  ;;  %2129 = vst.msk [vmem:[#allocation2 + $0x178] sm:$0xff] %vm81_vm0, %v12152_v49  ;;  %2362 = vrot.lane.b32.xlu0 %v8820_v0, %s10308_s16  ;;  %9906 = vmatmul.mubr.msk.f32.gmra.mrb[46].mxu0 %vm1375_vm4, %v1348_v14  ;;  %v12225_v14 = vld [vmem:[%s16422_s0 + $0x2ba] sm:$0xff] }
 0x1db   :  { %2364 = vrot.lane.b32.xlu1 %v8821_v15, %s10308_s16  ;;  %v12230_v15 = vld [vmem:[%s16422_s0 + $0x2c2] sm:$0xff] }
 0x1dc   :  { %v1149_v50 = vpop.permute.xlu0 %1148  ;;  %v1151_v56 = vpop.permute.xlu1 %1150  ;;  %v1349_v57 = vld [vmem:[#allocation2 + $0x180] sm:$0xff]  ;;  %v1350_v26 = vld [vmem:[#allocation2 + $0x188] sm:$0xff] }
 0x1dd   :  { %1289 = vst.msk [vmem:[#allocation2 + $0x1a0] sm:$0xff] %vm1236_vm3, %v1149_v50  ;;  %1290 = vst.msk [vmem:[#allocation2 + $0x1a8] sm:$0xff] %vm1236_vm3, %v1151_v56  ;;  %9908 = vmatprep.mubr.msk.f32.mxu0 %vm1375_vm4, %v1349_v57 }
 0x1de   :  { %2130 = vst.msk [vmem:[#allocation2 + $0x180] sm:$0xff] %vm81_vm0, %v12173_v2  ;;  %2131 = vst.msk [vmem:[#allocation2 + $0x188] sm:$0xff] %vm81_vm0, %v12178_v3  ;;  %2366 = vrot.lane.b32.xlu0 %v8822_v43, %s10308_s16  ;;  %9909 = vmatmul.mubr.msk.f32.gmra.mrb[48].mxu0 %vm1375_vm4, %v1350_v26  ;;  %v8826_v43 = vld [vmem:[%s16422_s0 + $0x2a1] sm:$0xff] }
 0x1df   :  { %2368 = vrot.lane.b32.xlu1 %v8823_v29, %s10308_s16  ;;  %v8827_v29 = vld [vmem:[%s16422_s0 + $0x2a9] sm:$0xff] }
 0x1e0   :  { %v1153_v39 = vpop.permute.xlu0 %1152  ;;  %v1155_v0 = vpop.permute.xlu1 %1154  ;;  %v1351_v1 = vld [vmem:[#allocation2 + $0x190] sm:$0xff]  ;;  %v1352_v4 = vld [vmem:[#allocation2 + $0x198] sm:$0xff] }
 0x1e1   :  { %1291 = vst.msk [vmem:[#allocation2 + $0x1b0] sm:$0xff] %vm1236_vm3, %v1153_v39  ;;  %1292 = vst.msk [vmem:[#allocation2 + $0x1b8] sm:$0xff] %vm1236_vm3, %v1155_v0  ;;  %9911 = vmatprep.mubr.msk.f32.mxu0 %vm1375_vm4, %v1351_v1  ;;  %v12256_v39 = vld [vmem:[%s16422_s0 + $0x2da] sm:$0xff] }
 0x1e2   :  { %2132 = vst.msk [vmem:[#allocation2 + $0x190] sm:$0xff] %vm81_vm0, %v12199_v36  ;;  %2133 = vst.msk [vmem:[#allocation2 + $0x198] sm:$0xff] %vm81_vm0, %v12204_v37  ;;  %2370 = vrot.lane.b32.xlu0 %v8824_v38, %s10308_s16  ;;  %9912 = vmatmul.mubr.msk.f32.gmra.mrb[50].mxu0 %vm1375_vm4, %v1352_v4  ;;  %v12251_v38 = vld [vmem:[%s16422_s0 + $0x2d2] sm:$0xff] }
 0x1e3   :  { %2372 = vrot.lane.b32.xlu1 %v8825_v5, %s10308_s16  ;;  %v8828_v0 = vld [vmem:[%s16422_s0 + $0x2b9] sm:$0xff] }
 0x1e4   :  { %v1157_v50 = vpop.permute.xlu0 %1156  ;;  %v1159_v56 = vpop.permute.xlu1 %1158  ;;  %v1353_v57 = vld [vmem:[#allocation2 + $0x1a0] sm:$0xff]  ;;  %v1354_v26 = vld [vmem:[#allocation2 + $0x1a8] sm:$0xff] }
 0x1e5   :  { %1293 = vst.msk [vmem:[#allocation2 + $0x1c0] sm:$0xff] %vm1236_vm3, %v1157_v50  ;;  %1294 = vst.msk [vmem:[#allocation2 + $0x1c8] sm:$0xff] %vm1236_vm3, %v1159_v56  ;;  %9914 = vmatprep.mubr.msk.f32.mxu0 %vm1375_vm4, %v1353_v57  ;;  %v8829_v50 = vld [vmem:[%s16422_s0 + $0x2c1] sm:$0xff]  ;;  %v12277_v56 = vld [vmem:[%s16422_s0 + $0x2ea] sm:$0xff] }
 0x1e6   :  { %2134 = vst.msk [vmem:[#allocation2 + $0x1a0] sm:$0xff] %vm81_vm0, %v12225_v14  ;;  %2135 = vst.msk [vmem:[#allocation2 + $0x1a8] sm:$0xff] %vm81_vm0, %v12230_v15  ;;  %2374 = vrot.lane.b32.xlu0 %v8826_v43, %s10308_s16  ;;  %9915 = vmatmul.mubr.msk.f32.gmra.mrb[52].mxu0 %vm1375_vm4, %v1354_v26  ;;  %v12282_v57 = vld [vmem:[%s16422_s0 + $0x2f2] sm:$0xff] }
 0x1e7   :  { %2376 = vrot.lane.b32.xlu1 %v8827_v29, %s10308_s16  ;;  %16447 = vst [vmem:[#allocation6_spill] sm:$0xff] %v12282_v57  ;;  %v8830_v26 = vld [vmem:[%s16422_s0 + $0x2d1] sm:$0xff] }
 0x1e8   :  { %v1161_v1 = vpop.permute.xlu0 %1160  ;;  %v1163_v4 = vpop.permute.xlu1 %1162  ;;  %v1355_v5 = vld [vmem:[#allocation2 + $0x1b0] sm:$0xff]  ;;  %v1356_v43 = vld [vmem:[#allocation2 + $0x1b8] sm:$0xff] }
 0x1e9   :  { %1295 = vst.msk [vmem:[#allocation2 + $0x1d0] sm:$0xff] %vm1236_vm3, %v1161_v1  ;;  %1296 = vst.msk [vmem:[#allocation2 + $0x1d8] sm:$0xff] %vm1236_vm3, %v1163_v4  ;;  %9917 = vmatprep.mubr.msk.f32.mxu0 %vm1375_vm4, %v1355_v5  ;;  %v8831_v5 = vld [vmem:[%s16422_s0 + $0x2d9] sm:$0xff] }
 0x1ea   :  { %2136 = vst.msk [vmem:[#allocation2 + $0x1b0] sm:$0xff] %vm81_vm0, %v12251_v38  ;;  %2137 = vst.msk [vmem:[#allocation2 + $0x1b8] sm:$0xff] %vm81_vm0, %v12256_v39  ;;  %2378 = vrot.lane.b32.xlu0 %v8828_v0, %s10308_s16  ;;  %9918 = vmatmul.mubr.msk.f32.gmra.mrb[54].mxu0 %vm1375_vm4, %v1356_v43  ;;  %v12303_v43 = vld [vmem:[%s16422_s0 + $0x302] sm:$0xff] }
 0x1eb   :  { %2380 = vrot.lane.b32.xlu1 %v8829_v50, %s10308_s16  ;;  %16448 = vst [vmem:[#allocation7_spill] sm:$0xff] %v12303_v43  ;;  %v12308_v50 = vld [vmem:[%s16422_s0 + $0x30a] sm:$0xff] }
 0x1ec   :  { %v1165_v29 = vpop.permute.xlu0 %1164  ;;  %v1167_v0 = vpop.permute.xlu1 %1166  ;;  %v1357_v1 = vld [vmem:[#allocation2 + $0x1c0] sm:$0xff]  ;;  %v1358_v4 = vld [vmem:[#allocation2 + $0x1c8] sm:$0xff]  ;;  %16449 = vst [vmem:[#allocation8_spill] sm:$0xff] %v12308_v50 }
 0x1ed   :  { %1297 = vst.msk [vmem:[#allocation2 + $0x1e0] sm:$0xff] %vm1236_vm3, %v1165_v29  ;;  %1298 = vst.msk [vmem:[#allocation2 + $0x1e8] sm:$0xff] %vm1236_vm3, %v1167_v0  ;;  %9920 = vmatprep.mubr.msk.f32.mxu0 %vm1375_vm4, %v1357_v1  ;;  %v8832_v29 = vld [vmem:[%s16422_s0 + $0x2e9] sm:$0xff] }
 0x1ee   :  { %2138 = vst.msk [vmem:[#allocation2 + $0x1c0] sm:$0xff] %vm81_vm0, %v12277_v56  ;;  %2139 = vst.msk [vmem:[#allocation2 + $0x1c8] sm:$0xff] %vm81_vm0, %v12282_v57  ;;  %2382 = vrot.lane.b32.xlu0 %v8830_v26, %s10308_s16  ;;  %9921 = vmatmul.mubr.msk.f32.gmra.mrb[56].mxu0 %vm1375_vm4, %v1358_v4  ;;  %v8833_v4 = vld [vmem:[%s16422_s0 + $0x2f1] sm:$0xff] }
 0x1ef   :  { %2384 = vrot.lane.b32.xlu1 %v8831_v5, %s10308_s16  ;;  %v12329_v5 = vld [vmem:[%s16422_s0 + $0x31a] sm:$0xff] }
 0x1f0   :  { %v1169_v0 = vpop.permute.xlu0 %1168  ;;  %v1359_v26 = vld [vmem:[#allocation2 + $0x1d0] sm:$0xff]  ;;  %v1360_v1 = vld [vmem:[#allocation2 + $0x1d8] sm:$0xff]  ;;  %16450 = vst [vmem:[#allocation9_spill] sm:$0xff] %v12329_v5 }
 0x1f1   :  { %1299 = vst.msk [vmem:[#allocation2 + $0x1f0] sm:$0xff] %vm1236_vm3, %v1169_v0  ;;  %v1171_v57 = vpop.permute.xlu1 %1170  ;;  %9923 = vmatprep.mubr.msk.f32.mxu0 %vm1375_vm4, %v1359_v26  ;;  %v12334_v0 = vld [vmem:[%s16422_s0 + $0x322] sm:$0xff] }
 0x1f2   :  { %2140 = vst.msk [vmem:[#allocation2 + $0x1d0] sm:$0xff] %vm81_vm0, %v12303_v43  ;;  %2141 = vst.msk [vmem:[#allocation2 + $0x1d8] sm:$0xff] %vm81_vm0, %v12308_v50  ;;  %2386 = vrot.lane.b32.xlu0 %v8832_v29, %s10308_s16  ;;  %9924 = vmatmul.mubr.msk.f32.gmra.mrb[58].mxu0 %vm1375_vm4, %v1360_v1  ;;  %v8835_v1 = vld [vmem:[%s16422_s0 + $0x309] sm:$0xff] }
 0x1f3   :  { %1300 = vst.msk [vmem:[#allocation2 + $0x1f8] sm:$0xff] %vm1236_vm3, %v1171_v57  ;;  %16451 = vst [vmem:[#allocation10_spill] sm:$0xff] %v12334_v0  ;;  %2388 = vrot.lane.b32.xlu1 %v8833_v4, %s10308_s16  ;;  %v8834_v57 = vld [vmem:[%s16422_s0 + $0x301] sm:$0xff]  ;;  %v8774_v4 = vld [vmem:[%s16422_s0 + $0x332] sm:$0xff] }
 0x1f4   :  { %v2275_v26 = vpop.permute.xlu0 %2274  ;;  %v1361_v29 = vld [vmem:[#allocation2 + $0x1e0] sm:$0xff]  ;;  %v1362_v50 = vld [vmem:[#allocation2 + $0x1e8] sm:$0xff] }
 0x1f5   :  { %2466 = vst.msk [vmem:[#allocation2] sm:$0xff] %vm466_vm1, %v2275_v26  ;;  %v2277_v43 = vpop.permute.xlu1 %2276  ;;  %9926 = vmatprep.mubr.msk.f32.mxu0 %vm1375_vm4, %v1361_v29  ;;  %v8836_v26 = vld [vmem:[%s16422_s0 + $0x319] sm:$0xff] }
 0x1f6   :  { %2142 = vst.msk [vmem:[#allocation2 + $0x1e0] sm:$0xff] %vm81_vm0, %v12329_v5  ;;  %2143 = vst.msk [vmem:[#allocation2 + $0x1e8] sm:$0xff] %vm81_vm0, %v12334_v0  ;;  %2390 = vrot.lane.b32.xlu0 %v8834_v57, %s10308_s16  ;;  %9927 = vmatmul.mubr.msk.f32.gmra.mrb[60].mxu0 %vm1375_vm4, %v1362_v50  ;;  %v8775_v29 = vld [vmem:[%s16422_s0 + $0x33a] sm:$0xff] }
 0x1f7   :  { %2467 = vst.msk [vmem:[#allocation2 + $0x8] sm:$0xff] %vm466_vm1, %v2277_v43  ;;  %2392 = vrot.lane.b32.xlu1 %v8835_v1, %s10308_s16  ;;  %v8837_v50 = vld [vmem:[%s16422_s0 + $0x321] sm:$0xff] }
 0x1f8   :  { %v2279_v0 = vpop.permute.xlu0 %2278  ;;  %v1363_v43 = vld [vmem:[#allocation2 + $0x1f0] sm:$0xff] }
 0x1f9   :  { %2468 = vst.msk [vmem:[#allocation2 + $0x10] sm:$0xff] %vm466_vm1, %v2279_v0  ;;  %v2281_v57 = vpop.permute.xlu1 %2280  ;;  %9929 = vmatprep.mubr.msk.f32.mxu0 %vm1375_vm4, %v1363_v43  ;;  %v8838_v0 = vld [vmem:[%s16422_s0 + $0x331] sm:$0xff]  ;;  %v8839_v43 = vld [vmem:[%s16422_s0 + $0x339] sm:$0xff] }
 0x1fa   :  { %v1364_v1 = vld [vmem:[#allocation2 + $0x1f8] sm:$0xff]  ;;  %2144 = vst.msk [vmem:[#allocation2 + $0x1f0] sm:$0xff] %vm81_vm0, %v8774_v4  ;;  %2394 = vrot.lane.b32.xlu0 %v8836_v26, %s10308_s16  ;;  %v2530_v26 = vld [vmem:[%s16422_s0 + $0x2] sm:$0xff] }
 0x1fb   :  { %2469 = vst.msk [vmem:[#allocation2 + $0x18] sm:$0xff] %vm466_vm1, %v2281_v57  ;;  %9930 = vmatmul.mubr.msk.f32.gmra.mrb[62].mxu0 %vm1375_vm4, %v1364_v1  ;;  %2396 = vrot.lane.b32.xlu1 %v8837_v50, %s10308_s16  ;;  %v2531_v50 = vld [vmem:[%s16422_s0 + $0xa] sm:$0xff] }
 0x1fc   :  { %2145 = vst.msk [vmem:[#allocation2 + $0x1f8] sm:$0xff] %vm81_vm0, %v8775_v29  ;;  %v2283_v5 = vpop.permute.xlu0 %2282 }
 0x1fd   :  { %2470 = vst.msk [vmem:[#allocation2 + $0x20] sm:$0xff] %vm466_vm1, %v2283_v5  ;;  %v2285_v4 = vpop.permute.xlu1 %2284 }
 0x1fe   :  { %2471 = vst.msk [vmem:[#allocation2 + $0x28] sm:$0xff] %vm466_vm1, %v2285_v4  ;;  %2398 = vrot.lane.b32.xlu0 %v8838_v0, %s10308_s16 }
 0x1ff   :  { %2400 = vrot.lane.b32.xlu1 %v8839_v43, %s10308_s16 }
 0x200   :  { %v2287_v29 = vpop.permute.xlu0 %2286 }
 0x201   :  { %2472 = vst.msk [vmem:[#allocation2 + $0x30] sm:$0xff] %vm466_vm1, %v2287_v29  ;;  %v2289_v57 = vpop.permute.xlu1 %2288 }
 0x202   :  { %2473 = vst.msk [vmem:[#allocation2 + $0x38] sm:$0xff] %vm466_vm1, %v2289_v57  ;;  %2658 = vrot.lane.b32.xlu0 %v2530_v26, %s10309_s12 }
 0x203   :  { %2660 = vrot.lane.b32.xlu1 %v2531_v50, %s10309_s12 }
 0x204   :  { %v2291_v5 = vpop.permute.xlu0 %2290 }
 0x205   :  { %2474 = vst.msk [vmem:[#allocation2 + $0x40] sm:$0xff] %vm466_vm1, %v2291_v5  ;;  %v2293_v1 = vpop.permute.xlu1 %2292 }
 0x206   :  { %2475 = vst.msk [vmem:[#allocation2 + $0x48] sm:$0xff] %vm466_vm1, %v2293_v1  ;;  %2662 = vrot.lane.b32.xlu0 %v11556_v12, %s10309_s12 }
 0x207   :  { %2664 = vrot.lane.b32.xlu1 %v11561_v16, %s10309_s12 }
 0x208   :  { %v2295_v0 = vpop.permute.xlu0 %2294 }
 0x209   :  { %2476 = vst.msk [vmem:[#allocation2 + $0x50] sm:$0xff] %vm466_vm1, %v2295_v0  ;;  %v2297_v43 = vpop.permute.xlu1 %2296 }
 0x20a   :  { %2477 = vst.msk [vmem:[#allocation2 + $0x58] sm:$0xff] %vm466_vm1, %v2297_v43  ;;  %2666 = vrot.lane.b32.xlu0 %v11581_v24, %s10309_s12 }
 0x20b   :  { %2668 = vrot.lane.b32.xlu1 %v11586_v25, %s10309_s12 }
 0x20c   :  { %v2299_v4 = vpop.permute.xlu0 %2298 }
 0x20d   :  { %2478 = vst.msk [vmem:[#allocation2 + $0x60] sm:$0xff] %vm466_vm1, %v2299_v4  ;;  %v2301_v26 = vpop.permute.xlu1 %2300 }
 0x20e   :  { %2479 = vst.msk [vmem:[#allocation2 + $0x68] sm:$0xff] %vm466_vm1, %v2301_v26  ;;  %2670 = vrot.lane.b32.xlu0 %v11607_v34, %s10309_s12 }
 0x20f   :  { %2672 = vrot.lane.b32.xlu1 %v11612_v35, %s10309_s12 }
 0x210   :  { %v2303_v12 = vpop.permute.xlu0 %2302 }
 0x211   :  { %2480 = vst.msk [vmem:[#allocation2 + $0x70] sm:$0xff] %vm466_vm1, %v2303_v12  ;;  %v2305_v16 = vpop.permute.xlu1 %2304 }
 0x212   :  { %2481 = vst.msk [vmem:[#allocation2 + $0x78] sm:$0xff] %vm466_vm1, %v2305_v16  ;;  %2674 = vrot.lane.b32.xlu0 %v11633_v44, %s10309_s12 }
 0x213   :  { %2676 = vrot.lane.b32.xlu1 %v11638_v45, %s10309_s12 }
 0x214   :  { %v2307_v24 = vpop.permute.xlu0 %2306 }
 0x215   :  { %2482 = vst.msk [vmem:[#allocation2 + $0x80] sm:$0xff] %vm466_vm1, %v2307_v24  ;;  %v2309_v25 = vpop.permute.xlu1 %2308 }
 0x216   :  { %2483 = vst.msk [vmem:[#allocation2 + $0x88] sm:$0xff] %vm466_vm1, %v2309_v25  ;;  %2678 = vrot.lane.b32.xlu0 %v11659_v7, %s10309_s12 }
 0x217   :  { %2680 = vrot.lane.b32.xlu1 %v11664_v51, %s10309_s12 }
 0x218   :  { %v2311_v34 = vpop.permute.xlu0 %2310 }
 0x219   :  { %2484 = vst.msk [vmem:[#allocation2 + $0x90] sm:$0xff] %vm466_vm1, %v2311_v34  ;;  %v2313_v35 = vpop.permute.xlu1 %2312 }
 0x21a   :  { %2485 = vst.msk [vmem:[#allocation2 + $0x98] sm:$0xff] %vm466_vm1, %v2313_v35  ;;  %2682 = vrot.lane.b32.xlu0 %v11685_v8, %s10309_s12 }
 0x21b   :  { %2684 = vrot.lane.b32.xlu1 %v11690_v9, %s10309_s12 }
 0x21c   :  { %v2315_v44 = vpop.permute.xlu0 %2314 }
 0x21d   :  { %2486 = vst.msk [vmem:[#allocation2 + $0xa0] sm:$0xff] %vm466_vm1, %v2315_v44  ;;  %v2317_v45 = vpop.permute.xlu1 %2316 }
 0x21e   :  { %2487 = vst.msk [vmem:[#allocation2 + $0xa8] sm:$0xff] %vm466_vm1, %v2317_v45  ;;  %2686 = vrot.lane.b32.xlu0 %v11711_v54, %s10309_s12 }
 0x21f   :  { %2688 = vrot.lane.b32.xlu1 %v11716_v55, %s10309_s12 }
 0x220   :  { %v2319_v7 = vpop.permute.xlu0 %2318 }
 0x221   :  { %2488 = vst.msk [vmem:[#allocation2 + $0xb0] sm:$0xff] %vm466_vm1, %v2319_v7  ;;  %v2321_v51 = vpop.permute.xlu1 %2320 }
 0x222   :  { %2489 = vst.msk [vmem:[#allocation2 + $0xb8] sm:$0xff] %vm466_vm1, %v2321_v51  ;;  %2690 = vrot.lane.b32.xlu0 %v11737_v22, %s10309_s12 }
 0x223   :  { %2692 = vrot.lane.b32.xlu1 %v11742_v42, %s10309_s12 }
 0x224   :  { %v2323_v8 = vpop.permute.xlu0 %2322 }
 0x225   :  { %2490 = vst.msk [vmem:[#allocation2 + $0xc0] sm:$0xff] %vm466_vm1, %v2323_v8  ;;  %v2325_v9 = vpop.permute.xlu1 %2324 }
 0x226   :  { %2491 = vst.msk [vmem:[#allocation2 + $0xc8] sm:$0xff] %vm466_vm1, %v2325_v9  ;;  %2694 = vrot.lane.b32.xlu0 %v11763_v13, %s10309_s12 }
 0x227   :  { %2696 = vrot.lane.b32.xlu1 %v11768_v17, %s10309_s12 }
 0x228   :  { %v2327_v54 = vpop.permute.xlu0 %2326 }
 0x229   :  { %2492 = vst.msk [vmem:[#allocation2 + $0xd0] sm:$0xff] %vm466_vm1, %v2327_v54  ;;  %v2329_v55 = vpop.permute.xlu1 %2328 }
 0x22a   :  { %2493 = vst.msk [vmem:[#allocation2 + $0xd8] sm:$0xff] %vm466_vm1, %v2329_v55  ;;  %2698 = vrot.lane.b32.xlu0 %v11789_v30, %s10309_s12 }
 0x22b   :  { %2700 = vrot.lane.b32.xlu1 %v11794_v31, %s10309_s12 }
 0x22c   :  { %v2331_v22 = vpop.permute.xlu0 %2330 }
 0x22d   :  { %2494 = vst.msk [vmem:[#allocation2 + $0xe0] sm:$0xff] %vm466_vm1, %v2331_v22  ;;  %v2333_v42 = vpop.permute.xlu1 %2332 }
 0x22e   :  { %2495 = vst.msk [vmem:[#allocation2 + $0xe8] sm:$0xff] %vm466_vm1, %v2333_v42  ;;  %2702 = vrot.lane.b32.xlu0 %v11815_v40, %s10309_s12 }
 0x22f   :  { %2704 = vrot.lane.b32.xlu1 %v11820_v41, %s10309_s12 }
 0x230   :  { %v2335_v13 = vpop.permute.xlu0 %2334 }
 0x231   :  { %2496 = vst.msk [vmem:[#allocation2 + $0xf0] sm:$0xff] %vm466_vm1, %v2335_v13  ;;  %v2337_v17 = vpop.permute.xlu1 %2336 }
 0x232   :  { %2497 = vst.msk [vmem:[#allocation2 + $0xf8] sm:$0xff] %vm466_vm1, %v2337_v17  ;;  %2706 = vrot.lane.b32.xlu0 %v11841_v60, %s10309_s12 }
 0x233   :  { %2708 = vrot.lane.b32.xlu1 %v11846_v61, %s10309_s12 }
 0x234   :  { %v2339_v30 = vpop.permute.xlu0 %2338 }
 0x235   :  { %2498 = vst.msk [vmem:[#allocation2 + $0x100] sm:$0xff] %vm466_vm1, %v2339_v30  ;;  %v2341_v31 = vpop.permute.xlu1 %2340 }
 0x236   :  { %2499 = vst.msk [vmem:[#allocation2 + $0x108] sm:$0xff] %vm466_vm1, %v2341_v31  ;;  %2710 = vrot.lane.b32.xlu0 %v11867_v27, %s10309_s12  ;;  %v2562_v27 = vld [vmem:[%s16422_s0 + $0x1b2] sm:$0xff] }
 0x237   :  { %2712 = vrot.lane.b32.xlu1 %v11872_v28, %s10309_s12 }
 0x238   :  { %v2343_v40 = vpop.permute.xlu0 %2342 }
 0x239   :  { %2500 = vst.msk [vmem:[#allocation2 + $0x110] sm:$0xff] %vm466_vm1, %v2343_v40  ;;  %v2345_v41 = vpop.permute.xlu1 %2344 }
 0x23a   :  { %2501 = vst.msk [vmem:[#allocation2 + $0x118] sm:$0xff] %vm466_vm1, %v2345_v41  ;;  %2714 = vrot.lane.b32.xlu0 %v11893_v10, %s10309_s12  ;;  %v2563_v10 = vld [vmem:[%s16422_s0 + $0x1ba] sm:$0xff] }
 0x23b   :  { %2716 = vrot.lane.b32.xlu1 %v11898_v11, %s10309_s12 }
 0x23c   :  { %v2347_v60 = vpop.permute.xlu0 %2346 }
 0x23d   :  { %2502 = vst.msk [vmem:[#allocation2 + $0x120] sm:$0xff] %vm466_vm1, %v2347_v60  ;;  %v2349_v61 = vpop.permute.xlu1 %2348 }
 0x23e   :  { %2503 = vst.msk [vmem:[#allocation2 + $0x128] sm:$0xff] %vm466_vm1, %v2349_v61  ;;  %2718 = vrot.lane.b32.xlu0 %v11919_v18, %s10309_s12 }
 0x23f   :  { %2720 = vrot.lane.b32.xlu1 %v11924_v19, %s10309_s12 }
 0x240   :  { %v2351_v28 = vpop.permute.xlu0 %2350 }
 0x241   :  { %2504 = vst.msk [vmem:[#allocation2 + $0x130] sm:$0xff] %vm466_vm1, %v2351_v28  ;;  %v2353_v11 = vpop.permute.xlu1 %2352 }
 0x242   :  { %2505 = vst.msk [vmem:[#allocation2 + $0x138] sm:$0xff] %vm466_vm1, %v2353_v11  ;;  %2722 = vrot.lane.b32.xlu0 %v2562_v27, %s10309_s12 }
 0x243   :  { %2724 = vrot.lane.b32.xlu1 %v2563_v10, %s10309_s12 }
 0x244   :  { %v2355_v18 = vpop.permute.xlu0 %2354 }
 0x245   :  { %2506 = vst.msk [vmem:[#allocation2 + $0x140] sm:$0xff] %vm466_vm1, %v2355_v18  ;;  %v2357_v19 = vpop.permute.xlu1 %2356 }
 0x246   :  { %2507 = vst.msk [vmem:[#allocation2 + $0x148] sm:$0xff] %vm466_vm1, %v2357_v19  ;;  %2726 = vrot.lane.b32.xlu0 %v11965_v63, %s10309_s12  ;;  %v12514_v63 = vld [vmem:[%s16424_s2] ss:$0 sm:$0xff]  ;;  %v8841_v19 = vld [vmem:[%s16423_s1 + $0x28] sm:$0xff] }
 0x247   :  { %2728 = vrot.lane.b32.xlu1 %v11970_v21, %s10309_s12 }
 0x248   :  { %v2359_v29 = vpop.permute.xlu0 %2358 }
 0x249   :  { %2508 = vst.msk [vmem:[#allocation2 + $0x150] sm:$0xff] %vm466_vm1, %v2359_v29  ;;  %v2361_v50 = vpop.permute.xlu1 %2360 }
 0x24a   :  { %2509 = vst.msk [vmem:[#allocation2 + $0x158] sm:$0xff] %vm466_vm1, %v2361_v50  ;;  %2730 = vrot.lane.b32.xlu0 %v11991_v46, %s10309_s12 }
 0x24b   :  { %2732 = vrot.lane.b32.xlu1 %v11996_v47, %s10309_s12 }
 0x24c   :  { %v2363_v57 = vpop.permute.xlu0 %2362 }
 0x24d   :  { %2510 = vst.msk [vmem:[#allocation2 + $0x160] sm:$0xff] %vm466_vm1, %v2363_v57  ;;  %v2365_v5 = vpop.permute.xlu1 %2364 }
 0x24e   :  { %2511 = vst.msk [vmem:[#allocation2 + $0x168] sm:$0xff] %vm466_vm1, %v2365_v5  ;;  %2734 = vrot.lane.b32.xlu0 %v12017_v6, %s10309_s12 }
 0x24f   :  { %2736 = vrot.lane.b32.xlu1 %v12022_v62, %s10309_s12 }
 0x250   :  { %v2367_v21 = vpop.permute.xlu0 %2366 }
 0x251   :  { %2512 = vst.msk [vmem:[#allocation2 + $0x170] sm:$0xff] %vm466_vm1, %v2367_v21  ;;  %v2369_v46 = vpop.permute.xlu1 %2368  ;;  %v9838_v47 = vpop.f32.mrb[0].mxu0 }
 0x252   :  { %2513 = vst.msk [vmem:[#allocation2 + $0x178] sm:$0xff] %vm466_vm1, %v2369_v46  ;;  %v1640_v1 = vadd.f32 %v9838_v47, %v12514_v63  ;;  %2738 = vrot.lane.b32.xlu0 %v12043_v32, %s10309_s12  ;;  %v1634_v6 = vpop.f32.mrb[1].mxu0  ;;  %v16452_v46 = vld [vmem:[#allocation6_spill] sm:$0xff]  ;;  %v8842_v47 = vld [vmem:[%s16423_s1 + $0x30] sm:$0xff] }
 0x253   :  { %v1635_v62 = vadd.f32 %v12514_v63, %v1634_v6  ;;  %2740 = vrot.lane.b32.xlu1 %v12048_v33, %s10309_s12 }
 0x254   :  { %1955 = vst.msk [vmem:[#allocation3 + $0x8] sm:$0xff] %vm1953_vm5, %v1640_v1  ;;  %v2371_v0 = vpop.permute.xlu0 %2370  ;;  %v8843_v1 = vld [vmem:[%s16423_s1 + $0x38] sm:$0xff] }
 0x255   :  { %1954 = vst.msk [vmem:[#allocation3] sm:$0xff] %vm1953_vm5, %v1635_v62  ;;  %v2373_v43 = vpop.permute.xlu1 %2372  ;;  %v9841_v4 = vpop.f32.mrb[2].mxu0 }
 0x256   :  { %2514 = vst.msk [vmem:[#allocation2 + $0x180] sm:$0xff] %vm466_vm1, %v2371_v0  ;;  %2515 = vst.msk [vmem:[#allocation2 + $0x188] sm:$0xff] %vm466_vm1, %v2373_v43  ;;  %v1650_v26 = vadd.f32 %v9841_v4, %v12514_v63  ;;  %2742 = vrot.lane.b32.xlu0 %v12069_v52, %s10309_s12  ;;  %v1644_v32 = vpop.f32.mrb[3].mxu0  ;;  %v16453_v4 = vld [vmem:[#allocation7_spill] sm:$0xff] }
 0x257   :  { %v1645_v12 = vadd.f32 %v12514_v63, %v1644_v32  ;;  %2744 = vrot.lane.b32.xlu1 %v12074_v53, %s10309_s12 }
 0x258   :  { %1957 = vst.msk [vmem:[#allocation3 + $0x28] sm:$0xff] %vm1953_vm5, %v1650_v26  ;;  %v2375_v33 = vpop.permute.xlu0 %2374 }
 0x259   :  { %1956 = vst.msk [vmem:[#allocation3 + $0x20] sm:$0xff] %vm1953_vm5, %v1645_v12  ;;  %v2377_v16 = vpop.permute.xlu1 %2376  ;;  %v9844_v24 = vpop.f32.mrb[4].mxu0  ;;  %v16454_v12 = vld [vmem:[#allocation8_spill] sm:$0xff] }
 0x25a   :  { %2516 = vst.msk [vmem:[#allocation2 + $0x190] sm:$0xff] %vm466_vm1, %v2375_v33  ;;  %2517 = vst.msk [vmem:[#allocation2 + $0x198] sm:$0xff] %vm466_vm1, %v2377_v16  ;;  %v1660_v25 = vadd.f32 %v9844_v24, %v12514_v63  ;;  %2746 = vrot.lane.b32.xlu0 %v12095_v58, %s10309_s12  ;;  %v1654_v52 = vpop.f32.mrb[5].mxu0 }
 0x25b   :  { %v1655_v34 = vadd.f32 %v12514_v63, %v1654_v52  ;;  %2748 = vrot.lane.b32.xlu1 %v12100_v59, %s10309_s12  ;;  %v16455_v52 = vld [vmem:[#allocation9_spill] sm:$0xff] }
 0x25c   :  { %1959 = vst.msk [vmem:[#allocation3 + $0x48] sm:$0xff] %vm1953_vm5, %v1660_v25  ;;  %v2379_v53 = vpop.permute.xlu0 %2378 }
 0x25d   :  { %1958 = vst.msk [vmem:[#allocation3 + $0x40] sm:$0xff] %vm1953_vm5, %v1655_v34  ;;  %v2381_v35 = vpop.permute.xlu1 %2380  ;;  %v9847_v44 = vpop.f32.mrb[6].mxu0 }
 0x25e   :  { %2518 = vst.msk [vmem:[#allocation2 + $0x1a0] sm:$0xff] %vm466_vm1, %v2379_v53  ;;  %2519 = vst.msk [vmem:[#allocation2 + $0x1a8] sm:$0xff] %vm466_vm1, %v2381_v35  ;;  %v1670_v45 = vadd.f32 %v9847_v44, %v12514_v63  ;;  %2750 = vrot.lane.b32.xlu0 %v12121_v20, %s10309_s12  ;;  %v1664_v58 = vpop.f32.mrb[7].mxu0  ;;  %v16456_v35 = vld [vmem:[#allocation10_spill] sm:$0xff] }
 0x25f   :  { %v1665_v7 = vadd.f32 %v12514_v63, %v1664_v58  ;;  %2752 = vrot.lane.b32.xlu1 %v12126_v23, %s10309_s12  ;;  %v2914_v44 = vld [vmem:[%s16422_s0 + $0x1] sm:$0xff]  ;;  %v2915_v58 = vld [vmem:[%s16422_s0 + $0x9] sm:$0xff] }
 0x260   :  { %1961 = vst.msk [vmem:[#allocation3 + $0x68] sm:$0xff] %vm1953_vm5, %v1670_v45  ;;  %v2383_v59 = vpop.permute.xlu0 %2382 }
 0x261   :  { %1960 = vst.msk [vmem:[#allocation3 + $0x60] sm:$0xff] %vm1953_vm5, %v1665_v7  ;;  %v2385_v51 = vpop.permute.xlu1 %2384  ;;  %v9850_v8 = vpop.f32.mrb[8].mxu0 }
 0x262   :  { %2520 = vst.msk [vmem:[#allocation2 + $0x1b0] sm:$0xff] %vm466_vm1, %v2383_v59  ;;  %2521 = vst.msk [vmem:[#allocation2 + $0x1b8] sm:$0xff] %vm466_vm1, %v2385_v51  ;;  %v1680_v9 = vadd.f32 %v9850_v8, %v12514_v63  ;;  %2754 = vrot.lane.b32.xlu0 %v12147_v48, %s10309_s12  ;;  %v1674_v20 = vpop.f32.mrb[9].mxu0 }
 0x263   :  { %v1675_v54 = vadd.f32 %v12514_v63, %v1674_v20  ;;  %2756 = vrot.lane.b32.xlu1 %v12152_v49, %s10309_s12  ;;  %v2916_v20 = vld [vmem:[%s16422_s0 + $0x19] sm:$0xff] }
 0x264   :  { %1963 = vst.msk [vmem:[#allocation3 + $0x88] sm:$0xff] %vm1953_vm5, %v1680_v9  ;;  %v2387_v23 = vpop.permute.xlu0 %2386 }
 0x265   :  { %1962 = vst.msk [vmem:[#allocation3 + $0x80] sm:$0xff] %vm1953_vm5, %v1675_v54  ;;  %v2389_v55 = vpop.permute.xlu1 %2388  ;;  %v9853_v22 = vpop.f32.mrb[10].mxu0 }
 0x266   :  { %2522 = vst.msk [vmem:[#allocation2 + $0x1c0] sm:$0xff] %vm466_vm1, %v2387_v23  ;;  %2523 = vst.msk [vmem:[#allocation2 + $0x1c8] sm:$0xff] %vm466_vm1, %v2389_v55  ;;  %v1690_v42 = vadd.f32 %v9853_v22, %v12514_v63  ;;  %2758 = vrot.lane.b32.xlu0 %v12173_v2, %s10309_s12  ;;  %v1684_v48 = vpop.f32.mrb[11].mxu0  ;;  %v2917_v23 = vld [vmem:[%s16422_s0 + $0x21] sm:$0xff] }
 0x267   :  { %v1685_v13 = vadd.f32 %v12514_v63, %v1684_v48  ;;  %2760 = vrot.lane.b32.xlu1 %v12178_v3, %s10309_s12 }
 0x268   :  { %1965 = vst.msk [vmem:[#allocation3 + $0xa8] sm:$0xff] %vm1953_vm5, %v1690_v42  ;;  %v2391_v49 = vpop.permute.xlu0 %2390 }
 0x269   :  { %1964 = vst.msk [vmem:[#allocation3 + $0xa0] sm:$0xff] %vm1953_vm5, %v1685_v13  ;;  %v2393_v17 = vpop.permute.xlu1 %2392  ;;  %v9856_v30 = vpop.f32.mrb[12].mxu0 }
 0x26a   :  { %2524 = vst.msk [vmem:[#allocation2 + $0x1d0] sm:$0xff] %vm466_vm1, %v2391_v49  ;;  %2525 = vst.msk [vmem:[#allocation2 + $0x1d8] sm:$0xff] %vm466_vm1, %v2393_v17  ;;  %v1700_v31 = vadd.f32 %v9856_v30, %v12514_v63  ;;  %2762 = vrot.lane.b32.xlu0 %v12199_v36, %s10309_s12  ;;  %v1694_v2 = vpop.f32.mrb[13].mxu0  ;;  %v2918_v49 = vld [vmem:[%s16422_s0 + $0x31] sm:$0xff]  ;;  %v2919_v30 = vld [vmem:[%s16422_s0 + $0x39] sm:$0xff] }
 0x26b   :  { %v1695_v40 = vadd.f32 %v12514_v63, %v1694_v2  ;;  %2764 = vrot.lane.b32.xlu1 %v12204_v37, %s10309_s12 }
 0x26c   :  { %1967 = vst.msk [vmem:[#allocation3 + $0xc8] sm:$0xff] %vm1953_vm5, %v1700_v31  ;;  %v2395_v3 = vpop.permute.xlu0 %2394 }
 0x26d   :  { %1966 = vst.msk [vmem:[#allocation3 + $0xc0] sm:$0xff] %vm1953_vm5, %v1695_v40  ;;  %v2397_v41 = vpop.permute.xlu1 %2396  ;;  %v9859_v60 = vpop.f32.mrb[14].mxu0 }
 0x26e   :  { %2526 = vst.msk [vmem:[#allocation2 + $0x1e0] sm:$0xff] %vm466_vm1, %v2395_v3  ;;  %2527 = vst.msk [vmem:[#allocation2 + $0x1e8] sm:$0xff] %vm466_vm1, %v2397_v41  ;;  %v1710_v61 = vadd.f32 %v9859_v60, %v12514_v63  ;;  %2766 = vrot.lane.b32.xlu0 %v12225_v14, %s10309_s12  ;;  %v1704_v36 = vpop.f32.mrb[15].mxu0  ;;  %v2920_v60 = vld [vmem:[%s16422_s0 + $0x49] sm:$0xff] }
 0x26f   :  { %v1705_v27 = vadd.f32 %v12514_v63, %v1704_v36  ;;  %2768 = vrot.lane.b32.xlu1 %v12230_v15, %s10309_s12  ;;  %v8840_v15 = vld [vmem:[%s16423_s1 + $0x20] sm:$0xff]  ;;  %v2921_v36 = vld [vmem:[%s16422_s0 + $0x51] sm:$0xff] }
 0x270   :  { %1969 = vst.msk [vmem:[#allocation3 + $0xe8] sm:$0xff] %vm1953_vm5, %v1710_v61  ;;  %v2399_v37 = vpop.permute.xlu0 %2398  ;;  %v10252_v50 = vpack.c.bf16 %v8841_v19, %v8840_v15  ;;  %v2923_v15 = vld [vmem:[%s16422_s0 + $0x69] sm:$0xff] }
 0x271   :  { %1968 = vst.msk [vmem:[#allocation3 + $0xe0] sm:$0xff] %vm1953_vm5, %v1705_v27  ;;  %v2401_v28 = vpop.permute.xlu1 %2400  ;;  %v9862_v10 = vpop.f32.mrb[16].mxu0 }
 0x272   :  { %2528 = vst.msk [vmem:[#allocation2 + $0x1f0] sm:$0xff] %vm466_vm1, %v2399_v37  ;;  %2529 = vst.msk [vmem:[#allocation2 + $0x1f8] sm:$0xff] %vm466_vm1, %v2401_v28  ;;  %v1720_v11 = vadd.f32 %v9862_v10, %v12514_v63  ;;  %2770 = vrot.lane.b32.xlu0 %v12251_v38, %s10309_s12  ;;  %v1714_v14 = vpop.f32.mrb[17].mxu0  ;;  %10253 = vmatprep.subr.bf16.mxu1 %v10252_v50 }
 0x273   :  { %v1715_v18 = vadd.f32 %v12514_v63, %v1714_v14  ;;  %2772 = vrot.lane.b32.xlu1 %v12256_v39, %s10309_s12  ;;  %10255 = vmatpush3.bf16.msra.mxu1 %v10252_v50  ;;  %v2922_v14 = vld [vmem:[%s16422_s0 + $0x61] sm:$0xff] }
 0x274   :  { %1971 = vst.msk [vmem:[#allocation3 + $0x108] sm:$0xff] %vm1953_vm5, %v1720_v11  ;;  %v2659_v29 = vpop.permute.xlu0 %2658 }
 0x275   :  { %1970 = vst.msk [vmem:[#allocation3 + $0x100] sm:$0xff] %vm1953_vm5, %v1715_v18  ;;  %v2661_v38 = vpop.permute.xlu1 %2660  ;;  %v9865_v57 = vpop.f32.mrb[18].mxu0 }
 0x276   :  { %2850 = vst.msk [vmem:[#allocation2] sm:$0xff] %vm851_vm2, %v2659_v29  ;;  %2851 = vst.msk [vmem:[#allocation2 + $0x8] sm:$0xff] %vm851_vm2, %v2661_v38  ;;  %v1730_v39 = vadd.f32 %v9865_v57, %v12514_v63  ;;  %2774 = vrot.lane.b32.xlu0 %v12277_v56, %s10309_s12  ;;  %v1724_v5 = vpop.f32.mrb[19].mxu0  ;;  %v10256_v56 = vpack.c.bf16 %v8843_v1, %v8842_v47 }
 0x277   :  { %v1725_v21 = vadd.f32 %v12514_v63, %v1724_v5  ;;  %2776 = vrot.lane.b32.xlu1 %v16452_v46, %s10309_s12 }
 0x278   :  { %1973 = vst.msk [vmem:[#allocation3 + $0x128] sm:$0xff] %vm1953_vm5, %v1730_v39  ;;  %v2663_v6 = vpop.permute.xlu0 %2662  ;;  %10257 = vmatprep.subr.bf16.mxu1 %v10256_v56  ;;  %v2924_v39 = vld [vmem:[%s16422_s0 + $0x79] sm:$0xff] }
 0x279   :  { %1972 = vst.msk [vmem:[#allocation3 + $0x120] sm:$0xff] %vm1953_vm5, %v1725_v21  ;;  %v2665_v62 = vpop.permute.xlu1 %2664  ;;  %v9868_v0 = vpop.f32.mrb[20].mxu0  ;;  %10259 = vmatpush3.bf16.msra.mxu1 %v10256_v56  ;;  %v2925_v21 = vld [vmem:[%s16422_s0 + $0x81] sm:$0xff] }
 0x27a   :  { %2852 = vst.msk [vmem:[#allocation2 + $0x10] sm:$0xff] %vm851_vm2, %v2663_v6  ;;  %2853 = vst.msk [vmem:[#allocation2 + $0x18] sm:$0xff] %vm851_vm2, %v2665_v62  ;;  %v1740_v43 = vadd.f32 %v9868_v0, %v12514_v63  ;;  %2778 = vrot.lane.b32.xlu0 %v16453_v4, %s10309_s12  ;;  %v1734_v26 = vpop.f32.mrb[21].mxu0  ;;  %v2926_v62 = vld [vmem:[%s16422_s0 + $0x91] sm:$0xff] }
 0x27b   :  { %v1735_v32 = vadd.f32 %v12514_v63, %v1734_v26  ;;  %2780 = vrot.lane.b32.xlu1 %v16454_v12, %s10309_s12 }
 0x27c   :  { %1975 = vst.msk [vmem:[#allocation3 + $0x148] sm:$0xff] %vm1953_vm5, %v1740_v43  ;;  %v2667_v33 = vpop.permute.xlu0 %2666  ;;  %v2927_v43 = vld [vmem:[%s16422_s0 + $0x99] sm:$0xff] }
 0x27d   :  { %1974 = vst.msk [vmem:[#allocation3 + $0x140] sm:$0xff] %vm1953_vm5, %v1735_v32  ;;  %v2669_v16 = vpop.permute.xlu1 %2668  ;;  %v9871_v24 = vpop.f32.mrb[22].mxu0 }
 0x27e   :  { %2854 = vst.msk [vmem:[#allocation2 + $0x20] sm:$0xff] %vm851_vm2, %v2667_v33  ;;  %2855 = vst.msk [vmem:[#allocation2 + $0x28] sm:$0xff] %vm851_vm2, %v2669_v16  ;;  %v1750_v25 = vadd.f32 %v9871_v24, %v12514_v63  ;;  %2782 = vrot.lane.b32.xlu0 %v16455_v52, %s10309_s12  ;;  %v1744_v34 = vpop.f32.mrb[23].mxu0  ;;  %v2928_v16 = vld [vmem:[%s16422_s0 + $0xa9] sm:$0xff] }
 0x27f   :  { %v1745_v53 = vadd.f32 %v12514_v63, %v1744_v34  ;;  %2784 = vrot.lane.b32.xlu1 %v16456_v35, %s10309_s12 }
 0x280   :  { %1977 = vst.msk [vmem:[#allocation3 + $0x168] sm:$0xff] %vm1953_vm5, %v1750_v25  ;;  %v2671_v45 = vpop.permute.xlu0 %2670  ;;  %v2929_v25 = vld [vmem:[%s16422_s0 + $0xb1] sm:$0xff] }
 0x281   :  { %1976 = vst.msk [vmem:[#allocation3 + $0x160] sm:$0xff] %vm1953_vm5, %v1745_v53  ;;  %v2673_v7 = vpop.permute.xlu1 %2672  ;;  %v9874_v59 = vpop.f32.mrb[24].mxu0 }
 0x282   :  { %2856 = vst.msk [vmem:[#allocation2 + $0x30] sm:$0xff] %vm851_vm2, %v2671_v45  ;;  %2857 = vst.msk [vmem:[#allocation2 + $0x38] sm:$0xff] %vm851_vm2, %v2673_v7  ;;  %v1760_v51 = vadd.f32 %v9874_v59, %v12514_v63  ;;  %3042 = vrot.lane.b32.xlu0 %v2914_v44, %s10310_s30  ;;  %v1754_v8 = vpop.f32.mrb[25].mxu0  ;;  %v2930_v45 = vld [vmem:[%s16422_s0 + $0xc1] sm:$0xff]  ;;  %v2931_v7 = vld [vmem:[%s16422_s0 + $0xc9] sm:$0xff] }
 0x283   :  { %v1755_v9 = vadd.f32 %v12514_v63, %v1754_v8  ;;  %3044 = vrot.lane.b32.xlu1 %v2915_v58, %s10310_s30 }
 0x284   :  { %1979 = vst.msk [vmem:[#allocation3 + $0x188] sm:$0xff] %vm1953_vm5, %v1760_v51  ;;  %v2675_v54 = vpop.permute.xlu0 %2674 }
 0x285   :  { %1978 = vst.msk [vmem:[#allocation3 + $0x180] sm:$0xff] %vm1953_vm5, %v1755_v9  ;;  %v2677_v55 = vpop.permute.xlu1 %2676  ;;  %v9877_v22 = vpop.f32.mrb[26].mxu0 }
 0x286   :  { %2858 = vst.msk [vmem:[#allocation2 + $0x40] sm:$0xff] %vm851_vm2, %v2675_v54  ;;  %2859 = vst.msk [vmem:[#allocation2 + $0x48] sm:$0xff] %vm851_vm2, %v2677_v55  ;;  %v1770_v42 = vadd.f32 %v9877_v22, %v12514_v63  ;;  %3046 = vrot.lane.b32.xlu0 %v2916_v20, %s10310_s30  ;;  %v1764_v48 = vpop.f32.mrb[27].mxu0  ;;  %v2932_v54 = vld [vmem:[%s16422_s0 + $0xd9] sm:$0xff]  ;;  %v2933_v55 = vld [vmem:[%s16422_s0 + $0xe1] sm:$0xff] }
 0x287   :  { %v1765_v13 = vadd.f32 %v12514_v63, %v1764_v48  ;;  %3048 = vrot.lane.b32.xlu1 %v2917_v23, %s10310_s30 }
 0x288   :  { %1981 = vst.msk [vmem:[#allocation3 + $0x1a8] sm:$0xff] %vm1953_vm5, %v1770_v42  ;;  %v2679_v17 = vpop.permute.xlu0 %2678 }
 0x289   :  { %1980 = vst.msk [vmem:[#allocation3 + $0x1a0] sm:$0xff] %vm1953_vm5, %v1765_v13  ;;  %v2681_v31 = vpop.permute.xlu1 %2680  ;;  %v9880_v2 = vpop.f32.mrb[28].mxu0 }
 0x28a   :  { %2860 = vst.msk [vmem:[#allocation2 + $0x50] sm:$0xff] %vm851_vm2, %v2679_v17  ;;  %2861 = vst.msk [vmem:[#allocation2 + $0x58] sm:$0xff] %vm851_vm2, %v2681_v31  ;;  %v1780_v40 = vadd.f32 %v9880_v2, %v12514_v63  ;;  %3050 = vrot.lane.b32.xlu0 %v2918_v49, %s10310_s30  ;;  %v1774_v3 = vpop.f32.mrb[29].mxu0  ;;  %v2934_v17 = vld [vmem:[%s16422_s0 + $0xf1] sm:$0xff]  ;;  %v2935_v31 = vld [vmem:[%s16422_s0 + $0xf9] sm:$0xff] }
 0x28b   :  { %v1775_v41 = vadd.f32 %v12514_v63, %v1774_v3  ;;  %3052 = vrot.lane.b32.xlu1 %v2919_v30, %s10310_s30 }
 0x28c   :  { %1983 = vst.msk [vmem:[#allocation3 + $0x1c8] sm:$0xff] %vm1953_vm5, %v1780_v40  ;;  %v2683_v61 = vpop.permute.xlu0 %2682 }
 0x28d   :  { %1982 = vst.msk [vmem:[#allocation3 + $0x1c0] sm:$0xff] %vm1953_vm5, %v1775_v41  ;;  %v2685_v27 = vpop.permute.xlu1 %2684  ;;  %v9883_v37 = vpop.f32.mrb[30].mxu0 }
 0x28e   :  { %2862 = vst.msk [vmem:[#allocation2 + $0x60] sm:$0xff] %vm851_vm2, %v2683_v61  ;;  %2863 = vst.msk [vmem:[#allocation2 + $0x68] sm:$0xff] %vm851_vm2, %v2685_v27  ;;  %v1790_v28 = vadd.f32 %v9883_v37, %v12514_v63  ;;  %3054 = vrot.lane.b32.xlu0 %v2920_v60, %s10310_s30  ;;  %v1784_v10 = vpop.f32.mrb[31].mxu0  ;;  %v2936_v61 = vld [vmem:[%s16422_s0 + $0x109] sm:$0xff]  ;;  %v2937_v27 = vld [vmem:[%s16422_s0 + $0x111] sm:$0xff] }
 0x28f   :  { %v1785_v11 = vadd.f32 %v12514_v63, %v1784_v10  ;;  %3056 = vrot.lane.b32.xlu1 %v2921_v36, %s10310_s30 }
 0x290   :  { %1985 = vst.msk [vmem:[#allocation3 + $0x1e8] sm:$0xff] %vm1953_vm5, %v1790_v28  ;;  %v2687_v18 = vpop.permute.xlu0 %2686 }
 0x291   :  { %1984 = vst.msk [vmem:[#allocation3 + $0x1e0] sm:$0xff] %vm1953_vm5, %v1785_v11  ;;  %v2689_v19 = vpop.permute.xlu1 %2688  ;;  %v9886_v29 = vpop.f32.mrb[32].mxu0 }
 0x292   :  { %2864 = vst.msk [vmem:[#allocation2 + $0x70] sm:$0xff] %vm851_vm2, %v2687_v18  ;;  %2865 = vst.msk [vmem:[#allocation2 + $0x78] sm:$0xff] %vm851_vm2, %v2689_v19  ;;  %v1800_v50 = vadd.f32 %v9886_v29, %v12514_v63  ;;  %3058 = vrot.lane.b32.xlu0 %v2922_v14, %s10310_s30  ;;  %v1794_v38 = vpop.f32.mrb[33].mxu0  ;;  %v2938_v18 = vld [vmem:[%s16422_s0 + $0x121] sm:$0xff]  ;;  %v2939_v19 = vld [vmem:[%s16422_s0 + $0x129] sm:$0xff] }
 0x293   :  { %v1795_v57 = vadd.f32 %v12514_v63, %v1794_v38  ;;  %3060 = vrot.lane.b32.xlu1 %v2923_v15, %s10310_s30 }
 0x294   :  { %1987 = vst.msk [vmem:[#allocation3 + $0x208] sm:$0xff] %vm1953_vm5, %v1800_v50  ;;  %v2691_v5 = vpop.permute.xlu0 %2690 }
 0x295   :  { %1986 = vst.msk [vmem:[#allocation3 + $0x200] sm:$0xff] %vm1953_vm5, %v1795_v57  ;;  %v2693_v46 = vpop.permute.xlu1 %2692  ;;  %v9889_v47 = vpop.f32.mrb[34].mxu0 }
 0x296   :  { %2866 = vst.msk [vmem:[#allocation2 + $0x80] sm:$0xff] %vm851_vm2, %v2691_v5  ;;  %2867 = vst.msk [vmem:[#allocation2 + $0x88] sm:$0xff] %vm851_vm2, %v2693_v46  ;;  %v1810_v1 = vadd.f32 %v9889_v47, %v12514_v63  ;;  %3062 = vrot.lane.b32.xlu0 %v2924_v39, %s10310_s30  ;;  %v1804_v6 = vpop.f32.mrb[35].mxu0  ;;  %v2940_v5 = vld [vmem:[%s16422_s0 + $0x139] sm:$0xff]  ;;  %v2941_v46 = vld [vmem:[%s16422_s0 + $0x141] sm:$0xff] }
 0x297   :  { %v1805_v56 = vadd.f32 %v12514_v63, %v1804_v6  ;;  %3064 = vrot.lane.b32.xlu1 %v2925_v21, %s10310_s30 }
 0x298   :  { %1989 = vst.msk [vmem:[#allocation3 + $0x228] sm:$0xff] %vm1953_vm5, %v1810_v1  ;;  %v2695_v0 = vpop.permute.xlu0 %2694 }
 0x299   :  { %1988 = vst.msk [vmem:[#allocation3 + $0x220] sm:$0xff] %vm1953_vm5, %v1805_v56  ;;  %v2697_v4 = vpop.permute.xlu1 %2696  ;;  %v9892_v26 = vpop.f32.mrb[36].mxu0 }
 0x29a   :  { %2868 = vst.msk [vmem:[#allocation2 + $0x90] sm:$0xff] %vm851_vm2, %v2695_v0  ;;  %2869 = vst.msk [vmem:[#allocation2 + $0x98] sm:$0xff] %vm851_vm2, %v2697_v4  ;;  %v1820_v32 = vadd.f32 %v9892_v26, %v12514_v63  ;;  %3066 = vrot.lane.b32.xlu0 %v2926_v62, %s10310_s30  ;;  %v1814_v12 = vpop.f32.mrb[37].mxu0  ;;  %v2942_v0 = vld [vmem:[%s16422_s0 + $0x151] sm:$0xff]  ;;  %v2943_v4 = vld [vmem:[%s16422_s0 + $0x159] sm:$0xff] }
 0x29b   :  { %v1815_v33 = vadd.f32 %v12514_v63, %v1814_v12  ;;  %3068 = vrot.lane.b32.xlu1 %v2927_v43, %s10310_s30 }
 0x29c   :  { %1991 = vst.msk [vmem:[#allocation3 + $0x248] sm:$0xff] %vm1953_vm5, %v1820_v32  ;;  %v2699_v24 = vpop.permute.xlu0 %2698 }
 0x29d   :  { %1990 = vst.msk [vmem:[#allocation3 + $0x240] sm:$0xff] %vm1953_vm5, %v1815_v33  ;;  %v2701_v52 = vpop.permute.xlu1 %2700  ;;  %v9895_v34 = vpop.f32.mrb[38].mxu0 }
 0x29e   :  { %2870 = vst.msk [vmem:[#allocation2 + $0xa0] sm:$0xff] %vm851_vm2, %v2699_v24  ;;  %2871 = vst.msk [vmem:[#allocation2 + $0xa8] sm:$0xff] %vm851_vm2, %v2701_v52  ;;  %v1830_v53 = vadd.f32 %v9895_v34, %v12514_v63  ;;  %3070 = vrot.lane.b32.xlu0 %v2928_v16, %s10310_s30  ;;  %v1824_v35 = vpop.f32.mrb[39].mxu0  ;;  %v2944_v24 = vld [vmem:[%s16422_s0 + $0x169] sm:$0xff]  ;;  %v2945_v52 = vld [vmem:[%s16422_s0 + $0x171] sm:$0xff] }
 0x29f   :  { %v1825_v44 = vadd.f32 %v12514_v63, %v1824_v35  ;;  %3072 = vrot.lane.b32.xlu1 %v2929_v25, %s10310_s30 }
 0x2a0   :  { %1993 = vst.msk [vmem:[#allocation3 + $0x268] sm:$0xff] %vm1953_vm5, %v1830_v53  ;;  %v2703_v58 = vpop.permute.xlu0 %2702 }
 0x2a1   :  { %1992 = vst.msk [vmem:[#allocation3 + $0x260] sm:$0xff] %vm1953_vm5, %v1825_v44  ;;  %v2705_v59 = vpop.permute.xlu1 %2704  ;;  %v9898_v51 = vpop.f32.mrb[40].mxu0 }
 0x2a2   :  { %2872 = vst.msk [vmem:[#allocation2 + $0xb0] sm:$0xff] %vm851_vm2, %v2703_v58  ;;  %2873 = vst.msk [vmem:[#allocation2 + $0xb8] sm:$0xff] %vm851_vm2, %v2705_v59  ;;  %v1840_v8 = vadd.f32 %v9898_v51, %v12514_v63  ;;  %3074 = vrot.lane.b32.xlu0 %v2930_v45, %s10310_s30  ;;  %v1834_v9 = vpop.f32.mrb[41].mxu0  ;;  %v2946_v58 = vld [vmem:[%s16422_s0 + $0x1b1] sm:$0xff]  ;;  %v2947_v59 = vld [vmem:[%s16422_s0 + $0x1b9] sm:$0xff] }
 0x2a3   :  { %v1835_v20 = vadd.f32 %v12514_v63, %v1834_v9  ;;  %3076 = vrot.lane.b32.xlu1 %v2931_v7, %s10310_s30 }
 0x2a4   :  { %1995 = vst.msk [vmem:[#allocation3 + $0x288] sm:$0xff] %vm1953_vm5, %v1840_v8  ;;  %v2707_v23 = vpop.permute.xlu0 %2706 }
 0x2a5   :  { %1994 = vst.msk [vmem:[#allocation3 + $0x280] sm:$0xff] %vm1953_vm5, %v1835_v20  ;;  %v2709_v22 = vpop.permute.xlu1 %2708  ;;  %v9901_v42 = vpop.f32.mrb[42].mxu0 }
 0x2a6   :  { %2874 = vst.msk [vmem:[#allocation2 + $0xc0] sm:$0xff] %vm851_vm2, %v2707_v23  ;;  %2875 = vst.msk [vmem:[#allocation2 + $0xc8] sm:$0xff] %vm851_vm2, %v2709_v22  ;;  %v1850_v48 = vadd.f32 %v9901_v42, %v12514_v63  ;;  %3078 = vrot.lane.b32.xlu0 %v2932_v54, %s10310_s30  ;;  %v1844_v13 = vpop.f32.mrb[43].mxu0  ;;  %v2948_v23 = vld [vmem:[%s16422_s0 + $0x1c9] sm:$0xff]  ;;  %v2949_v22 = vld [vmem:[%s16422_s0 + $0x1d1] sm:$0xff] }
 0x2a7   :  { %v1845_v49 = vadd.f32 %v12514_v63, %v1844_v13  ;;  %3080 = vrot.lane.b32.xlu1 %v2933_v55, %s10310_s30 }
 0x2a8   :  { %1997 = vst.msk [vmem:[#allocation3 + $0x2a8] sm:$0xff] %vm1953_vm5, %v1850_v48  ;;  %v2711_v30 = vpop.permute.xlu0 %2710 }
 0x2a9   :  { %1996 = vst.msk [vmem:[#allocation3 + $0x2a0] sm:$0xff] %vm1953_vm5, %v1845_v49  ;;  %v2713_v2 = vpop.permute.xlu1 %2712  ;;  %v9904_v40 = vpop.f32.mrb[44].mxu0 }
 0x2aa   :  { %2876 = vst.msk [vmem:[#allocation2 + $0xd0] sm:$0xff] %vm851_vm2, %v2711_v30  ;;  %2877 = vst.msk [vmem:[#allocation2 + $0xd8] sm:$0xff] %vm851_vm2, %v2713_v2  ;;  %v1860_v3 = vadd.f32 %v9904_v40, %v12514_v63  ;;  %3082 = vrot.lane.b32.xlu0 %v2934_v17, %s10310_s30  ;;  %v1854_v41 = vpop.f32.mrb[45].mxu0  ;;  %v2950_v30 = vld [vmem:[%s16422_s0 + $0x1e1] sm:$0xff]  ;;  %v2951_v2 = vld [vmem:[%s16422_s0 + $0x1e9] sm:$0xff] }
 0x2ab   :  { %v1855_v60 = vadd.f32 %v12514_v63, %v1854_v41  ;;  %3084 = vrot.lane.b32.xlu1 %v2935_v31, %s10310_s30 }
 0x2ac   :  { %1999 = vst.msk [vmem:[#allocation3 + $0x2c8] sm:$0xff] %vm1953_vm5, %v1860_v3  ;;  %v2715_v36 = vpop.permute.xlu0 %2714 }
 0x2ad   :  { %1998 = vst.msk [vmem:[#allocation3 + $0x2c0] sm:$0xff] %vm1953_vm5, %v1855_v60  ;;  %v2717_v37 = vpop.permute.xlu1 %2716  ;;  %v9907_v28 = vpop.f32.mrb[46].mxu0 }
 0x2ae   :  { %2878 = vst.msk [vmem:[#allocation2 + $0xe0] sm:$0xff] %vm851_vm2, %v2715_v36  ;;  %2879 = vst.msk [vmem:[#allocation2 + $0xe8] sm:$0xff] %vm851_vm2, %v2717_v37  ;;  %v1870_v10 = vadd.f32 %v9907_v28, %v12514_v63  ;;  %3086 = vrot.lane.b32.xlu0 %v2936_v61, %s10310_s30  ;;  %v1864_v11 = vpop.f32.mrb[47].mxu0  ;;  %v2952_v36 = vld [vmem:[%s16422_s0 + $0x1f9] sm:$0xff]  ;;  %v2953_v37 = vld [vmem:[%s16422_s0 + $0x201] sm:$0xff] }
 0x2af   :  { %v1865_v14 = vadd.f32 %v12514_v63, %v1864_v11  ;;  %3088 = vrot.lane.b32.xlu1 %v2937_v27, %s10310_s30 }
 0x2b0   :  { %2001 = vst.msk [vmem:[#allocation3 + $0x2e8] sm:$0xff] %vm1953_vm5, %v1870_v10  ;;  %v2719_v15 = vpop.permute.xlu0 %2718 }
 0x2b1   :  { %2000 = vst.msk [vmem:[#allocation3 + $0x2e0] sm:$0xff] %vm1953_vm5, %v1865_v14  ;;  %v2721_v29 = vpop.permute.xlu1 %2720  ;;  %v9910_v50 = vpop.f32.mrb[48].mxu0 }
 0x2b2   :  { %2880 = vst.msk [vmem:[#allocation2 + $0xf0] sm:$0xff] %vm851_vm2, %v2719_v15  ;;  %2881 = vst.msk [vmem:[#allocation2 + $0xf8] sm:$0xff] %vm851_vm2, %v2721_v29  ;;  %v1880_v38 = vadd.f32 %v9910_v50, %v12514_v63  ;;  %3090 = vrot.lane.b32.xlu0 %v2938_v18, %s10310_s30  ;;  %v1874_v57 = vpop.f32.mrb[49].mxu0  ;;  %v2954_v15 = vld [vmem:[%s16422_s0 + $0x211] sm:$0xff]  ;;  %v2955_v29 = vld [vmem:[%s16422_s0 + $0x219] sm:$0xff] }
 0x2b3   :  { %v1875_v39 = vadd.f32 %v12514_v63, %v1874_v57  ;;  %3092 = vrot.lane.b32.xlu1 %v2939_v19, %s10310_s30  ;;  %v2957_v57 = vld [vmem:[%s16422_s0 + $0x231] sm:$0xff] }
 0x2b4   :  { %2003 = vst.msk [vmem:[#allocation3 + $0x308] sm:$0xff] %vm1953_vm5, %v1880_v38  ;;  %v2723_v21 = vpop.permute.xlu0 %2722 }
 0x2b5   :  { %2002 = vst.msk [vmem:[#allocation3 + $0x300] sm:$0xff] %vm1953_vm5, %v1875_v39  ;;  %v2725_v47 = vpop.permute.xlu1 %2724  ;;  %v9913_v1 = vpop.f32.mrb[50].mxu0 }
 0x2b6   :  { %2882 = vst.msk [vmem:[#allocation2 + $0x100] sm:$0xff] %vm851_vm2, %v2723_v21  ;;  %2883 = vst.msk [vmem:[#allocation2 + $0x108] sm:$0xff] %vm851_vm2, %v2725_v47  ;;  %v1890_v6 = vadd.f32 %v9913_v1, %v12514_v63  ;;  %3094 = vrot.lane.b32.xlu0 %v2940_v5, %s10310_s30  ;;  %v1884_v56 = vpop.f32.mrb[51].mxu0  ;;  %v2958_v5 = vld [vmem:[%s16422_s0 + $0x241] sm:$0xff]  ;;  %v2960_v1 = vld [vmem:[%s16422_s0 + $0x259] sm:$0xff] }
 0x2b7   :  { %v1885_v62 = vadd.f32 %v12514_v63, %v1884_v56  ;;  %3096 = vrot.lane.b32.xlu1 %v2941_v46, %s10310_s30  ;;  %v2959_v46 = vld [vmem:[%s16422_s0 + $0x249] sm:$0xff]  ;;  %v2961_v56 = vld [vmem:[%s16422_s0 + $0x261] sm:$0xff] }
 0x2b8   :  { %2005 = vst.msk [vmem:[#allocation3 + $0x328] sm:$0xff] %vm1953_vm5, %v1890_v6  ;;  %v2727_v43 = vpop.permute.xlu0 %2726 }
 0x2b9   :  { %2004 = vst.msk [vmem:[#allocation3 + $0x320] sm:$0xff] %vm1953_vm5, %v1885_v62  ;;  %v2729_v26 = vpop.permute.xlu1 %2728  ;;  %v9916_v32 = vpop.f32.mrb[52].mxu0 }
 0x2ba   :  { %2884 = vst.msk [vmem:[#allocation2 + $0x110] sm:$0xff] %vm851_vm2, %v2727_v43  ;;  %2885 = vst.msk [vmem:[#allocation2 + $0x118] sm:$0xff] %vm851_vm2, %v2729_v26  ;;  %v1900_v12 = vadd.f32 %v9916_v32, %v12514_v63  ;;  %3098 = vrot.lane.b32.xlu0 %v2942_v0, %s10310_s30  ;;  %v1894_v33 = vpop.f32.mrb[53].mxu0  ;;  %v2962_v0 = vld [vmem:[%s16422_s0 + $0x271] sm:$0xff]  ;;  %v2964_v32 = vld [vmem:[%s16422_s0 + $0x289] sm:$0xff] }
 0x2bb   :  { %v1895_v16 = vadd.f32 %v12514_v63, %v1894_v33  ;;  %3100 = vrot.lane.b32.xlu1 %v2943_v4, %s10310_s30  ;;  %v2963_v4 = vld [vmem:[%s16422_s0 + $0x279] sm:$0xff]  ;;  %v2965_v33 = vld [vmem:[%s16422_s0 + $0x291] sm:$0xff] }
 0x2bc   :  { %2007 = vst.msk [vmem:[#allocation3 + $0x348] sm:$0xff] %vm1953_vm5, %v1900_v12  ;;  %v2731_v25 = vpop.permute.xlu0 %2730 }
 0x2bd   :  { %2006 = vst.msk [vmem:[#allocation3 + $0x340] sm:$0xff] %vm1953_vm5, %v1895_v16  ;;  %v2733_v34 = vpop.permute.xlu1 %2732  ;;  %v9919_v53 = vpop.f32.mrb[54].mxu0 }
 0x2be   :  { %2886 = vst.msk [vmem:[#allocation2 + $0x120] sm:$0xff] %vm851_vm2, %v2731_v25  ;;  %2887 = vst.msk [vmem:[#allocation2 + $0x128] sm:$0xff] %vm851_vm2, %v2733_v34  ;;  %v1910_v35 = vadd.f32 %v9919_v53, %v12514_v63  ;;  %3102 = vrot.lane.b32.xlu0 %v2944_v24, %s10310_s30  ;;  %v1904_v44 = vpop.f32.mrb[55].mxu0  ;;  %v2966_v24 = vld [vmem:[%s16422_s0 + $0x2a1] sm:$0xff]  ;;  %v2968_v53 = vld [vmem:[%s16422_s0 + $0x2b9] sm:$0xff] }
 0x2bf   :  { %v1905_v45 = vadd.f32 %v12514_v63, %v1904_v44  ;;  %3104 = vrot.lane.b32.xlu1 %v2945_v52, %s10310_s30  ;;  %v2967_v52 = vld [vmem:[%s16422_s0 + $0x2a9] sm:$0xff]  ;;  %v2969_v44 = vld [vmem:[%s16422_s0 + $0x2c1] sm:$0xff] }
 0x2c0   :  { %2009 = vst.msk [vmem:[#allocation3 + $0x368] sm:$0xff] %vm1953_vm5, %v1910_v35  ;;  %v2735_v7 = vpop.permute.xlu0 %2734 }
 0x2c1   :  { %2008 = vst.msk [vmem:[#allocation3 + $0x360] sm:$0xff] %vm1953_vm5, %v1905_v45  ;;  %v2737_v51 = vpop.permute.xlu1 %2736  ;;  %v9922_v8 = vpop.f32.mrb[56].mxu0 }
 0x2c2   :  { %2888 = vst.msk [vmem:[#allocation2 + $0x130] sm:$0xff] %vm851_vm2, %v2735_v7  ;;  %2889 = vst.msk [vmem:[#allocation2 + $0x138] sm:$0xff] %vm851_vm2, %v2737_v51  ;;  %v1920_v9 = vadd.f32 %v9922_v8, %v12514_v63  ;;  %3106 = vrot.lane.b32.xlu0 %v2946_v58, %s10310_s30  ;;  %v1914_v20 = vpop.f32.mrb[57].mxu0  ;;  %v2970_v58 = vld [vmem:[%s16422_s0 + $0x2d1] sm:$0xff]  ;;  %v2972_v8 = vld [vmem:[%s16422_s0 + $0x2e9] sm:$0xff] }
 0x2c3   :  { %v1915_v54 = vadd.f32 %v12514_v63, %v1914_v20  ;;  %3108 = vrot.lane.b32.xlu1 %v2947_v59, %s10310_s30  ;;  %v2971_v59 = vld [vmem:[%s16422_s0 + $0x2d9] sm:$0xff]  ;;  %v2973_v20 = vld [vmem:[%s16422_s0 + $0x2f1] sm:$0xff] }
 0x2c4   :  { %2011 = vst.msk [vmem:[#allocation3 + $0x388] sm:$0xff] %vm1953_vm5, %v1920_v9  ;;  %v2739_v55 = vpop.permute.xlu0 %2738 }
 0x2c5   :  { %2010 = vst.msk [vmem:[#allocation3 + $0x380] sm:$0xff] %vm1953_vm5, %v1915_v54  ;;  %v2741_v42 = vpop.permute.xlu1 %2740  ;;  %v9925_v48 = vpop.f32.mrb[58].mxu0 }
 0x2c6   :  { %2890 = vst.msk [vmem:[#allocation2 + $0x140] sm:$0xff] %vm851_vm2, %v2739_v55  ;;  %2891 = vst.msk [vmem:[#allocation2 + $0x148] sm:$0xff] %vm851_vm2, %v2741_v42  ;;  %v1930_v13 = vadd.f32 %v9925_v48, %v12514_v63  ;;  %3110 = vrot.lane.b32.xlu0 %v2948_v23, %s10310_s30  ;;  %v1924_v49 = vpop.f32.mrb[59].mxu0  ;;  %v2974_v23 = vld [vmem:[%s16422_s0 + $0x301] sm:$0xff]  ;;  %v2976_v48 = vld [vmem:[%s16422_s0 + $0x319] sm:$0xff] }
 0x2c7   :  { %v1925_v17 = vadd.f32 %v12514_v63, %v1924_v49  ;;  %3112 = vrot.lane.b32.xlu1 %v2949_v22, %s10310_s30  ;;  %v2975_v22 = vld [vmem:[%s16422_s0 + $0x309] sm:$0xff] }
 0x2c8   :  { %2013 = vst.msk [vmem:[#allocation3 + $0x3a8] sm:$0xff] %vm1953_vm5, %v1930_v13  ;;  %v2743_v31 = vpop.permute.xlu0 %2742 }
 0x2c9   :  { %2012 = vst.msk [vmem:[#allocation3 + $0x3a0] sm:$0xff] %vm1953_vm5, %v1925_v17  ;;  %v2745_v40 = vpop.permute.xlu1 %2744  ;;  %v9928_v3 = vpop.f32.mrb[60].mxu0  ;;  %v2977_v17 = vld [vmem:[%s16422_s0 + $0x321] sm:$0xff] }
 0x2ca   :  { %2892 = vst.msk [vmem:[#allocation2 + $0x150] sm:$0xff] %vm851_vm2, %v2743_v31  ;;  %2893 = vst.msk [vmem:[#allocation2 + $0x158] sm:$0xff] %vm851_vm2, %v2745_v40  ;;  %v1940_v41 = vadd.f32 %v9928_v3, %v12514_v63  ;;  %3114 = vrot.lane.b32.xlu0 %v2950_v30, %s10310_s30  ;;  %v1934_v60 = vpop.f32.mrb[61].mxu0 }
 0x2cb   :  { %v1935_v61 = vadd.f32 %v12514_v63, %v1934_v60  ;;  %3116 = vrot.lane.b32.xlu1 %v2951_v2, %s10310_s30 }
 0x2cc   :  { %2015 = vst.msk [vmem:[#allocation3 + $0x3c8] sm:$0xff] %vm1953_vm5, %v1940_v41  ;;  %v2747_v27 = vpop.permute.xlu0 %2746 }
 0x2cd   :  { %2014 = vst.msk [vmem:[#allocation3 + $0x3c0] sm:$0xff] %vm1953_vm5, %v1935_v61  ;;  %v2749_v28 = vpop.permute.xlu1 %2748 }
 0x2ce   :  { %2894 = vst.msk [vmem:[#allocation2 + $0x160] sm:$0xff] %vm851_vm2, %v2747_v27  ;;  %v9931_v10 = vpop.f32.mrb[62].mxu0  ;;  %2895 = vst.msk [vmem:[#allocation2 + $0x168] sm:$0xff] %vm851_vm2, %v2749_v28  ;;  %3118 = vrot.lane.b32.xlu0 %v2952_v36, %s10310_s30 }
 0x2cf   :  { %v1950_v11 = vadd.f32 %v9931_v10, %v12514_v63  ;;  %v1944_v14 = vpop.f32.mrb[63].mxu0  ;;  %3120 = vrot.lane.b32.xlu1 %v2953_v37, %s10310_s30 }
 0x2d0   :  { %v1945_v18 = vadd.f32 %v12514_v63, %v1944_v14  ;;  %v2751_v19 = vpop.permute.xlu0 %2750  ;;  %v2956_v63 = vld [vmem:[%s16422_s0 + $0x229] sm:$0xff] }
 0x2d1   :  { %2017 = vst.msk [vmem:[#allocation3 + $0x3e8] sm:$0xff] %vm1953_vm5, %v1950_v11  ;;  %v2753_v50 = vpop.permute.xlu1 %2752 }
 0x2d2   :  { %2016 = vst.msk [vmem:[#allocation3 + $0x3e0] sm:$0xff] %vm1953_vm5, %v1945_v18  ;;  %3122 = vrot.lane.b32.xlu0 %v2954_v15, %s10310_s30 }
 0x2d3   :  { %2896 = vst.msk [vmem:[#allocation2 + $0x170] sm:$0xff] %vm851_vm2, %v2751_v19  ;;  %2897 = vst.msk [vmem:[#allocation2 + $0x178] sm:$0xff] %vm851_vm2, %v2753_v50  ;;  %3124 = vrot.lane.b32.xlu1 %v2955_v29, %s10310_s30 }
 0x2d4   :  { %v2755_v38 = vpop.permute.xlu0 %2754 }
 0x2d5   :  { %2898 = vst.msk [vmem:[#allocation2 + $0x180] sm:$0xff] %vm851_vm2, %v2755_v38  ;;  %v2757_v39 = vpop.permute.xlu1 %2756 }
 0x2d6   :  { %2899 = vst.msk [vmem:[#allocation2 + $0x188] sm:$0xff] %vm851_vm2, %v2757_v39  ;;  %3126 = vrot.lane.b32.xlu0 %v2956_v63, %s10310_s30 }
 0x2d7   :  { %3128 = vrot.lane.b32.xlu1 %v2957_v57, %s10310_s30 }
 0x2d8   :  { %v2759_v21 = vpop.permute.xlu0 %2758 }
 0x2d9   :  { %2900 = vst.msk [vmem:[#allocation2 + $0x190] sm:$0xff] %vm851_vm2, %v2759_v21  ;;  %v2761_v47 = vpop.permute.xlu1 %2760 }
 0x2da   :  { %2901 = vst.msk [vmem:[#allocation2 + $0x198] sm:$0xff] %vm851_vm2, %v2761_v47  ;;  %3130 = vrot.lane.b32.xlu0 %v2958_v5, %s10310_s30 }
 0x2db   :  { %3132 = vrot.lane.b32.xlu1 %v2959_v46, %s10310_s30 }
 0x2dc   :  { %v2763_v6 = vpop.permute.xlu0 %2762 }
 0x2dd   :  { %2902 = vst.msk [vmem:[#allocation2 + $0x1a0] sm:$0xff] %vm851_vm2, %v2763_v6  ;;  %v2765_v62 = vpop.permute.xlu1 %2764 }
 0x2de   :  { %2903 = vst.msk [vmem:[#allocation2 + $0x1a8] sm:$0xff] %vm851_vm2, %v2765_v62  ;;  %3134 = vrot.lane.b32.xlu0 %v2960_v1, %s10310_s30 }
 0x2df   :  { %3136 = vrot.lane.b32.xlu1 %v2961_v56, %s10310_s30 }
 0x2e0   :  { %v2767_v43 = vpop.permute.xlu0 %2766 }
 0x2e1   :  { %2904 = vst.msk [vmem:[#allocation2 + $0x1b0] sm:$0xff] %vm851_vm2, %v2767_v43  ;;  %v2769_v26 = vpop.permute.xlu1 %2768 }
 0x2e2   :  { %2905 = vst.msk [vmem:[#allocation2 + $0x1b8] sm:$0xff] %vm851_vm2, %v2769_v26  ;;  %3138 = vrot.lane.b32.xlu0 %v2962_v0, %s10310_s30 }
 0x2e3   :  { %3140 = vrot.lane.b32.xlu1 %v2963_v4, %s10310_s30 }
 0x2e4   :  { %v2771_v12 = vpop.permute.xlu0 %2770 }
 0x2e5   :  { %2906 = vst.msk [vmem:[#allocation2 + $0x1c0] sm:$0xff] %vm851_vm2, %v2771_v12  ;;  %v2773_v16 = vpop.permute.xlu1 %2772 }
 0x2e6   :  { %2907 = vst.msk [vmem:[#allocation2 + $0x1c8] sm:$0xff] %vm851_vm2, %v2773_v16  ;;  %3142 = vrot.lane.b32.xlu0 %v2964_v32, %s10310_s30 }
 0x2e7   :  { %3144 = vrot.lane.b32.xlu1 %v2965_v33, %s10310_s30 }
 0x2e8   :  { %v2775_v25 = vpop.permute.xlu0 %2774 }
 0x2e9   :  { %2908 = vst.msk [vmem:[#allocation2 + $0x1d0] sm:$0xff] %vm851_vm2, %v2775_v25  ;;  %v2777_v34 = vpop.permute.xlu1 %2776 }
 0x2ea   :  { %2909 = vst.msk [vmem:[#allocation2 + $0x1d8] sm:$0xff] %vm851_vm2, %v2777_v34  ;;  %3146 = vrot.lane.b32.xlu0 %v2966_v24, %s10310_s30 }
 0x2eb   :  { %3148 = vrot.lane.b32.xlu1 %v2967_v52, %s10310_s30 }
 0x2ec   :  { %v2779_v35 = vpop.permute.xlu0 %2778 }
 0x2ed   :  { %2910 = vst.msk [vmem:[#allocation2 + $0x1e0] sm:$0xff] %vm851_vm2, %v2779_v35  ;;  %v2781_v45 = vpop.permute.xlu1 %2780 }
 0x2ee   :  { %2911 = vst.msk [vmem:[#allocation2 + $0x1e8] sm:$0xff] %vm851_vm2, %v2781_v45  ;;  %3150 = vrot.lane.b32.xlu0 %v2968_v53, %s10310_s30 }
 0x2ef   :  { %3152 = vrot.lane.b32.xlu1 %v2969_v44, %s10310_s30 }
 0x2f0   :  { %v2783_v7 = vpop.permute.xlu0 %2782 }
 0x2f1   :  { %2912 = vst.msk [vmem:[#allocation2 + $0x1f0] sm:$0xff] %vm851_vm2, %v2783_v7  ;;  %v2785_v51 = vpop.permute.xlu1 %2784 }
 0x2f2   :  { %2913 = vst.msk [vmem:[#allocation2 + $0x1f8] sm:$0xff] %vm851_vm2, %v2785_v51  ;;  %3154 = vrot.lane.b32.xlu0 %v2970_v58, %s10310_s30 }
 0x2f3   :  { %3156 = vrot.lane.b32.xlu1 %v2971_v59, %s10310_s30 }
 0x2f4   :  { %v3043_v9 = vpop.permute.xlu0 %3042 }
 0x2f5   :  { %3234 = vst.msk [vmem:[#allocation2] sm:$0xff] %vm1236_vm3, %v3043_v9  ;;  %v3045_v54 = vpop.permute.xlu1 %3044 }
 0x2f6   :  { %3235 = vst.msk [vmem:[#allocation2 + $0x8] sm:$0xff] %vm1236_vm3, %v3045_v54  ;;  %3158 = vrot.lane.b32.xlu0 %v2972_v8, %s10310_s30 }
 0x2f7   :  { %3160 = vrot.lane.b32.xlu1 %v2973_v20, %s10310_s30 }
 0x2f8   :  { %v3047_v55 = vpop.permute.xlu0 %3046 }
 0x2f9   :  { %3236 = vst.msk [vmem:[#allocation2 + $0x10] sm:$0xff] %vm1236_vm3, %v3047_v55  ;;  %v3049_v42 = vpop.permute.xlu1 %3048 }
 0x2fa   :  { %3237 = vst.msk [vmem:[#allocation2 + $0x18] sm:$0xff] %vm1236_vm3, %v3049_v42  ;;  %3162 = vrot.lane.b32.xlu0 %v2974_v23, %s10310_s30 }
 0x2fb   :  { %3164 = vrot.lane.b32.xlu1 %v2975_v22, %s10310_s30 }
 0x2fc   :  { %v3051_v13 = vpop.permute.xlu0 %3050  ;;  %v3298_v49 = vld [vmem:[#allocation2] sm:$0xff] }
 0x2fd   :  { %3238 = vst.msk [vmem:[#allocation2 + $0x20] sm:$0xff] %vm1236_vm3, %v3051_v13  ;;  %v3053_v30 = vpop.permute.xlu1 %3052  ;;  %9940 = vmatprep.mubr.msk.f32.mxu1 %vm1375_vm4, %v3298_v49  ;;  %v3299_v31 = vld [vmem:[#allocation2 + $0x8] sm:$0xff] }
 0x2fe   :  { %3239 = vst.msk [vmem:[#allocation2 + $0x28] sm:$0xff] %vm1236_vm3, %v3053_v30  ;;  %3166 = vrot.lane.b32.xlu0 %v2976_v48, %s10310_s30  ;;  %9941 = vmatmul.mubr.msk.f32.vlgmr.msra.gmra.mrb[0].mxu1 %vm1375_vm4, %v3299_v31 }
 0x2ff   :  { %3168 = vrot.lane.b32.xlu1 %v2977_v17, %s10310_s30 }
 0x300   :  { %v3055_v2 = vpop.permute.xlu0 %3054  ;;  %v3300_v40 = vld [vmem:[#allocation2 + $0x10] sm:$0xff] }
 0x301   :  { %3240 = vst.msk [vmem:[#allocation2 + $0x30] sm:$0xff] %vm1236_vm3, %v3055_v2  ;;  %v3057_v3 = vpop.permute.xlu1 %3056  ;;  %9943 = vmatprep.mubr.msk.f32.mxu1 %vm1375_vm4, %v3300_v40  ;;  %v3301_v41 = vld [vmem:[#allocation2 + $0x18] sm:$0xff] }
 0x302   :  { %3241 = vst.msk [vmem:[#allocation2 + $0x38] sm:$0xff] %vm1236_vm3, %v3057_v3  ;;  %9944 = vmatmul.mubr.msk.f32.gmra.mrb[2].mxu1 %vm1375_vm4, %v3301_v41 }
 0x304   :  { %v3059_v60 = vpop.permute.xlu0 %3058  ;;  %v3302_v61 = vld [vmem:[#allocation2 + $0x20] sm:$0xff] }
 0x305   :  { %3242 = vst.msk [vmem:[#allocation2 + $0x40] sm:$0xff] %vm1236_vm3, %v3059_v60  ;;  %v3061_v36 = vpop.permute.xlu1 %3060  ;;  %9946 = vmatprep.mubr.msk.f32.mxu1 %vm1375_vm4, %v3302_v61  ;;  %v3303_v27 = vld [vmem:[#allocation2 + $0x28] sm:$0xff] }
 0x306   :  { %3243 = vst.msk [vmem:[#allocation2 + $0x48] sm:$0xff] %vm1236_vm3, %v3061_v36  ;;  %9947 = vmatmul.mubr.msk.f32.gmra.mrb[4].mxu1 %vm1375_vm4, %v3303_v27 }
 0x308   :  { %v3063_v37 = vpop.permute.xlu0 %3062  ;;  %v3304_v28 = vld [vmem:[#allocation2 + $0x30] sm:$0xff] }
 0x309   :  { %3244 = vst.msk [vmem:[#allocation2 + $0x50] sm:$0xff] %vm1236_vm3, %v3063_v37  ;;  %v3065_v10 = vpop.permute.xlu1 %3064  ;;  %9949 = vmatprep.mubr.msk.f32.mxu1 %vm1375_vm4, %v3304_v28  ;;  %v3305_v11 = vld [vmem:[#allocation2 + $0x38] sm:$0xff] }
 0x30a   :  { %3245 = vst.msk [vmem:[#allocation2 + $0x58] sm:$0xff] %vm1236_vm3, %v3065_v10  ;;  %9950 = vmatmul.mubr.msk.f32.gmra.mrb[6].mxu1 %vm1375_vm4, %v3305_v11 }
 0x30c   :  { %v3067_v14 = vpop.permute.xlu0 %3066  ;;  %v3306_v18 = vld [vmem:[#allocation2 + $0x40] sm:$0xff] }
 0x30d   :  { %3246 = vst.msk [vmem:[#allocation2 + $0x60] sm:$0xff] %vm1236_vm3, %v3067_v14  ;;  %v3069_v15 = vpop.permute.xlu1 %3068  ;;  %9952 = vmatprep.mubr.msk.f32.mxu1 %vm1375_vm4, %v3306_v18  ;;  %v3307_v19 = vld [vmem:[#allocation2 + $0x48] sm:$0xff] }
 0x30e   :  { %3247 = vst.msk [vmem:[#allocation2 + $0x68] sm:$0xff] %vm1236_vm3, %v3069_v15  ;;  %9953 = vmatmul.mubr.msk.f32.gmra.mrb[8].mxu1 %vm1375_vm4, %v3307_v19 }
 0x310   :  { %v3071_v29 = vpop.permute.xlu0 %3070  ;;  %v3308_v50 = vld [vmem:[#allocation2 + $0x50] sm:$0xff] }
 0x311   :  { %3248 = vst.msk [vmem:[#allocation2 + $0x70] sm:$0xff] %vm1236_vm3, %v3071_v29  ;;  %v3073_v63 = vpop.permute.xlu1 %3072  ;;  %9955 = vmatprep.mubr.msk.f32.mxu1 %vm1375_vm4, %v3308_v50  ;;  %v3309_v38 = vld [vmem:[#allocation2 + $0x58] sm:$0xff] }
 0x312   :  { %3249 = vst.msk [vmem:[#allocation2 + $0x78] sm:$0xff] %vm1236_vm3, %v3073_v63  ;;  %9956 = vmatmul.mubr.msk.f32.gmra.mrb[10].mxu1 %vm1375_vm4, %v3309_v38 }
 0x314   :  { %v3075_v57 = vpop.permute.xlu0 %3074  ;;  %v3310_v39 = vld [vmem:[#allocation2 + $0x60] sm:$0xff] }
 0x315   :  { %3250 = vst.msk [vmem:[#allocation2 + $0x80] sm:$0xff] %vm1236_vm3, %v3075_v57  ;;  %v3077_v5 = vpop.permute.xlu1 %3076  ;;  %9958 = vmatprep.mubr.msk.f32.mxu1 %vm1375_vm4, %v3310_v39  ;;  %v3311_v21 = vld [vmem:[#allocation2 + $0x68] sm:$0xff] }
 0x316   :  { %3251 = vst.msk [vmem:[#allocation2 + $0x88] sm:$0xff] %vm1236_vm3, %v3077_v5  ;;  %9959 = vmatmul.mubr.msk.f32.gmra.mrb[12].mxu1 %vm1375_vm4, %v3311_v21 }
 0x318   :  { %v3079_v46 = vpop.permute.xlu0 %3078  ;;  %v3312_v47 = vld [vmem:[#allocation2 + $0x70] sm:$0xff] }
 0x319   :  { %3252 = vst.msk [vmem:[#allocation2 + $0x90] sm:$0xff] %vm1236_vm3, %v3079_v46  ;;  %v3081_v1 = vpop.permute.xlu1 %3080  ;;  %9961 = vmatprep.mubr.msk.f32.mxu1 %vm1375_vm4, %v3312_v47  ;;  %v3313_v6 = vld [vmem:[#allocation2 + $0x78] sm:$0xff] }
 0x31a   :  { %3253 = vst.msk [vmem:[#allocation2 + $0x98] sm:$0xff] %vm1236_vm3, %v3081_v1  ;;  %9962 = vmatmul.mubr.msk.f32.gmra.mrb[14].mxu1 %vm1375_vm4, %v3313_v6 }
 0x31c   :  { %v3083_v56 = vpop.permute.xlu0 %3082  ;;  %v3314_v62 = vld [vmem:[#allocation2 + $0x80] sm:$0xff] }
 0x31d   :  { %3254 = vst.msk [vmem:[#allocation2 + $0xa0] sm:$0xff] %vm1236_vm3, %v3083_v56  ;;  %v3085_v0 = vpop.permute.xlu1 %3084  ;;  %9964 = vmatprep.mubr.msk.f32.mxu1 %vm1375_vm4, %v3314_v62  ;;  %v3315_v43 = vld [vmem:[#allocation2 + $0x88] sm:$0xff] }
 0x31e   :  { %3255 = vst.msk [vmem:[#allocation2 + $0xa8] sm:$0xff] %vm1236_vm3, %v3085_v0  ;;  %9965 = vmatmul.mubr.msk.f32.gmra.mrb[16].mxu1 %vm1375_vm4, %v3315_v43 }
 0x320   :  { %v3087_v4 = vpop.permute.xlu0 %3086  ;;  %v3316_v26 = vld [vmem:[#allocation2 + $0x90] sm:$0xff] }
 0x321   :  { %3256 = vst.msk [vmem:[#allocation2 + $0xb0] sm:$0xff] %vm1236_vm3, %v3087_v4  ;;  %v3089_v32 = vpop.permute.xlu1 %3088  ;;  %9967 = vmatprep.mubr.msk.f32.mxu1 %vm1375_vm4, %v3316_v26  ;;  %v3317_v12 = vld [vmem:[#allocation2 + $0x98] sm:$0xff] }
 0x322   :  { %3257 = vst.msk [vmem:[#allocation2 + $0xb8] sm:$0xff] %vm1236_vm3, %v3089_v32  ;;  %9968 = vmatmul.mubr.msk.f32.gmra.mrb[18].mxu1 %vm1375_vm4, %v3317_v12 }
 0x324   :  { %v3091_v33 = vpop.permute.xlu0 %3090  ;;  %v3318_v16 = vld [vmem:[#allocation2 + $0xa0] sm:$0xff] }
 0x325   :  { %3258 = vst.msk [vmem:[#allocation2 + $0xc0] sm:$0xff] %vm1236_vm3, %v3091_v33  ;;  %v3093_v24 = vpop.permute.xlu1 %3092  ;;  %9970 = vmatprep.mubr.msk.f32.mxu1 %vm1375_vm4, %v3318_v16  ;;  %v3319_v25 = vld [vmem:[#allocation2 + $0xa8] sm:$0xff] }
 0x326   :  { %3259 = vst.msk [vmem:[#allocation2 + $0xc8] sm:$0xff] %vm1236_vm3, %v3093_v24  ;;  %9971 = vmatmul.mubr.msk.f32.gmra.mrb[20].mxu1 %vm1375_vm4, %v3319_v25 }
 0x328   :  { %v3095_v52 = vpop.permute.xlu0 %3094  ;;  %v3320_v34 = vld [vmem:[#allocation2 + $0xb0] sm:$0xff] }
 0x329   :  { %3260 = vst.msk [vmem:[#allocation2 + $0xd0] sm:$0xff] %vm1236_vm3, %v3095_v52  ;;  %v3097_v53 = vpop.permute.xlu1 %3096  ;;  %9973 = vmatprep.mubr.msk.f32.mxu1 %vm1375_vm4, %v3320_v34  ;;  %v3321_v35 = vld [vmem:[#allocation2 + $0xb8] sm:$0xff] }
 0x32a   :  { %3261 = vst.msk [vmem:[#allocation2 + $0xd8] sm:$0xff] %vm1236_vm3, %v3097_v53  ;;  %9974 = vmatmul.mubr.msk.f32.gmra.mrb[22].mxu1 %vm1375_vm4, %v3321_v35 }
 0x32c   :  { %v3099_v44 = vpop.permute.xlu0 %3098  ;;  %v3322_v45 = vld [vmem:[#allocation2 + $0xc0] sm:$0xff] }
 0x32d   :  { %3262 = vst.msk [vmem:[#allocation2 + $0xe0] sm:$0xff] %vm1236_vm3, %v3099_v44  ;;  %v3101_v58 = vpop.permute.xlu1 %3100  ;;  %9976 = vmatprep.mubr.msk.f32.mxu1 %vm1375_vm4, %v3322_v45  ;;  %v3323_v7 = vld [vmem:[#allocation2 + $0xc8] sm:$0xff] }
 0x32e   :  { %3263 = vst.msk [vmem:[#allocation2 + $0xe8] sm:$0xff] %vm1236_vm3, %v3101_v58  ;;  %9977 = vmatmul.mubr.msk.f32.gmra.mrb[24].mxu1 %vm1375_vm4, %v3323_v7 }
 0x330   :  { %v3103_v59 = vpop.permute.xlu0 %3102  ;;  %v3324_v51 = vld [vmem:[#allocation2 + $0xd0] sm:$0xff] }
 0x331   :  { %3264 = vst.msk [vmem:[#allocation2 + $0xf0] sm:$0xff] %vm1236_vm3, %v3103_v59  ;;  %v3105_v8 = vpop.permute.xlu1 %3104  ;;  %9979 = vmatprep.mubr.msk.f32.mxu1 %vm1375_vm4, %v3324_v51  ;;  %v3325_v9 = vld [vmem:[#allocation2 + $0xd8] sm:$0xff] }
 0x332   :  { %3265 = vst.msk [vmem:[#allocation2 + $0xf8] sm:$0xff] %vm1236_vm3, %v3105_v8  ;;  %9980 = vmatmul.mubr.msk.f32.gmra.mrb[26].mxu1 %vm1375_vm4, %v3325_v9 }
 0x334   :  { %v3107_v20 = vpop.permute.xlu0 %3106  ;;  %v3326_v54 = vld [vmem:[#allocation2 + $0xe0] sm:$0xff] }
 0x335   :  { %3266 = vst.msk [vmem:[#allocation2 + $0x100] sm:$0xff] %vm1236_vm3, %v3107_v20  ;;  %v3109_v23 = vpop.permute.xlu1 %3108  ;;  %9982 = vmatprep.mubr.msk.f32.mxu1 %vm1375_vm4, %v3326_v54  ;;  %v3327_v55 = vld [vmem:[#allocation2 + $0xe8] sm:$0xff] }
 0x336   :  { %3267 = vst.msk [vmem:[#allocation2 + $0x108] sm:$0xff] %vm1236_vm3, %v3109_v23  ;;  %9983 = vmatmul.mubr.msk.f32.gmra.mrb[28].mxu1 %vm1375_vm4, %v3327_v55 }
 0x338   :  { %v3111_v22 = vpop.permute.xlu0 %3110  ;;  %v3328_v42 = vld [vmem:[#allocation2 + $0xf0] sm:$0xff] }
 0x339   :  { %3268 = vst.msk [vmem:[#allocation2 + $0x110] sm:$0xff] %vm1236_vm3, %v3111_v22  ;;  %v3113_v48 = vpop.permute.xlu1 %3112  ;;  %9985 = vmatprep.mubr.msk.f32.mxu1 %vm1375_vm4, %v3328_v42  ;;  %v3329_v13 = vld [vmem:[#allocation2 + $0xf8] sm:$0xff]  ;;  %v13173_v42 = vld [vmem:[%s16424_s2] ss:$0 sm:$0xff] }
 0x33a   :  { %3269 = vst.msk [vmem:[#allocation2 + $0x118] sm:$0xff] %vm1236_vm3, %v3113_v48  ;;  %9986 = vmatmul.mubr.msk.f32.gmra.mrb[30].mxu1 %vm1375_vm4, %v3329_v13 }
 0x33c   :  { %v3115_v49 = vpop.permute.xlu0 %3114  ;;  %v3330_v17 = vld [vmem:[#allocation2 + $0x100] sm:$0xff] }
 0x33d   :  { %3270 = vst.msk [vmem:[#allocation2 + $0x120] sm:$0xff] %vm1236_vm3, %v3115_v49  ;;  %v3117_v30 = vpop.permute.xlu1 %3116  ;;  %9988 = vmatprep.mubr.msk.f32.mxu1 %vm1375_vm4, %v3330_v17  ;;  %v3331_v31 = vld [vmem:[#allocation2 + $0x108] sm:$0xff] }
 0x33e   :  { %3271 = vst.msk [vmem:[#allocation2 + $0x128] sm:$0xff] %vm1236_vm3, %v3117_v30  ;;  %9989 = vmatmul.mubr.msk.f32.gmra.mrb[32].mxu1 %vm1375_vm4, %v3331_v31 }
 0x340   :  { %v3119_v2 = vpop.permute.xlu0 %3118  ;;  %v3332_v40 = vld [vmem:[#allocation2 + $0x110] sm:$0xff] }
 0x341   :  { %3272 = vst.msk [vmem:[#allocation2 + $0x130] sm:$0xff] %vm1236_vm3, %v3119_v2  ;;  %v3121_v3 = vpop.permute.xlu1 %3120  ;;  %9991 = vmatprep.mubr.msk.f32.mxu1 %vm1375_vm4, %v3332_v40  ;;  %v3333_v41 = vld [vmem:[#allocation2 + $0x118] sm:$0xff] }
 0x342   :  { %3273 = vst.msk [vmem:[#allocation2 + $0x138] sm:$0xff] %vm1236_vm3, %v3121_v3  ;;  %9992 = vmatmul.mubr.msk.f32.gmra.mrb[34].mxu1 %vm1375_vm4, %v3333_v41 }
 0x344   :  { %v3123_v60 = vpop.permute.xlu0 %3122  ;;  %v3334_v61 = vld [vmem:[#allocation2 + $0x120] sm:$0xff] }
 0x345   :  { %3274 = vst.msk [vmem:[#allocation2 + $0x140] sm:$0xff] %vm1236_vm3, %v3123_v60  ;;  %v3125_v36 = vpop.permute.xlu1 %3124  ;;  %9994 = vmatprep.mubr.msk.f32.mxu1 %vm1375_vm4, %v3334_v61  ;;  %v3335_v27 = vld [vmem:[#allocation2 + $0x128] sm:$0xff] }
 0x346   :  { %3275 = vst.msk [vmem:[#allocation2 + $0x148] sm:$0xff] %vm1236_vm3, %v3125_v36  ;;  %9995 = vmatmul.mubr.msk.f32.gmra.mrb[36].mxu1 %vm1375_vm4, %v3335_v27 }
 0x348   :  { %v3127_v37 = vpop.permute.xlu0 %3126  ;;  %v3336_v28 = vld [vmem:[#allocation2 + $0x130] sm:$0xff] }
 0x349   :  { %3276 = vst.msk [vmem:[#allocation2 + $0x150] sm:$0xff] %vm1236_vm3, %v3127_v37  ;;  %v3129_v10 = vpop.permute.xlu1 %3128  ;;  %9997 = vmatprep.mubr.msk.f32.mxu1 %vm1375_vm4, %v3336_v28  ;;  %v3337_v11 = vld [vmem:[#allocation2 + $0x138] sm:$0xff] }
 0x34a   :  { %3277 = vst.msk [vmem:[#allocation2 + $0x158] sm:$0xff] %vm1236_vm3, %v3129_v10  ;;  %9998 = vmatmul.mubr.msk.f32.gmra.mrb[38].mxu1 %vm1375_vm4, %v3337_v11 }
 0x34c   :  { %v3131_v14 = vpop.permute.xlu0 %3130  ;;  %v3338_v18 = vld [vmem:[#allocation2 + $0x140] sm:$0xff] }
 0x34d   :  { %3278 = vst.msk [vmem:[#allocation2 + $0x160] sm:$0xff] %vm1236_vm3, %v3131_v14  ;;  %v3133_v15 = vpop.permute.xlu1 %3132  ;;  %10000 = vmatprep.mubr.msk.f32.mxu1 %vm1375_vm4, %v3338_v18  ;;  %v3339_v19 = vld [vmem:[#allocation2 + $0x148] sm:$0xff] }
 0x34e   :  { %3279 = vst.msk [vmem:[#allocation2 + $0x168] sm:$0xff] %vm1236_vm3, %v3133_v15  ;;  %10001 = vmatmul.mubr.msk.f32.gmra.mrb[40].mxu1 %vm1375_vm4, %v3339_v19 }
 0x350   :  { %v3135_v29 = vpop.permute.xlu0 %3134  ;;  %v3340_v50 = vld [vmem:[#allocation2 + $0x150] sm:$0xff] }
 0x351   :  { %3280 = vst.msk [vmem:[#allocation2 + $0x170] sm:$0xff] %vm1236_vm3, %v3135_v29  ;;  %v3137_v63 = vpop.permute.xlu1 %3136  ;;  %10003 = vmatprep.mubr.msk.f32.mxu1 %vm1375_vm4, %v3340_v50  ;;  %v3341_v38 = vld [vmem:[#allocation2 + $0x158] sm:$0xff] }
 0x352   :  { %3281 = vst.msk [vmem:[#allocation2 + $0x178] sm:$0xff] %vm1236_vm3, %v3137_v63  ;;  %10004 = vmatmul.mubr.msk.f32.gmra.mrb[42].mxu1 %vm1375_vm4, %v3341_v38 }
 0x354   :  { %v3139_v57 = vpop.permute.xlu0 %3138  ;;  %v3342_v39 = vld [vmem:[#allocation2 + $0x160] sm:$0xff] }
 0x355   :  { %3282 = vst.msk [vmem:[#allocation2 + $0x180] sm:$0xff] %vm1236_vm3, %v3139_v57  ;;  %v3141_v5 = vpop.permute.xlu1 %3140  ;;  %10006 = vmatprep.mubr.msk.f32.mxu1 %vm1375_vm4, %v3342_v39  ;;  %v3343_v21 = vld [vmem:[#allocation2 + $0x168] sm:$0xff] }
 0x356   :  { %3283 = vst.msk [vmem:[#allocation2 + $0x188] sm:$0xff] %vm1236_vm3, %v3141_v5  ;;  %10007 = vmatmul.mubr.msk.f32.gmra.mrb[44].mxu1 %vm1375_vm4, %v3343_v21 }
 0x358   :  { %v3143_v46 = vpop.permute.xlu0 %3142  ;;  %v3344_v47 = vld [vmem:[#allocation2 + $0x170] sm:$0xff] }
 0x359   :  { %3284 = vst.msk [vmem:[#allocation2 + $0x190] sm:$0xff] %vm1236_vm3, %v3143_v46  ;;  %v3145_v1 = vpop.permute.xlu1 %3144  ;;  %10009 = vmatprep.mubr.msk.f32.mxu1 %vm1375_vm4, %v3344_v47  ;;  %v3345_v6 = vld [vmem:[#allocation2 + $0x178] sm:$0xff] }
 0x35a   :  { %3285 = vst.msk [vmem:[#allocation2 + $0x198] sm:$0xff] %vm1236_vm3, %v3145_v1  ;;  %10010 = vmatmul.mubr.msk.f32.gmra.mrb[46].mxu1 %vm1375_vm4, %v3345_v6 }
 0x35c   :  { %v3147_v56 = vpop.permute.xlu0 %3146  ;;  %v3346_v62 = vld [vmem:[#allocation2 + $0x180] sm:$0xff] }
 0x35d   :  { %3286 = vst.msk [vmem:[#allocation2 + $0x1a0] sm:$0xff] %vm1236_vm3, %v3147_v56  ;;  %v3149_v0 = vpop.permute.xlu1 %3148  ;;  %10012 = vmatprep.mubr.msk.f32.mxu1 %vm1375_vm4, %v3346_v62  ;;  %v3347_v43 = vld [vmem:[#allocation2 + $0x188] sm:$0xff] }
 0x35e   :  { %3287 = vst.msk [vmem:[#allocation2 + $0x1a8] sm:$0xff] %vm1236_vm3, %v3149_v0  ;;  %10013 = vmatmul.mubr.msk.f32.gmra.mrb[48].mxu1 %vm1375_vm4, %v3347_v43 }
 0x360   :  { %v3151_v4 = vpop.permute.xlu0 %3150  ;;  %v3348_v26 = vld [vmem:[#allocation2 + $0x190] sm:$0xff] }
 0x361   :  { %3288 = vst.msk [vmem:[#allocation2 + $0x1b0] sm:$0xff] %vm1236_vm3, %v3151_v4  ;;  %v3153_v32 = vpop.permute.xlu1 %3152  ;;  %10015 = vmatprep.mubr.msk.f32.mxu1 %vm1375_vm4, %v3348_v26  ;;  %v3349_v12 = vld [vmem:[#allocation2 + $0x198] sm:$0xff] }
 0x362   :  { %3289 = vst.msk [vmem:[#allocation2 + $0x1b8] sm:$0xff] %vm1236_vm3, %v3153_v32  ;;  %10016 = vmatmul.mubr.msk.f32.gmra.mrb[50].mxu1 %vm1375_vm4, %v3349_v12 }
 0x364   :  { %v3155_v33 = vpop.permute.xlu0 %3154  ;;  %v3350_v16 = vld [vmem:[#allocation2 + $0x1a0] sm:$0xff] }
 0x365   :  { %3290 = vst.msk [vmem:[#allocation2 + $0x1c0] sm:$0xff] %vm1236_vm3, %v3155_v33  ;;  %v3157_v24 = vpop.permute.xlu1 %3156  ;;  %10018 = vmatprep.mubr.msk.f32.mxu1 %vm1375_vm4, %v3350_v16  ;;  %v3351_v25 = vld [vmem:[#allocation2 + $0x1a8] sm:$0xff] }
 0x366   :  { %3291 = vst.msk [vmem:[#allocation2 + $0x1c8] sm:$0xff] %vm1236_vm3, %v3157_v24  ;;  %10019 = vmatmul.mubr.msk.f32.gmra.mrb[52].mxu1 %vm1375_vm4, %v3351_v25 }
 0x368   :  { %v3159_v52 = vpop.permute.xlu0 %3158  ;;  %v3352_v34 = vld [vmem:[#allocation2 + $0x1b0] sm:$0xff] }
 0x369   :  { %3292 = vst.msk [vmem:[#allocation2 + $0x1d0] sm:$0xff] %vm1236_vm3, %v3159_v52  ;;  %v3161_v53 = vpop.permute.xlu1 %3160  ;;  %10021 = vmatprep.mubr.msk.f32.mxu1 %vm1375_vm4, %v3352_v34  ;;  %v3353_v35 = vld [vmem:[#allocation2 + $0x1b8] sm:$0xff] }
 0x36a   :  { %3293 = vst.msk [vmem:[#allocation2 + $0x1d8] sm:$0xff] %vm1236_vm3, %v3161_v53  ;;  %10022 = vmatmul.mubr.msk.f32.gmra.mrb[54].mxu1 %vm1375_vm4, %v3353_v35 }
 0x36c   :  { %v3163_v44 = vpop.permute.xlu0 %3162  ;;  %v3354_v45 = vld [vmem:[#allocation2 + $0x1c0] sm:$0xff] }
 0x36d   :  { %3294 = vst.msk [vmem:[#allocation2 + $0x1e0] sm:$0xff] %vm1236_vm3, %v3163_v44  ;;  %v3165_v58 = vpop.permute.xlu1 %3164  ;;  %10024 = vmatprep.mubr.msk.f32.mxu1 %vm1375_vm4, %v3354_v45  ;;  %v3355_v7 = vld [vmem:[#allocation2 + $0x1c8] sm:$0xff] }
 0x36e   :  { %3295 = vst.msk [vmem:[#allocation2 + $0x1e8] sm:$0xff] %vm1236_vm3, %v3165_v58  ;;  %10025 = vmatmul.mubr.msk.f32.gmra.mrb[56].mxu1 %vm1375_vm4, %v3355_v7 }
 0x370   :  { %v3167_v59 = vpop.permute.xlu0 %3166  ;;  %v3356_v51 = vld [vmem:[#allocation2 + $0x1d0] sm:$0xff] }
 0x371   :  { %3296 = vst.msk [vmem:[#allocation2 + $0x1f0] sm:$0xff] %vm1236_vm3, %v3167_v59  ;;  %v3169_v8 = vpop.permute.xlu1 %3168  ;;  %10027 = vmatprep.mubr.msk.f32.mxu1 %vm1375_vm4, %v3356_v51  ;;  %v3357_v9 = vld [vmem:[#allocation2 + $0x1d8] sm:$0xff] }
 0x372   :  { %3297 = vst.msk [vmem:[#allocation2 + $0x1f8] sm:$0xff] %vm1236_vm3, %v3169_v8  ;;  %10028 = vmatmul.mubr.msk.f32.gmra.mrb[58].mxu1 %vm1375_vm4, %v3357_v9 }
 0x374   :  { %v3358_v20 = vld [vmem:[#allocation2 + $0x1e0] sm:$0xff] }
 0x375   :  { %10030 = vmatprep.mubr.msk.f32.mxu1 %vm1375_vm4, %v3358_v20  ;;  %v3359_v54 = vld [vmem:[#allocation2 + $0x1e8] sm:$0xff] }
 0x376   :  { %10031 = vmatmul.mubr.msk.f32.gmra.mrb[60].mxu1 %vm1375_vm4, %v3359_v54 }
 0x378   :  { %v3360_v23 = vld [vmem:[#allocation2 + $0x1f0] sm:$0xff] }
 0x379   :  { %10033 = vmatprep.mubr.msk.f32.mxu1 %vm1375_vm4, %v3360_v23  ;;  %v3361_v55 = vld [vmem:[#allocation2 + $0x1f8] sm:$0xff] }
 0x37a   :  { %10034 = vmatmul.mubr.msk.f32.gmra.mrb[62].mxu1 %vm1375_vm4, %v3361_v55 }
 0x3d1   :  { %v9942_v22 = vpop.f32.mrb[0].mxu1 }
 0x3d2   :  { %v3631_v48 = vadd.f32 %v13173_v42, %v9942_v22  ;;  %v3625_v13 = vpop.f32.mrb[1].mxu1 }
 0x3d3   :  { %v3626_v49 = vadd.f32 %v13173_v42, %v3625_v13 }
 0x3d4   :  { %4010 = vrot.lane.b32.xlu1 %v3631_v48, %s10309_s12 }
 0x3d5   :  { %v9945_v17 = vpop.f32.mrb[2].mxu1  ;;  %4008 = vrot.lane.b32.xlu0 %v3626_v49, %s10309_s12 }
 0x3d6   :  { %v3641_v30 = vadd.f32 %v13173_v42, %v9945_v17  ;;  %v3635_v31 = vpop.f32.mrb[3].mxu1 }
 0x3d7   :  { %v3636_v2 = vadd.f32 %v13173_v42, %v3635_v31 }
 0x3d8   :  { %4014 = vrot.lane.b32.xlu1 %v3641_v30, %s10309_s12 }
 0x3d9   :  { %v9948_v40 = vpop.f32.mrb[4].mxu1  ;;  %4012 = vrot.lane.b32.xlu0 %v3636_v2, %s10309_s12 }
 0x3da   :  { %v3651_v3 = vadd.f32 %v13173_v42, %v9948_v40  ;;  %v3645_v41 = vpop.f32.mrb[5].mxu1 }
 0x3db   :  { %v3646_v60 = vadd.f32 %v13173_v42, %v3645_v41 }
 0x3dc   :  { %4018 = vrot.lane.b32.xlu1 %v3651_v3, %s10309_s12 }
 0x3dd   :  { %v9951_v61 = vpop.f32.mrb[6].mxu1  ;;  %4016 = vrot.lane.b32.xlu0 %v3646_v60, %s10309_s12 }
 0x3de   :  { %v3661_v36 = vadd.f32 %v13173_v42, %v9951_v61  ;;  %v3655_v27 = vpop.f32.mrb[7].mxu1 }
 0x3df   :  { %v3656_v37 = vadd.f32 %v13173_v42, %v3655_v27 }
 0x3e0   :  { %4022 = vrot.lane.b32.xlu1 %v3661_v36, %s10309_s12 }
 0x3e1   :  { %v9954_v28 = vpop.f32.mrb[8].mxu1  ;;  %4020 = vrot.lane.b32.xlu0 %v3656_v37, %s10309_s12 }
 0x3e2   :  { %v3671_v10 = vadd.f32 %v13173_v42, %v9954_v28  ;;  %v3665_v11 = vpop.f32.mrb[9].mxu1 }
 0x3e3   :  { %v3666_v14 = vadd.f32 %v13173_v42, %v3665_v11 }
 0x3e4   :  { %4026 = vrot.lane.b32.xlu1 %v3671_v10, %s10309_s12 }
 0x3e5   :  { %v9957_v18 = vpop.f32.mrb[10].mxu1  ;;  %4024 = vrot.lane.b32.xlu0 %v3666_v14, %s10309_s12 }
 0x3e6   :  { %v3681_v15 = vadd.f32 %v13173_v42, %v9957_v18  ;;  %v3675_v19 = vpop.f32.mrb[11].mxu1 }
 0x3e7   :  { %v3676_v29 = vadd.f32 %v13173_v42, %v3675_v19 }
 0x3e8   :  { %4030 = vrot.lane.b32.xlu1 %v3681_v15, %s10309_s12 }
 0x3e9   :  { %v9960_v50 = vpop.f32.mrb[12].mxu1  ;;  %4028 = vrot.lane.b32.xlu0 %v3676_v29, %s10309_s12 }
 0x3ea   :  { %v3691_v63 = vadd.f32 %v13173_v42, %v9960_v50  ;;  %v3685_v38 = vpop.f32.mrb[13].mxu1 }
 0x3eb   :  { %v3686_v57 = vadd.f32 %v13173_v42, %v3685_v38 }
 0x3ec   :  { %4034 = vrot.lane.b32.xlu1 %v3691_v63, %s10309_s12 }
 0x3ed   :  { %v9963_v39 = vpop.f32.mrb[14].mxu1  ;;  %4032 = vrot.lane.b32.xlu0 %v3686_v57, %s10309_s12 }
 0x3ee   :  { %v3701_v5 = vadd.f32 %v13173_v42, %v9963_v39  ;;  %v3695_v21 = vpop.f32.mrb[15].mxu1 }
 0x3ef   :  { %v3696_v46 = vadd.f32 %v13173_v42, %v3695_v21 }
 0x3f0   :  { %4038 = vrot.lane.b32.xlu1 %v3701_v5, %s10309_s12 }
 0x3f1   :  { %v9966_v47 = vpop.f32.mrb[16].mxu1  ;;  %4036 = vrot.lane.b32.xlu0 %v3696_v46, %s10309_s12 }
 0x3f2   :  { %v3711_v1 = vadd.f32 %v13173_v42, %v9966_v47  ;;  %v3705_v6 = vpop.f32.mrb[17].mxu1 }
 0x3f3   :  { %v3706_v56 = vadd.f32 %v13173_v42, %v3705_v6 }
 0x3f4   :  { %4042 = vrot.lane.b32.xlu1 %v3711_v1, %s10309_s12 }
 0x3f5   :  { %v9969_v62 = vpop.f32.mrb[18].mxu1  ;;  %4040 = vrot.lane.b32.xlu0 %v3706_v56, %s10309_s12 }
 0x3f6   :  { %v3721_v0 = vadd.f32 %v13173_v42, %v9969_v62  ;;  %v3715_v43 = vpop.f32.mrb[19].mxu1 }
 0x3f7   :  { %v3716_v4 = vadd.f32 %v13173_v42, %v3715_v43 }
 0x3f8   :  { %4046 = vrot.lane.b32.xlu1 %v3721_v0, %s10309_s12 }
 0x3f9   :  { %v9972_v26 = vpop.f32.mrb[20].mxu1  ;;  %4044 = vrot.lane.b32.xlu0 %v3716_v4, %s10309_s12 }
 0x3fa   :  { %v3731_v32 = vadd.f32 %v13173_v42, %v9972_v26  ;;  %v3725_v12 = vpop.f32.mrb[21].mxu1 }
 0x3fb   :  { %v3726_v33 = vadd.f32 %v13173_v42, %v3725_v12 }
 0x3fc   :  { %4050 = vrot.lane.b32.xlu1 %v3731_v32, %s10309_s12 }
 0x3fd   :  { %v9975_v16 = vpop.f32.mrb[22].mxu1  ;;  %4048 = vrot.lane.b32.xlu0 %v3726_v33, %s10309_s12 }
 0x3fe   :  { %v3741_v24 = vadd.f32 %v13173_v42, %v9975_v16  ;;  %v3735_v25 = vpop.f32.mrb[23].mxu1 }
 0x3ff   :  { %v3736_v52 = vadd.f32 %v13173_v42, %v3735_v25 }
 0x400   :  { %4054 = vrot.lane.b32.xlu1 %v3741_v24, %s10309_s12 }
 0x401   :  { %v9978_v34 = vpop.f32.mrb[24].mxu1  ;;  %4052 = vrot.lane.b32.xlu0 %v3736_v52, %s10309_s12 }
 0x402   :  { %v3751_v53 = vadd.f32 %v13173_v42, %v9978_v34  ;;  %v3745_v35 = vpop.f32.mrb[25].mxu1 }
 0x403   :  { %v3746_v44 = vadd.f32 %v13173_v42, %v3745_v35 }
 0x404   :  { %4058 = vrot.lane.b32.xlu1 %v3751_v53, %s10309_s12 }
 0x405   :  { %v9981_v45 = vpop.f32.mrb[26].mxu1  ;;  %4056 = vrot.lane.b32.xlu0 %v3746_v44, %s10309_s12 }
 0x406   :  { %v3761_v58 = vadd.f32 %v13173_v42, %v9981_v45  ;;  %v3755_v7 = vpop.f32.mrb[27].mxu1 }
 0x407   :  { %v3756_v59 = vadd.f32 %v13173_v42, %v3755_v7  ;;  %v13294_v7 = vld [vmem:[%s16422_s0 + $0x31] sm:$0xff] }
 0x408   :  { %4062 = vrot.lane.b32.xlu1 %v3761_v58, %s10309_s12  ;;  %4330 = vst.msk [vmem:[#allocation2] sm:$0xff] %vm81_vm0, %v13294_v7 }
 0x409   :  { %v9984_v51 = vpop.f32.mrb[28].mxu1  ;;  %4060 = vrot.lane.b32.xlu0 %v3756_v59, %s10309_s12 }
 0x40a   :  { %v3771_v8 = vadd.f32 %v13173_v42, %v9984_v51  ;;  %v3765_v9 = vpop.f32.mrb[29].mxu1 }
 0x40b   :  { %v3766_v20 = vadd.f32 %v13173_v42, %v3765_v9 }
 0x40c   :  { %4066 = vrot.lane.b32.xlu1 %v3771_v8, %s10309_s12 }
 0x40d   :  { %v9987_v54 = vpop.f32.mrb[30].mxu1  ;;  %4064 = vrot.lane.b32.xlu0 %v3766_v20, %s10309_s12 }
 0x40e   :  { %v3781_v23 = vadd.f32 %v13173_v42, %v9987_v54  ;;  %v3775_v55 = vpop.f32.mrb[31].mxu1  ;;  %v13304_v54 = vld [vmem:[%s16422_s0 + $0x39] sm:$0xff] }
 0x40f   :  { %v3776_v22 = vadd.f32 %v13173_v42, %v3775_v55  ;;  %4331 = vst.msk [vmem:[#allocation2 + $0x8] sm:$0xff] %vm81_vm0, %v13304_v54  ;;  %v13314_v55 = vld [vmem:[%s16422_s0 + $0x49] sm:$0xff] }
 0x410   :  { %4070 = vrot.lane.b32.xlu1 %v3781_v23, %s10309_s12  ;;  %4332 = vst.msk [vmem:[#allocation2 + $0x10] sm:$0xff] %vm81_vm0, %v13314_v55 }
 0x411   :  { %v9990_v48 = vpop.f32.mrb[32].mxu1  ;;  %4068 = vrot.lane.b32.xlu0 %v3776_v22, %s10309_s12 }
 0x412   :  { %v3791_v13 = vadd.f32 %v13173_v42, %v9990_v48  ;;  %v3785_v49 = vpop.f32.mrb[33].mxu1 }
 0x413   :  { %v3786_v17 = vadd.f32 %v13173_v42, %v3785_v49 }
 0x414   :  { %4074 = vrot.lane.b32.xlu1 %v3791_v13, %s10309_s12 }
 0x415   :  { %v9993_v30 = vpop.f32.mrb[34].mxu1  ;;  %4072 = vrot.lane.b32.xlu0 %v3786_v17, %s10309_s12 }
 0x416   :  { %v3801_v31 = vadd.f32 %v13173_v42, %v9993_v30  ;;  %v3795_v2 = vpop.f32.mrb[35].mxu1  ;;  %v13324_v30 = vld [vmem:[%s16422_s0 + $0x51] sm:$0xff] }
 0x417   :  { %v3796_v40 = vadd.f32 %v13173_v42, %v3795_v2  ;;  %4333 = vst.msk [vmem:[#allocation2 + $0x18] sm:$0xff] %vm81_vm0, %v13324_v30  ;;  %v13334_v2 = vld [vmem:[%s16422_s0 + $0x61] sm:$0xff] }
 0x418   :  { %4078 = vrot.lane.b32.xlu1 %v3801_v31, %s10309_s12  ;;  %4334 = vst.msk [vmem:[#allocation2 + $0x20] sm:$0xff] %vm81_vm0, %v13334_v2 }
 0x419   :  { %v9996_v3 = vpop.f32.mrb[36].mxu1  ;;  %4076 = vrot.lane.b32.xlu0 %v3796_v40, %s10309_s12 }
 0x41a   :  { %v3811_v41 = vadd.f32 %v13173_v42, %v9996_v3  ;;  %v3805_v60 = vpop.f32.mrb[37].mxu1 }
 0x41b   :  { %v3806_v61 = vadd.f32 %v13173_v42, %v3805_v60 }
 0x41c   :  { %4082 = vrot.lane.b32.xlu1 %v3811_v41, %s10309_s12 }
 0x41d   :  { %v9999_v36 = vpop.f32.mrb[38].mxu1  ;;  %4080 = vrot.lane.b32.xlu0 %v3806_v61, %s10309_s12 }
 0x41e   :  { %v3821_v27 = vadd.f32 %v13173_v42, %v9999_v36  ;;  %v3815_v37 = vpop.f32.mrb[39].mxu1  ;;  %v13344_v36 = vld [vmem:[%s16422_s0 + $0x69] sm:$0xff] }
 0x41f   :  { %v3816_v28 = vadd.f32 %v13173_v42, %v3815_v37  ;;  %4335 = vst.msk [vmem:[#allocation2 + $0x28] sm:$0xff] %vm81_vm0, %v13344_v36 }
 0x420   :  { %4086 = vrot.lane.b32.xlu1 %v3821_v27, %s10309_s12  ;;  %v8973_v27 = vld [vmem:[%s16422_s0 + $0x38] sm:$0xff] }
 0x421   :  { %v10002_v10 = vpop.f32.mrb[40].mxu1  ;;  %4084 = vrot.lane.b32.xlu0 %v3816_v28, %s10309_s12  ;;  %v8972_v28 = vld [vmem:[%s16422_s0 + $0x30] sm:$0xff] }
 0x422   :  { %v3831_v11 = vadd.f32 %v13173_v42, %v10002_v10  ;;  %v3825_v14 = vpop.f32.mrb[41].mxu1 }
 0x423   :  { %v3826_v18 = vadd.f32 %v13173_v42, %v3825_v14  ;;  %v8975_v14 = vld [vmem:[%s16422_s0 + $0x50] sm:$0xff] }
 0x424   :  { %4090 = vrot.lane.b32.xlu1 %v3831_v11, %s10309_s12  ;;  %v13368_v11 = vld [vmem:[%s16422_s0 + $0x81] sm:$0xff] }
 0x425   :  { %v10005_v15 = vpop.f32.mrb[42].mxu1  ;;  %4088 = vrot.lane.b32.xlu0 %v3826_v18, %s10309_s12  ;;  %4337 = vst.msk [vmem:[#allocation2 + $0x38] sm:$0xff] %vm81_vm0, %v13368_v11  ;;  %v13381_v18 = vld [vmem:[%s16422_s0 + $0x91] sm:$0xff] }
 0x426   :  { %v3841_v19 = vadd.f32 %v13173_v42, %v10005_v15  ;;  %v3835_v29 = vpop.f32.mrb[43].mxu1  ;;  %4338 = vst.msk [vmem:[#allocation2 + $0x40] sm:$0xff] %vm81_vm0, %v13381_v18 }
 0x427   :  { %v3836_v50 = vadd.f32 %v13173_v42, %v3835_v29 }
 0x428   :  { %4094 = vrot.lane.b32.xlu1 %v3841_v19, %s10309_s12  ;;  %v8974_v19 = vld [vmem:[%s16422_s0 + $0x48] sm:$0xff] }
 0x429   :  { %v10008_v63 = vpop.f32.mrb[44].mxu1  ;;  %4092 = vrot.lane.b32.xlu0 %v3836_v50, %s10309_s12  ;;  %v13392_v50 = vld [vmem:[%s16422_s0 + $0x99] sm:$0xff] }
 0x42a   :  { %v3851_v38 = vadd.f32 %v13173_v42, %v10008_v63  ;;  %v3845_v57 = vpop.f32.mrb[45].mxu1  ;;  %4339 = vst.msk [vmem:[#allocation2 + $0x48] sm:$0xff] %vm81_vm0, %v13392_v50  ;;  %v8977_v63 = vld [vmem:[%s16422_s0 + $0x68] sm:$0xff] }
 0x42b   :  { %v3846_v39 = vadd.f32 %v13173_v42, %v3845_v57 }
 0x42c   :  { %4098 = vrot.lane.b32.xlu1 %v3851_v38, %s10309_s12  ;;  %v13405_v38 = vld [vmem:[%s16422_s0 + $0xa9] sm:$0xff] }
 0x42d   :  { %v10011_v5 = vpop.f32.mrb[46].mxu1  ;;  %4096 = vrot.lane.b32.xlu0 %v3846_v39, %s10309_s12  ;;  %v8976_v39 = vld [vmem:[%s16422_s0 + $0x60] sm:$0xff]  ;;  %4340 = vst.msk [vmem:[#allocation2 + $0x50] sm:$0xff] %vm81_vm0, %v13405_v38 }
 0x42e   :  { %v3861_v21 = vadd.f32 %v13173_v42, %v10011_v5  ;;  %v3855_v46 = vpop.f32.mrb[47].mxu1 }
 0x42f   :  { %v3856_v47 = vadd.f32 %v13173_v42, %v3855_v46  ;;  %v8979_v46 = vld [vmem:[%s16422_s0 + $0x80] sm:$0xff] }
 0x430   :  { %4102 = vrot.lane.b32.xlu1 %v3861_v21, %s10309_s12  ;;  %v13416_v21 = vld [vmem:[%s16422_s0 + $0xb1] sm:$0xff] }
 0x431   :  { %v10014_v1 = vpop.f32.mrb[48].mxu1  ;;  %4100 = vrot.lane.b32.xlu0 %v3856_v47, %s10309_s12  ;;  %4341 = vst.msk [vmem:[#allocation2 + $0x58] sm:$0xff] %vm81_vm0, %v13416_v21  ;;  %v13429_v47 = vld [vmem:[%s16422_s0 + $0xc1] sm:$0xff] }
 0x432   :  { %v3871_v6 = vadd.f32 %v13173_v42, %v10014_v1  ;;  %v3865_v56 = vpop.f32.mrb[49].mxu1  ;;  %4342 = vst.msk [vmem:[#allocation2 + $0x60] sm:$0xff] %vm81_vm0, %v13429_v47 }
 0x433   :  { %v3866_v62 = vadd.f32 %v13173_v42, %v3865_v56 }
 0x434   :  { %4106 = vrot.lane.b32.xlu1 %v3871_v6, %s10309_s12  ;;  %v8978_v6 = vld [vmem:[%s16422_s0 + $0x78] sm:$0xff] }
 0x435   :  { %v10017_v0 = vpop.f32.mrb[50].mxu1  ;;  %4104 = vrot.lane.b32.xlu0 %v3866_v62, %s10309_s12  ;;  %v13440_v62 = vld [vmem:[%s16422_s0 + $0xc9] sm:$0xff] }
 0x436   :  { %v3881_v43 = vadd.f32 %v13173_v42, %v10017_v0  ;;  %v3875_v4 = vpop.f32.mrb[51].mxu1  ;;  %4343 = vst.msk [vmem:[#allocation2 + $0x68] sm:$0xff] %vm81_vm0, %v13440_v62  ;;  %v8981_v0 = vld [vmem:[%s16422_s0 + $0x98] sm:$0xff] }
 0x437   :  { %v3876_v26 = vadd.f32 %v13173_v42, %v3875_v4 }
 0x438   :  { %4110 = vrot.lane.b32.xlu1 %v3881_v43, %s10309_s12  ;;  %v13453_v43 = vld [vmem:[%s16422_s0 + $0xd9] sm:$0xff] }
 0x439   :  { %v10020_v32 = vpop.f32.mrb[52].mxu1  ;;  %4108 = vrot.lane.b32.xlu0 %v3876_v26, %s10309_s12  ;;  %v8980_v26 = vld [vmem:[%s16422_s0 + $0x90] sm:$0xff]  ;;  %4344 = vst.msk [vmem:[#allocation2 + $0x70] sm:$0xff] %vm81_vm0, %v13453_v43 }
 0x43a   :  { %v3891_v12 = vadd.f32 %v13173_v42, %v10020_v32  ;;  %v3885_v33 = vpop.f32.mrb[53].mxu1 }
 0x43b   :  { %v3886_v16 = vadd.f32 %v13173_v42, %v3885_v33  ;;  %v8983_v33 = vld [vmem:[%s16422_s0 + $0xb0] sm:$0xff] }
 0x43c   :  { %4114 = vrot.lane.b32.xlu1 %v3891_v12, %s10309_s12  ;;  %v13464_v12 = vld [vmem:[%s16422_s0 + $0xe1] sm:$0xff] }
 0x43d   :  { %v10023_v24 = vpop.f32.mrb[54].mxu1  ;;  %4112 = vrot.lane.b32.xlu0 %v3886_v16, %s10309_s12  ;;  %4345 = vst.msk [vmem:[#allocation2 + $0x78] sm:$0xff] %vm81_vm0, %v13464_v12  ;;  %v13477_v16 = vld [vmem:[%s16422_s0 + $0xf1] sm:$0xff] }
 0x43e   :  { %v3901_v25 = vadd.f32 %v13173_v42, %v10023_v24  ;;  %v3895_v52 = vpop.f32.mrb[55].mxu1  ;;  %4346 = vst.msk [vmem:[#allocation2 + $0x80] sm:$0xff] %vm81_vm0, %v13477_v16 }
 0x43f   :  { %v3896_v34 = vadd.f32 %v13173_v42, %v3895_v52 }
 0x440   :  { %4118 = vrot.lane.b32.xlu1 %v3901_v25, %s10309_s12  ;;  %v8982_v25 = vld [vmem:[%s16422_s0 + $0xa8] sm:$0xff] }
 0x441   :  { %v10026_v53 = vpop.f32.mrb[56].mxu1  ;;  %4116 = vrot.lane.b32.xlu0 %v3896_v34, %s10309_s12  ;;  %v13488_v34 = vld [vmem:[%s16422_s0 + $0xf9] sm:$0xff] }
 0x442   :  { %v3911_v35 = vadd.f32 %v13173_v42, %v10026_v53  ;;  %v3905_v44 = vpop.f32.mrb[57].mxu1  ;;  %4347 = vst.msk [vmem:[#allocation2 + $0x88] sm:$0xff] %vm81_vm0, %v13488_v34  ;;  %v8985_v53 = vld [vmem:[%s16422_s0 + $0xc8] sm:$0xff] }
 0x443   :  { %v3906_v45 = vadd.f32 %v13173_v42, %v3905_v44 }
 0x444   :  { %4122 = vrot.lane.b32.xlu1 %v3911_v35, %s10309_s12  ;;  %v13501_v35 = vld [vmem:[%s16422_s0 + $0x109] sm:$0xff] }
 0x445   :  { %v10029_v58 = vpop.f32.mrb[58].mxu1  ;;  %4120 = vrot.lane.b32.xlu0 %v3906_v45, %s10309_s12  ;;  %v8984_v45 = vld [vmem:[%s16422_s0 + $0xc0] sm:$0xff]  ;;  %4348 = vst.msk [vmem:[#allocation2 + $0x90] sm:$0xff] %vm81_vm0, %v13501_v35 }
 0x446   :  { %v3921_v59 = vadd.f32 %v13173_v42, %v10029_v58  ;;  %v4011_v51 = vpop.permute.xlu1 %4010  ;;  %v3915_v8 = vpop.f32.mrb[59].mxu1 }
 0x447   :  { %4202 = vst.msk [vmem:[#allocation3 + $0x8] sm:$0xff] %vm4200_vm6, %v4011_v51  ;;  %v3916_v9 = vadd.f32 %v13173_v42, %v3915_v8  ;;  %v4009_v20 = vpop.permute.xlu0 %4008  ;;  %v8987_v51 = vld [vmem:[%s16422_s0 + $0xe0] sm:$0xff] }
 0x448   :  { %4201 = vst.msk [vmem:[#allocation3] sm:$0xff] %vm4200_vm6, %v4009_v20  ;;  %4126 = vrot.lane.b32.xlu1 %v3921_v59, %s10309_s12  ;;  %v13512_v59 = vld [vmem:[%s16422_s0 + $0x111] sm:$0xff]  ;;  %v13525_v8 = vld [vmem:[%s16422_s0 + $0x121] sm:$0xff] }
 0x449   :  { %v10032_v23 = vpop.f32.mrb[60].mxu1  ;;  %4124 = vrot.lane.b32.xlu0 %v3916_v9, %s10309_s12  ;;  %4349 = vst.msk [vmem:[#allocation2 + $0x98] sm:$0xff] %vm81_vm0, %v13512_v59  ;;  %v8986_v20 = vld [vmem:[%s16422_s0 + $0xd8] sm:$0xff]  ;;  %4350 = vst.msk [vmem:[#allocation2 + $0xa0] sm:$0xff] %vm81_vm0, %v13525_v8 }
 0x44a   :  { %v3931_v22 = vadd.f32 %v13173_v42, %v10032_v23  ;;  %v4015_v48 = vpop.permute.xlu1 %4014  ;;  %v3925_v13 = vpop.f32.mrb[61].mxu1 }
 0x44b   :  { %4204 = vst.msk [vmem:[#allocation3 + $0x28] sm:$0xff] %vm4200_vm6, %v4015_v48  ;;  %v3926_v49 = vadd.f32 %v13173_v42, %v3925_v13  ;;  %v4013_v17 = vpop.permute.xlu0 %4012  ;;  %v8989_v48 = vld [vmem:[%s16422_s0 + $0xf8] sm:$0xff] }
 0x44c   :  { %4203 = vst.msk [vmem:[#allocation3 + $0x20] sm:$0xff] %vm4200_vm6, %v4013_v17  ;;  %4130 = vrot.lane.b32.xlu1 %v3931_v22, %s10309_s12  ;;  %v13536_v22 = vld [vmem:[%s16422_s0 + $0x129] sm:$0xff]  ;;  %v13549_v13 = vld [vmem:[%s16422_s0 + $0x139] sm:$0xff] }
 0x44d   :  { %v10035_v31 = vpop.f32.mrb[62].mxu1  ;;  %4128 = vrot.lane.b32.xlu0 %v3926_v49, %s10309_s12  ;;  %4351 = vst.msk [vmem:[#allocation2 + $0xa8] sm:$0xff] %vm81_vm0, %v13536_v22  ;;  %v8988_v17 = vld [vmem:[%s16422_s0 + $0xf0] sm:$0xff]  ;;  %4352 = vst.msk [vmem:[#allocation2 + $0xb0] sm:$0xff] %vm81_vm0, %v13549_v13 }
 0x44e   :  { %v3941_v40 = vadd.f32 %v13173_v42, %v10035_v31  ;;  %v4019_v3 = vpop.permute.xlu1 %4018  ;;  %v3935_v41 = vpop.f32.mrb[63].mxu1 }
 0x44f   :  { %4206 = vst.msk [vmem:[#allocation3 + $0x48] sm:$0xff] %vm4200_vm6, %v4019_v3  ;;  %v3936_v60 = vadd.f32 %v13173_v42, %v3935_v41  ;;  %v4017_v61 = vpop.permute.xlu0 %4016  ;;  %v13357_v42 = vld [vmem:[%s16422_s0 + $0x79] sm:$0xff]  ;;  %v8991_v3 = vld [vmem:[%s16422_s0 + $0x110] sm:$0xff] }
 0x450   :  { %4205 = vst.msk [vmem:[#allocation3 + $0x40] sm:$0xff] %vm4200_vm6, %v4017_v61  ;;  %4134 = vrot.lane.b32.xlu1 %v3941_v40, %s10309_s12  ;;  %v13560_v40 = vld [vmem:[%s16422_s0 + $0x141] sm:$0xff]  ;;  %v13573_v41 = vld [vmem:[%s16422_s0 + $0x151] sm:$0xff] }
 0x451   :  { %4132 = vrot.lane.b32.xlu0 %v3936_v60, %s10309_s12  ;;  %4336 = vst.msk [vmem:[#allocation2 + $0x30] sm:$0xff] %vm81_vm0, %v13357_v42  ;;  %4353 = vst.msk [vmem:[#allocation2 + $0xb8] sm:$0xff] %vm81_vm0, %v13560_v40  ;;  %v8990_v61 = vld [vmem:[%s16422_s0 + $0x108] sm:$0xff] }
 0x452   :  { %v4023_v37 = vpop.permute.xlu1 %4022  ;;  %4354 = vst.msk [vmem:[#allocation2 + $0xc0] sm:$0xff] %vm81_vm0, %v13573_v41 }
 0x453   :  { %4208 = vst.msk [vmem:[#allocation3 + $0x68] sm:$0xff] %vm4200_vm6, %v4023_v37  ;;  %v4021_v10 = vpop.permute.xlu0 %4020  ;;  %v13584_v37 = vld [vmem:[%s16422_s0 + $0x159] sm:$0xff] }
 0x454   :  { %4207 = vst.msk [vmem:[#allocation3 + $0x60] sm:$0xff] %vm4200_vm6, %v4021_v10  ;;  %4524 = vrot.lane.b32.xlu1 %v8973_v27, %s10308_s16  ;;  %v13597_v10 = vld [vmem:[%s16422_s0 + $0x169] sm:$0xff] }
 0x455   :  { %4522 = vrot.lane.b32.xlu0 %v8972_v28, %s10308_s16  ;;  %4355 = vst.msk [vmem:[#allocation2 + $0xc8] sm:$0xff] %vm81_vm0, %v13584_v37  ;;  %v8993_v28 = vld [vmem:[%s16422_s0 + $0x128] sm:$0xff]  ;;  %4356 = vst.msk [vmem:[#allocation2 + $0xd0] sm:$0xff] %vm81_vm0, %v13597_v10 }
 0x456   :  { %v4027_v15 = vpop.permute.xlu1 %4026 }
 0x457   :  { %4210 = vst.msk [vmem:[#allocation3 + $0x88] sm:$0xff] %vm4200_vm6, %v4027_v15  ;;  %v4025_v29 = vpop.permute.xlu0 %4024  ;;  %v8992_v15 = vld [vmem:[%s16422_s0 + $0x120] sm:$0xff] }
 0x458   :  { %4209 = vst.msk [vmem:[#allocation3 + $0x80] sm:$0xff] %vm4200_vm6, %v4025_v29  ;;  %4528 = vrot.lane.b32.xlu1 %v8975_v14, %s10308_s16  ;;  %v13608_v29 = vld [vmem:[%s16422_s0 + $0x171] sm:$0xff] }
 0x459   :  { %4526 = vrot.lane.b32.xlu0 %v8974_v19, %s10308_s16  ;;  %4357 = vst.msk [vmem:[#allocation2 + $0xd8] sm:$0xff] %vm81_vm0, %v13608_v29 }
 0x45a   :  { %v4031_v57 = vpop.permute.xlu1 %4030 }
 0x45b   :  { %4212 = vst.msk [vmem:[#allocation3 + $0xa8] sm:$0xff] %vm4200_vm6, %v4031_v57  ;;  %v4029_v5 = vpop.permute.xlu0 %4028  ;;  %v13621_v57 = vld [vmem:[%s16422_s0 + $0x181] sm:$0xff] }
 0x45c   :  { %4211 = vst.msk [vmem:[#allocation3 + $0xa0] sm:$0xff] %vm4200_vm6, %v4029_v5  ;;  %4532 = vrot.lane.b32.xlu1 %v8977_v63, %s10308_s16  ;;  %v8995_v63 = vld [vmem:[%s16422_s0 + $0x140] sm:$0xff]  ;;  %v8994_v5 = vld [vmem:[%s16422_s0 + $0x138] sm:$0xff] }
 0x45d   :  { %4530 = vrot.lane.b32.xlu0 %v8976_v39, %s10308_s16  ;;  %4358 = vst.msk [vmem:[#allocation2 + $0xe0] sm:$0xff] %vm81_vm0, %v13621_v57 }
 0x45e   :  { %v4035_v1 = vpop.permute.xlu1 %4034 }
 0x45f   :  { %4214 = vst.msk [vmem:[#allocation3 + $0xc8] sm:$0xff] %vm4200_vm6, %v4035_v1  ;;  %v4033_v56 = vpop.permute.xlu0 %4032  ;;  %v13632_v1 = vld [vmem:[%s16422_s0 + $0x189] sm:$0xff] }
 0x460   :  { %4213 = vst.msk [vmem:[#allocation3 + $0xc0] sm:$0xff] %vm4200_vm6, %v4033_v56  ;;  %4536 = vrot.lane.b32.xlu1 %v8979_v46, %s10308_s16  ;;  %v8938_v56 = vld [vmem:[%s16422_s0 + $0x199] sm:$0xff] }
 0x461   :  { %4534 = vrot.lane.b32.xlu0 %v8978_v6, %s10308_s16  ;;  %4359 = vst.msk [vmem:[#allocation2 + $0xe8] sm:$0xff] %vm81_vm0, %v13632_v1  ;;  %v8997_v6 = vld [vmem:[%s16422_s0 + $0x158] sm:$0xff]  ;;  %4360 = vst.msk [vmem:[#allocation2 + $0xf0] sm:$0xff] %vm81_vm0, %v8938_v56  ;;  %v13770_v56 = vld [vmem:[%s16422_s0 + $0x249] sm:$0xff] }
 0x462   :  { %v4039_v4 = vpop.permute.xlu1 %4038  ;;  %4371 = vst.msk [vmem:[#allocation2 + $0x148] sm:$0xff] %vm81_vm0, %v13770_v56 }
 0x463   :  { %4216 = vst.msk [vmem:[#allocation3 + $0xe8] sm:$0xff] %vm4200_vm6, %v4039_v4  ;;  %v4037_v32 = vpop.permute.xlu0 %4036  ;;  %v8996_v4 = vld [vmem:[%s16422_s0 + $0x150] sm:$0xff] }
 0x464   :  { %4215 = vst.msk [vmem:[#allocation3 + $0xe0] sm:$0xff] %vm4200_vm6, %v4037_v32  ;;  %4540 = vrot.lane.b32.xlu1 %v8981_v0, %s10308_s16  ;;  %v8939_v32 = vld [vmem:[%s16422_s0 + $0x1a1] sm:$0xff] }
 0x465   :  { %4538 = vrot.lane.b32.xlu0 %v8980_v26, %s10308_s16  ;;  %4361 = vst.msk [vmem:[#allocation2 + $0xf8] sm:$0xff] %vm81_vm0, %v8939_v32  ;;  %v9008_v32 = vld [vmem:[%s16422_s0 + $0x210] sm:$0xff] }
 0x466   :  { %v4043_v24 = vpop.permute.xlu1 %4042 }
 0x467   :  { %4218 = vst.msk [vmem:[#allocation3 + $0x108] sm:$0xff] %vm4200_vm6, %v4043_v24  ;;  %v4041_v52 = vpop.permute.xlu0 %4040  ;;  %v13663_v24 = vld [vmem:[%s16422_s0 + $0x1e1] sm:$0xff] }
 0x468   :  { %4217 = vst.msk [vmem:[#allocation3 + $0x100] sm:$0xff] %vm4200_vm6, %v4041_v52  ;;  %4544 = vrot.lane.b32.xlu1 %v8983_v33, %s10308_s16  ;;  %v8999_v33 = vld [vmem:[%s16422_s0 + $0x170] sm:$0xff]  ;;  %v8998_v52 = vld [vmem:[%s16422_s0 + $0x168] sm:$0xff] }
 0x469   :  { %4542 = vrot.lane.b32.xlu0 %v8982_v25, %s10308_s16  ;;  %4362 = vst.msk [vmem:[#allocation2 + $0x100] sm:$0xff] %vm81_vm0, %v13663_v24 }
 0x46a   :  { %v4047_v44 = vpop.permute.xlu1 %4046 }
 0x46b   :  { %4220 = vst.msk [vmem:[#allocation3 + $0x128] sm:$0xff] %vm4200_vm6, %v4047_v44  ;;  %v4045_v58 = vpop.permute.xlu0 %4044  ;;  %v13674_v44 = vld [vmem:[%s16422_s0 + $0x1e9] sm:$0xff] }
 0x46c   :  { %4219 = vst.msk [vmem:[#allocation3 + $0x120] sm:$0xff] %vm4200_vm6, %v4045_v58  ;;  %4548 = vrot.lane.b32.xlu1 %v8985_v53, %s10308_s16  ;;  %v13687_v58 = vld [vmem:[%s16422_s0 + $0x1f9] sm:$0xff] }
 0x46d   :  { %4546 = vrot.lane.b32.xlu0 %v8984_v45, %s10308_s16  ;;  %4363 = vst.msk [vmem:[#allocation2 + $0x108] sm:$0xff] %vm81_vm0, %v13674_v44  ;;  %v9001_v45 = vld [vmem:[%s16422_s0 + $0x188] sm:$0xff]  ;;  %4364 = vst.msk [vmem:[#allocation2 + $0x110] sm:$0xff] %vm81_vm0, %v13687_v58 }
 0x46e   :  { %v4051_v9 = vpop.permute.xlu1 %4050 }
 0x46f   :  { %4222 = vst.msk [vmem:[#allocation3 + $0x148] sm:$0xff] %vm4200_vm6, %v4051_v9  ;;  %v4049_v23 = vpop.permute.xlu0 %4048  ;;  %v9000_v9 = vld [vmem:[%s16422_s0 + $0x180] sm:$0xff] }
 0x470   :  { %4221 = vst.msk [vmem:[#allocation3 + $0x140] sm:$0xff] %vm4200_vm6, %v4049_v23  ;;  %4552 = vrot.lane.b32.xlu1 %v8987_v51, %s10308_s16  ;;  %v13698_v23 = vld [vmem:[%s16422_s0 + $0x201] sm:$0xff] }
 0x471   :  { %4550 = vrot.lane.b32.xlu0 %v8986_v20, %s10308_s16  ;;  %4365 = vst.msk [vmem:[#allocation2 + $0x118] sm:$0xff] %vm81_vm0, %v13698_v23 }
 0x472   :  { %v4055_v49 = vpop.permute.xlu1 %4054 }
 0x473   :  { %4224 = vst.msk [vmem:[#allocation3 + $0x168] sm:$0xff] %vm4200_vm6, %v4055_v49  ;;  %v4053_v31 = vpop.permute.xlu0 %4052  ;;  %v13711_v49 = vld [vmem:[%s16422_s0 + $0x211] sm:$0xff] }
 0x474   :  { %4223 = vst.msk [vmem:[#allocation3 + $0x160] sm:$0xff] %vm4200_vm6, %v4053_v31  ;;  %4556 = vrot.lane.b32.xlu1 %v8989_v48, %s10308_s16  ;;  %v9003_v48 = vld [vmem:[%s16422_s0 + $0x1a0] sm:$0xff]  ;;  %v9002_v31 = vld [vmem:[%s16422_s0 + $0x198] sm:$0xff] }
 0x475   :  { %4554 = vrot.lane.b32.xlu0 %v8988_v17, %s10308_s16  ;;  %4366 = vst.msk [vmem:[#allocation2 + $0x120] sm:$0xff] %vm81_vm0, %v13711_v49 }
 0x476   :  { %v4059_v60 = vpop.permute.xlu1 %4058 }
 0x477   :  { %4226 = vst.msk [vmem:[#allocation3 + $0x188] sm:$0xff] %vm4200_vm6, %v4059_v60  ;;  %v4057_v27 = vpop.permute.xlu0 %4056  ;;  %v13722_v60 = vld [vmem:[%s16422_s0 + $0x219] sm:$0xff] }
 0x478   :  { %4225 = vst.msk [vmem:[#allocation3 + $0x180] sm:$0xff] %vm4200_vm6, %v4057_v27  ;;  %4560 = vrot.lane.b32.xlu1 %v8991_v3, %s10308_s16  ;;  %v13735_v27 = vld [vmem:[%s16422_s0 + $0x229] sm:$0xff] }
 0x479   :  { %4558 = vrot.lane.b32.xlu0 %v8990_v61, %s10308_s16  ;;  %4367 = vst.msk [vmem:[#allocation2 + $0x128] sm:$0xff] %vm81_vm0, %v13722_v60  ;;  %v9005_v61 = vld [vmem:[%s16422_s0 + $0x1e8] sm:$0xff]  ;;  %4368 = vst.msk [vmem:[#allocation2 + $0x130] sm:$0xff] %vm81_vm0, %v13735_v27 }
 0x47a   :  { %v4063_v14 = vpop.permute.xlu1 %4062 }
 0x47b   :  { %4228 = vst.msk [vmem:[#allocation3 + $0x1a8] sm:$0xff] %vm4200_vm6, %v4063_v14  ;;  %v4061_v19 = vpop.permute.xlu0 %4060  ;;  %v9004_v14 = vld [vmem:[%s16422_s0 + $0x1e0] sm:$0xff] }
 0x47c   :  { %4227 = vst.msk [vmem:[#allocation3 + $0x1a0] sm:$0xff] %vm4200_vm6, %v4061_v19  ;;  %4564 = vrot.lane.b32.xlu1 %v8993_v28, %s10308_s16  ;;  %v13746_v19 = vld [vmem:[%s16422_s0 + $0x231] sm:$0xff] }
 0x47d   :  { %4562 = vrot.lane.b32.xlu0 %v8992_v15, %s10308_s16  ;;  %4369 = vst.msk [vmem:[#allocation2 + $0x138] sm:$0xff] %vm81_vm0, %v13746_v19 }
 0x47e   :  { %v4067_v39 = vpop.permute.xlu1 %4066 }
 0x47f   :  { %4230 = vst.msk [vmem:[#allocation3 + $0x1c8] sm:$0xff] %vm4200_vm6, %v4067_v39  ;;  %v4065_v46 = vpop.permute.xlu0 %4064  ;;  %v13759_v39 = vld [vmem:[%s16422_s0 + $0x241] sm:$0xff] }
 0x480   :  { %4229 = vst.msk [vmem:[#allocation3 + $0x1c0] sm:$0xff] %vm4200_vm6, %v4065_v46  ;;  %4568 = vrot.lane.b32.xlu1 %v8995_v63, %s10308_s16  ;;  %v9007_v63 = vld [vmem:[%s16422_s0 + $0x200] sm:$0xff]  ;;  %v9006_v46 = vld [vmem:[%s16422_s0 + $0x1f8] sm:$0xff] }
 0x481   :  { %4566 = vrot.lane.b32.xlu0 %v8994_v5, %s10308_s16  ;;  %4370 = vst.msk [vmem:[#allocation2 + $0x140] sm:$0xff] %vm81_vm0, %v13759_v39 }
 0x482   :  { %v4071_v0 = vpop.permute.xlu1 %4070 }
 0x483   :  { %4232 = vst.msk [vmem:[#allocation3 + $0x1e8] sm:$0xff] %vm4200_vm6, %v4071_v0  ;;  %v4069_v26 = vpop.permute.xlu0 %4068  ;;  %v9009_v0 = vld [vmem:[%s16422_s0 + $0x218] sm:$0xff] }
 0x484   :  { %4231 = vst.msk [vmem:[#allocation3 + $0x1e0] sm:$0xff] %vm4200_vm6, %v4069_v26  ;;  %4572 = vrot.lane.b32.xlu1 %v8997_v6, %s10308_s16 }
 0x485   :  { %4570 = vrot.lane.b32.xlu0 %v8996_v4, %s10308_s16  ;;  %v13783_v4 = vld [vmem:[%s16422_s0 + $0x259] sm:$0xff] }
 0x486   :  { %v4075_v25 = vpop.permute.xlu1 %4074  ;;  %4372 = vst.msk [vmem:[#allocation2 + $0x150] sm:$0xff] %vm81_vm0, %v13783_v4 }
 0x487   :  { %4234 = vst.msk [vmem:[#allocation3 + $0x208] sm:$0xff] %vm4200_vm6, %v4075_v25  ;;  %v4073_v53 = vpop.permute.xlu0 %4072  ;;  %v13794_v25 = vld [vmem:[%s16422_s0 + $0x261] sm:$0xff] }
 0x488   :  { %4233 = vst.msk [vmem:[#allocation3 + $0x200] sm:$0xff] %vm4200_vm6, %v4073_v53  ;;  %4576 = vrot.lane.b32.xlu1 %v8999_v33, %s10308_s16  ;;  %v13807_v53 = vld [vmem:[%s16422_s0 + $0x271] sm:$0xff] }
 0x489   :  { %4574 = vrot.lane.b32.xlu0 %v8998_v52, %s10308_s16  ;;  %4373 = vst.msk [vmem:[#allocation2 + $0x158] sm:$0xff] %vm81_vm0, %v13794_v25  ;;  %v9011_v52 = vld [vmem:[%s16422_s0 + $0x230] sm:$0xff]  ;;  %4374 = vst.msk [vmem:[#allocation2 + $0x160] sm:$0xff] %vm81_vm0, %v13807_v53 }
 0x48a   :  { %v4079_v51 = vpop.permute.xlu1 %4078 }
 0x48b   :  { %4236 = vst.msk [vmem:[#allocation3 + $0x228] sm:$0xff] %vm4200_vm6, %v4079_v51  ;;  %v4077_v20 = vpop.permute.xlu0 %4076  ;;  %v9010_v51 = vld [vmem:[%s16422_s0 + $0x228] sm:$0xff] }
 0x48c   :  { %4235 = vst.msk [vmem:[#allocation3 + $0x220] sm:$0xff] %vm4200_vm6, %v4077_v20  ;;  %4580 = vrot.lane.b32.xlu1 %v9001_v45, %s10308_s16  ;;  %v13818_v20 = vld [vmem:[%s16422_s0 + $0x279] sm:$0xff] }
 0x48d   :  { %4578 = vrot.lane.b32.xlu0 %v9000_v9, %s10308_s16  ;;  %4375 = vst.msk [vmem:[#allocation2 + $0x168] sm:$0xff] %vm81_vm0, %v13818_v20 }
 0x48e   :  { %v4083_v17 = vpop.permute.xlu1 %4082 }
 0x48f   :  { %4238 = vst.msk [vmem:[#allocation3 + $0x248] sm:$0xff] %vm4200_vm6, %v4083_v17  ;;  %v4081_v3 = vpop.permute.xlu0 %4080  ;;  %v13831_v17 = vld [vmem:[%s16422_s0 + $0x289] sm:$0xff] }
 0x490   :  { %4237 = vst.msk [vmem:[#allocation3 + $0x240] sm:$0xff] %vm4200_vm6, %v4081_v3  ;;  %4584 = vrot.lane.b32.xlu1 %v9003_v48, %s10308_s16  ;;  %v9013_v48 = vld [vmem:[%s16422_s0 + $0x248] sm:$0xff]  ;;  %v9012_v3 = vld [vmem:[%s16422_s0 + $0x240] sm:$0xff] }
 0x491   :  { %4582 = vrot.lane.b32.xlu0 %v9002_v31, %s10308_s16  ;;  %4376 = vst.msk [vmem:[#allocation2 + $0x170] sm:$0xff] %vm81_vm0, %v13831_v17 }
 0x492   :  { %v4087_v28 = vpop.permute.xlu1 %4086 }
 0x493   :  { %4240 = vst.msk [vmem:[#allocation3 + $0x268] sm:$0xff] %vm4200_vm6, %v4087_v28  ;;  %v4085_v15 = vpop.permute.xlu0 %4084  ;;  %v13842_v28 = vld [vmem:[%s16422_s0 + $0x291] sm:$0xff] }
 0x494   :  { %4239 = vst.msk [vmem:[#allocation3 + $0x260] sm:$0xff] %vm4200_vm6, %v4085_v15  ;;  %4588 = vrot.lane.b32.xlu1 %v9005_v61, %s10308_s16  ;;  %v13855_v15 = vld [vmem:[%s16422_s0 + $0x2a1] sm:$0xff] }
 0x495   :  { %4586 = vrot.lane.b32.xlu0 %v9004_v14, %s10308_s16  ;;  %4377 = vst.msk [vmem:[#allocation2 + $0x178] sm:$0xff] %vm81_vm0, %v13842_v28  ;;  %v9015_v14 = vld [vmem:[%s16422_s0 + $0x260] sm:$0xff]  ;;  %4378 = vst.msk [vmem:[#allocation2 + $0x180] sm:$0xff] %vm81_vm0, %v13855_v15 }
 0x496   :  { %v4091_v5 = vpop.permute.xlu1 %4090 }
 0x497   :  { %4242 = vst.msk [vmem:[#allocation3 + $0x288] sm:$0xff] %vm4200_vm6, %v4091_v5  ;;  %v4089_v6 = vpop.permute.xlu0 %4088  ;;  %v9014_v5 = vld [vmem:[%s16422_s0 + $0x258] sm:$0xff] }
 0x498   :  { %4241 = vst.msk [vmem:[#allocation3 + $0x280] sm:$0xff] %vm4200_vm6, %v4089_v6  ;;  %4592 = vrot.lane.b32.xlu1 %v9007_v63, %s10308_s16  ;;  %v13866_v6 = vld [vmem:[%s16422_s0 + $0x2a9] sm:$0xff] }
 0x499   :  { %4590 = vrot.lane.b32.xlu0 %v9006_v46, %s10308_s16  ;;  %4379 = vst.msk [vmem:[#allocation2 + $0x188] sm:$0xff] %vm81_vm0, %v13866_v6 }
 0x49a   :  { %v4095_v26 = vpop.permute.xlu1 %4094 }
 0x49b   :  { %4244 = vst.msk [vmem:[#allocation3 + $0x2a8] sm:$0xff] %vm4200_vm6, %v4095_v26  ;;  %v4093_v33 = vpop.permute.xlu0 %4092  ;;  %v13879_v26 = vld [vmem:[%s16422_s0 + $0x2b9] sm:$0xff] }
 0x49c   :  { %4243 = vst.msk [vmem:[#allocation3 + $0x2a0] sm:$0xff] %vm4200_vm6, %v4093_v33  ;;  %4596 = vrot.lane.b32.xlu1 %v9009_v0, %s10308_s16  ;;  %v9017_v0 = vld [vmem:[%s16422_s0 + $0x278] sm:$0xff]  ;;  %v9016_v33 = vld [vmem:[%s16422_s0 + $0x270] sm:$0xff] }
 0x49d   :  { %4594 = vrot.lane.b32.xlu0 %v9008_v32, %s10308_s16  ;;  %4380 = vst.msk [vmem:[#allocation2 + $0x190] sm:$0xff] %vm81_vm0, %v13879_v26 }
 0x49e   :  { %v4099_v45 = vpop.permute.xlu1 %4098 }
 0x49f   :  { %4246 = vst.msk [vmem:[#allocation3 + $0x2c8] sm:$0xff] %vm4200_vm6, %v4099_v45  ;;  %v4097_v9 = vpop.permute.xlu0 %4096  ;;  %v13890_v45 = vld [vmem:[%s16422_s0 + $0x2c1] sm:$0xff] }
 0x4a0   :  { %4245 = vst.msk [vmem:[#allocation3 + $0x2c0] sm:$0xff] %vm4200_vm6, %v4097_v9  ;;  %4600 = vrot.lane.b32.xlu1 %v9011_v52, %s10308_s16  ;;  %v13903_v9 = vld [vmem:[%s16422_s0 + $0x2d1] sm:$0xff] }
 0x4a1   :  { %4598 = vrot.lane.b32.xlu0 %v9010_v51, %s10308_s16  ;;  %4381 = vst.msk [vmem:[#allocation2 + $0x198] sm:$0xff] %vm81_vm0, %v13890_v45  ;;  %v9019_v51 = vld [vmem:[%s16422_s0 + $0x290] sm:$0xff]  ;;  %4382 = vst.msk [vmem:[#allocation2 + $0x1a0] sm:$0xff] %vm81_vm0, %v13903_v9 }
 0x4a2   :  { %v4103_v31 = vpop.permute.xlu1 %4102 }
 0x4a3   :  { %4248 = vst.msk [vmem:[#allocation3 + $0x2e8] sm:$0xff] %vm4200_vm6, %v4103_v31  ;;  %v4101_v61 = vpop.permute.xlu0 %4100  ;;  %v9018_v31 = vld [vmem:[%s16422_s0 + $0x288] sm:$0xff] }
 0x4a4   :  { %4247 = vst.msk [vmem:[#allocation3 + $0x2e0] sm:$0xff] %vm4200_vm6, %v4101_v61  ;;  %4604 = vrot.lane.b32.xlu1 %v9013_v48, %s10308_s16  ;;  %v13914_v61 = vld [vmem:[%s16422_s0 + $0x2d9] sm:$0xff] }
 0x4a5   :  { %4602 = vrot.lane.b32.xlu0 %v9012_v3, %s10308_s16  ;;  %4383 = vst.msk [vmem:[#allocation2 + $0x1a8] sm:$0xff] %vm81_vm0, %v13914_v61 }
 0x4a6   :  { %v4107_v63 = vpop.permute.xlu1 %4106 }
 0x4a7   :  { %4250 = vst.msk [vmem:[#allocation3 + $0x308] sm:$0xff] %vm4200_vm6, %v4107_v63  ;;  %v4105_v46 = vpop.permute.xlu0 %4104  ;;  %v13927_v63 = vld [vmem:[%s16422_s0 + $0x2e9] sm:$0xff] }
 0x4a8   :  { %4249 = vst.msk [vmem:[#allocation3 + $0x300] sm:$0xff] %vm4200_vm6, %v4105_v46  ;;  %4608 = vrot.lane.b32.xlu1 %v9015_v14, %s10308_s16  ;;  %v9021_v14 = vld [vmem:[%s16422_s0 + $0x2a8] sm:$0xff]  ;;  %v9020_v46 = vld [vmem:[%s16422_s0 + $0x2a0] sm:$0xff] }
 0x4a9   :  { %4606 = vrot.lane.b32.xlu0 %v9014_v5, %s10308_s16  ;;  %4384 = vst.msk [vmem:[#allocation2 + $0x1b0] sm:$0xff] %vm81_vm0, %v13927_v63 }
 0x4aa   :  { %v4111_v32 = vpop.permute.xlu1 %4110 }
 0x4ab   :  { %4252 = vst.msk [vmem:[#allocation3 + $0x328] sm:$0xff] %vm4200_vm6, %v4111_v32  ;;  %v4109_v52 = vpop.permute.xlu0 %4108  ;;  %v13938_v32 = vld [vmem:[%s16422_s0 + $0x2f1] sm:$0xff] }
 0x4ac   :  { %4251 = vst.msk [vmem:[#allocation3 + $0x320] sm:$0xff] %vm4200_vm6, %v4109_v52  ;;  %4612 = vrot.lane.b32.xlu1 %v9017_v0, %s10308_s16  ;;  %v13951_v52 = vld [vmem:[%s16422_s0 + $0x301] sm:$0xff] }
 0x4ad   :  { %4610 = vrot.lane.b32.xlu0 %v9016_v33, %s10308_s16  ;;  %4385 = vst.msk [vmem:[#allocation2 + $0x1b8] sm:$0xff] %vm81_vm0, %v13938_v32  ;;  %v9023_v33 = vld [vmem:[%s16422_s0 + $0x2c0] sm:$0xff]  ;;  %4386 = vst.msk [vmem:[#allocation2 + $0x1c0] sm:$0xff] %vm81_vm0, %v13951_v52 }
 0x4ae   :  { %v4115_v48 = vpop.permute.xlu1 %4114 }
 0x4af   :  { %4254 = vst.msk [vmem:[#allocation3 + $0x348] sm:$0xff] %vm4200_vm6, %v4115_v48  ;;  %v4113_v3 = vpop.permute.xlu0 %4112  ;;  %v9022_v48 = vld [vmem:[%s16422_s0 + $0x2b8] sm:$0xff] }
 0x4b0   :  { %4253 = vst.msk [vmem:[#allocation3 + $0x340] sm:$0xff] %vm4200_vm6, %v4113_v3  ;;  %4616 = vrot.lane.b32.xlu1 %v9019_v51, %s10308_s16  ;;  %v13962_v3 = vld [vmem:[%s16422_s0 + $0x309] sm:$0xff] }
 0x4b1   :  { %4614 = vrot.lane.b32.xlu0 %v9018_v31, %s10308_s16  ;;  %4387 = vst.msk [vmem:[#allocation2 + $0x1c8] sm:$0xff] %vm81_vm0, %v13962_v3 }
 0x4b2   :  { %v4119_v5 = vpop.permute.xlu1 %4118 }
 0x4b3   :  { %4256 = vst.msk [vmem:[#allocation3 + $0x368] sm:$0xff] %vm4200_vm6, %v4119_v5  ;;  %v4117_v0 = vpop.permute.xlu0 %4116  ;;  %v13975_v5 = vld [vmem:[%s16422_s0 + $0x319] sm:$0xff] }
 0x4b4   :  { %4255 = vst.msk [vmem:[#allocation3 + $0x360] sm:$0xff] %vm4200_vm6, %v4117_v0  ;;  %4620 = vrot.lane.b32.xlu1 %v9021_v14, %s10308_s16  ;;  %v9025_v14 = vld [vmem:[%s16422_s0 + $0x2d8] sm:$0xff]  ;;  %16457 = vst [vmem:[#allocation6_spill] sm:$0xff] %v13975_v5  ;;  %v9024_v0 = vld [vmem:[%s16422_s0 + $0x2d0] sm:$0xff] }
 0x4b5   :  { %4618 = vrot.lane.b32.xlu0 %v9020_v46, %s10308_s16  ;;  %4388 = vst.msk [vmem:[#allocation2 + $0x1d0] sm:$0xff] %vm81_vm0, %v13975_v5 }
 0x4b6   :  { %v4123_v51 = vpop.permute.xlu1 %4122 }
 0x4b7   :  { %4258 = vst.msk [vmem:[#allocation3 + $0x388] sm:$0xff] %vm4200_vm6, %v4123_v51  ;;  %v4121_v31 = vpop.permute.xlu0 %4120  ;;  %v13986_v51 = vld [vmem:[%s16422_s0 + $0x321] sm:$0xff] }
 0x4b8   :  { %4257 = vst.msk [vmem:[#allocation3 + $0x380] sm:$0xff] %vm4200_vm6, %v4121_v31  ;;  %4624 = vrot.lane.b32.xlu1 %v9023_v33, %s10308_s16  ;;  %16458 = vst [vmem:[#allocation7_spill] sm:$0xff] %v13986_v51  ;;  %v13999_v31 = vld [vmem:[%s16422_s0 + $0x331] sm:$0xff] }
 0x4b9   :  { %4622 = vrot.lane.b32.xlu0 %v9022_v48, %s10308_s16  ;;  %4389 = vst.msk [vmem:[#allocation2 + $0x1d8] sm:$0xff] %vm81_vm0, %v13986_v51  ;;  %v9027_v48 = vld [vmem:[%s16422_s0 + $0x2f0] sm:$0xff]  ;;  %16459 = vst [vmem:[#allocation8_spill] sm:$0xff] %v13999_v31 }
 0x4ba   :  { %v4127_v46 = vpop.permute.xlu1 %4126  ;;  %4390 = vst.msk [vmem:[#allocation2 + $0x1e0] sm:$0xff] %vm81_vm0, %v13999_v31  ;;  %v9029_v31 = vld [vmem:[%s16422_s0 + $0x308] sm:$0xff] }
 0x4bb   :  { %4260 = vst.msk [vmem:[#allocation3 + $0x3a8] sm:$0xff] %vm4200_vm6, %v4127_v46  ;;  %v4125_v33 = vpop.permute.xlu0 %4124 }
 0x4bc   :  { %4259 = vst.msk [vmem:[#allocation3 + $0x3a0] sm:$0xff] %vm4200_vm6, %v4125_v33  ;;  %4628 = vrot.lane.b32.xlu1 %v9025_v14, %s10308_s16  ;;  %v9026_v33 = vld [vmem:[%s16422_s0 + $0x2e8] sm:$0xff] }
 0x4bd   :  { %4626 = vrot.lane.b32.xlu0 %v9024_v0, %s10308_s16  ;;  %v14010_v0 = vld [vmem:[%s16422_s0 + $0x339] sm:$0xff] }
 0x4be   :  { %v4131_v46 = vpop.permute.xlu1 %4130  ;;  %16460 = vst [vmem:[#allocation9_spill] sm:$0xff] %v14010_v0  ;;  %4391 = vst.msk [vmem:[#allocation2 + $0x1e8] sm:$0xff] %vm81_vm0, %v14010_v0  ;;  %v9031_v0 = vld [vmem:[%s16422_s0 + $0x320] sm:$0xff] }
 0x4bf   :  { %4262 = vst.msk [vmem:[#allocation3 + $0x3c8] sm:$0xff] %vm4200_vm6, %v4131_v46  ;;  %v4129_v14 = vpop.permute.xlu0 %4128  ;;  %v8970_v46 = vld [vmem:[%s16422_s0 + $0x349] sm:$0xff] }
 0x4c0   :  { %4261 = vst.msk [vmem:[#allocation3 + $0x3c0] sm:$0xff] %vm4200_vm6, %v4129_v14  ;;  %4632 = vrot.lane.b32.xlu1 %v9027_v48, %s10308_s16  ;;  %v9028_v14 = vld [vmem:[%s16422_s0 + $0x300] sm:$0xff] }
 0x4c1   :  { %4630 = vrot.lane.b32.xlu0 %v9026_v33, %s10308_s16  ;;  %4392 = vst.msk [vmem:[#allocation2 + $0x1f0] sm:$0xff] %vm81_vm0, %v8970_v46  ;;  %v8971_v33 = vld [vmem:[%s16422_s0 + $0x351] sm:$0xff] }
 0x4c2   :  { %v4135_v5 = vpop.permute.xlu1 %4134  ;;  %4393 = vst.msk [vmem:[#allocation2 + $0x1f8] sm:$0xff] %vm81_vm0, %v8971_v33 }
 0x4c3   :  { %4264 = vst.msk [vmem:[#allocation3 + $0x3e8] sm:$0xff] %vm4200_vm6, %v4135_v5  ;;  %v4133_v48 = vpop.permute.xlu0 %4132  ;;  %v9030_v5 = vld [vmem:[%s16422_s0 + $0x318] sm:$0xff] }
 0x4c4   :  { %4263 = vst.msk [vmem:[#allocation3 + $0x3e0] sm:$0xff] %vm4200_vm6, %v4133_v48  ;;  %4636 = vrot.lane.b32.xlu1 %v9029_v31, %s10308_s16  ;;  %v9033_v31 = vld [vmem:[%s16422_s0 + $0x338] sm:$0xff]  ;;  %v9032_v48 = vld [vmem:[%s16422_s0 + $0x330] sm:$0xff] }
 0x4c5   :  { %4634 = vrot.lane.b32.xlu0 %v9028_v14, %s10308_s16 }
 0x4c6   :  { %v4525_v46 = vpop.permute.xlu1 %4524 }
 0x4c7   :  { %v4523_v51 = vpop.permute.xlu0 %4522  ;;  %4715 = vst.msk [vmem:[#allocation2 + $0x8] sm:$0xff] %vm466_vm1, %v4525_v46  ;;  %v9034_v46 = vld [vmem:[%s16422_s0 + $0x348] sm:$0xff] }
 0x4c8   :  { %4714 = vst.msk [vmem:[#allocation2] sm:$0xff] %vm466_vm1, %v4523_v51  ;;  %4640 = vrot.lane.b32.xlu1 %v9031_v0, %s10308_s16  ;;  %v9035_v51 = vld [vmem:[%s16422_s0 + $0x350] sm:$0xff] }
 0x4c9   :  { %4638 = vrot.lane.b32.xlu0 %v9030_v5, %s10308_s16 }
 0x4ca   :  { %v4529_v14 = vpop.permute.xlu1 %4528 }
 0x4cb   :  { %v4527_v33 = vpop.permute.xlu0 %4526  ;;  %4717 = vst.msk [vmem:[#allocation2 + $0x18] sm:$0xff] %vm466_vm1, %v4529_v14 }
 0x4cc   :  { %4716 = vst.msk [vmem:[#allocation2 + $0x10] sm:$0xff] %vm466_vm1, %v4527_v33  ;;  %4644 = vrot.lane.b32.xlu1 %v9033_v31, %s10308_s16  ;;  %v9037_v31 = vld [vmem:[%s16422_s0 + $0x21] sm:$0xff] }
 0x4cd   :  { %4642 = vrot.lane.b32.xlu0 %v9032_v48, %s10308_s16  ;;  %v9036_v48 = vld [vmem:[%s16422_s0 + $0x19] sm:$0xff] }
 0x4ce   :  { %v4533_v0 = vpop.permute.xlu1 %4532 }
 0x4cf   :  { %v4531_v5 = vpop.permute.xlu0 %4530  ;;  %4719 = vst.msk [vmem:[#allocation2 + $0x28] sm:$0xff] %vm466_vm1, %v4533_v0 }
 0x4d0   :  { %4718 = vst.msk [vmem:[#allocation2 + $0x20] sm:$0xff] %vm466_vm1, %v4531_v5  ;;  %4648 = vrot.lane.b32.xlu1 %v9035_v51, %s10308_s16 }
 0x4d1   :  { %4646 = vrot.lane.b32.xlu0 %v9034_v46, %s10308_s16 }
 0x4d2   :  { %v4537_v14 = vpop.permute.xlu1 %4536 }
 0x4d3   :  { %v4535_v33 = vpop.permute.xlu0 %4534  ;;  %4721 = vst.msk [vmem:[#allocation2 + $0x38] sm:$0xff] %vm466_vm1, %v4537_v14 }
 0x4d4   :  { %4720 = vst.msk [vmem:[#allocation2 + $0x30] sm:$0xff] %vm466_vm1, %v4535_v33  ;;  %4908 = vrot.lane.b32.xlu1 %v9037_v31, %s10309_s12 }
 0x4d5   :  { %4906 = vrot.lane.b32.xlu0 %v9036_v48, %s10309_s12 }
 0x4d6   :  { %v4541_v51 = vpop.permute.xlu1 %4540 }
 0x4d7   :  { %v4539_v0 = vpop.permute.xlu0 %4538  ;;  %4723 = vst.msk [vmem:[#allocation2 + $0x48] sm:$0xff] %vm466_vm1, %v4541_v51 }
 0x4d8   :  { %4722 = vst.msk [vmem:[#allocation2 + $0x40] sm:$0xff] %vm466_vm1, %v4539_v0  ;;  %4912 = vrot.lane.b32.xlu1 %v13304_v54, %s10309_s12 }
 0x4d9   :  { %4910 = vrot.lane.b32.xlu0 %v13294_v7, %s10309_s12 }
 0x4da   :  { %v4545_v46 = vpop.permute.xlu1 %4544 }
 0x4db   :  { %v4543_v5 = vpop.permute.xlu0 %4542  ;;  %4725 = vst.msk [vmem:[#allocation2 + $0x58] sm:$0xff] %vm466_vm1, %v4545_v46 }
 0x4dc   :  { %4724 = vst.msk [vmem:[#allocation2 + $0x50] sm:$0xff] %vm466_vm1, %v4543_v5  ;;  %4916 = vrot.lane.b32.xlu1 %v13324_v30, %s10309_s12  ;;  %v9167_v5 = vld [vmem:[%s16423_s1 + $0x58] sm:$0xff] }
 0x4dd   :  { %4914 = vrot.lane.b32.xlu0 %v13314_v55, %s10309_s12 }
 0x4de   :  { %v4549_v31 = vpop.permute.xlu1 %4548 }
 0x4df   :  { %v4547_v14 = vpop.permute.xlu0 %4546  ;;  %4727 = vst.msk [vmem:[#allocation2 + $0x68] sm:$0xff] %vm466_vm1, %v4549_v31 }
 0x4e0   :  { %4726 = vst.msk [vmem:[#allocation2 + $0x60] sm:$0xff] %vm466_vm1, %v4547_v14  ;;  %4920 = vrot.lane.b32.xlu1 %v13344_v36, %s10309_s12 }
 0x4e1   :  { %4918 = vrot.lane.b32.xlu0 %v13334_v2, %s10309_s12 }
 0x4e2   :  { %v4553_v7 = vpop.permute.xlu1 %4552 }
 0x4e3   :  { %v4551_v54 = vpop.permute.xlu0 %4550  ;;  %4729 = vst.msk [vmem:[#allocation2 + $0x78] sm:$0xff] %vm466_vm1, %v4553_v7 }
 0x4e4   :  { %4728 = vst.msk [vmem:[#allocation2 + $0x70] sm:$0xff] %vm466_vm1, %v4551_v54  ;;  %4924 = vrot.lane.b32.xlu1 %v13368_v11, %s10309_s12 }
 0x4e5   :  { %4922 = vrot.lane.b32.xlu0 %v13357_v42, %s10309_s12 }
 0x4e6   :  { %v4557_v55 = vpop.permute.xlu1 %4556 }
 0x4e7   :  { %v4555_v30 = vpop.permute.xlu0 %4554  ;;  %4731 = vst.msk [vmem:[#allocation2 + $0x88] sm:$0xff] %vm466_vm1, %v4557_v55  ;;  %v16463_v55 = vld [vmem:[#allocation9_spill] sm:$0xff] }
 0x4e8   :  { %4730 = vst.msk [vmem:[#allocation2 + $0x80] sm:$0xff] %vm466_vm1, %v4555_v30  ;;  %4928 = vrot.lane.b32.xlu1 %v13392_v50, %s10309_s12  ;;  %v16464_v30 = vld [vmem:[#allocation8_spill] sm:$0xff] }
 0x4e9   :  { %4926 = vrot.lane.b32.xlu0 %v13381_v18, %s10309_s12 }
 0x4ea   :  { %v4561_v2 = vpop.permute.xlu1 %4560 }
 0x4eb   :  { %v4559_v36 = vpop.permute.xlu0 %4558  ;;  %4733 = vst.msk [vmem:[#allocation2 + $0x98] sm:$0xff] %vm466_vm1, %v4561_v2  ;;  %v9101_v2 = vld [vmem:[%s16422_s0 + $0x20] sm:$0xff] }
 0x4ec   :  { %4732 = vst.msk [vmem:[#allocation2 + $0x90] sm:$0xff] %vm466_vm1, %v4559_v36  ;;  %4932 = vrot.lane.b32.xlu1 %v13416_v21, %s10309_s12 }
 0x4ed   :  { %4930 = vrot.lane.b32.xlu0 %v13405_v38, %s10309_s12 }
 0x4ee   :  { %v4565_v42 = vpop.permute.xlu1 %4564 }
 0x4ef   :  { %v4563_v11 = vpop.permute.xlu0 %4562  ;;  %4735 = vst.msk [vmem:[#allocation2 + $0xa8] sm:$0xff] %vm466_vm1, %v4565_v42  ;;  %v9100_v42 = vld [vmem:[%s16422_s0 + $0x18] sm:$0xff] }
 0x4f0   :  { %4734 = vst.msk [vmem:[#allocation2 + $0xa0] sm:$0xff] %vm466_vm1, %v4563_v11  ;;  %4936 = vrot.lane.b32.xlu1 %v13440_v62, %s10309_s12 }
 0x4f1   :  { %4934 = vrot.lane.b32.xlu0 %v13429_v47, %s10309_s12 }
 0x4f2   :  { %v4569_v18 = vpop.permute.xlu1 %4568 }
 0x4f3   :  { %v4567_v50 = vpop.permute.xlu0 %4566  ;;  %4737 = vst.msk [vmem:[#allocation2 + $0xb8] sm:$0xff] %vm466_vm1, %v4569_v18  ;;  %v9103_v18 = vld [vmem:[%s16422_s0 + $0x38] sm:$0xff] }
 0x4f4   :  { %4736 = vst.msk [vmem:[#allocation2 + $0xb0] sm:$0xff] %vm466_vm1, %v4567_v50  ;;  %4940 = vrot.lane.b32.xlu1 %v13464_v12, %s10309_s12 }
 0x4f5   :  { %4938 = vrot.lane.b32.xlu0 %v13453_v43, %s10309_s12 }
 0x4f6   :  { %v4573_v38 = vpop.permute.xlu1 %4572 }
 0x4f7   :  { %v4571_v21 = vpop.permute.xlu0 %4570  ;;  %4739 = vst.msk [vmem:[#allocation2 + $0xc8] sm:$0xff] %vm466_vm1, %v4573_v38  ;;  %v9102_v38 = vld [vmem:[%s16422_s0 + $0x30] sm:$0xff] }
 0x4f8   :  { %4738 = vst.msk [vmem:[#allocation2 + $0xc0] sm:$0xff] %vm466_vm1, %v4571_v21  ;;  %4944 = vrot.lane.b32.xlu1 %v13488_v34, %s10309_s12 }
 0x4f9   :  { %4942 = vrot.lane.b32.xlu0 %v13477_v16, %s10309_s12 }
 0x4fa   :  { %v4577_v47 = vpop.permute.xlu1 %4576 }
 0x4fb   :  { %v4575_v62 = vpop.permute.xlu0 %4574  ;;  %4741 = vst.msk [vmem:[#allocation2 + $0xd8] sm:$0xff] %vm466_vm1, %v4577_v47  ;;  %v9105_v47 = vld [vmem:[%s16422_s0 + $0x50] sm:$0xff] }
 0x4fc   :  { %4740 = vst.msk [vmem:[#allocation2 + $0xd0] sm:$0xff] %vm466_vm1, %v4575_v62  ;;  %4948 = vrot.lane.b32.xlu1 %v13512_v59, %s10309_s12 }
 0x4fd   :  { %4946 = vrot.lane.b32.xlu0 %v13501_v35, %s10309_s12 }
 0x4fe   :  { %v4581_v43 = vpop.permute.xlu1 %4580 }
 0x4ff   :  { %v4579_v12 = vpop.permute.xlu0 %4578  ;;  %4743 = vst.msk [vmem:[#allocation2 + $0xe8] sm:$0xff] %vm466_vm1, %v4581_v43  ;;  %v9104_v43 = vld [vmem:[%s16422_s0 + $0x48] sm:$0xff] }
 0x500   :  { %4742 = vst.msk [vmem:[#allocation2 + $0xe0] sm:$0xff] %vm466_vm1, %v4579_v12  ;;  %4952 = vrot.lane.b32.xlu1 %v13536_v22, %s10309_s12 }
 0x501   :  { %4950 = vrot.lane.b32.xlu0 %v13525_v8, %s10309_s12 }
 0x502   :  { %v4585_v16 = vpop.permute.xlu1 %4584 }
 0x503   :  { %v4583_v34 = vpop.permute.xlu0 %4582  ;;  %4745 = vst.msk [vmem:[#allocation2 + $0xf8] sm:$0xff] %vm466_vm1, %v4585_v16  ;;  %v9107_v16 = vld [vmem:[%s16422_s0 + $0x68] sm:$0xff] }
 0x504   :  { %4744 = vst.msk [vmem:[#allocation2 + $0xf0] sm:$0xff] %vm466_vm1, %v4583_v34  ;;  %4956 = vrot.lane.b32.xlu1 %v13560_v40, %s10309_s12 }
 0x505   :  { %4954 = vrot.lane.b32.xlu0 %v13549_v13, %s10309_s12 }
 0x506   :  { %v4589_v35 = vpop.permute.xlu1 %4588 }
 0x507   :  { %v4587_v59 = vpop.permute.xlu0 %4586  ;;  %4747 = vst.msk [vmem:[#allocation2 + $0x108] sm:$0xff] %vm466_vm1, %v4589_v35  ;;  %v9106_v35 = vld [vmem:[%s16422_s0 + $0x60] sm:$0xff] }
 0x508   :  { %4746 = vst.msk [vmem:[#allocation2 + $0x100] sm:$0xff] %vm466_vm1, %v4587_v59  ;;  %4960 = vrot.lane.b32.xlu1 %v13584_v37, %s10309_s12 }
 0x509   :  { %4958 = vrot.lane.b32.xlu0 %v13573_v41, %s10309_s12  ;;  %v9069_v41 = vld [vmem:[%s16422_s0 + $0x1d1] sm:$0xff] }
 0x50a   :  { %v4593_v8 = vpop.permute.xlu1 %4592 }
 0x50b   :  { %v4591_v22 = vpop.permute.xlu0 %4590  ;;  %4749 = vst.msk [vmem:[#allocation2 + $0x118] sm:$0xff] %vm466_vm1, %v4593_v8  ;;  %v9109_v8 = vld [vmem:[%s16422_s0 + $0x80] sm:$0xff] }
 0x50c   :  { %4748 = vst.msk [vmem:[#allocation2 + $0x110] sm:$0xff] %vm466_vm1, %v4591_v22  ;;  %4964 = vrot.lane.b32.xlu1 %v13608_v29, %s10309_s12 }
 0x50d   :  { %4962 = vrot.lane.b32.xlu0 %v13597_v10, %s10309_s12  ;;  %v9068_v10 = vld [vmem:[%s16422_s0 + $0x1c9] sm:$0xff] }
 0x50e   :  { %v4597_v13 = vpop.permute.xlu1 %4596 }
 0x50f   :  { %v4595_v40 = vpop.permute.xlu0 %4594  ;;  %4751 = vst.msk [vmem:[#allocation2 + $0x128] sm:$0xff] %vm466_vm1, %v4597_v13  ;;  %v9108_v13 = vld [vmem:[%s16422_s0 + $0x78] sm:$0xff] }
 0x510   :  { %4750 = vst.msk [vmem:[#allocation2 + $0x120] sm:$0xff] %vm466_vm1, %v4595_v40  ;;  %4968 = vrot.lane.b32.xlu1 %v13632_v1, %s10309_s12 }
 0x511   :  { %4966 = vrot.lane.b32.xlu0 %v13621_v57, %s10309_s12 }
 0x512   :  { %v4601_v37 = vpop.permute.xlu1 %4600 }
 0x513   :  { %v4599_v29 = vpop.permute.xlu0 %4598  ;;  %4753 = vst.msk [vmem:[#allocation2 + $0x138] sm:$0xff] %vm466_vm1, %v4601_v37 }
 0x514   :  { %4752 = vst.msk [vmem:[#allocation2 + $0x130] sm:$0xff] %vm466_vm1, %v4599_v29  ;;  %4972 = vrot.lane.b32.xlu1 %v9069_v41, %s10309_s12  ;;  %v9111_v41 = vld [vmem:[%s16422_s0 + $0x98] sm:$0xff] }
 0x515   :  { %4970 = vrot.lane.b32.xlu0 %v9068_v10, %s10309_s12  ;;  %v9110_v10 = vld [vmem:[%s16422_s0 + $0x90] sm:$0xff] }
 0x516   :  { %v4605_v1 = vpop.permute.xlu1 %4604 }
 0x517   :  { %v4603_v57 = vpop.permute.xlu0 %4602  ;;  %4755 = vst.msk [vmem:[#allocation2 + $0x148] sm:$0xff] %vm466_vm1, %v4605_v1  ;;  %v9113_v1 = vld [vmem:[%s16422_s0 + $0xb0] sm:$0xff] }
 0x518   :  { %4754 = vst.msk [vmem:[#allocation2 + $0x140] sm:$0xff] %vm466_vm1, %v4603_v57  ;;  %4976 = vrot.lane.b32.xlu1 %v13674_v44, %s10309_s12 }
 0x519   :  { %4974 = vrot.lane.b32.xlu0 %v13663_v24, %s10309_s12 }
 0x51a   :  { %v4609_v48 = vpop.permute.xlu1 %4608 }
 0x51b   :  { %v4607_v33 = vpop.permute.xlu0 %4606  ;;  %4757 = vst.msk [vmem:[#allocation2 + $0x158] sm:$0xff] %vm466_vm1, %v4609_v48  ;;  %v9112_v48 = vld [vmem:[%s16422_s0 + $0xa8] sm:$0xff] }
 0x51c   :  { %4756 = vst.msk [vmem:[#allocation2 + $0x150] sm:$0xff] %vm466_vm1, %v4607_v33  ;;  %4980 = vrot.lane.b32.xlu1 %v13698_v23, %s10309_s12 }
 0x51d   :  { %4978 = vrot.lane.b32.xlu0 %v13687_v58, %s10309_s12 }
 0x51e   :  { %v4613_v51 = vpop.permute.xlu1 %4612 }
 0x51f   :  { %v4611_v0 = vpop.permute.xlu0 %4610  ;;  %4759 = vst.msk [vmem:[#allocation2 + $0x168] sm:$0xff] %vm466_vm1, %v4613_v51  ;;  %v9115_v51 = vld [vmem:[%s16422_s0 + $0xc8] sm:$0xff] }
 0x520   :  { %4758 = vst.msk [vmem:[#allocation2 + $0x160] sm:$0xff] %vm466_vm1, %v4611_v0  ;;  %4984 = vrot.lane.b32.xlu1 %v13722_v60, %s10309_s12 }
 0x521   :  { %4982 = vrot.lane.b32.xlu0 %v13711_v49, %s10309_s12 }
 0x522   :  { %v4617_v24 = vpop.permute.xlu1 %4616 }
 0x523   :  { %v4615_v44 = vpop.permute.xlu0 %4614  ;;  %4761 = vst.msk [vmem:[#allocation2 + $0x178] sm:$0xff] %vm466_vm1, %v4617_v24  ;;  %v9114_v24 = vld [vmem:[%s16422_s0 + $0xc0] sm:$0xff] }
 0x524   :  { %4760 = vst.msk [vmem:[#allocation2 + $0x170] sm:$0xff] %vm466_vm1, %v4615_v44  ;;  %4988 = vrot.lane.b32.xlu1 %v13746_v19, %s10309_s12 }
 0x525   :  { %4986 = vrot.lane.b32.xlu0 %v13735_v27, %s10309_s12 }
 0x526   :  { %v4621_v58 = vpop.permute.xlu1 %4620 }
 0x527   :  { %v4619_v23 = vpop.permute.xlu0 %4618  ;;  %4763 = vst.msk [vmem:[#allocation2 + $0x188] sm:$0xff] %vm466_vm1, %v4621_v58  ;;  %v9117_v58 = vld [vmem:[%s16422_s0 + $0xe0] sm:$0xff] }
 0x528   :  { %4762 = vst.msk [vmem:[#allocation2 + $0x180] sm:$0xff] %vm466_vm1, %v4619_v23  ;;  %4992 = vrot.lane.b32.xlu1 %v13770_v56, %s10309_s12 }
 0x529   :  { %4990 = vrot.lane.b32.xlu0 %v13759_v39, %s10309_s12 }
 0x52a   :  { %v4625_v49 = vpop.permute.xlu1 %4624 }
 0x52b   :  { %v4623_v60 = vpop.permute.xlu0 %4622  ;;  %4765 = vst.msk [vmem:[#allocation2 + $0x198] sm:$0xff] %vm466_vm1, %v4625_v49  ;;  %v9116_v49 = vld [vmem:[%s16422_s0 + $0xd8] sm:$0xff] }
 0x52c   :  { %4764 = vst.msk [vmem:[#allocation2 + $0x190] sm:$0xff] %vm466_vm1, %v4623_v60  ;;  %4996 = vrot.lane.b32.xlu1 %v13794_v25, %s10309_s12 }
 0x52d   :  { %4994 = vrot.lane.b32.xlu0 %v13783_v4, %s10309_s12 }
 0x52e   :  { %v4629_v27 = vpop.permute.xlu1 %4628 }
 0x52f   :  { %v4627_v19 = vpop.permute.xlu0 %4626  ;;  %4767 = vst.msk [vmem:[#allocation2 + $0x1a8] sm:$0xff] %vm466_vm1, %v4629_v27  ;;  %v9119_v27 = vld [vmem:[%s16422_s0 + $0xf8] sm:$0xff] }
 0x530   :  { %4766 = vst.msk [vmem:[#allocation2 + $0x1a0] sm:$0xff] %vm466_vm1, %v4627_v19  ;;  %5000 = vrot.lane.b32.xlu1 %v13818_v20, %s10309_s12 }
 0x531   :  { %4998 = vrot.lane.b32.xlu0 %v13807_v53, %s10309_s12 }
 0x532   :  { %v4633_v39 = vpop.permute.xlu1 %4632 }
 0x533   :  { %v4631_v56 = vpop.permute.xlu0 %4630  ;;  %4769 = vst.msk [vmem:[#allocation2 + $0x1b8] sm:$0xff] %vm466_vm1, %v4633_v39  ;;  %v9118_v39 = vld [vmem:[%s16422_s0 + $0xf0] sm:$0xff] }
 0x534   :  { %4768 = vst.msk [vmem:[#allocation2 + $0x1b0] sm:$0xff] %vm466_vm1, %v4631_v56  ;;  %5004 = vrot.lane.b32.xlu1 %v13842_v28, %s10309_s12 }
 0x535   :  { %5002 = vrot.lane.b32.xlu0 %v13831_v17, %s10309_s12 }
 0x536   :  { %v4637_v4 = vpop.permute.xlu1 %4636 }
 0x537   :  { %v4635_v25 = vpop.permute.xlu0 %4634  ;;  %4771 = vst.msk [vmem:[#allocation2 + $0x1c8] sm:$0xff] %vm466_vm1, %v4637_v4  ;;  %v9121_v4 = vld [vmem:[%s16422_s0 + $0x110] sm:$0xff] }
 0x538   :  { %4770 = vst.msk [vmem:[#allocation2 + $0x1c0] sm:$0xff] %vm466_vm1, %v4635_v25  ;;  %5008 = vrot.lane.b32.xlu1 %v13866_v6, %s10309_s12 }
 0x539   :  { %5006 = vrot.lane.b32.xlu0 %v13855_v15, %s10309_s12 }
 0x53a   :  { %v4641_v53 = vpop.permute.xlu1 %4640 }
 0x53b   :  { %v4639_v20 = vpop.permute.xlu0 %4638  ;;  %4773 = vst.msk [vmem:[#allocation2 + $0x1d8] sm:$0xff] %vm466_vm1, %v4641_v53  ;;  %v9120_v53 = vld [vmem:[%s16422_s0 + $0x108] sm:$0xff] }
 0x53c   :  { %4772 = vst.msk [vmem:[#allocation2 + $0x1d0] sm:$0xff] %vm466_vm1, %v4639_v20  ;;  %5012 = vrot.lane.b32.xlu1 %v13890_v45, %s10309_s12  ;;  %v9164_v45 = vld [vmem:[%s16423_s1 + $0x40] sm:$0xff] }
 0x53d   :  { %5010 = vrot.lane.b32.xlu0 %v13879_v26, %s10309_s12 }
 0x53e   :  { %v4645_v17 = vpop.permute.xlu1 %4644 }
 0x53f   :  { %v4643_v28 = vpop.permute.xlu0 %4642  ;;  %4775 = vst.msk [vmem:[#allocation2 + $0x1e8] sm:$0xff] %vm466_vm1, %v4645_v17  ;;  %v9123_v17 = vld [vmem:[%s16422_s0 + $0x128] sm:$0xff] }
 0x540   :  { %4774 = vst.msk [vmem:[#allocation2 + $0x1e0] sm:$0xff] %vm466_vm1, %v4643_v28  ;;  %5016 = vrot.lane.b32.xlu1 %v13914_v61, %s10309_s12 }
 0x541   :  { %5014 = vrot.lane.b32.xlu0 %v13903_v9, %s10309_s12  ;;  %v9165_v9 = vld [vmem:[%s16423_s1 + $0x48] sm:$0xff] }
 0x542   :  { %v4649_v15 = vpop.permute.xlu1 %4648  ;;  %v10260_v46 = vpack.c.bf16 %v9165_v9, %v9164_v45  ;;  %v9124_v9 = vld [vmem:[%s16422_s0 + $0x138] sm:$0xff] }
 0x543   :  { %v4647_v6 = vpop.permute.xlu0 %4646  ;;  %4777 = vst.msk [vmem:[#allocation2 + $0x1f8] sm:$0xff] %vm466_vm1, %v4649_v15  ;;  %v9122_v15 = vld [vmem:[%s16422_s0 + $0x120] sm:$0xff] }
 0x544   :  { %4776 = vst.msk [vmem:[#allocation2 + $0x1f0] sm:$0xff] %vm466_vm1, %v4647_v6  ;;  %5020 = vrot.lane.b32.xlu1 %v13938_v32, %s10309_s12  ;;  %10261 = vmatprep.subr.bf16.mxu0 %v10260_v46  ;;  %v9166_v32 = vld [vmem:[%s16423_s1 + $0x50] sm:$0xff] }
 0x545   :  { %5018 = vrot.lane.b32.xlu0 %v13927_v63, %s10309_s12  ;;  %10263 = vmatpush3.bf16.msra.mxu0 %v10260_v46  ;;  %v10264_v14 = vpack.c.bf16 %v9167_v5, %v9166_v32  ;;  %v9127_v46 = vld [vmem:[%s16422_s0 + $0x158] sm:$0xff]  ;;  %v9126_v32 = vld [vmem:[%s16422_s0 + $0x150] sm:$0xff] }
 0x546   :  { %v4909_v26 = vpop.permute.xlu1 %4908 }
 0x547   :  { %v4907_v61 = vpop.permute.xlu0 %4906  ;;  %5099 = vst.msk [vmem:[#allocation2 + $0x8] sm:$0xff] %vm851_vm2, %v4909_v26  ;;  %10265 = vmatprep.subr.bf16.mxu0 %v10264_v14  ;;  %v9125_v26 = vld [vmem:[%s16422_s0 + $0x140] sm:$0xff] }
 0x548   :  { %5098 = vst.msk [vmem:[#allocation2] sm:$0xff] %vm851_vm2, %v4907_v61  ;;  %5024 = vrot.lane.b32.xlu1 %v13962_v3, %s10309_s12  ;;  %v16461_v3 = vld [vmem:[#allocation7_spill] sm:$0xff] }
 0x549   :  { %5022 = vrot.lane.b32.xlu0 %v13951_v52, %s10309_s12  ;;  %v16462_v52 = vld [vmem:[#allocation6_spill] sm:$0xff]  ;;  %10267 = vmatpush3.bf16.msra.mxu0 %v10264_v14 }
 0x54a   :  { %v4913_v63 = vpop.permute.xlu1 %4912 }
 0x54b   :  { %v4911_v31 = vpop.permute.xlu0 %4910  ;;  %5101 = vst.msk [vmem:[#allocation2 + $0x18] sm:$0xff] %vm851_vm2, %v4913_v63 }
 0x54c   :  { %5100 = vst.msk [vmem:[#allocation2 + $0x10] sm:$0xff] %vm851_vm2, %v4911_v31  ;;  %5028 = vrot.lane.b32.xlu1 %v16461_v3, %s10309_s12  ;;  %v9129_v31 = vld [vmem:[%s16422_s0 + $0x170] sm:$0xff]  ;;  %v9128_v3 = vld [vmem:[%s16422_s0 + $0x168] sm:$0xff] }
 0x54d   :  { %5026 = vrot.lane.b32.xlu0 %v16462_v52, %s10309_s12 }
 0x54e   :  { %v4917_v7 = vpop.permute.xlu1 %4916 }
 0x54f   :  { %v4915_v54 = vpop.permute.xlu0 %4914  ;;  %5103 = vst.msk [vmem:[#allocation2 + $0x28] sm:$0xff] %vm851_vm2, %v4917_v7  ;;  %v9131_v7 = vld [vmem:[%s16422_s0 + $0x188] sm:$0xff] }
 0x550   :  { %5102 = vst.msk [vmem:[#allocation2 + $0x20] sm:$0xff] %vm851_vm2, %v4915_v54  ;;  %5032 = vrot.lane.b32.xlu1 %v16463_v55, %s10309_s12  ;;  %v9130_v55 = vld [vmem:[%s16422_s0 + $0x180] sm:$0xff] }
 0x551   :  { %5030 = vrot.lane.b32.xlu0 %v16464_v30, %s10309_s12 }
 0x552   :  { %v4921_v36 = vpop.permute.xlu1 %4920 }
 0x553   :  { %v4919_v11 = vpop.permute.xlu0 %4918  ;;  %5105 = vst.msk [vmem:[#allocation2 + $0x38] sm:$0xff] %vm851_vm2, %v4921_v36 }
 0x554   :  { %5104 = vst.msk [vmem:[#allocation2 + $0x30] sm:$0xff] %vm851_vm2, %v4919_v11  ;;  %5292 = vrot.lane.b32.xlu1 %v9101_v2, %s10310_s30  ;;  %v9133_v2 = vld [vmem:[%s16422_s0 + $0x1d0] sm:$0xff] }
 0x555   :  { %5290 = vrot.lane.b32.xlu0 %v9100_v42, %s10310_s30  ;;  %v9132_v42 = vld [vmem:[%s16422_s0 + $0x1c8] sm:$0xff] }
 0x556   :  { %v4925_v50 = vpop.permute.xlu1 %4924 }
 0x557   :  { %v4923_v21 = vpop.permute.xlu0 %4922  ;;  %5107 = vst.msk [vmem:[#allocation2 + $0x48] sm:$0xff] %vm851_vm2, %v4925_v50 }
 0x558   :  { %5106 = vst.msk [vmem:[#allocation2 + $0x40] sm:$0xff] %vm851_vm2, %v4923_v21  ;;  %5296 = vrot.lane.b32.xlu1 %v9103_v18, %s10310_s30  ;;  %v9135_v18 = vld [vmem:[%s16422_s0 + $0x1e8] sm:$0xff] }
 0x559   :  { %5294 = vrot.lane.b32.xlu0 %v9102_v38, %s10310_s30  ;;  %v9134_v38 = vld [vmem:[%s16422_s0 + $0x1e0] sm:$0xff] }
 0x55a   :  { %v4929_v62 = vpop.permute.xlu1 %4928 }
 0x55b   :  { %v4927_v12 = vpop.permute.xlu0 %4926  ;;  %5109 = vst.msk [vmem:[#allocation2 + $0x58] sm:$0xff] %vm851_vm2, %v4929_v62 }
 0x55c   :  { %5108 = vst.msk [vmem:[#allocation2 + $0x50] sm:$0xff] %vm851_vm2, %v4927_v12  ;;  %5300 = vrot.lane.b32.xlu1 %v9105_v47, %s10310_s30  ;;  %v9137_v47 = vld [vmem:[%s16422_s0 + $0x200] sm:$0xff] }
 0x55d   :  { %5298 = vrot.lane.b32.xlu0 %v9104_v43, %s10310_s30  ;;  %v9136_v43 = vld [vmem:[%s16422_s0 + $0x1f8] sm:$0xff] }
 0x55e   :  { %v4933_v34 = vpop.permute.xlu1 %4932 }
 0x55f   :  { %v4931_v59 = vpop.permute.xlu0 %4930  ;;  %5111 = vst.msk [vmem:[#allocation2 + $0x68] sm:$0xff] %vm851_vm2, %v4933_v34 }
 0x560   :  { %5110 = vst.msk [vmem:[#allocation2 + $0x60] sm:$0xff] %vm851_vm2, %v4931_v59  ;;  %5304 = vrot.lane.b32.xlu1 %v9107_v16, %s10310_s30  ;;  %v9139_v16 = vld [vmem:[%s16422_s0 + $0x218] sm:$0xff] }
 0x561   :  { %5302 = vrot.lane.b32.xlu0 %v9106_v35, %s10310_s30  ;;  %v9138_v35 = vld [vmem:[%s16422_s0 + $0x210] sm:$0xff] }
 0x562   :  { %v4937_v22 = vpop.permute.xlu1 %4936 }
 0x563   :  { %v4935_v40 = vpop.permute.xlu0 %4934  ;;  %5113 = vst.msk [vmem:[#allocation2 + $0x78] sm:$0xff] %vm851_vm2, %v4937_v22 }
 0x564   :  { %5112 = vst.msk [vmem:[#allocation2 + $0x70] sm:$0xff] %vm851_vm2, %v4935_v40  ;;  %5308 = vrot.lane.b32.xlu1 %v9109_v8, %s10310_s30  ;;  %v9141_v8 = vld [vmem:[%s16422_s0 + $0x230] sm:$0xff] }
 0x565   :  { %5306 = vrot.lane.b32.xlu0 %v9108_v13, %s10310_s30  ;;  %v9140_v13 = vld [vmem:[%s16422_s0 + $0x228] sm:$0xff] }
 0x566   :  { %v4941_v37 = vpop.permute.xlu1 %4940 }
 0x567   :  { %v4939_v29 = vpop.permute.xlu0 %4938  ;;  %5115 = vst.msk [vmem:[#allocation2 + $0x88] sm:$0xff] %vm851_vm2, %v4941_v37 }
 0x568   :  { %5114 = vst.msk [vmem:[#allocation2 + $0x80] sm:$0xff] %vm851_vm2, %v4939_v29  ;;  %5312 = vrot.lane.b32.xlu1 %v9111_v41, %s10310_s30  ;;  %v9143_v41 = vld [vmem:[%s16422_s0 + $0x248] sm:$0xff] }
 0x569   :  { %5310 = vrot.lane.b32.xlu0 %v9110_v10, %s10310_s30  ;;  %v9142_v10 = vld [vmem:[%s16422_s0 + $0x240] sm:$0xff] }
 0x56a   :  { %v4945_v57 = vpop.permute.xlu1 %4944 }
 0x56b   :  { %v4943_v33 = vpop.permute.xlu0 %4942  ;;  %5117 = vst.msk [vmem:[#allocation2 + $0x98] sm:$0xff] %vm851_vm2, %v4945_v57 }
 0x56c   :  { %5116 = vst.msk [vmem:[#allocation2 + $0x90] sm:$0xff] %vm851_vm2, %v4943_v33  ;;  %5316 = vrot.lane.b32.xlu1 %v9113_v1, %s10310_s30  ;;  %v9145_v1 = vld [vmem:[%s16422_s0 + $0x260] sm:$0xff] }
 0x56d   :  { %5314 = vrot.lane.b32.xlu0 %v9112_v48, %s10310_s30  ;;  %v9144_v48 = vld [vmem:[%s16422_s0 + $0x258] sm:$0xff] }
 0x56e   :  { %v4949_v0 = vpop.permute.xlu1 %4948 }
 0x56f   :  { %v4947_v44 = vpop.permute.xlu0 %4946  ;;  %5119 = vst.msk [vmem:[#allocation2 + $0xa8] sm:$0xff] %vm851_vm2, %v4949_v0 }
 0x570   :  { %5118 = vst.msk [vmem:[#allocation2 + $0xa0] sm:$0xff] %vm851_vm2, %v4947_v44  ;;  %5320 = vrot.lane.b32.xlu1 %v9115_v51, %s10310_s30  ;;  %v9147_v51 = vld [vmem:[%s16422_s0 + $0x278] sm:$0xff] }
 0x571   :  { %5318 = vrot.lane.b32.xlu0 %v9114_v24, %s10310_s30  ;;  %v9146_v24 = vld [vmem:[%s16422_s0 + $0x270] sm:$0xff] }
 0x572   :  { %v4953_v23 = vpop.permute.xlu1 %4952 }
 0x573   :  { %v4951_v60 = vpop.permute.xlu0 %4950  ;;  %5121 = vst.msk [vmem:[#allocation2 + $0xb8] sm:$0xff] %vm851_vm2, %v4953_v23 }
 0x574   :  { %5120 = vst.msk [vmem:[#allocation2 + $0xb0] sm:$0xff] %vm851_vm2, %v4951_v60  ;;  %5324 = vrot.lane.b32.xlu1 %v9117_v58, %s10310_s30  ;;  %v9149_v58 = vld [vmem:[%s16422_s0 + $0x290] sm:$0xff] }
 0x575   :  { %5322 = vrot.lane.b32.xlu0 %v9116_v49, %s10310_s30  ;;  %v9148_v49 = vld [vmem:[%s16422_s0 + $0x288] sm:$0xff] }
 0x576   :  { %v4957_v19 = vpop.permute.xlu1 %4956 }
 0x577   :  { %v4955_v56 = vpop.permute.xlu0 %4954  ;;  %5123 = vst.msk [vmem:[#allocation2 + $0xc8] sm:$0xff] %vm851_vm2, %v4957_v19 }
 0x578   :  { %5122 = vst.msk [vmem:[#allocation2 + $0xc0] sm:$0xff] %vm851_vm2, %v4955_v56  ;;  %5328 = vrot.lane.b32.xlu1 %v9119_v27, %s10310_s30  ;;  %v9151_v27 = vld [vmem:[%s16422_s0 + $0x2a8] sm:$0xff] }
 0x579   :  { %5326 = vrot.lane.b32.xlu0 %v9118_v39, %s10310_s30  ;;  %v9150_v39 = vld [vmem:[%s16422_s0 + $0x2a0] sm:$0xff] }
 0x57a   :  { %v4961_v25 = vpop.permute.xlu1 %4960 }
 0x57b   :  { %v4959_v20 = vpop.permute.xlu0 %4958  ;;  %5125 = vst.msk [vmem:[#allocation2 + $0xd8] sm:$0xff] %vm851_vm2, %v4961_v25 }
 0x57c   :  { %5124 = vst.msk [vmem:[#allocation2 + $0xd0] sm:$0xff] %vm851_vm2, %v4959_v20  ;;  %5332 = vrot.lane.b32.xlu1 %v9121_v4, %s10310_s30  ;;  %v9153_v4 = vld [vmem:[%s16422_s0 + $0x2c0] sm:$0xff] }
 0x57d   :  { %5330 = vrot.lane.b32.xlu0 %v9120_v53, %s10310_s30  ;;  %v9152_v53 = vld [vmem:[%s16422_s0 + $0x2b8] sm:$0xff] }
 0x57e   :  { %v4965_v28 = vpop.permute.xlu1 %4964 }
 0x57f   :  { %v4963_v6 = vpop.permute.xlu0 %4962  ;;  %5127 = vst.msk [vmem:[#allocation2 + $0xe8] sm:$0xff] %vm851_vm2, %v4965_v28 }
 0x580   :  { %5126 = vst.msk [vmem:[#allocation2 + $0xe0] sm:$0xff] %vm851_vm2, %v4963_v6  ;;  %5336 = vrot.lane.b32.xlu1 %v9123_v17, %s10310_s30  ;;  %v9155_v17 = vld [vmem:[%s16422_s0 + $0x2d8] sm:$0xff] }
 0x581   :  { %5334 = vrot.lane.b32.xlu0 %v9122_v15, %s10310_s30  ;;  %v9154_v15 = vld [vmem:[%s16422_s0 + $0x2d0] sm:$0xff] }
 0x582   :  { %v4969_v45 = vpop.permute.xlu1 %4968 }
 0x583   :  { %v4967_v61 = vpop.permute.xlu0 %4966  ;;  %5129 = vst.msk [vmem:[#allocation2 + $0xf8] sm:$0xff] %vm851_vm2, %v4969_v45 }
 0x584   :  { %5128 = vst.msk [vmem:[#allocation2 + $0xf0] sm:$0xff] %vm851_vm2, %v4967_v61  ;;  %5340 = vrot.lane.b32.xlu1 %v9125_v26, %s10310_s30  ;;  %v9157_v26 = vld [vmem:[%s16422_s0 + $0x2f0] sm:$0xff] }
 0x585   :  { %5338 = vrot.lane.b32.xlu0 %v9124_v9, %s10310_s30  ;;  %v9156_v9 = vld [vmem:[%s16422_s0 + $0x2e8] sm:$0xff] }
 0x586   :  { %v4973_v63 = vpop.permute.xlu1 %4972 }
 0x587   :  { %v4971_v5 = vpop.permute.xlu0 %4970  ;;  %5131 = vst.msk [vmem:[#allocation2 + $0x108] sm:$0xff] %vm851_vm2, %v4973_v63 }
 0x588   :  { %5130 = vst.msk [vmem:[#allocation2 + $0x100] sm:$0xff] %vm851_vm2, %v4971_v5  ;;  %5344 = vrot.lane.b32.xlu1 %v9127_v46, %s10310_s30  ;;  %v9159_v46 = vld [vmem:[%s16422_s0 + $0x308] sm:$0xff] }
 0x589   :  { %5342 = vrot.lane.b32.xlu0 %v9126_v32, %s10310_s30  ;;  %v9158_v32 = vld [vmem:[%s16422_s0 + $0x300] sm:$0xff] }
 0x58a   :  { %v4977_v14 = vpop.permute.xlu1 %4976 }
 0x58b   :  { %v4975_v52 = vpop.permute.xlu0 %4974  ;;  %5133 = vst.msk [vmem:[#allocation2 + $0x118] sm:$0xff] %vm851_vm2, %v4977_v14 }
 0x58c   :  { %5132 = vst.msk [vmem:[#allocation2 + $0x110] sm:$0xff] %vm851_vm2, %v4975_v52  ;;  %5348 = vrot.lane.b32.xlu1 %v9129_v31, %s10310_s30  ;;  %v9161_v31 = vld [vmem:[%s16422_s0 + $0x320] sm:$0xff] }
 0x58d   :  { %5346 = vrot.lane.b32.xlu0 %v9128_v3, %s10310_s30  ;;  %v9160_v3 = vld [vmem:[%s16422_s0 + $0x318] sm:$0xff] }
 0x58e   :  { %v4981_v54 = vpop.permute.xlu1 %4980 }
 0x58f   :  { %v4979_v30 = vpop.permute.xlu0 %4978  ;;  %5135 = vst.msk [vmem:[#allocation2 + $0x128] sm:$0xff] %vm851_vm2, %v4981_v54 }
 0x590   :  { %5134 = vst.msk [vmem:[#allocation2 + $0x120] sm:$0xff] %vm851_vm2, %v4979_v30  ;;  %5352 = vrot.lane.b32.xlu1 %v9131_v7, %s10310_s30  ;;  %v9163_v7 = vld [vmem:[%s16422_s0 + $0x338] sm:$0xff] }
 0x591   :  { %5350 = vrot.lane.b32.xlu0 %v9130_v55, %s10310_s30  ;;  %v9162_v55 = vld [vmem:[%s16422_s0 + $0x330] sm:$0xff] }
 0x592   :  { %v4985_v36 = vpop.permute.xlu1 %4984 }
 0x593   :  { %v4983_v11 = vpop.permute.xlu0 %4982  ;;  %5137 = vst.msk [vmem:[#allocation2 + $0x138] sm:$0xff] %vm851_vm2, %v4985_v36 }
 0x594   :  { %5136 = vst.msk [vmem:[#allocation2 + $0x130] sm:$0xff] %vm851_vm2, %v4983_v11  ;;  %5356 = vrot.lane.b32.xlu1 %v9133_v2, %s10310_s30  ;;  %v14596_v2 = vld [vmem:[%s16422_s0 + $0x3a] sm:$0xff]  ;;  %v14602_v11 = vld [vmem:[%s16422_s0 + $0x32] sm:$0xff] }
 0x595   :  { %5354 = vrot.lane.b32.xlu0 %v9132_v42, %s10310_s30 }
 0x596   :  { %v4989_v50 = vpop.permute.xlu1 %4988 }
 0x597   :  { %v4987_v21 = vpop.permute.xlu0 %4986  ;;  %5139 = vst.msk [vmem:[#allocation2 + $0x148] sm:$0xff] %vm851_vm2, %v4989_v50 }
 0x598   :  { %5138 = vst.msk [vmem:[#allocation2 + $0x140] sm:$0xff] %vm851_vm2, %v4987_v21  ;;  %5360 = vrot.lane.b32.xlu1 %v9135_v18, %s10310_s30  ;;  %v14616_v18 = vld [vmem:[%s16422_s0 + $0x39] sm:$0xff] }
 0x599   :  { %5358 = vrot.lane.b32.xlu0 %v9134_v38, %s10310_s30  ;;  %v14621_v38 = vld [vmem:[%s16422_s0 + $0x31] sm:$0xff] }
 0x59a   :  { %v4993_v62 = vpop.permute.xlu1 %4992 }
 0x59b   :  { %v4991_v12 = vpop.permute.xlu0 %4990  ;;  %5141 = vst.msk [vmem:[#allocation2 + $0x158] sm:$0xff] %vm851_vm2, %v4993_v62 }
 0x59c   :  { %5140 = vst.msk [vmem:[#allocation2 + $0x150] sm:$0xff] %vm851_vm2, %v4991_v12  ;;  %5364 = vrot.lane.b32.xlu1 %v9137_v47, %s10310_s30  ;;  %v14626_v47 = vld [vmem:[%s16422_s0 + $0x52] sm:$0xff]  ;;  %v14632_v12 = vld [vmem:[%s16422_s0 + $0x4a] sm:$0xff] }
 0x59d   :  { %5362 = vrot.lane.b32.xlu0 %v9136_v43, %s10310_s30 }
 0x59e   :  { %v4997_v34 = vpop.permute.xlu1 %4996 }
 0x59f   :  { %v4995_v59 = vpop.permute.xlu0 %4994  ;;  %5143 = vst.msk [vmem:[#allocation2 + $0x168] sm:$0xff] %vm851_vm2, %v4997_v34 }
 0x5a0   :  { %5142 = vst.msk [vmem:[#allocation2 + $0x160] sm:$0xff] %vm851_vm2, %v4995_v59  ;;  %5368 = vrot.lane.b32.xlu1 %v9139_v16, %s10310_s30  ;;  %v14648_v16 = vld [vmem:[%s16422_s0 + $0x51] sm:$0xff] }
 0x5a1   :  { %5366 = vrot.lane.b32.xlu0 %v9138_v35, %s10310_s30  ;;  %v14653_v35 = vld [vmem:[%s16422_s0 + $0x49] sm:$0xff] }
 0x5a2   :  { %v5001_v22 = vpop.permute.xlu1 %5000 }
 0x5a3   :  { %v4999_v40 = vpop.permute.xlu0 %4998  ;;  %5145 = vst.msk [vmem:[#allocation2 + $0x178] sm:$0xff] %vm851_vm2, %v5001_v22 }
 0x5a4   :  { %5144 = vst.msk [vmem:[#allocation2 + $0x170] sm:$0xff] %vm851_vm2, %v4999_v40  ;;  %5372 = vrot.lane.b32.xlu1 %v9141_v8, %s10310_s30  ;;  %v14658_v8 = vld [vmem:[%s16422_s0 + $0x6a] sm:$0xff]  ;;  %v14664_v40 = vld [vmem:[%s16422_s0 + $0x62] sm:$0xff] }
 0x5a5   :  { %5370 = vrot.lane.b32.xlu0 %v9140_v13, %s10310_s30 }
 0x5a6   :  { %v5005_v37 = vpop.permute.xlu1 %5004 }
 0x5a7   :  { %v5003_v29 = vpop.permute.xlu0 %5002  ;;  %5147 = vst.msk [vmem:[#allocation2 + $0x188] sm:$0xff] %vm851_vm2, %v5005_v37 }
 0x5a8   :  { %5146 = vst.msk [vmem:[#allocation2 + $0x180] sm:$0xff] %vm851_vm2, %v5003_v29  ;;  %5376 = vrot.lane.b32.xlu1 %v9143_v41, %s10310_s30  ;;  %v14680_v41 = vld [vmem:[%s16422_s0 + $0x69] sm:$0xff] }
 0x5a9   :  { %5374 = vrot.lane.b32.xlu0 %v9142_v10, %s10310_s30  ;;  %v14685_v10 = vld [vmem:[%s16422_s0 + $0x61] sm:$0xff] }
 0x5aa   :  { %v5009_v57 = vpop.permute.xlu1 %5008 }
 0x5ab   :  { %v5007_v33 = vpop.permute.xlu0 %5006  ;;  %5149 = vst.msk [vmem:[#allocation2 + $0x198] sm:$0xff] %vm851_vm2, %v5009_v57 }
 0x5ac   :  { %5148 = vst.msk [vmem:[#allocation2 + $0x190] sm:$0xff] %vm851_vm2, %v5007_v33  ;;  %5380 = vrot.lane.b32.xlu1 %v9145_v1, %s10310_s30  ;;  %v14690_v1 = vld [vmem:[%s16422_s0 + $0x82] sm:$0xff]  ;;  %v14696_v33 = vld [vmem:[%s16422_s0 + $0x7a] sm:$0xff] }
 0x5ad   :  { %5378 = vrot.lane.b32.xlu0 %v9144_v48, %s10310_s30 }
 0x5ae   :  { %v5013_v0 = vpop.permute.xlu1 %5012 }
 0x5af   :  { %v5011_v44 = vpop.permute.xlu0 %5010  ;;  %5151 = vst.msk [vmem:[#allocation2 + $0x1a8] sm:$0xff] %vm851_vm2, %v5013_v0 }
 0x5b0   :  { %5150 = vst.msk [vmem:[#allocation2 + $0x1a0] sm:$0xff] %vm851_vm2, %v5011_v44  ;;  %5384 = vrot.lane.b32.xlu1 %v9147_v51, %s10310_s30  ;;  %v14712_v51 = vld [vmem:[%s16422_s0 + $0x81] sm:$0xff] }
 0x5b1   :  { %5382 = vrot.lane.b32.xlu0 %v9146_v24, %s10310_s30  ;;  %v14717_v24 = vld [vmem:[%s16422_s0 + $0x79] sm:$0xff] }
 0x5b2   :  { %v5017_v23 = vpop.permute.xlu1 %5016 }
 0x5b3   :  { %v5015_v60 = vpop.permute.xlu0 %5014  ;;  %5153 = vst.msk [vmem:[#allocation2 + $0x1b8] sm:$0xff] %vm851_vm2, %v5017_v23 }
 0x5b4   :  { %5152 = vst.msk [vmem:[#allocation2 + $0x1b0] sm:$0xff] %vm851_vm2, %v5015_v60  ;;  %5388 = vrot.lane.b32.xlu1 %v9149_v58, %s10310_s30  ;;  %v14722_v58 = vld [vmem:[%s16422_s0 + $0x9a] sm:$0xff]  ;;  %v14728_v60 = vld [vmem:[%s16422_s0 + $0x92] sm:$0xff] }
 0x5b5   :  { %5386 = vrot.lane.b32.xlu0 %v9148_v49, %s10310_s30 }
 0x5b6   :  { %v5021_v19 = vpop.permute.xlu1 %5020 }
 0x5b7   :  { %v5019_v56 = vpop.permute.xlu0 %5018  ;;  %5155 = vst.msk [vmem:[#allocation2 + $0x1c8] sm:$0xff] %vm851_vm2, %v5021_v19 }
 0x5b8   :  { %5154 = vst.msk [vmem:[#allocation2 + $0x1c0] sm:$0xff] %vm851_vm2, %v5019_v56  ;;  %5392 = vrot.lane.b32.xlu1 %v9151_v27, %s10310_s30  ;;  %v14744_v27 = vld [vmem:[%s16422_s0 + $0x99] sm:$0xff] }
 0x5b9   :  { %5390 = vrot.lane.b32.xlu0 %v9150_v39, %s10310_s30  ;;  %v14749_v39 = vld [vmem:[%s16422_s0 + $0x91] sm:$0xff] }
 0x5ba   :  { %v5025_v25 = vpop.permute.xlu1 %5024 }
 0x5bb   :  { %v5023_v20 = vpop.permute.xlu0 %5022  ;;  %5157 = vst.msk [vmem:[#allocation2 + $0x1d8] sm:$0xff] %vm851_vm2, %v5025_v25 }
 0x5bc   :  { %5156 = vst.msk [vmem:[#allocation2 + $0x1d0] sm:$0xff] %vm851_vm2, %v5023_v20  ;;  %5396 = vrot.lane.b32.xlu1 %v9153_v4, %s10310_s30  ;;  %v14754_v4 = vld [vmem:[%s16422_s0 + $0xb2] sm:$0xff]  ;;  %v14760_v20 = vld [vmem:[%s16422_s0 + $0xaa] sm:$0xff] }
 0x5bd   :  { %5394 = vrot.lane.b32.xlu0 %v9152_v53, %s10310_s30 }
 0x5be   :  { %v5029_v28 = vpop.permute.xlu1 %5028 }
 0x5bf   :  { %v5027_v6 = vpop.permute.xlu0 %5026  ;;  %5159 = vst.msk [vmem:[#allocation2 + $0x1e8] sm:$0xff] %vm851_vm2, %v5029_v28 }
 0x5c0   :  { %5158 = vst.msk [vmem:[#allocation2 + $0x1e0] sm:$0xff] %vm851_vm2, %v5027_v6  ;;  %5400 = vrot.lane.b32.xlu1 %v9155_v17, %s10310_s30  ;;  %v14776_v17 = vld [vmem:[%s16422_s0 + $0xb1] sm:$0xff] }
 0x5c1   :  { %5398 = vrot.lane.b32.xlu0 %v9154_v15, %s10310_s30  ;;  %v14781_v15 = vld [vmem:[%s16422_s0 + $0xa9] sm:$0xff] }
 0x5c2   :  { %v5033_v45 = vpop.permute.xlu1 %5032 }
 0x5c3   :  { %v5031_v61 = vpop.permute.xlu0 %5030  ;;  %5161 = vst.msk [vmem:[#allocation2 + $0x1f8] sm:$0xff] %vm851_vm2, %v5033_v45 }
 0x5c4   :  { %5160 = vst.msk [vmem:[#allocation2 + $0x1f0] sm:$0xff] %vm851_vm2, %v5031_v61  ;;  %5404 = vrot.lane.b32.xlu1 %v9157_v26, %s10310_s30  ;;  %v14786_v26 = vld [vmem:[%s16422_s0 + $0xca] sm:$0xff]  ;;  %v14792_v61 = vld [vmem:[%s16422_s0 + $0xc2] sm:$0xff] }
 0x5c5   :  { %5402 = vrot.lane.b32.xlu0 %v9156_v9, %s10310_s30 }
 0x5c6   :  { %v5293_v63 = vpop.permute.xlu1 %5292 }
 0x5c7   :  { %v5291_v5 = vpop.permute.xlu0 %5290  ;;  %5483 = vst.msk [vmem:[#allocation2 + $0x8] sm:$0xff] %vm1236_vm3, %v5293_v63 }
 0x5c8   :  { %5482 = vst.msk [vmem:[#allocation2] sm:$0xff] %vm1236_vm3, %v5291_v5  ;;  %5408 = vrot.lane.b32.xlu1 %v9159_v46, %s10310_s30  ;;  %v14808_v46 = vld [vmem:[%s16422_s0 + $0xc9] sm:$0xff] }
 0x5c9   :  { %5406 = vrot.lane.b32.xlu0 %v9158_v32, %s10310_s30  ;;  %v14813_v32 = vld [vmem:[%s16422_s0 + $0xc1] sm:$0xff] }
 0x5ca   :  { %v5297_v14 = vpop.permute.xlu1 %5296 }
 0x5cb   :  { %v5295_v52 = vpop.permute.xlu0 %5294  ;;  %5485 = vst.msk [vmem:[#allocation2 + $0x18] sm:$0xff] %vm1236_vm3, %v5297_v14 }
 0x5cc   :  { %5484 = vst.msk [vmem:[#allocation2 + $0x10] sm:$0xff] %vm1236_vm3, %v5295_v52  ;;  %5412 = vrot.lane.b32.xlu1 %v9161_v31, %s10310_s30  ;;  %v14818_v31 = vld [vmem:[%s16422_s0 + $0xe2] sm:$0xff]  ;;  %v14824_v52 = vld [vmem:[%s16422_s0 + $0xda] sm:$0xff] }
 0x5cd   :  { %5410 = vrot.lane.b32.xlu0 %v9160_v3, %s10310_s30 }
 0x5ce   :  { %v5301_v54 = vpop.permute.xlu1 %5300  ;;  %v5547_v30 = vld [vmem:[#allocation2 + $0x8] sm:$0xff] }
 0x5cf   :  { %v5299_v36 = vpop.permute.xlu0 %5298  ;;  %5487 = vst.msk [vmem:[#allocation2 + $0x28] sm:$0xff] %vm1236_vm3, %v5301_v54  ;;  %v5546_v42 = vld [vmem:[#allocation2] sm:$0xff] }
 0x5d0   :  { %6322 = vst.msk [vmem:[#allocation2 + $0x8] sm:$0xff] %vm81_vm0, %v14596_v2  ;;  %10044 = vmatprep.mubr.msk.f32.mxu0 %vm1375_vm4, %v5546_v42  ;;  %5416 = vrot.lane.b32.xlu1 %v9163_v7, %s10310_s30  ;;  %6321 = vst.msk [vmem:[#allocation2] sm:$0xff] %vm81_vm0, %v14602_v11  ;;  %v14840_v7 = vld [vmem:[%s16422_s0 + $0xe1] sm:$0xff] }
 0x5d1   :  { %5486 = vst.msk [vmem:[#allocation2 + $0x20] sm:$0xff] %vm1236_vm3, %v5299_v36  ;;  %5414 = vrot.lane.b32.xlu0 %v9162_v55, %s10310_s30  ;;  %10045 = vmatmul.mubr.msk.f32.vlgmr.msra.gmra.mrb[64].mxu0 %vm1375_vm4, %v5547_v30  ;;  %v14845_v55 = vld [vmem:[%s16422_s0 + $0xd9] sm:$0xff] }
 0x5d2   :  { %v5305_v50 = vpop.permute.xlu1 %5304  ;;  %v5549_v21 = vld [vmem:[#allocation2 + $0x18] sm:$0xff] }
 0x5d3   :  { %v5303_v62 = vpop.permute.xlu0 %5302  ;;  %5489 = vst.msk [vmem:[#allocation2 + $0x38] sm:$0xff] %vm1236_vm3, %v5305_v50  ;;  %v5548_v43 = vld [vmem:[#allocation2 + $0x10] sm:$0xff]  ;;  %v14850_v36 = vld [vmem:[%s16422_s0 + $0xfa] sm:$0xff] }
 0x5d4   :  { %6324 = vst.msk [vmem:[#allocation2 + $0x18] sm:$0xff] %vm81_vm0, %v14626_v47  ;;  %10047 = vmatprep.mubr.msk.f32.mxu0 %vm1375_vm4, %v5548_v43  ;;  %6515 = vrot.lane.b32.xlu1 %v14616_v18, %s10308_s16  ;;  %6323 = vst.msk [vmem:[#allocation2 + $0x10] sm:$0xff] %vm81_vm0, %v14632_v12 }
 0x5d5   :  { %5488 = vst.msk [vmem:[#allocation2 + $0x30] sm:$0xff] %vm1236_vm3, %v5303_v62  ;;  %6513 = vrot.lane.b32.xlu0 %v14621_v38, %s10308_s16  ;;  %10048 = vmatmul.mubr.msk.f32.gmra.mrb[66].mxu0 %vm1375_vm4, %v5549_v21  ;;  %v14856_v21 = vld [vmem:[%s16422_s0 + $0xf2] sm:$0xff] }
 0x5d6   :  { %v5309_v34 = vpop.permute.xlu1 %5308  ;;  %v5551_v59 = vld [vmem:[#allocation2 + $0x28] sm:$0xff]  ;;  %v14872_v62 = vld [vmem:[%s16422_s0 + $0xf9] sm:$0xff] }
 0x5d7   :  { %v5307_v22 = vpop.permute.xlu0 %5306  ;;  %5491 = vst.msk [vmem:[#allocation2 + $0x48] sm:$0xff] %vm1236_vm3, %v5309_v34  ;;  %v14877_v34 = vld [vmem:[%s16422_s0 + $0xf1] sm:$0xff] }
 0x5d8   :  { %v5550_v13 = vld [vmem:[#allocation2 + $0x20] sm:$0xff]  ;;  %6326 = vst.msk [vmem:[#allocation2 + $0x28] sm:$0xff] %vm81_vm0, %v14658_v8  ;;  %6519 = vrot.lane.b32.xlu1 %v14648_v16, %s10308_s16 }
 0x5d9   :  { %5490 = vst.msk [vmem:[#allocation2 + $0x40] sm:$0xff] %vm1236_vm3, %v5307_v22  ;;  %10050 = vmatprep.mubr.msk.f32.mxu0 %vm1375_vm4, %v5550_v13  ;;  %6517 = vrot.lane.b32.xlu0 %v14653_v35, %s10308_s16  ;;  %v14882_v22 = vld [vmem:[%s16422_s0 + $0x112] sm:$0xff] }
 0x5da   :  { %6325 = vst.msk [vmem:[#allocation2 + $0x20] sm:$0xff] %vm81_vm0, %v14664_v40  ;;  %10051 = vmatmul.mubr.msk.f32.gmra.mrb[68].mxu0 %vm1375_vm4, %v5551_v59  ;;  %v5313_v37 = vpop.permute.xlu1 %5312  ;;  %v5553_v29 = vld [vmem:[#allocation2 + $0x38] sm:$0xff] }
 0x5db   :  { %v5311_v57 = vpop.permute.xlu0 %5310  ;;  %5493 = vst.msk [vmem:[#allocation2 + $0x58] sm:$0xff] %vm1236_vm3, %v5313_v37 }
 0x5dc   :  { %v5552_v48 = vld [vmem:[#allocation2 + $0x30] sm:$0xff]  ;;  %6328 = vst.msk [vmem:[#allocation2 + $0x38] sm:$0xff] %vm81_vm0, %v14690_v1  ;;  %6523 = vrot.lane.b32.xlu1 %v14680_v41, %s10308_s16 }
 0x5dd   :  { %5492 = vst.msk [vmem:[#allocation2 + $0x50] sm:$0xff] %vm1236_vm3, %v5311_v57  ;;  %10053 = vmatprep.mubr.msk.f32.mxu0 %vm1375_vm4, %v5552_v48  ;;  %6521 = vrot.lane.b32.xlu0 %v14685_v10, %s10308_s16  ;;  %v14904_v57 = vld [vmem:[%s16422_s0 + $0x111] sm:$0xff] }
 0x5de   :  { %6327 = vst.msk [vmem:[#allocation2 + $0x30] sm:$0xff] %vm81_vm0, %v14696_v33  ;;  %10054 = vmatmul.mubr.msk.f32.gmra.mrb[70].mxu0 %vm1375_vm4, %v5553_v29  ;;  %v5317_v0 = vpop.permute.xlu1 %5316  ;;  %v5555_v44 = vld [vmem:[#allocation2 + $0x48] sm:$0xff] }
 0x5df   :  { %v5315_v23 = vpop.permute.xlu0 %5314  ;;  %5495 = vst.msk [vmem:[#allocation2 + $0x68] sm:$0xff] %vm1236_vm3, %v5317_v0  ;;  %v14888_v29 = vld [vmem:[%s16422_s0 + $0x10a] sm:$0xff] }
 0x5e0   :  { %v5554_v49 = vld [vmem:[#allocation2 + $0x40] sm:$0xff]  ;;  %6330 = vst.msk [vmem:[#allocation2 + $0x48] sm:$0xff] %vm81_vm0, %v14722_v58  ;;  %6527 = vrot.lane.b32.xlu1 %v14712_v51, %s10308_s16  ;;  %v14909_v0 = vld [vmem:[%s16422_s0 + $0x109] sm:$0xff] }
 0x5e1   :  { %5494 = vst.msk [vmem:[#allocation2 + $0x60] sm:$0xff] %vm1236_vm3, %v5315_v23  ;;  %10056 = vmatprep.mubr.msk.f32.mxu0 %vm1375_vm4, %v5554_v49  ;;  %6525 = vrot.lane.b32.xlu0 %v14717_v24, %s10308_s16  ;;  %v14914_v23 = vld [vmem:[%s16422_s0 + $0x12a] sm:$0xff] }
 0x5e2   :  { %6329 = vst.msk [vmem:[#allocation2 + $0x40] sm:$0xff] %vm81_vm0, %v14728_v60  ;;  %10057 = vmatmul.mubr.msk.f32.gmra.mrb[72].mxu0 %vm1375_vm4, %v5555_v44  ;;  %v5321_v19 = vpop.permute.xlu1 %5320  ;;  %v5557_v56 = vld [vmem:[#allocation2 + $0x58] sm:$0xff] }
 0x5e3   :  { %v5319_v25 = vpop.permute.xlu0 %5318  ;;  %5497 = vst.msk [vmem:[#allocation2 + $0x78] sm:$0xff] %vm1236_vm3, %v5321_v19 }
 0x5e4   :  { %v5556_v53 = vld [vmem:[#allocation2 + $0x50] sm:$0xff]  ;;  %6332 = vst.msk [vmem:[#allocation2 + $0x58] sm:$0xff] %vm81_vm0, %v14754_v4  ;;  %6531 = vrot.lane.b32.xlu1 %v14744_v27, %s10308_s16 }
 0x5e5   :  { %5496 = vst.msk [vmem:[#allocation2 + $0x70] sm:$0xff] %vm1236_vm3, %v5319_v25  ;;  %10059 = vmatprep.mubr.msk.f32.mxu0 %vm1375_vm4, %v5556_v53  ;;  %6529 = vrot.lane.b32.xlu0 %v14749_v39, %s10308_s16  ;;  %v14936_v25 = vld [vmem:[%s16422_s0 + $0x129] sm:$0xff]  ;;  %v9488_v53 = vld [vmem:[%s16423_s1 + $0x60] sm:$0xff] }
 0x5e6   :  { %6331 = vst.msk [vmem:[#allocation2 + $0x50] sm:$0xff] %vm81_vm0, %v14760_v20  ;;  %10060 = vmatmul.mubr.msk.f32.gmra.mrb[74].mxu0 %vm1375_vm4, %v5557_v56  ;;  %v5325_v28 = vpop.permute.xlu1 %5324  ;;  %v5559_v6 = vld [vmem:[#allocation2 + $0x68] sm:$0xff] }
 0x5e7   :  { %v5323_v45 = vpop.permute.xlu0 %5322  ;;  %5499 = vst.msk [vmem:[#allocation2 + $0x88] sm:$0xff] %vm1236_vm3, %v5325_v28  ;;  %v14920_v56 = vld [vmem:[%s16422_s0 + $0x122] sm:$0xff] }
 0x5e8   :  { %v5558_v9 = vld [vmem:[#allocation2 + $0x60] sm:$0xff]  ;;  %6334 = vst.msk [vmem:[#allocation2 + $0x68] sm:$0xff] %vm81_vm0, %v14786_v26  ;;  %6535 = vrot.lane.b32.xlu1 %v14776_v17, %s10308_s16  ;;  %v9489_v28 = vld [vmem:[%s16423_s1 + $0x68] sm:$0xff] }
 0x5e9   :  { %5498 = vst.msk [vmem:[#allocation2 + $0x80] sm:$0xff] %vm1236_vm3, %v5323_v45  ;;  %10062 = vmatprep.mubr.msk.f32.mxu0 %vm1375_vm4, %v5558_v9  ;;  %6533 = vrot.lane.b32.xlu0 %v14781_v15, %s10308_s16  ;;  %v14947_v45 = vld [vmem:[%s16422_s0 + $0x121] sm:$0xff] }
 0x5ea   :  { %6333 = vst.msk [vmem:[#allocation2 + $0x60] sm:$0xff] %vm81_vm0, %v14792_v61  ;;  %10063 = vmatmul.mubr.msk.f32.gmra.mrb[76].mxu0 %vm1375_vm4, %v5559_v6  ;;  %v5329_v63 = vpop.permute.xlu1 %5328  ;;  %v5561_v5 = vld [vmem:[#allocation2 + $0x78] sm:$0xff] }
 0x5eb   :  { %v5327_v14 = vpop.permute.xlu0 %5326  ;;  %5501 = vst.msk [vmem:[#allocation2 + $0x98] sm:$0xff] %vm1236_vm3, %v5329_v63  ;;  %v14952_v63 = vld [vmem:[%s16422_s0 + $0x142] sm:$0xff] }
 0x5ec   :  { %v5560_v3 = vld [vmem:[#allocation2 + $0x70] sm:$0xff]  ;;  %6336 = vst.msk [vmem:[#allocation2 + $0x78] sm:$0xff] %vm81_vm0, %v14818_v31  ;;  %6539 = vrot.lane.b32.xlu1 %v14808_v46, %s10308_s16 }
 0x5ed   :  { %5500 = vst.msk [vmem:[#allocation2 + $0x90] sm:$0xff] %vm1236_vm3, %v5327_v14  ;;  %10065 = vmatprep.mubr.msk.f32.mxu0 %vm1375_vm4, %v5560_v3  ;;  %6537 = vrot.lane.b32.xlu0 %v14813_v32, %s10308_s16 }
 0x5ee   :  { %6335 = vst.msk [vmem:[#allocation2 + $0x70] sm:$0xff] %vm81_vm0, %v14824_v52  ;;  %10066 = vmatmul.mubr.msk.f32.gmra.mrb[78].mxu0 %vm1375_vm4, %v5561_v5  ;;  %v5333_v54 = vpop.permute.xlu1 %5332  ;;  %v5563_v30 = vld [vmem:[#allocation2 + $0x88] sm:$0xff]  ;;  %v10268_v5 = vpack.c.bf16 %v9489_v28, %v9488_v53  ;;  %v9424_v53 = vld [vmem:[%s16422_s0 + $0x19] sm:$0xff] }
 0x5ef   :  { %v5331_v42 = vpop.permute.xlu0 %5330  ;;  %5503 = vst.msk [vmem:[#allocation2 + $0xa8] sm:$0xff] %vm1236_vm3, %v5333_v54  ;;  %v14958_v54 = vld [vmem:[%s16422_s0 + $0x13a] sm:$0xff] }
 0x5f0   :  { %v5562_v50 = vld [vmem:[#allocation2 + $0x80] sm:$0xff]  ;;  %6338 = vst.msk [vmem:[#allocation2 + $0x88] sm:$0xff] %vm81_vm0, %v14850_v36  ;;  %6543 = vrot.lane.b32.xlu1 %v14840_v7, %s10308_s16  ;;  %10269 = vmatprep.subr.bf16.mxu1 %v10268_v5 }
 0x5f1   :  { %5502 = vst.msk [vmem:[#allocation2 + $0xa0] sm:$0xff] %vm1236_vm3, %v5331_v42  ;;  %10068 = vmatprep.mubr.msk.f32.mxu0 %vm1375_vm4, %v5562_v50  ;;  %6541 = vrot.lane.b32.xlu0 %v14845_v55, %s10308_s16  ;;  %v9490_v42 = vld [vmem:[%s16423_s1 + $0x70] sm:$0xff]  ;;  %v9491_v50 = vld [vmem:[%s16423_s1 + $0x78] sm:$0xff] }
 0x5f2   :  { %6337 = vst.msk [vmem:[#allocation2 + $0x80] sm:$0xff] %vm81_vm0, %v14856_v21  ;;  %10069 = vmatmul.mubr.msk.f32.gmra.mrb[80].mxu0 %vm1375_vm4, %v5563_v30  ;;  %v5337_v43 = vpop.permute.xlu1 %5336  ;;  %v5565_v59 = vld [vmem:[#allocation2 + $0x98] sm:$0xff]  ;;  %10271 = vmatpush3.bf16.msra.mxu1 %v10268_v5 }
 0x5f3   :  { %v5335_v13 = vpop.permute.xlu0 %5334  ;;  %5505 = vst.msk [vmem:[#allocation2 + $0xb8] sm:$0xff] %vm1236_vm3, %v5337_v43  ;;  %v9360_v30 = vld [vmem:[%s16422_s0 + $0x1a] sm:$0xff]  ;;  %v15015_v5 = vld [vmem:[%s16422_s0 + $0x172] sm:$0xff] }
 0x5f4   :  { %v5564_v37 = vld [vmem:[#allocation2 + $0x90] sm:$0xff]  ;;  %6340 = vst.msk [vmem:[#allocation2 + $0x98] sm:$0xff] %vm81_vm0, %v14882_v22  ;;  %6547 = vrot.lane.b32.xlu1 %v14872_v62, %s10308_s16 }
 0x5f5   :  { %5504 = vst.msk [vmem:[#allocation2 + $0xb0] sm:$0xff] %vm1236_vm3, %v5335_v13  ;;  %10071 = vmatprep.mubr.msk.f32.mxu0 %vm1375_vm4, %v5564_v37  ;;  %6545 = vrot.lane.b32.xlu0 %v14877_v34, %s10308_s16  ;;  %v14988_v37 = vld [vmem:[%s16422_s0 + $0x15a] sm:$0xff] }
 0x5f6   :  { %6339 = vst.msk [vmem:[#allocation2 + $0x90] sm:$0xff] %vm81_vm0, %v14888_v29  ;;  %10072 = vmatmul.mubr.msk.f32.gmra.mrb[82].mxu0 %vm1375_vm4, %v5565_v59  ;;  %v5341_v48 = vpop.permute.xlu1 %5340  ;;  %v5567_v44 = vld [vmem:[#allocation2 + $0xa8] sm:$0xff]  ;;  %v14983_v59 = vld [vmem:[%s16422_s0 + $0x139] sm:$0xff] }
 0x5f7   :  { %v5339_v49 = vpop.permute.xlu0 %5338  ;;  %5507 = vst.msk [vmem:[#allocation2 + $0xc8] sm:$0xff] %vm1236_vm3, %v5341_v48  ;;  %v10272_v48 = vpack.c.bf16 %v9491_v50, %v9490_v42  ;;  %v9425_v50 = vld [vmem:[%s16422_s0 + $0x21] sm:$0xff] }
 0x5f8   :  { %v5566_v19 = vld [vmem:[#allocation2 + $0xa0] sm:$0xff]  ;;  %6342 = vst.msk [vmem:[#allocation2 + $0xa8] sm:$0xff] %vm81_vm0, %v14914_v23  ;;  %6551 = vrot.lane.b32.xlu1 %v14904_v57, %s10308_s16 }
 0x5f9   :  { %5506 = vst.msk [vmem:[#allocation2 + $0xc0] sm:$0xff] %vm1236_vm3, %v5339_v49  ;;  %10074 = vmatprep.mubr.msk.f32.mxu0 %vm1375_vm4, %v5566_v19  ;;  %6549 = vrot.lane.b32.xlu0 %v14909_v0, %s10308_s16  ;;  %v14994_v19 = vld [vmem:[%s16422_s0 + $0x152] sm:$0xff] }
 0x5fa   :  { %6341 = vst.msk [vmem:[#allocation2 + $0xa0] sm:$0xff] %vm81_vm0, %v14920_v56  ;;  %10075 = vmatmul.mubr.msk.f32.gmra.mrb[84].mxu0 %vm1375_vm4, %v5567_v44  ;;  %v5345_v6 = vpop.permute.xlu1 %5344  ;;  %v5569_v9 = vld [vmem:[#allocation2 + $0xb8] sm:$0xff]  ;;  %10273 = vmatprep.subr.bf16.mxu1 %v10272_v48 }
 0x5fb   :  { %v5343_v14 = vpop.permute.xlu0 %5342  ;;  %5509 = vst.msk [vmem:[#allocation2 + $0xd8] sm:$0xff] %vm1236_vm3, %v5345_v6  ;;  %v9361_v6 = vld [vmem:[%s16422_s0 + $0x22] sm:$0xff]  ;;  %10275 = vmatpush3.bf16.msra.mxu1 %v10272_v48 }
 0x5fc   :  { %v5568_v3 = vld [vmem:[#allocation2 + $0xb0] sm:$0xff]  ;;  %6344 = vst.msk [vmem:[#allocation2 + $0xb8] sm:$0xff] %vm81_vm0, %v14952_v63  ;;  %6555 = vrot.lane.b32.xlu1 %v14936_v25, %s10308_s16 }
 0x5fd   :  { %5508 = vst.msk [vmem:[#allocation2 + $0xd0] sm:$0xff] %vm1236_vm3, %v5343_v14  ;;  %10077 = vmatprep.mubr.msk.f32.mxu0 %vm1375_vm4, %v5568_v3  ;;  %6553 = vrot.lane.b32.xlu0 %v14947_v45, %s10308_s16 }
 0x5fe   :  { %6343 = vst.msk [vmem:[#allocation2 + $0xb0] sm:$0xff] %vm81_vm0, %v14958_v54  ;;  %10078 = vmatmul.mubr.msk.f32.gmra.mrb[86].mxu0 %vm1375_vm4, %v5569_v9  ;;  %v5349_v43 = vpop.permute.xlu1 %5348  ;;  %v5571_v13 = vld [vmem:[#allocation2 + $0xc8] sm:$0xff] }
 0x5ff   :  { %v5347_v44 = vpop.permute.xlu0 %5346  ;;  %5511 = vst.msk [vmem:[#allocation2 + $0xe8] sm:$0xff] %vm1236_vm3, %v5349_v43 }
 0x600   :  { %v5570_v49 = vld [vmem:[#allocation2 + $0xc0] sm:$0xff]  ;;  %6346 = vst.msk [vmem:[#allocation2 + $0xc8] sm:$0xff] %vm81_vm0, %v14988_v37  ;;  %6897 = vrot.lane.b32.xlu1 %v9360_v30, %s10309_s12  ;;  %v15021_v30 = vld [vmem:[%s16422_s0 + $0x16a] sm:$0xff] }
 0x601   :  { %5510 = vst.msk [vmem:[#allocation2 + $0xe0] sm:$0xff] %vm1236_vm3, %v5347_v44  ;;  %10080 = vmatprep.mubr.msk.f32.mxu0 %vm1375_vm4, %v5570_v49  ;;  %6557 = vrot.lane.b32.xlu0 %v14983_v59, %s10308_s16 }
 0x602   :  { %6345 = vst.msk [vmem:[#allocation2 + $0xc0] sm:$0xff] %vm81_vm0, %v14994_v19  ;;  %10081 = vmatmul.mubr.msk.f32.gmra.mrb[88].mxu0 %vm1375_vm4, %v5571_v13  ;;  %v5353_v28 = vpop.permute.xlu1 %5352  ;;  %v5573_v9 = vld [vmem:[#allocation2 + $0xd8] sm:$0xff] }
 0x603   :  { %v5351_v14 = vpop.permute.xlu0 %5350  ;;  %5513 = vst.msk [vmem:[#allocation2 + $0xf8] sm:$0xff] %vm1236_vm3, %v5353_v28 }
 0x604   :  { %v5572_v3 = vld [vmem:[#allocation2 + $0xd0] sm:$0xff]  ;;  %6348 = vst.msk [vmem:[#allocation2 + $0xd8] sm:$0xff] %vm81_vm0, %v15015_v5  ;;  %7281 = vrot.lane.b32.xlu1 %v9424_v53, %s10310_s30 }
 0x605   :  { %5512 = vst.msk [vmem:[#allocation2 + $0xf0] sm:$0xff] %vm1236_vm3, %v5351_v14  ;;  %10083 = vmatprep.mubr.msk.f32.mxu0 %vm1375_vm4, %v5572_v3  ;;  %6899 = vrot.lane.b32.xlu0 %v9361_v6, %s10309_s12  ;;  %v15058_v6 = vld [vmem:[%s16422_s0 + $0x18a] sm:$0xff] }
 0x606   :  { %6347 = vst.msk [vmem:[#allocation2 + $0xd0] sm:$0xff] %vm81_vm0, %v15021_v30  ;;  %10084 = vmatmul.mubr.msk.f32.gmra.mrb[90].mxu0 %vm1375_vm4, %v5573_v9  ;;  %v5357_v42 = vpop.permute.xlu1 %5356  ;;  %v5575_v43 = vld [vmem:[#allocation2 + $0xe8] sm:$0xff] }
 0x607   :  { %v5355_v13 = vpop.permute.xlu0 %5354  ;;  %5515 = vst.msk [vmem:[#allocation2 + $0x108] sm:$0xff] %vm1236_vm3, %v5357_v42 }
 0x608   :  { %v5574_v48 = vld [vmem:[#allocation2 + $0xe0] sm:$0xff]  ;;  %5514 = vst.msk [vmem:[#allocation2 + $0x100] sm:$0xff] %vm1236_vm3, %v5355_v13  ;;  %6901 = vrot.lane.b32.xlu1 %v14602_v11, %s10309_s12 }
 0x609   :  { %10086 = vmatprep.mubr.msk.f32.mxu0 %vm1375_vm4, %v5574_v48  ;;  %7283 = vrot.lane.b32.xlu0 %v9425_v50, %s10310_s30  ;;  %v15050_v11 = vld [vmem:[%s16422_s0 + $0x182] sm:$0xff]  ;;  %6350 = vst.msk [vmem:[#allocation2 + $0xe8] sm:$0xff] %vm81_vm0, %v15058_v6 }
 0x60a   :  { %10087 = vmatmul.mubr.msk.f32.gmra.mrb[92].mxu0 %vm1375_vm4, %v5575_v43  ;;  %v5361_v44 = vpop.permute.xlu1 %5360  ;;  %v5577_v49 = vld [vmem:[#allocation2 + $0xf8] sm:$0xff]  ;;  %6349 = vst.msk [vmem:[#allocation2 + $0xe0] sm:$0xff] %vm81_vm0, %v15050_v11 }
 0x60b   :  { %v5359_v53 = vpop.permute.xlu0 %5358  ;;  %5517 = vst.msk [vmem:[#allocation2 + $0x118] sm:$0xff] %vm1236_vm3, %v5361_v44 }
 0x60c   :  { %v5576_v28 = vld [vmem:[#allocation2 + $0xf0] sm:$0xff]  ;;  %5516 = vst.msk [vmem:[#allocation2 + $0x110] sm:$0xff] %vm1236_vm3, %v5359_v53  ;;  %7285 = vrot.lane.b32.xlu1 %v14621_v38, %s10310_s30 }
 0x60d   :  { %10089 = vmatprep.mubr.msk.f32.mxu0 %vm1375_vm4, %v5576_v28  ;;  %6903 = vrot.lane.b32.xlu0 %v14596_v2, %s10309_s12 }
 0x60e   :  { %10090 = vmatmul.mubr.msk.f32.gmra.mrb[94].mxu0 %vm1375_vm4, %v5577_v49  ;;  %v5365_v9 = vpop.permute.xlu1 %5364  ;;  %v5579_v38 = vld [vmem:[#allocation2 + $0x108] sm:$0xff] }
 0x60f   :  { %v5363_v14 = vpop.permute.xlu0 %5362  ;;  %5519 = vst.msk [vmem:[#allocation2 + $0x128] sm:$0xff] %vm1236_vm3, %v5365_v9  ;;  %v5578_v3 = vld [vmem:[#allocation2 + $0x100] sm:$0xff] }
 0x610   :  { %5518 = vst.msk [vmem:[#allocation2 + $0x120] sm:$0xff] %vm1236_vm3, %v5363_v14  ;;  %10092 = vmatprep.mubr.msk.f32.mxu0 %vm1375_vm4, %v5578_v3  ;;  %6905 = vrot.lane.b32.xlu1 %v14632_v12, %s10309_s12 }
 0x611   :  { %7287 = vrot.lane.b32.xlu0 %v14616_v18, %s10310_s30 }
 0x612   :  { %10093 = vmatmul.mubr.msk.f32.gmra.mrb[96].mxu0 %vm1375_vm4, %v5579_v38  ;;  %v5369_v2 = vpop.permute.xlu1 %5368  ;;  %v5581_v42 = vld [vmem:[#allocation2 + $0x118] sm:$0xff] }
 0x613   :  { %v5367_v50 = vpop.permute.xlu0 %5366  ;;  %5521 = vst.msk [vmem:[#allocation2 + $0x138] sm:$0xff] %vm1236_vm3, %v5369_v2  ;;  %v5580_v43 = vld [vmem:[#allocation2 + $0x110] sm:$0xff] }
 0x614   :  { %5520 = vst.msk [vmem:[#allocation2 + $0x130] sm:$0xff] %vm1236_vm3, %v5367_v50  ;;  %10095 = vmatprep.mubr.msk.f32.mxu0 %vm1375_vm4, %v5580_v43  ;;  %7289 = vrot.lane.b32.xlu1 %v14653_v35, %s10310_s30 }
 0x615   :  { %6907 = vrot.lane.b32.xlu0 %v14626_v47, %s10309_s12 }
 0x616   :  { %10096 = vmatmul.mubr.msk.f32.gmra.mrb[98].mxu0 %vm1375_vm4, %v5581_v42  ;;  %v5373_v18 = vpop.permute.xlu1 %5372  ;;  %v5583_v12 = vld [vmem:[#allocation2 + $0x128] sm:$0xff] }
 0x617   :  { %v5371_v13 = vpop.permute.xlu0 %5370  ;;  %5523 = vst.msk [vmem:[#allocation2 + $0x148] sm:$0xff] %vm1236_vm3, %v5373_v18  ;;  %v5582_v48 = vld [vmem:[#allocation2 + $0x120] sm:$0xff] }
 0x618   :  { %5522 = vst.msk [vmem:[#allocation2 + $0x140] sm:$0xff] %vm1236_vm3, %v5371_v13  ;;  %10098 = vmatprep.mubr.msk.f32.mxu0 %vm1375_vm4, %v5582_v48  ;;  %6909 = vrot.lane.b32.xlu1 %v14664_v40, %s10309_s12 }
 0x619   :  { %7291 = vrot.lane.b32.xlu0 %v14648_v16, %s10310_s30 }
 0x61a   :  { %10099 = vmatmul.mubr.msk.f32.gmra.mrb[100].mxu0 %vm1375_vm4, %v5583_v12  ;;  %v5377_v47 = vpop.permute.xlu1 %5376  ;;  %v5585_v35 = vld [vmem:[#allocation2 + $0x138] sm:$0xff] }
 0x61b   :  { %v5375_v44 = vpop.permute.xlu0 %5374  ;;  %5525 = vst.msk [vmem:[#allocation2 + $0x158] sm:$0xff] %vm1236_vm3, %v5377_v47  ;;  %v5584_v49 = vld [vmem:[#allocation2 + $0x130] sm:$0xff] }
 0x61c   :  { %5524 = vst.msk [vmem:[#allocation2 + $0x150] sm:$0xff] %vm1236_vm3, %v5375_v44  ;;  %10101 = vmatprep.mubr.msk.f32.mxu0 %vm1375_vm4, %v5584_v49  ;;  %7293 = vrot.lane.b32.xlu1 %v14685_v10, %s10310_s30 }
 0x61d   :  { %6911 = vrot.lane.b32.xlu0 %v14658_v8, %s10309_s12 }
 0x61e   :  { %10102 = vmatmul.mubr.msk.f32.gmra.mrb[102].mxu0 %vm1375_vm4, %v5585_v35  ;;  %v5381_v16 = vpop.permute.xlu1 %5380  ;;  %v5587_v40 = vld [vmem:[#allocation2 + $0x148] sm:$0xff] }
 0x61f   :  { %v5379_v53 = vpop.permute.xlu0 %5378  ;;  %5527 = vst.msk [vmem:[#allocation2 + $0x168] sm:$0xff] %vm1236_vm3, %v5381_v16  ;;  %v5586_v28 = vld [vmem:[#allocation2 + $0x140] sm:$0xff] }
 0x620   :  { %5526 = vst.msk [vmem:[#allocation2 + $0x160] sm:$0xff] %vm1236_vm3, %v5379_v53  ;;  %10104 = vmatprep.mubr.msk.f32.mxu0 %vm1375_vm4, %v5586_v28  ;;  %6913 = vrot.lane.b32.xlu1 %v14696_v33, %s10309_s12  ;;  %v15112_v33 = vld [vmem:[%s16422_s0 + $0x1e2] sm:$0xff] }
 0x621   :  { %7295 = vrot.lane.b32.xlu0 %v14680_v41, %s10310_s30  ;;  %v15120_v41 = vld [vmem:[%s16422_s0 + $0x1ea] sm:$0xff]  ;;  %6353 = vst.msk [vmem:[#allocation2 + $0x100] sm:$0xff] %vm81_vm0, %v15112_v33 }
 0x622   :  { %10105 = vmatmul.mubr.msk.f32.gmra.mrb[104].mxu0 %vm1375_vm4, %v5587_v40  ;;  %v5385_v8 = vpop.permute.xlu1 %5384  ;;  %v5589_v10 = vld [vmem:[#allocation2 + $0x158] sm:$0xff]  ;;  %6354 = vst.msk [vmem:[#allocation2 + $0x108] sm:$0xff] %vm81_vm0, %v15120_v41 }
 0x623   :  { %v5383_v9 = vpop.permute.xlu0 %5382  ;;  %5529 = vst.msk [vmem:[#allocation2 + $0x178] sm:$0xff] %vm1236_vm3, %v5385_v8  ;;  %v5588_v38 = vld [vmem:[#allocation2 + $0x150] sm:$0xff] }
 0x624   :  { %5528 = vst.msk [vmem:[#allocation2 + $0x170] sm:$0xff] %vm1236_vm3, %v5383_v9  ;;  %10107 = vmatprep.mubr.msk.f32.mxu0 %vm1375_vm4, %v5588_v38  ;;  %7297 = vrot.lane.b32.xlu1 %v14717_v24, %s10310_s30 }
 0x625   :  { %6915 = vrot.lane.b32.xlu0 %v14690_v1, %s10309_s12 }
 0x626   :  { %10108 = vmatmul.mubr.msk.f32.gmra.mrb[106].mxu0 %vm1375_vm4, %v5589_v10  ;;  %v5389_v14 = vpop.permute.xlu1 %5388  ;;  %v5591_v24 = vld [vmem:[#allocation2 + $0x168] sm:$0xff] }
 0x627   :  { %v5387_v3 = vpop.permute.xlu0 %5386  ;;  %5531 = vst.msk [vmem:[#allocation2 + $0x188] sm:$0xff] %vm1236_vm3, %v5389_v14  ;;  %v5590_v2 = vld [vmem:[#allocation2 + $0x160] sm:$0xff] }
 0x628   :  { %5530 = vst.msk [vmem:[#allocation2 + $0x180] sm:$0xff] %vm1236_vm3, %v5387_v3  ;;  %10110 = vmatprep.mubr.msk.f32.mxu0 %vm1375_vm4, %v5590_v2  ;;  %6917 = vrot.lane.b32.xlu1 %v14728_v60, %s10309_s12 }
 0x629   :  { %7299 = vrot.lane.b32.xlu0 %v14712_v51, %s10310_s30 }
 0x62a   :  { %10111 = vmatmul.mubr.msk.f32.gmra.mrb[108].mxu0 %vm1375_vm4, %v5591_v24  ;;  %v5393_v1 = vpop.permute.xlu1 %5392  ;;  %v5593_v42 = vld [vmem:[#allocation2 + $0x178] sm:$0xff] }
 0x62b   :  { %v5391_v50 = vpop.permute.xlu0 %5390  ;;  %5533 = vst.msk [vmem:[#allocation2 + $0x198] sm:$0xff] %vm1236_vm3, %v5393_v1  ;;  %v5592_v43 = vld [vmem:[#allocation2 + $0x170] sm:$0xff] }
 0x62c   :  { %5532 = vst.msk [vmem:[#allocation2 + $0x190] sm:$0xff] %vm1236_vm3, %v5391_v50  ;;  %10113 = vmatprep.mubr.msk.f32.mxu0 %vm1375_vm4, %v5592_v43  ;;  %7301 = vrot.lane.b32.xlu1 %v14749_v39, %s10310_s30  ;;  %v15150_v39 = vld [vmem:[%s16422_s0 + $0x1fa] sm:$0xff] }
 0x62d   :  { %6919 = vrot.lane.b32.xlu0 %v14722_v58, %s10309_s12  ;;  %v15158_v58 = vld [vmem:[%s16422_s0 + $0x202] sm:$0xff]  ;;  %6355 = vst.msk [vmem:[#allocation2 + $0x110] sm:$0xff] %vm81_vm0, %v15150_v39 }
 0x62e   :  { %10114 = vmatmul.mubr.msk.f32.gmra.mrb[110].mxu0 %vm1375_vm4, %v5593_v42  ;;  %v5397_v51 = vpop.permute.xlu1 %5396  ;;  %v5595_v60 = vld [vmem:[#allocation2 + $0x188] sm:$0xff]  ;;  %6356 = vst.msk [vmem:[#allocation2 + $0x118] sm:$0xff] %vm81_vm0, %v15158_v58 }
 0x62f   :  { %v5395_v18 = vpop.permute.xlu0 %5394  ;;  %5535 = vst.msk [vmem:[#allocation2 + $0x1a8] sm:$0xff] %vm1236_vm3, %v5397_v51  ;;  %v5594_v12 = vld [vmem:[#allocation2 + $0x180] sm:$0xff] }
 0x630   :  { %5534 = vst.msk [vmem:[#allocation2 + $0x1a0] sm:$0xff] %vm1236_vm3, %v5395_v18  ;;  %10116 = vmatprep.mubr.msk.f32.mxu0 %vm1375_vm4, %v5594_v12  ;;  %6921 = vrot.lane.b32.xlu1 %v14760_v20, %s10309_s12  ;;  %v9320_v12 = vld [vmem:[%s16422_s0 + $0x151] sm:$0xff] }
 0x631   :  { %7303 = vrot.lane.b32.xlu0 %v14744_v27, %s10310_s30 }
 0x632   :  { %10117 = vmatmul.mubr.msk.f32.gmra.mrb[112].mxu0 %vm1375_vm4, %v5595_v60  ;;  %v5401_v13 = vpop.permute.xlu1 %5400  ;;  %v5597_v20 = vld [vmem:[#allocation2 + $0x198] sm:$0xff] }
 0x633   :  { %v5399_v48 = vpop.permute.xlu0 %5398  ;;  %5537 = vst.msk [vmem:[#allocation2 + $0x1b8] sm:$0xff] %vm1236_vm3, %v5401_v13  ;;  %v5596_v47 = vld [vmem:[#allocation2 + $0x190] sm:$0xff] }
 0x634   :  { %5536 = vst.msk [vmem:[#allocation2 + $0x1b0] sm:$0xff] %vm1236_vm3, %v5399_v48  ;;  %10119 = vmatprep.mubr.msk.f32.mxu0 %vm1375_vm4, %v5596_v47  ;;  %7305 = vrot.lane.b32.xlu1 %v14781_v15, %s10310_s30 }
 0x635   :  { %6923 = vrot.lane.b32.xlu0 %v14754_v4, %s10309_s12 }
 0x636   :  { %10120 = vmatmul.mubr.msk.f32.gmra.mrb[114].mxu0 %vm1375_vm4, %v5597_v20  ;;  %v5405_v27 = vpop.permute.xlu1 %5404  ;;  %v5599_v35 = vld [vmem:[#allocation2 + $0x1a8] sm:$0xff] }
 0x637   :  { %v5403_v44 = vpop.permute.xlu0 %5402  ;;  %5539 = vst.msk [vmem:[#allocation2 + $0x1c8] sm:$0xff] %vm1236_vm3, %v5405_v27  ;;  %v5598_v49 = vld [vmem:[#allocation2 + $0x1a0] sm:$0xff]  ;;  %v15330_v27 = vld [vmem:[%s16422_s0 + $0x272] sm:$0xff] }
 0x638   :  { %5538 = vst.msk [vmem:[#allocation2 + $0x1c0] sm:$0xff] %vm1236_vm3, %v5403_v44  ;;  %10122 = vmatprep.mubr.msk.f32.mxu0 %vm1375_vm4, %v5598_v49  ;;  %6925 = vrot.lane.b32.xlu1 %v14792_v61, %s10309_s12  ;;  %v15188_v61 = vld [vmem:[%s16422_s0 + $0x212] sm:$0xff]  ;;  %v9322_v44 = vld [vmem:[%s16422_s0 + $0x169] sm:$0xff] }
 0x639   :  { %7307 = vrot.lane.b32.xlu0 %v14776_v17, %s10310_s30  ;;  %v15196_v17 = vld [vmem:[%s16422_s0 + $0x21a] sm:$0xff]  ;;  %6357 = vst.msk [vmem:[#allocation2 + $0x120] sm:$0xff] %vm81_vm0, %v15188_v61  ;;  %6365 = vst.msk [vmem:[#allocation2 + $0x160] sm:$0xff] %vm81_vm0, %v15330_v27 }
 0x63a   :  { %10123 = vmatmul.mubr.msk.f32.gmra.mrb[116].mxu0 %vm1375_vm4, %v5599_v35  ;;  %v5409_v4 = vpop.permute.xlu1 %5408  ;;  %v5601_v15 = vld [vmem:[#allocation2 + $0x1b8] sm:$0xff]  ;;  %6358 = vst.msk [vmem:[#allocation2 + $0x128] sm:$0xff] %vm81_vm0, %v15196_v17 }
 0x63b   :  { %v5407_v16 = vpop.permute.xlu0 %5406  ;;  %5541 = vst.msk [vmem:[#allocation2 + $0x1d8] sm:$0xff] %vm1236_vm3, %v5409_v4  ;;  %v5600_v40 = vld [vmem:[#allocation2 + $0x1b0] sm:$0xff] }
 0x63c   :  { %5540 = vst.msk [vmem:[#allocation2 + $0x1d0] sm:$0xff] %vm1236_vm3, %v5407_v16  ;;  %10125 = vmatprep.mubr.msk.f32.mxu0 %vm1375_vm4, %v5600_v40  ;;  %7309 = vrot.lane.b32.xlu1 %v14813_v32, %s10310_s30  ;;  %v15365_v40 = vld [vmem:[%s16422_s0 + $0x28a] sm:$0xff] }
 0x63d   :  { %6927 = vrot.lane.b32.xlu0 %v14786_v26, %s10309_s12  ;;  %6367 = vst.msk [vmem:[#allocation2 + $0x170] sm:$0xff] %vm81_vm0, %v15365_v40 }
 0x63e   :  { %10126 = vmatmul.mubr.msk.f32.gmra.mrb[118].mxu0 %vm1375_vm4, %v5601_v15  ;;  %v5413_v53 = vpop.permute.xlu1 %5412  ;;  %v5603_v32 = vld [vmem:[#allocation2 + $0x1c8] sm:$0xff] }
 0x63f   :  { %v5411_v28 = vpop.permute.xlu0 %5410  ;;  %5543 = vst.msk [vmem:[#allocation2 + $0x1e8] sm:$0xff] %vm1236_vm3, %v5413_v53  ;;  %v5602_v8 = vld [vmem:[#allocation2 + $0x1c0] sm:$0xff] }
 0x640   :  { %5542 = vst.msk [vmem:[#allocation2 + $0x1e0] sm:$0xff] %vm1236_vm3, %v5411_v28  ;;  %10128 = vmatprep.mubr.msk.f32.mxu0 %vm1375_vm4, %v5602_v8  ;;  %6929 = vrot.lane.b32.xlu1 %v14824_v52, %s10309_s12  ;;  %v9262_v28 = vld [vmem:[%s16422_s0 + $0x19a] sm:$0xff] }
 0x641   :  { %7311 = vrot.lane.b32.xlu0 %v14808_v46, %s10310_s30  ;;  %6351 = vst.msk [vmem:[#allocation2 + $0xf0] sm:$0xff] %vm81_vm0, %v9262_v28 }
 0x642   :  { %10129 = vmatmul.mubr.msk.f32.gmra.mrb[120].mxu0 %vm1375_vm4, %v5603_v32  ;;  %v5417_v26 = vpop.permute.xlu1 %5416  ;;  %v5605_v10 = vld [vmem:[#allocation2 + $0x1d8] sm:$0xff]  ;;  %v9324_v32 = vld [vmem:[%s16422_s0 + $0x181] sm:$0xff] }
 0x643   :  { %v5415_v9 = vpop.permute.xlu0 %5414  ;;  %5545 = vst.msk [vmem:[#allocation2 + $0x1f8] sm:$0xff] %vm1236_vm3, %v5417_v26  ;;  %v5604_v38 = vld [vmem:[#allocation2 + $0x1d0] sm:$0xff]  ;;  %v9263_v26 = vld [vmem:[%s16422_s0 + $0x1a2] sm:$0xff] }
 0x644   :  { %5544 = vst.msk [vmem:[#allocation2 + $0x1f0] sm:$0xff] %vm1236_vm3, %v5415_v9  ;;  %10131 = vmatprep.mubr.msk.f32.mxu0 %vm1375_vm4, %v5604_v38  ;;  %7313 = vrot.lane.b32.xlu1 %v14845_v55, %s10310_s30  ;;  %v15226_v55 = vld [vmem:[%s16422_s0 + $0x22a] sm:$0xff] }
 0x645   :  { %6931 = vrot.lane.b32.xlu0 %v14818_v31, %s10309_s12  ;;  %v15234_v31 = vld [vmem:[%s16422_s0 + $0x232] sm:$0xff]  ;;  %6359 = vst.msk [vmem:[#allocation2 + $0x130] sm:$0xff] %vm81_vm0, %v15226_v55  ;;  %6352 = vst.msk [vmem:[#allocation2 + $0xf8] sm:$0xff] %vm81_vm0, %v9263_v26  ;;  %v15536_v26 = vld [vmem:[%s16424_s2] ss:$0 sm:$0xff] }
 0x646   :  { %10132 = vmatmul.mubr.msk.f32.gmra.mrb[122].mxu0 %vm1375_vm4, %v5605_v10  ;;  %v6516_v46 = vpop.permute.xlu1 %6515  ;;  %v5607_v52 = vld [vmem:[#allocation2 + $0x1e8] sm:$0xff]  ;;  %6360 = vst.msk [vmem:[#allocation2 + $0x138] sm:$0xff] %vm81_vm0, %v15234_v31 }
 0x647   :  { %v6514_v14 = vpop.permute.xlu0 %6513  ;;  %6706 = vst.msk [vmem:[#allocation2 + $0x8] sm:$0xff] %vm466_vm1, %v6516_v46  ;;  %v5606_v24 = vld [vmem:[#allocation2 + $0x1e0] sm:$0xff] }
 0x648   :  { %6705 = vst.msk [vmem:[#allocation2] sm:$0xff] %vm466_vm1, %v6514_v14  ;;  %10134 = vmatprep.mubr.msk.f32.mxu0 %vm1375_vm4, %v5606_v24  ;;  %6933 = vrot.lane.b32.xlu1 %v14856_v21, %s10309_s12  ;;  %v15409_v24 = vld [vmem:[%s16422_s0 + $0x2a2] sm:$0xff] }
 0x649   :  { %7315 = vrot.lane.b32.xlu0 %v14840_v7, %s10310_s30  ;;  %6369 = vst.msk [vmem:[#allocation2 + $0x180] sm:$0xff] %vm81_vm0, %v15409_v24 }
 0x64a   :  { %10135 = vmatmul.mubr.msk.f32.gmra.mrb[124].mxu0 %vm1375_vm4, %v5607_v52  ;;  %v6520_v3 = vpop.permute.xlu1 %6519  ;;  %v5609_v21 = vld [vmem:[#allocation2 + $0x1f8] sm:$0xff] }
 0x64b   :  { %v6518_v2 = vpop.permute.xlu0 %6517  ;;  %6708 = vst.msk [vmem:[#allocation2 + $0x18] sm:$0xff] %vm466_vm1, %v6520_v3  ;;  %v5608_v1 = vld [vmem:[#allocation2 + $0x1f0] sm:$0xff] }
 0x64c   :  { %6707 = vst.msk [vmem:[#allocation2 + $0x10] sm:$0xff] %vm466_vm1, %v6518_v2  ;;  %10137 = vmatprep.mubr.msk.f32.mxu0 %vm1375_vm4, %v5608_v1  ;;  %7317 = vrot.lane.b32.xlu1 %v14877_v34, %s10310_s30  ;;  %v15271_v34 = vld [vmem:[%s16422_s0 + $0x24a] sm:$0xff] }
 0x64d   :  { %6935 = vrot.lane.b32.xlu0 %v14850_v36, %s10309_s12  ;;  %v15261_v36 = vld [vmem:[%s16422_s0 + $0x242] sm:$0xff]  ;;  %6362 = vst.msk [vmem:[#allocation2 + $0x148] sm:$0xff] %vm81_vm0, %v15271_v34 }
 0x64e   :  { %10138 = vmatmul.mubr.msk.f32.gmra.mrb[126].mxu0 %vm1375_vm4, %v5609_v21  ;;  %v6524_v7 = vpop.permute.xlu1 %6523  ;;  %6361 = vst.msk [vmem:[#allocation2 + $0x140] sm:$0xff] %vm81_vm0, %v15261_v36  ;;  %v9326_v21 = vld [vmem:[%s16422_s0 + $0x199] sm:$0xff] }
 0x64f   :  { %v6522_v42 = vpop.permute.xlu0 %6521  ;;  %6710 = vst.msk [vmem:[#allocation2 + $0x28] sm:$0xff] %vm466_vm1, %v6524_v7 }
 0x650   :  { %6709 = vst.msk [vmem:[#allocation2 + $0x20] sm:$0xff] %vm466_vm1, %v6522_v42  ;;  %6937 = vrot.lane.b32.xlu1 %v14888_v29, %s10309_s12 }
 0x651   :  { %7319 = vrot.lane.b32.xlu0 %v14872_v62, %s10310_s30  ;;  %v9319_v62 = vld [vmem:[%s16422_s0 + $0x141] sm:$0xff] }
 0x652   :  { %v6528_v50 = vpop.permute.xlu1 %6527 }
 0x653   :  { %v6526_v43 = vpop.permute.xlu0 %6525  ;;  %6712 = vst.msk [vmem:[#allocation2 + $0x38] sm:$0xff] %vm466_vm1, %v6528_v50 }
 0x654   :  { %6711 = vst.msk [vmem:[#allocation2 + $0x30] sm:$0xff] %vm466_vm1, %v6526_v43  ;;  %7321 = vrot.lane.b32.xlu1 %v14909_v0, %s10310_s30 }
 0x655   :  { %6939 = vrot.lane.b32.xlu0 %v14882_v22, %s10309_s12 }
 0x656   :  { %v6532_v29 = vpop.permute.xlu1 %6531 }
 0x657   :  { %v6530_v0 = vpop.permute.xlu0 %6529  ;;  %6714 = vst.msk [vmem:[#allocation2 + $0x48] sm:$0xff] %vm466_vm1, %v6532_v29 }
 0x658   :  { %6713 = vst.msk [vmem:[#allocation2 + $0x40] sm:$0xff] %vm466_vm1, %v6530_v0  ;;  %6559 = vrot.lane.b32.xlu1 %v9319_v62, %s10308_s16  ;;  %v15446_v0 = vld [vmem:[%s16422_s0 + $0x2ba] sm:$0xff] }
 0x659   :  { %7323 = vrot.lane.b32.xlu0 %v14904_v57, %s10310_s30  ;;  %v15295_v57 = vld [vmem:[%s16422_s0 + $0x25a] sm:$0xff]  ;;  %6371 = vst.msk [vmem:[#allocation2 + $0x190] sm:$0xff] %vm81_vm0, %v15446_v0 }
 0x65a   :  { %v6536_v22 = vpop.permute.xlu1 %6535  ;;  %6363 = vst.msk [vmem:[#allocation2 + $0x150] sm:$0xff] %vm81_vm0, %v15295_v57 }
 0x65b   :  { %v6534_v51 = vpop.permute.xlu0 %6533  ;;  %6716 = vst.msk [vmem:[#allocation2 + $0x58] sm:$0xff] %vm466_vm1, %v6536_v22 }
 0x65c   :  { %6715 = vst.msk [vmem:[#allocation2 + $0x50] sm:$0xff] %vm466_vm1, %v6534_v51  ;;  %6943 = vrot.lane.b32.xlu1 %v14914_v23, %s10309_s12  ;;  %v9321_v23 = vld [vmem:[%s16422_s0 + $0x159] sm:$0xff]  ;;  %v15464_v51 = vld [vmem:[%s16422_s0 + $0x1e1] sm:$0xff] }
 0x65d   :  { %6941 = vrot.lane.b32.xlu0 %v14920_v56, %s10309_s12  ;;  %v15305_v56 = vld [vmem:[%s16422_s0 + $0x262] sm:$0xff] }
 0x65e   :  { %v6540_v60 = vpop.permute.xlu1 %6539  ;;  %6364 = vst.msk [vmem:[#allocation2 + $0x158] sm:$0xff] %vm81_vm0, %v15305_v56 }
 0x65f   :  { %v6538_v18 = vpop.permute.xlu0 %6537  ;;  %6718 = vst.msk [vmem:[#allocation2 + $0x68] sm:$0xff] %vm466_vm1, %v6540_v60 }
 0x660   :  { %6717 = vst.msk [vmem:[#allocation2 + $0x60] sm:$0xff] %vm466_vm1, %v6538_v18  ;;  %7327 = vrot.lane.b32.xlu1 %v14936_v25, %s10310_s30 }
 0x661   :  { %7325 = vrot.lane.b32.xlu0 %v14947_v45, %s10310_s30 }
 0x662   :  { %v6544_v25 = vpop.permute.xlu1 %6543 }
 0x663   :  { %v6542_v45 = vpop.permute.xlu0 %6541  ;;  %6720 = vst.msk [vmem:[#allocation2 + $0x78] sm:$0xff] %vm466_vm1, %v6544_v25 }
 0x664   :  { %6719 = vst.msk [vmem:[#allocation2 + $0x70] sm:$0xff] %vm466_vm1, %v6542_v45  ;;  %6563 = vrot.lane.b32.xlu1 %v9321_v23, %s10308_s16 }
 0x665   :  { %6561 = vrot.lane.b32.xlu0 %v9320_v12, %s10308_s16 }
 0x666   :  { %v6548_v13 = vpop.permute.xlu1 %6547 }
 0x667   :  { %v6546_v20 = vpop.permute.xlu0 %6545  ;;  %6722 = vst.msk [vmem:[#allocation2 + $0x88] sm:$0xff] %vm466_vm1, %v6548_v13 }
 0x668   :  { %6721 = vst.msk [vmem:[#allocation2 + $0x80] sm:$0xff] %vm466_vm1, %v6546_v20  ;;  %6947 = vrot.lane.b32.xlu1 %v14952_v63, %s10309_s12  ;;  %v9323_v63 = vld [vmem:[%s16422_s0 + $0x171] sm:$0xff] }
 0x669   :  { %6945 = vrot.lane.b32.xlu0 %v14958_v54, %s10309_s12  ;;  %v15340_v54 = vld [vmem:[%s16422_s0 + $0x27a] sm:$0xff]  ;;  %v9457_v20 = vld [vmem:[%s16422_s0 + $0x1d1] sm:$0xff] }
 0x66a   :  { %v6552_v48 = vpop.permute.xlu1 %6551  ;;  %6366 = vst.msk [vmem:[#allocation2 + $0x168] sm:$0xff] %vm81_vm0, %v15340_v54 }
 0x66b   :  { %v6550_v47 = vpop.permute.xlu0 %6549  ;;  %6724 = vst.msk [vmem:[#allocation2 + $0x98] sm:$0xff] %vm466_vm1, %v6552_v48 }
 0x66c   :  { %6723 = vst.msk [vmem:[#allocation2 + $0x90] sm:$0xff] %vm466_vm1, %v6550_v47  ;;  %7331 = vrot.lane.b32.xlu1 %v9319_v62, %s10310_s30  ;;  %v9456_v47 = vld [vmem:[%s16422_s0 + $0x1c9] sm:$0xff] }
 0x66d   :  { %7329 = vrot.lane.b32.xlu0 %v14983_v59, %s10310_s30 }
 0x66e   :  { %v6556_v35 = vpop.permute.xlu1 %6555 }
 0x66f   :  { %v6554_v59 = vpop.permute.xlu0 %6553  ;;  %6726 = vst.msk [vmem:[#allocation2 + $0xa8] sm:$0xff] %vm466_vm1, %v6556_v35 }
 0x670   :  { %6725 = vst.msk [vmem:[#allocation2 + $0xa0] sm:$0xff] %vm466_vm1, %v6554_v59  ;;  %6567 = vrot.lane.b32.xlu1 %v9323_v63, %s10308_s16  ;;  %v15505_v59 = vld [vmem:[%s16422_s0 + $0x201] sm:$0xff] }
 0x671   :  { %6565 = vrot.lane.b32.xlu0 %v9322_v44, %s10308_s16 }
 0x672   :  { %v6898_v49 = vpop.permute.xlu1 %6897 }
 0x673   :  { %v6558_v4 = vpop.permute.xlu0 %6557  ;;  %7089 = vst.msk [vmem:[#allocation2] sm:$0xff] %vm851_vm2, %v6898_v49  ;;  %v15510_v49 = vld [vmem:[%s16422_s0 + $0x2da] sm:$0xff] }
 0x674   :  { %6727 = vst.msk [vmem:[#allocation2 + $0xb0] sm:$0xff] %vm466_vm1, %v6558_v4  ;;  %6951 = vrot.lane.b32.xlu1 %v14988_v37, %s10309_s12  ;;  %v9325_v37 = vld [vmem:[%s16422_s0 + $0x189] sm:$0xff] }
 0x675   :  { %6949 = vrot.lane.b32.xlu0 %v14994_v19, %s10309_s12  ;;  %v15374_v19 = vld [vmem:[%s16422_s0 + $0x292] sm:$0xff]  ;;  %6374 = vst.msk [vmem:[#allocation2 + $0x1a8] sm:$0xff] %vm81_vm0, %v15510_v49 }
 0x676   :  { %v7282_v15 = vpop.permute.xlu1 %7281  ;;  %6368 = vst.msk [vmem:[#allocation2 + $0x178] sm:$0xff] %vm81_vm0, %v15374_v19 }
 0x677   :  { %v6900_v16 = vpop.permute.xlu0 %6899  ;;  %7473 = vst.msk [vmem:[#allocation2] sm:$0xff] %vm1236_vm3, %v7282_v15  ;;  %v15517_v15 = vld [vmem:[%s16422_s0 + $0x1f9] sm:$0xff] }
 0x678   :  { %7090 = vst.msk [vmem:[#allocation2 + $0x8] sm:$0xff] %vm851_vm2, %v6900_v16  ;;  %7335 = vrot.lane.b32.xlu1 %v9321_v23, %s10310_s30  ;;  %v9393_v23 = vld [vmem:[%s16422_s0 + $0x1d2] sm:$0xff] }
 0x679   :  { %7333 = vrot.lane.b32.xlu0 %v9320_v12, %s10310_s30  ;;  %v9392_v12 = vld [vmem:[%s16422_s0 + $0x1ca] sm:$0xff] }
 0x67a   :  { %v6902_v53 = vpop.permute.xlu1 %6901 }
 0x67b   :  { %v7284_v8 = vpop.permute.xlu0 %7283  ;;  %7091 = vst.msk [vmem:[#allocation2 + $0x10] sm:$0xff] %vm851_vm2, %v6902_v53 }
 0x67c   :  { %7474 = vst.msk [vmem:[#allocation2 + $0x8] sm:$0xff] %vm1236_vm3, %v7284_v8  ;;  %6571 = vrot.lane.b32.xlu1 %v9325_v37, %s10308_s16 }
 0x67d   :  { %6569 = vrot.lane.b32.xlu0 %v9324_v32, %s10308_s16 }
 0x67e   :  { %v7286_v10 = vpop.permute.xlu1 %7285  ;;  %v7537_v9 = vld [vmem:[#allocation2] sm:$0xff] }
 0x67f   :  { %v6904_v38 = vpop.permute.xlu0 %6903  ;;  %7475 = vst.msk [vmem:[#allocation2 + $0x10] sm:$0xff] %vm1236_vm3, %v7286_v10  ;;  %10148 = vmatprep.mubr.msk.f32.mxu1 %vm1375_vm4, %v7537_v9 }
 0x680   :  { %7092 = vst.msk [vmem:[#allocation2 + $0x18] sm:$0xff] %vm851_vm2, %v6904_v38  ;;  %6955 = vrot.lane.b32.xlu1 %v15015_v5, %s10309_s12  ;;  %v9327_v5 = vld [vmem:[%s16422_s0 + $0x1a1] sm:$0xff] }
 0x681   :  { %6953 = vrot.lane.b32.xlu0 %v15021_v30, %s10309_s12  ;;  %v15418_v30 = vld [vmem:[%s16422_s0 + $0x2aa] sm:$0xff] }
 0x682   :  { %v6906_v46 = vpop.permute.xlu1 %6905  ;;  %6370 = vst.msk [vmem:[#allocation2 + $0x188] sm:$0xff] %vm81_vm0, %v15418_v30 }
 0x683   :  { %v7288_v52 = vpop.permute.xlu0 %7287  ;;  %7093 = vst.msk [vmem:[#allocation2 + $0x20] sm:$0xff] %vm851_vm2, %v6906_v46  ;;  %v7538_v14 = vld [vmem:[#allocation2 + $0x8] sm:$0xff] }
 0x684   :  { %7476 = vst.msk [vmem:[#allocation2 + $0x18] sm:$0xff] %vm1236_vm3, %v7288_v52  ;;  %10149 = vmatmul.mubr.msk.f32.vlgmr.msra.gmra.mrb[64].mxu1 %vm1375_vm4, %v7538_v14  ;;  %7339 = vrot.lane.b32.xlu1 %v9323_v63, %s10310_s30 }
 0x685   :  { %7337 = vrot.lane.b32.xlu0 %v9322_v44, %s10310_s30  ;;  %v15499_v44 = vld [vmem:[%s16422_s0 + $0x2d2] sm:$0xff] }
 0x686   :  { %v7290_v3 = vpop.permute.xlu1 %7289  ;;  %v7539_v2 = vld [vmem:[#allocation2 + $0x10] sm:$0xff]  ;;  %6373 = vst.msk [vmem:[#allocation2 + $0x1a0] sm:$0xff] %vm81_vm0, %v15499_v44 }
 0x687   :  { %v6908_v1 = vpop.permute.xlu0 %6907  ;;  %7477 = vst.msk [vmem:[#allocation2 + $0x20] sm:$0xff] %vm1236_vm3, %v7290_v3  ;;  %10151 = vmatprep.mubr.msk.f32.mxu1 %vm1375_vm4, %v7539_v2  ;;  %v15565_v2 = vld [vmem:[%s16422_s0 + $0x2f2] sm:$0xff] }
 0x688   :  { %7094 = vst.msk [vmem:[#allocation2 + $0x28] sm:$0xff] %vm851_vm2, %v6908_v1  ;;  %6575 = vrot.lane.b32.xlu1 %v9327_v5, %s10308_s16 }
 0x689   :  { %6573 = vrot.lane.b32.xlu0 %v9326_v21, %s10308_s16  ;;  %v15560_v21 = vld [vmem:[%s16422_s0 + $0x219] sm:$0xff]  ;;  %6376 = vst.msk [vmem:[#allocation2 + $0x1b8] sm:$0xff] %vm81_vm0, %v15565_v2 }
 0x68a   :  { %v6910_v7 = vpop.permute.xlu1 %6909 }
 0x68b   :  { %v7292_v42 = vpop.permute.xlu0 %7291  ;;  %7095 = vst.msk [vmem:[#allocation2 + $0x30] sm:$0xff] %vm851_vm2, %v6910_v7  ;;  %v7540_v50 = vld [vmem:[#allocation2 + $0x18] sm:$0xff] }
 0x68c   :  { %7478 = vst.msk [vmem:[#allocation2 + $0x28] sm:$0xff] %vm1236_vm3, %v7292_v42  ;;  %10152 = vmatmul.mubr.msk.f32.gmra.mrb[66].mxu1 %vm1375_vm4, %v7540_v50  ;;  %6959 = vrot.lane.b32.xlu1 %v15058_v6, %s10309_s12  ;;  %v15457_v6 = vld [vmem:[%s16422_s0 + $0x2c2] sm:$0xff]  ;;  %v15573_v42 = vld [vmem:[%s16422_s0 + $0x211] sm:$0xff] }
 0x68d   :  { %6957 = vrot.lane.b32.xlu0 %v15050_v11, %s10309_s12  ;;  %v15452_v11 = vld [vmem:[%s16422_s0 + $0x1e9] sm:$0xff]  ;;  %6372 = vst.msk [vmem:[#allocation2 + $0x198] sm:$0xff] %vm81_vm0, %v15457_v6 }
 0x68e   :  { %v7294_v43 = vpop.permute.xlu1 %7293  ;;  %v7541_v62 = vld [vmem:[#allocation2 + $0x20] sm:$0xff] }
 0x68f   :  { %v6912_v29 = vpop.permute.xlu0 %6911  ;;  %7479 = vst.msk [vmem:[#allocation2 + $0x30] sm:$0xff] %vm1236_vm3, %v7294_v43  ;;  %10154 = vmatprep.mubr.msk.f32.mxu1 %vm1375_vm4, %v7541_v62 }
 0x690   :  { %7096 = vst.msk [vmem:[#allocation2 + $0x38] sm:$0xff] %vm851_vm2, %v6912_v29  ;;  %7343 = vrot.lane.b32.xlu1 %v9325_v37, %s10310_s30 }
 0x691   :  { %7341 = vrot.lane.b32.xlu0 %v9324_v32, %s10310_s30 }
 0x692   :  { %v6914_v22 = vpop.permute.xlu1 %6913 }
 0x693   :  { %v7296_v60 = vpop.permute.xlu0 %7295  ;;  %7097 = vst.msk [vmem:[#allocation2 + $0x40] sm:$0xff] %vm851_vm2, %v6914_v22  ;;  %v7542_v18 = vld [vmem:[#allocation2 + $0x28] sm:$0xff] }
 0x694   :  { %7480 = vst.msk [vmem:[#allocation2 + $0x38] sm:$0xff] %vm1236_vm3, %v7296_v60  ;;  %10155 = vmatmul.mubr.msk.f32.gmra.mrb[68].mxu1 %vm1375_vm4, %v7542_v18  ;;  %6579 = vrot.lane.b32.xlu1 %v15452_v11, %s10308_s16 }
 0x695   :  { %6577 = vrot.lane.b32.xlu0 %v15464_v51, %s10308_s16 }
 0x696   :  { %v7298_v25 = vpop.permute.xlu1 %7297  ;;  %v7543_v45 = vld [vmem:[#allocation2 + $0x30] sm:$0xff] }
 0x697   :  { %v6916_v13 = vpop.permute.xlu0 %6915  ;;  %7481 = vst.msk [vmem:[#allocation2 + $0x40] sm:$0xff] %vm1236_vm3, %v7298_v25  ;;  %10157 = vmatprep.mubr.msk.f32.mxu1 %vm1375_vm4, %v7543_v45 }
 0x698   :  { %7098 = vst.msk [vmem:[#allocation2 + $0x48] sm:$0xff] %vm851_vm2, %v6916_v13  ;;  %6963 = vrot.lane.b32.xlu1 %v9393_v23, %s10309_s12 }
 0x699   :  { %6961 = vrot.lane.b32.xlu0 %v9392_v12, %s10309_s12 }
 0x69a   :  { %v6918_v48 = vpop.permute.xlu1 %6917 }
 0x69b   :  { %v7300_v63 = vpop.permute.xlu0 %7299  ;;  %7099 = vst.msk [vmem:[#allocation2 + $0x50] sm:$0xff] %vm851_vm2, %v6918_v48  ;;  %v7544_v35 = vld [vmem:[#allocation2 + $0x38] sm:$0xff] }
 0x69c   :  { %7482 = vst.msk [vmem:[#allocation2 + $0x48] sm:$0xff] %vm1236_vm3, %v7300_v63  ;;  %10158 = vmatmul.mubr.msk.f32.gmra.mrb[70].mxu1 %vm1375_vm4, %v7544_v35  ;;  %7347 = vrot.lane.b32.xlu1 %v9457_v20, %s10310_s30  ;;  %v15617_v35 = vld [vmem:[%s16422_s0 + $0x231] sm:$0xff] }
 0x69d   :  { %7345 = vrot.lane.b32.xlu0 %v9456_v47, %s10310_s30 }
 0x69e   :  { %v7302_v4 = vpop.permute.xlu1 %7301  ;;  %v7545_v16 = vld [vmem:[#allocation2 + $0x40] sm:$0xff] }
 0x69f   :  { %v6920_v37 = vpop.permute.xlu0 %6919  ;;  %7483 = vst.msk [vmem:[#allocation2 + $0x50] sm:$0xff] %vm1236_vm3, %v7302_v4  ;;  %10160 = vmatprep.mubr.msk.f32.mxu1 %vm1375_vm4, %v7545_v16 }
 0x6a0   :  { %7100 = vst.msk [vmem:[#allocation2 + $0x58] sm:$0xff] %vm851_vm2, %v6920_v37  ;;  %6583 = vrot.lane.b32.xlu1 %v15505_v59, %s10308_s16 }
 0x6a1   :  { %6581 = vrot.lane.b32.xlu0 %v15517_v15, %s10308_s16 }
 0x6a2   :  { %v6922_v53 = vpop.permute.xlu1 %6921 }
 0x6a3   :  { %v7304_v32 = vpop.permute.xlu0 %7303  ;;  %7101 = vst.msk [vmem:[#allocation2 + $0x60] sm:$0xff] %vm851_vm2, %v6922_v53  ;;  %v7546_v28 = vld [vmem:[#allocation2 + $0x48] sm:$0xff] }
 0x6a4   :  { %7484 = vst.msk [vmem:[#allocation2 + $0x58] sm:$0xff] %vm1236_vm3, %v7304_v32  ;;  %v10046_v8 = vpop.f32.mrb[64].mxu0  ;;  %10161 = vmatmul.mubr.msk.f32.gmra.mrb[72].mxu1 %vm1375_vm4, %v7546_v28  ;;  %6967 = vrot.lane.b32.xlu1 %v15120_v41, %s10309_s12 }
 0x6a5   :  { %v5879_v10 = vadd.f32 %v15536_v26, %v10046_v8  ;;  %6965 = vrot.lane.b32.xlu0 %v15112_v33, %s10309_s12  ;;  %v5873_v9 = vpop.f32.mrb[65].mxu0  ;;  %v15552_v33 = vld [vmem:[%s16422_s0 + $0x2ea] sm:$0xff] }
 0x6a6   :  { %v5874_v38 = vadd.f32 %v15536_v26, %v5873_v9  ;;  %v7306_v46 = vpop.permute.xlu1 %7305  ;;  %v7547_v52 = vld [vmem:[#allocation2 + $0x50] sm:$0xff]  ;;  %6375 = vst.msk [vmem:[#allocation2 + $0x1b0] sm:$0xff] %vm81_vm0, %v15552_v33 }
 0x6a7   :  { %6194 = vst.msk [vmem:[#allocation3 + $0x18] sm:$0xff] %vm1953_vm5, %v5879_v10  ;;  %v6924_v14 = vpop.permute.xlu0 %6923  ;;  %10163 = vmatprep.mubr.msk.f32.mxu1 %vm1375_vm4, %v7547_v52 }
 0x6a8   :  { %7485 = vst.msk [vmem:[#allocation2 + $0x60] sm:$0xff] %vm1236_vm3, %v7306_v46  ;;  %v10049_v41 = vpop.f32.mrb[66].mxu0  ;;  %7351 = vrot.lane.b32.xlu1 %v15452_v11, %s10310_s30 }
 0x6a9   :  { %6193 = vst.msk [vmem:[#allocation3 + $0x10] sm:$0xff] %vm1953_vm5, %v5874_v38  ;;  %v5889_v5 = vadd.f32 %v15536_v26, %v10049_v41  ;;  %7349 = vrot.lane.b32.xlu0 %v15464_v51, %s10310_s30  ;;  %v5883_v3 = vpop.f32.mrb[67].mxu0 }
 0x6aa   :  { %7102 = vst.msk [vmem:[#allocation2 + $0x68] sm:$0xff] %vm851_vm2, %v6924_v14  ;;  %v5884_v1 = vadd.f32 %v15536_v26, %v5883_v3  ;;  %v6926_v7 = vpop.permute.xlu1 %6925 }
 0x6ab   :  { %6196 = vst.msk [vmem:[#allocation3 + $0x38] sm:$0xff] %vm1953_vm5, %v5889_v5  ;;  %v7308_v50 = vpop.permute.xlu0 %7307  ;;  %v7548_v43 = vld [vmem:[#allocation2 + $0x58] sm:$0xff] }
 0x6ac   :  { %7103 = vst.msk [vmem:[#allocation2 + $0x70] sm:$0xff] %vm851_vm2, %v6926_v7  ;;  %10164 = vmatmul.mubr.msk.f32.gmra.mrb[74].mxu1 %vm1375_vm4, %v7548_v43  ;;  %6587 = vrot.lane.b32.xlu1 %v15560_v21, %s10308_s16 }
 0x6ad   :  { %6195 = vst.msk [vmem:[#allocation3 + $0x30] sm:$0xff] %vm1953_vm5, %v5884_v1  ;;  %v10052_v62 = vpop.f32.mrb[68].mxu0  ;;  %6585 = vrot.lane.b32.xlu0 %v15573_v42, %s10308_s16 }
 0x6ae   :  { %7486 = vst.msk [vmem:[#allocation2 + $0x68] sm:$0xff] %vm1236_vm3, %v7308_v50  ;;  %v5899_v29 = vadd.f32 %v15536_v26, %v10052_v62  ;;  %v5893_v11 = vpop.f32.mrb[69].mxu0  ;;  %v7310_v51 = vpop.permute.xlu1 %7309  ;;  %v15674_v62 = vld [vmem:[%s16422_s0 + $0x249] sm:$0xff] }
 0x6af   :  { %v5894_v22 = vadd.f32 %v15536_v26, %v5893_v11  ;;  %v7549_v60 = vld [vmem:[#allocation2 + $0x60] sm:$0xff]  ;;  %v6928_v18 = vpop.permute.xlu0 %6927  ;;  %7487 = vst.msk [vmem:[#allocation2 + $0x70] sm:$0xff] %vm1236_vm3, %v7310_v51 }
 0x6b0   :  { %6198 = vst.msk [vmem:[#allocation3 + $0x58] sm:$0xff] %vm1953_vm5, %v5899_v29  ;;  %10166 = vmatprep.mubr.msk.f32.mxu1 %vm1375_vm4, %v7549_v60  ;;  %6971 = vrot.lane.b32.xlu1 %v15158_v58, %s10309_s12 }
 0x6b1   :  { %6197 = vst.msk [vmem:[#allocation3 + $0x50] sm:$0xff] %vm1953_vm5, %v5894_v22  ;;  %v10055_v23 = vpop.f32.mrb[70].mxu0  ;;  %6969 = vrot.lane.b32.xlu0 %v15150_v39, %s10309_s12  ;;  %v15609_v39 = vld [vmem:[%s16422_s0 + $0x302] sm:$0xff] }
 0x6b2   :  { %7104 = vst.msk [vmem:[#allocation2 + $0x78] sm:$0xff] %vm851_vm2, %v6928_v18  ;;  %v5909_v25 = vadd.f32 %v15536_v26, %v10055_v23  ;;  %v5903_v12 = vpop.f32.mrb[71].mxu0  ;;  %v6930_v13 = vpop.permute.xlu1 %6929 }
 0x6b3   :  { %v5904_v45 = vadd.f32 %v15536_v26, %v5903_v12  ;;  %v7312_v20 = vpop.permute.xlu0 %7311  ;;  %7105 = vst.msk [vmem:[#allocation2 + $0x80] sm:$0xff] %vm851_vm2, %v6930_v13 }
 0x6b4   :  { %6200 = vst.msk [vmem:[#allocation3 + $0x78] sm:$0xff] %vm1953_vm5, %v5909_v25  ;;  %7355 = vrot.lane.b32.xlu1 %v15505_v59, %s10310_s30  ;;  %v15622_v59 = vld [vmem:[%s16422_s0 + $0x30a] sm:$0xff] }
 0x6b5   :  { %v7550_v48 = vld [vmem:[#allocation2 + $0x68] sm:$0xff]  ;;  %6199 = vst.msk [vmem:[#allocation3 + $0x70] sm:$0xff] %vm1953_vm5, %v5904_v45  ;;  %v10058_v58 = vpop.f32.mrb[72].mxu0  ;;  %7353 = vrot.lane.b32.xlu0 %v15517_v15, %s10310_s30 }
 0x6b6   :  { %7488 = vst.msk [vmem:[#allocation2 + $0x78] sm:$0xff] %vm1236_vm3, %v7312_v20  ;;  %10167 = vmatmul.mubr.msk.f32.gmra.mrb[76].mxu1 %vm1375_vm4, %v7550_v48  ;;  %v5919_v47 = vadd.f32 %v15536_v26, %v10058_v58  ;;  %v5913_v63 = vpop.f32.mrb[73].mxu0  ;;  %v7314_v16 = vpop.permute.xlu1 %7313  ;;  %v15630_v15 = vld [vmem:[%s16422_s0 + $0x229] sm:$0xff] }
 0x6b7   :  { %6377 = vst.msk [vmem:[#allocation2 + $0x1c0] sm:$0xff] %vm81_vm0, %v15609_v39  ;;  %v5914_v4 = vadd.f32 %v15536_v26, %v5913_v63  ;;  %v7551_v37 = vld [vmem:[#allocation2 + $0x70] sm:$0xff]  ;;  %6378 = vst.msk [vmem:[#allocation2 + $0x1c8] sm:$0xff] %vm81_vm0, %v15622_v59  ;;  %v6932_v53 = vpop.permute.xlu0 %6931 }
 0x6b8   :  { %6202 = vst.msk [vmem:[#allocation3 + $0x98] sm:$0xff] %vm1953_vm5, %v5919_v47  ;;  %10169 = vmatprep.mubr.msk.f32.mxu1 %vm1375_vm4, %v7551_v37  ;;  %6591 = vrot.lane.b32.xlu1 %v15617_v35, %s10308_s16 }
 0x6b9   :  { %7489 = vst.msk [vmem:[#allocation2 + $0x80] sm:$0xff] %vm1236_vm3, %v7314_v16  ;;  %v10061_v32 = vpop.f32.mrb[74].mxu0  ;;  %6589 = vrot.lane.b32.xlu0 %v15630_v15, %s10308_s16 }
 0x6ba   :  { %6201 = vst.msk [vmem:[#allocation3 + $0x90] sm:$0xff] %vm1953_vm5, %v5914_v4  ;;  %v5929_v28 = vadd.f32 %v15536_v26, %v10061_v32  ;;  %v5923_v8 = vpop.f32.mrb[75].mxu0  ;;  %v6934_v9 = vpop.permute.xlu1 %6933  ;;  %v15731_v32 = vld [vmem:[%s16422_s0 + $0x261] sm:$0xff] }
 0x6bb   :  { %7106 = vst.msk [vmem:[#allocation2 + $0x88] sm:$0xff] %vm851_vm2, %v6932_v53  ;;  %v5924_v10 = vadd.f32 %v15536_v26, %v5923_v8  ;;  %v7316_v38 = vpop.permute.xlu0 %7315  ;;  %7107 = vst.msk [vmem:[#allocation2 + $0x90] sm:$0xff] %vm851_vm2, %v6934_v9 }
 0x6bc   :  { %6204 = vst.msk [vmem:[#allocation3 + $0xb8] sm:$0xff] %vm1953_vm5, %v5929_v28  ;;  %6975 = vrot.lane.b32.xlu1 %v15196_v17, %s10309_s12 }
 0x6bd   :  { %v7552_v46 = vld [vmem:[#allocation2 + $0x78] sm:$0xff]  ;;  %6203 = vst.msk [vmem:[#allocation3 + $0xb0] sm:$0xff] %vm1953_vm5, %v5924_v10  ;;  %v10064_v52 = vpop.f32.mrb[76].mxu0  ;;  %6973 = vrot.lane.b32.xlu0 %v15188_v61, %s10309_s12 }
 0x6be   :  { %7490 = vst.msk [vmem:[#allocation2 + $0x88] sm:$0xff] %vm1236_vm3, %v7316_v38  ;;  %10170 = vmatmul.mubr.msk.f32.gmra.mrb[78].mxu1 %vm1375_vm4, %v7552_v46  ;;  %v5939_v14 = vadd.f32 %v15536_v26, %v10064_v52  ;;  %v5933_v41 = vpop.f32.mrb[77].mxu0  ;;  %v7318_v3 = vpop.permute.xlu1 %7317  ;;  %v15666_v61 = vld [vmem:[%s16422_s0 + $0x31a] sm:$0xff] }
 0x6bf   :  { %v5934_v5 = vadd.f32 %v15536_v26, %v5933_v41  ;;  %v6936_v7 = vpop.permute.xlu0 %6935  ;;  %7491 = vst.msk [vmem:[#allocation2 + $0x90] sm:$0xff] %vm1236_vm3, %v7318_v3 }
 0x6c0   :  { %v7553_v1 = vld [vmem:[#allocation2 + $0x80] sm:$0xff]  ;;  %6206 = vst.msk [vmem:[#allocation3 + $0xd8] sm:$0xff] %vm1953_vm5, %v5939_v14  ;;  %7359 = vrot.lane.b32.xlu1 %v15560_v21, %s10310_s30 }
 0x6c1   :  { %10172 = vmatprep.mubr.msk.f32.mxu1 %vm1375_vm4, %v7553_v1  ;;  %6205 = vst.msk [vmem:[#allocation3 + $0xd0] sm:$0xff] %vm1953_vm5, %v5934_v5  ;;  %v10067_v17 = vpop.f32.mrb[78].mxu0  ;;  %7357 = vrot.lane.b32.xlu0 %v15573_v42, %s10310_s30  ;;  %v15679_v21 = vld [vmem:[%s16422_s0 + $0x322] sm:$0xff] }
 0x6c2   :  { %7108 = vst.msk [vmem:[#allocation2 + $0x98] sm:$0xff] %vm851_vm2, %v6936_v7  ;;  %v5949_v50 = vadd.f32 %v15536_v26, %v10067_v17  ;;  %v5943_v43 = vpop.f32.mrb[79].mxu0  ;;  %v6938_v11 = vpop.permute.xlu1 %6937  ;;  %v15687_v42 = vld [vmem:[%s16422_s0 + $0x241] sm:$0xff] }
 0x6c3   :  { %6379 = vst.msk [vmem:[#allocation2 + $0x1d0] sm:$0xff] %vm81_vm0, %v15666_v61  ;;  %v5944_v29 = vadd.f32 %v15536_v26, %v5943_v43  ;;  %6380 = vst.msk [vmem:[#allocation2 + $0x1d8] sm:$0xff] %vm81_vm0, %v15679_v21  ;;  %v7320_v22 = vpop.permute.xlu0 %7319 }
 0x6c4   :  { %6208 = vst.msk [vmem:[#allocation3 + $0xf8] sm:$0xff] %vm1953_vm5, %v5949_v50  ;;  %6595 = vrot.lane.b32.xlu1 %v15674_v62, %s10308_s16 }
 0x6c5   :  { %7109 = vst.msk [vmem:[#allocation2 + $0xa0] sm:$0xff] %vm851_vm2, %v6938_v11  ;;  %v7554_v51 = vld [vmem:[#allocation2 + $0x88] sm:$0xff]  ;;  %v10070_v60 = vpop.f32.mrb[80].mxu0  ;;  %6593 = vrot.lane.b32.xlu0 %v15687_v42, %s10308_s16 }
 0x6c6   :  { %6207 = vst.msk [vmem:[#allocation3 + $0xf0] sm:$0xff] %vm1953_vm5, %v5944_v29  ;;  %10173 = vmatmul.mubr.msk.f32.gmra.mrb[80].mxu1 %vm1375_vm4, %v7554_v51  ;;  %v5959_v18 = vadd.f32 %v15536_v26, %v10070_v60  ;;  %v5953_v23 = vpop.f32.mrb[81].mxu0  ;;  %v7322_v12 = vpop.permute.xlu1 %7321  ;;  %v7555_v45 = vld [vmem:[#allocation2 + $0x90] sm:$0xff] }
 0x6c7   :  { %7492 = vst.msk [vmem:[#allocation2 + $0x98] sm:$0xff] %vm1236_vm3, %v7320_v22  ;;  %v5954_v25 = vadd.f32 %v15536_v26, %v5953_v23  ;;  %v6940_v13 = vpop.permute.xlu0 %6939  ;;  %7493 = vst.msk [vmem:[#allocation2 + $0xa0] sm:$0xff] %vm1236_vm3, %v7322_v12  ;;  %10175 = vmatprep.mubr.msk.f32.mxu1 %vm1375_vm4, %v7555_v45  ;;  %v15782_v22 = vld [vmem:[%s16422_s0 + $0x279] sm:$0xff] }
 0x6c8   :  { %6210 = vst.msk [vmem:[#allocation3 + $0x118] sm:$0xff] %vm1953_vm5, %v5959_v18  ;;  %6979 = vrot.lane.b32.xlu1 %v15234_v31, %s10309_s12  ;;  %v15788_v18 = vld [vmem:[%s16422_s0 + $0x271] sm:$0xff] }
 0x6c9   :  { %6209 = vst.msk [vmem:[#allocation3 + $0x110] sm:$0xff] %vm1953_vm5, %v5954_v25  ;;  %v10073_v20 = vpop.f32.mrb[82].mxu0  ;;  %6977 = vrot.lane.b32.xlu0 %v15226_v55, %s10309_s12  ;;  %v15723_v55 = vld [vmem:[%s16422_s0 + $0x332] sm:$0xff] }
 0x6ca   :  { %7110 = vst.msk [vmem:[#allocation2 + $0xa8] sm:$0xff] %vm851_vm2, %v6940_v13  ;;  %v5969_v48 = vadd.f32 %v15536_v26, %v10073_v20  ;;  %v5963_v58 = vpop.f32.mrb[83].mxu0  ;;  %v6560_v63 = vpop.permute.xlu1 %6559 }
 0x6cb   :  { %v5964_v47 = vadd.f32 %v15536_v26, %v5963_v58  ;;  %v7324_v4 = vpop.permute.xlu0 %7323  ;;  %6728 = vst.msk [vmem:[#allocation2 + $0xb8] sm:$0xff] %vm466_vm1, %v6560_v63 }
 0x6cc   :  { %6212 = vst.msk [vmem:[#allocation3 + $0x138] sm:$0xff] %vm1953_vm5, %v5969_v48  ;;  %7363 = vrot.lane.b32.xlu1 %v15617_v35, %s10310_s30  ;;  %v15736_v35 = vld [vmem:[%s16422_s0 + $0x33a] sm:$0xff] }
 0x6cd   :  { %6211 = vst.msk [vmem:[#allocation3 + $0x130] sm:$0xff] %vm1953_vm5, %v5964_v47  ;;  %v10076_v31 = vpop.f32.mrb[84].mxu0  ;;  %7361 = vrot.lane.b32.xlu0 %v15630_v15, %s10310_s30  ;;  %v15744_v15 = vld [vmem:[%s16422_s0 + $0x259] sm:$0xff] }
 0x6ce   :  { %v7556_v16 = vld [vmem:[#allocation2 + $0x98] sm:$0xff]  ;;  %7494 = vst.msk [vmem:[#allocation2 + $0xa8] sm:$0xff] %vm1236_vm3, %v7324_v4  ;;  %v5979_v37 = vadd.f32 %v15536_v26, %v10076_v31  ;;  %v5973_v53 = vpop.f32.mrb[85].mxu0  ;;  %v6944_v8 = vpop.permute.xlu1 %6943  ;;  %v7557_v10 = vld [vmem:[#allocation2 + $0xa0] sm:$0xff] }
 0x6cf   :  { %10176 = vmatmul.mubr.msk.f32.gmra.mrb[82].mxu1 %vm1375_vm4, %v7556_v16  ;;  %6381 = vst.msk [vmem:[#allocation2 + $0x1e0] sm:$0xff] %vm81_vm0, %v15723_v55  ;;  %v5974_v28 = vadd.f32 %v15536_v26, %v5973_v53  ;;  %6382 = vst.msk [vmem:[#allocation2 + $0x1e8] sm:$0xff] %vm81_vm0, %v15736_v35  ;;  %v6942_v9 = vpop.permute.xlu0 %6941  ;;  %v15824_v53 = vld [vmem:[%s16422_s0 + $0x291] sm:$0xff] }
 0x6d0   :  { %6214 = vst.msk [vmem:[#allocation3 + $0x158] sm:$0xff] %vm1953_vm5, %v5979_v37  ;;  %10178 = vmatprep.mubr.msk.f32.mxu1 %vm1375_vm4, %v7557_v10  ;;  %6599 = vrot.lane.b32.xlu1 %v15731_v32, %s10308_s16  ;;  %v15830_v10 = vld [vmem:[%s16422_s0 + $0x289] sm:$0xff] }
 0x6d1   :  { %7112 = vst.msk [vmem:[#allocation2 + $0xb8] sm:$0xff] %vm851_vm2, %v6944_v8  ;;  %7111 = vst.msk [vmem:[#allocation2 + $0xb0] sm:$0xff] %vm851_vm2, %v6942_v9  ;;  %v10079_v38 = vpop.f32.mrb[86].mxu0  ;;  %6597 = vrot.lane.b32.xlu0 %v15744_v15, %s10308_s16 }
 0x6d2   :  { %6213 = vst.msk [vmem:[#allocation3 + $0x150] sm:$0xff] %vm1953_vm5, %v5974_v28  ;;  %v5989_v46 = vadd.f32 %v15536_v26, %v10079_v38  ;;  %v5983_v52 = vpop.f32.mrb[87].mxu0  ;;  %v7328_v41 = vpop.permute.xlu1 %7327 }
 0x6d3   :  { %v5984_v14 = vadd.f32 %v15536_v26, %v5983_v52  ;;  %v7326_v5 = vpop.permute.xlu0 %7325  ;;  %7496 = vst.msk [vmem:[#allocation2 + $0xb8] sm:$0xff] %vm1236_vm3, %v7328_v41 }
 0x6d4   :  { %6216 = vst.msk [vmem:[#allocation3 + $0x178] sm:$0xff] %vm1953_vm5, %v5989_v46  ;;  %6983 = vrot.lane.b32.xlu1 %v15271_v34, %s10309_s12 }
 0x6d5   :  { %v7558_v3 = vld [vmem:[#allocation2 + $0xa8] sm:$0xff]  ;;  %6215 = vst.msk [vmem:[#allocation3 + $0x170] sm:$0xff] %vm1953_vm5, %v5984_v14  ;;  %v10082_v1 = vpop.f32.mrb[88].mxu0  ;;  %6981 = vrot.lane.b32.xlu0 %v15261_v36, %s10309_s12 }
 0x6d6   :  { %7495 = vst.msk [vmem:[#allocation2 + $0xb0] sm:$0xff] %vm1236_vm3, %v7326_v5  ;;  %10179 = vmatmul.mubr.msk.f32.gmra.mrb[84].mxu1 %vm1375_vm4, %v7558_v3  ;;  %v5999_v7 = vadd.f32 %v15536_v26, %v10082_v1  ;;  %v5993_v17 = vpop.f32.mrb[89].mxu0  ;;  %v6564_v43 = vpop.permute.xlu1 %6563 }
 0x6d7   :  { %v5994_v50 = vadd.f32 %v15536_v26, %v5993_v17  ;;  %v6562_v29 = vpop.permute.xlu0 %6561  ;;  %6730 = vst.msk [vmem:[#allocation2 + $0xc8] sm:$0xff] %vm466_vm1, %v6564_v43 }
 0x6d8   :  { %6218 = vst.msk [vmem:[#allocation3 + $0x198] sm:$0xff] %vm1953_vm5, %v5999_v7  ;;  %7367 = vrot.lane.b32.xlu1 %v15674_v62, %s10310_s30 }
 0x6d9   :  { %6217 = vst.msk [vmem:[#allocation3 + $0x190] sm:$0xff] %vm1953_vm5, %v5994_v50  ;;  %v10085_v11 = vpop.f32.mrb[90].mxu0  ;;  %7365 = vrot.lane.b32.xlu0 %v15687_v42, %s10310_s30 }
 0x6da   :  { %6729 = vst.msk [vmem:[#allocation2 + $0xc0] sm:$0xff] %vm466_vm1, %v6562_v29  ;;  %v6009_v34 = vadd.f32 %v15536_v26, %v10085_v11  ;;  %v6003_v36 = vpop.f32.mrb[91].mxu0  ;;  %v6948_v60 = vpop.permute.xlu1 %6947  ;;  %v7560_v62 = vld [vmem:[#allocation2 + $0xb8] sm:$0xff]  ;;  %v15866_v11 = vld [vmem:[%s16422_s0 + $0x2a9] sm:$0xff] }
 0x6db   :  { %v6004_v51 = vadd.f32 %v15536_v26, %v6003_v36  ;;  %v6946_v23 = vpop.permute.xlu0 %6945  ;;  %7114 = vst.msk [vmem:[#allocation2 + $0xc8] sm:$0xff] %vm851_vm2, %v6948_v60 }
 0x6dc   :  { %6220 = vst.msk [vmem:[#allocation3 + $0x1b8] sm:$0xff] %vm1953_vm5, %v6009_v34  ;;  %6603 = vrot.lane.b32.xlu1 %v15782_v22, %s10308_s16 }
 0x6dd   :  { %v7559_v42 = vld [vmem:[#allocation2 + $0xb0] sm:$0xff]  ;;  %6219 = vst.msk [vmem:[#allocation3 + $0x1b0] sm:$0xff] %vm1953_vm5, %v6004_v51  ;;  %v10088_v25 = vpop.f32.mrb[92].mxu0  ;;  %6601 = vrot.lane.b32.xlu0 %v15788_v18, %s10308_s16  ;;  %v15872_v51 = vld [vmem:[%s16422_s0 + $0x2a1] sm:$0xff] }
 0x6de   :  { %7113 = vst.msk [vmem:[#allocation2 + $0xc0] sm:$0xff] %vm851_vm2, %v6946_v23  ;;  %10181 = vmatprep.mubr.msk.f32.mxu1 %vm1375_vm4, %v7559_v42  ;;  %v6019_v12 = vadd.f32 %v15536_v26, %v10088_v25  ;;  %v6013_v45 = vpop.f32.mrb[93].mxu0  ;;  %v7332_v20 = vpop.permute.xlu1 %7331 }
 0x6df   :  { %10182 = vmatmul.mubr.msk.f32.gmra.mrb[86].mxu1 %vm1375_vm4, %v7560_v62  ;;  %v6014_v13 = vadd.f32 %v15536_v26, %v6013_v45  ;;  %v7330_v48 = vpop.permute.xlu0 %7329  ;;  %7498 = vst.msk [vmem:[#allocation2 + $0xc8] sm:$0xff] %vm1236_vm3, %v7332_v20 }
 0x6e0   :  { %6222 = vst.msk [vmem:[#allocation3 + $0x1d8] sm:$0xff] %vm1953_vm5, %v6019_v12  ;;  %6987 = vrot.lane.b32.xlu1 %v15305_v56, %s10309_s12 }
 0x6e1   :  { %6221 = vst.msk [vmem:[#allocation3 + $0x1d0] sm:$0xff] %vm1953_vm5, %v6014_v13  ;;  %v10091_v58 = vpop.f32.mrb[94].mxu0  ;;  %6985 = vrot.lane.b32.xlu0 %v15295_v57, %s10309_s12 }
 0x6e2   :  { %7497 = vst.msk [vmem:[#allocation2 + $0xc0] sm:$0xff] %vm1236_vm3, %v7330_v48  ;;  %v6029_v47 = vadd.f32 %v15536_v26, %v10091_v58  ;;  %v6023_v63 = vpop.f32.mrb[95].mxu0  ;;  %v6568_v16 = vpop.permute.xlu1 %6567 }
 0x6e3   :  { %v6024_v4 = vadd.f32 %v15536_v26, %v6023_v63  ;;  %v6566_v31 = vpop.permute.xlu0 %6565  ;;  %6732 = vst.msk [vmem:[#allocation2 + $0xd8] sm:$0xff] %vm466_vm1, %v6568_v16  ;;  %v15908_v16 = vld [vmem:[%s16422_s0 + $0x2c1] sm:$0xff] }
 0x6e4   :  { %6224 = vst.msk [vmem:[#allocation3 + $0x1f8] sm:$0xff] %vm1953_vm5, %v6029_v47  ;;  %7371 = vrot.lane.b32.xlu1 %v15731_v32, %s10310_s30 }
 0x6e5   :  { %6223 = vst.msk [vmem:[#allocation3 + $0x1f0] sm:$0xff] %vm1953_vm5, %v6024_v4  ;;  %v10094_v37 = vpop.f32.mrb[96].mxu0  ;;  %7369 = vrot.lane.b32.xlu0 %v15744_v15, %s10310_s30 }
 0x6e6   :  { %6731 = vst.msk [vmem:[#allocation2 + $0xd0] sm:$0xff] %vm466_vm1, %v6566_v31  ;;  %v6039_v56 = vadd.f32 %v15536_v26, %v10094_v37  ;;  %v6033_v57 = vpop.f32.mrb[97].mxu0  ;;  %v6952_v8 = vpop.permute.xlu1 %6951  ;;  %v7562_v32 = vld [vmem:[#allocation2 + $0xc8] sm:$0xff] }
 0x6e7   :  { %v6034_v28 = vadd.f32 %v15536_v26, %v6033_v57  ;;  %v6950_v9 = vpop.permute.xlu0 %6949  ;;  %7116 = vst.msk [vmem:[#allocation2 + $0xd8] sm:$0xff] %vm851_vm2, %v6952_v8 }
 0x6e8   :  { %6226 = vst.msk [vmem:[#allocation3 + $0x218] sm:$0xff] %vm1953_vm5, %v6039_v56  ;;  %6607 = vrot.lane.b32.xlu1 %v15824_v53, %s10308_s16  ;;  %v15914_v56 = vld [vmem:[%s16422_s0 + $0x2b9] sm:$0xff] }
 0x6e9   :  { %v7561_v15 = vld [vmem:[#allocation2 + $0xc0] sm:$0xff]  ;;  %6225 = vst.msk [vmem:[#allocation3 + $0x210] sm:$0xff] %vm1953_vm5, %v6034_v28  ;;  %v10097_v38 = vpop.f32.mrb[98].mxu0  ;;  %6605 = vrot.lane.b32.xlu0 %v15830_v10, %s10308_s16 }
 0x6ea   :  { %7115 = vst.msk [vmem:[#allocation2 + $0xd0] sm:$0xff] %vm851_vm2, %v6950_v9  ;;  %10184 = vmatprep.mubr.msk.f32.mxu1 %vm1375_vm4, %v7561_v15  ;;  %v6049_v46 = vadd.f32 %v15536_v26, %v10097_v38  ;;  %v6043_v52 = vpop.f32.mrb[99].mxu0  ;;  %v7336_v41 = vpop.permute.xlu1 %7335 }
 0x6eb   :  { %10185 = vmatmul.mubr.msk.f32.gmra.mrb[88].mxu1 %vm1375_vm4, %v7562_v32  ;;  %v6044_v14 = vadd.f32 %v15536_v26, %v6043_v52  ;;  %v7334_v5 = vpop.permute.xlu0 %7333  ;;  %7500 = vst.msk [vmem:[#allocation2 + $0xd8] sm:$0xff] %vm1236_vm3, %v7336_v41 }
 0x6ec   :  { %6228 = vst.msk [vmem:[#allocation3 + $0x238] sm:$0xff] %vm1953_vm5, %v6049_v46  ;;  %6991 = vrot.lane.b32.xlu1 %v15340_v54, %s10309_s12 }
 0x6ed   :  { %6227 = vst.msk [vmem:[#allocation3 + $0x230] sm:$0xff] %vm1953_vm5, %v6044_v14  ;;  %v10100_v3 = vpop.f32.mrb[100].mxu0  ;;  %6989 = vrot.lane.b32.xlu0 %v15330_v27, %s10309_s12 }
 0x6ee   :  { %7499 = vst.msk [vmem:[#allocation2 + $0xd0] sm:$0xff] %vm1236_vm3, %v7334_v5  ;;  %v6059_v1 = vadd.f32 %v15536_v26, %v10100_v3  ;;  %v6053_v7 = vpop.f32.mrb[101].mxu0  ;;  %v6572_v50 = vpop.permute.xlu1 %6571 }
 0x6ef   :  { %v6054_v17 = vadd.f32 %v15536_v26, %v6053_v7  ;;  %v6570_v43 = vpop.permute.xlu0 %6569  ;;  %6734 = vst.msk [vmem:[#allocation2 + $0xe8] sm:$0xff] %vm466_vm1, %v6572_v50  ;;  %v15950_v7 = vld [vmem:[%s16422_s0 + $0x2d9] sm:$0xff] }
 0x6f0   :  { %6230 = vst.msk [vmem:[#allocation3 + $0x258] sm:$0xff] %vm1953_vm5, %v6059_v1  ;;  %7375 = vrot.lane.b32.xlu1 %v15782_v22, %s10310_s30 }
 0x6f1   :  { %6229 = vst.msk [vmem:[#allocation3 + $0x250] sm:$0xff] %vm1953_vm5, %v6054_v17  ;;  %v10103_v29 = vpop.f32.mrb[102].mxu0  ;;  %7373 = vrot.lane.b32.xlu0 %v15788_v18, %s10310_s30 }
 0x6f2   :  { %6733 = vst.msk [vmem:[#allocation2 + $0xe0] sm:$0xff] %vm466_vm1, %v6570_v43  ;;  %v6069_v54 = vadd.f32 %v15536_v26, %v10103_v29  ;;  %v6063_v27 = vpop.f32.mrb[103].mxu0  ;;  %v6956_v36 = vpop.permute.xlu1 %6955  ;;  %v7564_v22 = vld [vmem:[#allocation2 + $0xd8] sm:$0xff] }
 0x6f3   :  { %v6064_v34 = vadd.f32 %v15536_v26, %v6063_v27  ;;  %v6954_v60 = vpop.permute.xlu0 %6953  ;;  %7118 = vst.msk [vmem:[#allocation2 + $0xe8] sm:$0xff] %vm851_vm2, %v6956_v36  ;;  %v15956_v43 = vld [vmem:[%s16422_s0 + $0x2d1] sm:$0xff] }
 0x6f4   :  { %6232 = vst.msk [vmem:[#allocation3 + $0x278] sm:$0xff] %vm1953_vm5, %v6069_v54  ;;  %6611 = vrot.lane.b32.xlu1 %v15866_v11, %s10308_s16 }
 0x6f5   :  { %v7563_v18 = vld [vmem:[#allocation2 + $0xd0] sm:$0xff]  ;;  %6231 = vst.msk [vmem:[#allocation3 + $0x270] sm:$0xff] %vm1953_vm5, %v6064_v34  ;;  %v10106_v62 = vpop.f32.mrb[104].mxu0  ;;  %6609 = vrot.lane.b32.xlu0 %v15872_v51, %s10308_s16 }
 0x6f6   :  { %7117 = vst.msk [vmem:[#allocation2 + $0xe0] sm:$0xff] %vm851_vm2, %v6954_v60  ;;  %10187 = vmatprep.mubr.msk.f32.mxu1 %vm1375_vm4, %v7563_v18  ;;  %v6079_v23 = vadd.f32 %v15536_v26, %v10106_v62  ;;  %v6073_v42 = vpop.f32.mrb[105].mxu0  ;;  %v7340_v12 = vpop.permute.xlu1 %7339 }
 0x6f7   :  { %10188 = vmatmul.mubr.msk.f32.gmra.mrb[90].mxu1 %vm1375_vm4, %v7564_v22  ;;  %v6074_v25 = vadd.f32 %v15536_v26, %v6073_v42  ;;  %v7338_v45 = vpop.permute.xlu0 %7337  ;;  %7502 = vst.msk [vmem:[#allocation2 + $0xe8] sm:$0xff] %vm1236_vm3, %v7340_v12 }
 0x6f8   :  { %6234 = vst.msk [vmem:[#allocation3 + $0x298] sm:$0xff] %vm1953_vm5, %v6079_v23  ;;  %6995 = vrot.lane.b32.xlu1 %v15374_v19, %s10309_s12 }
 0x6f9   :  { %6233 = vst.msk [vmem:[#allocation3 + $0x290] sm:$0xff] %vm1953_vm5, %v6074_v25  ;;  %v10109_v13 = vpop.f32.mrb[106].mxu0  ;;  %6993 = vrot.lane.b32.xlu0 %v15365_v40, %s10309_s12 }
 0x6fa   :  { %7501 = vst.msk [vmem:[#allocation2 + $0xe0] sm:$0xff] %vm1236_vm3, %v7338_v45  ;;  %v6089_v20 = vadd.f32 %v15536_v26, %v10109_v13  ;;  %v6083_v48 = vpop.f32.mrb[107].mxu0  ;;  %v6576_v47 = vpop.permute.xlu1 %6575  ;;  %v15992_v13 = vld [vmem:[%s16422_s0 + $0x2f1] sm:$0xff] }
 0x6fb   :  { %v6084_v58 = vadd.f32 %v15536_v26, %v6083_v48  ;;  %v6574_v63 = vpop.permute.xlu0 %6573  ;;  %6736 = vst.msk [vmem:[#allocation2 + $0xf8] sm:$0xff] %vm466_vm1, %v6576_v47 }
 0x6fc   :  { %6236 = vst.msk [vmem:[#allocation3 + $0x2b8] sm:$0xff] %vm1953_vm5, %v6089_v20  ;;  %7379 = vrot.lane.b32.xlu1 %v15824_v53, %s10310_s30 }
 0x6fd   :  { %6235 = vst.msk [vmem:[#allocation3 + $0x2b0] sm:$0xff] %vm1953_vm5, %v6084_v58  ;;  %v10112_v4 = vpop.f32.mrb[108].mxu0  ;;  %7377 = vrot.lane.b32.xlu0 %v15830_v10, %s10310_s30  ;;  %v15998_v58 = vld [vmem:[%s16422_s0 + $0x2e9] sm:$0xff] }
 0x6fe   :  { %6735 = vst.msk [vmem:[#allocation2 + $0xf0] sm:$0xff] %vm466_vm1, %v6574_v63  ;;  %v6099_v19 = vadd.f32 %v15536_v26, %v10112_v4  ;;  %v6093_v40 = vpop.f32.mrb[109].mxu0  ;;  %v6960_v37 = vpop.permute.xlu1 %6959  ;;  %v7566_v57 = vld [vmem:[#allocation2 + $0xe8] sm:$0xff] }
 0x6ff   :  { %v6094_v31 = vadd.f32 %v15536_v26, %v6093_v40  ;;  %v6958_v53 = vpop.permute.xlu0 %6957  ;;  %7120 = vst.msk [vmem:[#allocation2 + $0xf8] sm:$0xff] %vm851_vm2, %v6960_v37 }
 0x700   :  { %6238 = vst.msk [vmem:[#allocation3 + $0x2d8] sm:$0xff] %vm1953_vm5, %v6099_v19  ;;  %6615 = vrot.lane.b32.xlu1 %v15908_v16, %s10308_s16 }
 0x701   :  { %v7565_v28 = vld [vmem:[#allocation2 + $0xe0] sm:$0xff]  ;;  %6237 = vst.msk [vmem:[#allocation3 + $0x2d0] sm:$0xff] %vm1953_vm5, %v6094_v31  ;;  %v10115_v8 = vpop.f32.mrb[110].mxu0  ;;  %6613 = vrot.lane.b32.xlu0 %v15914_v56, %s10308_s16 }
 0x702   :  { %7119 = vst.msk [vmem:[#allocation2 + $0xf0] sm:$0xff] %vm851_vm2, %v6958_v53  ;;  %10190 = vmatprep.mubr.msk.f32.mxu1 %vm1375_vm4, %v7565_v28  ;;  %v6109_v10 = vadd.f32 %v15536_v26, %v10115_v8  ;;  %v6103_v32 = vpop.f32.mrb[111].mxu0  ;;  %v7344_v15 = vpop.permute.xlu1 %7343 }
 0x703   :  { %10191 = vmatmul.mubr.msk.f32.gmra.mrb[92].mxu1 %vm1375_vm4, %v7566_v57  ;;  %v6104_v9 = vadd.f32 %v15536_v26, %v6103_v32  ;;  %v7342_v38 = vpop.permute.xlu0 %7341  ;;  %7504 = vst.msk [vmem:[#allocation2 + $0xf8] sm:$0xff] %vm1236_vm3, %v7344_v15  ;;  %v9353_v15 = vld [vmem:[%s16422_s0 + $0x309] sm:$0xff] }
 0x704   :  { %6240 = vst.msk [vmem:[#allocation3 + $0x2f8] sm:$0xff] %vm1953_vm5, %v6109_v10  ;;  %6999 = vrot.lane.b32.xlu1 %v15418_v30, %s10309_s12 }
 0x705   :  { %6239 = vst.msk [vmem:[#allocation3 + $0x2f0] sm:$0xff] %vm1953_vm5, %v6104_v9  ;;  %v10118_v46 = vpop.f32.mrb[112].mxu0  ;;  %6997 = vrot.lane.b32.xlu0 %v15409_v24, %s10309_s12 }
 0x706   :  { %7503 = vst.msk [vmem:[#allocation2 + $0xf0] sm:$0xff] %vm1236_vm3, %v7342_v38  ;;  %v6119_v52 = vadd.f32 %v15536_v26, %v10118_v46  ;;  %v6113_v14 = vpop.f32.mrb[113].mxu0  ;;  %v6580_v5 = vpop.permute.xlu1 %6579 }
 0x707   :  { %v6114_v41 = vadd.f32 %v15536_v26, %v6113_v14  ;;  %v6578_v3 = vpop.permute.xlu0 %6577  ;;  %6738 = vst.msk [vmem:[#allocation2 + $0x108] sm:$0xff] %vm466_vm1, %v6580_v5 }
 0x708   :  { %6242 = vst.msk [vmem:[#allocation3 + $0x318] sm:$0xff] %vm1953_vm5, %v6119_v52  ;;  %7383 = vrot.lane.b32.xlu1 %v15866_v11, %s10310_s30  ;;  %v9352_v52 = vld [vmem:[%s16422_s0 + $0x301] sm:$0xff] }
 0x709   :  { %6241 = vst.msk [vmem:[#allocation3 + $0x310] sm:$0xff] %vm1953_vm5, %v6114_v41  ;;  %v10121_v1 = vpop.f32.mrb[114].mxu0  ;;  %7381 = vrot.lane.b32.xlu0 %v15872_v51, %s10310_s30 }
 0x70a   :  { %6737 = vst.msk [vmem:[#allocation2 + $0x100] sm:$0xff] %vm466_vm1, %v6578_v3  ;;  %v6129_v30 = vadd.f32 %v15536_v26, %v10121_v1  ;;  %v6123_v24 = vpop.f32.mrb[115].mxu0  ;;  %v6964_v50 = vpop.permute.xlu1 %6963  ;;  %v7568_v29 = vld [vmem:[#allocation2 + $0xf8] sm:$0xff] }
 0x70b   :  { %v6124_v17 = vadd.f32 %v15536_v26, %v6123_v24  ;;  %v6962_v54 = vpop.permute.xlu0 %6961  ;;  %7122 = vst.msk [vmem:[#allocation2 + $0x108] sm:$0xff] %vm851_vm2, %v6964_v50  ;;  %v9355_v24 = vld [vmem:[%s16422_s0 + $0x321] sm:$0xff] }
 0x70c   :  { %6244 = vst.msk [vmem:[#allocation3 + $0x338] sm:$0xff] %vm1953_vm5, %v6129_v30  ;;  %6619 = vrot.lane.b32.xlu1 %v15950_v7, %s10308_s16 }
 0x70d   :  { %v7567_v27 = vld [vmem:[#allocation2 + $0xf0] sm:$0xff]  ;;  %6243 = vst.msk [vmem:[#allocation3 + $0x330] sm:$0xff] %vm1953_vm5, %v6124_v17  ;;  %v10124_v11 = vpop.f32.mrb[116].mxu0  ;;  %6617 = vrot.lane.b32.xlu0 %v15956_v43, %s10308_s16 }
 0x70e   :  { %7121 = vst.msk [vmem:[#allocation2 + $0x100] sm:$0xff] %vm851_vm2, %v6962_v54  ;;  %10193 = vmatprep.mubr.msk.f32.mxu1 %vm1375_vm4, %v7567_v27  ;;  %v6139_v34 = vadd.f32 %v15536_v26, %v10124_v11  ;;  %v6133_v36 = vpop.f32.mrb[117].mxu0  ;;  %v7348_v22 = vpop.permute.xlu1 %7347  ;;  %v9294_v11 = vld [vmem:[%s16422_s0 + $0x34a] sm:$0xff] }
 0x70f   :  { %10194 = vmatmul.mubr.msk.f32.gmra.mrb[94].mxu1 %vm1375_vm4, %v7568_v29  ;;  %v6134_v51 = vadd.f32 %v15536_v26, %v6133_v36  ;;  %v7346_v60 = vpop.permute.xlu0 %7345  ;;  %7506 = vst.msk [vmem:[#allocation2 + $0x108] sm:$0xff] %vm1236_vm3, %v7348_v22 }
 0x710   :  { %6246 = vst.msk [vmem:[#allocation3 + $0x358] sm:$0xff] %vm1953_vm5, %v6139_v34  ;;  %7003 = vrot.lane.b32.xlu1 %v15457_v6, %s10309_s12  ;;  %v9356_v34 = vld [vmem:[%s16422_s0 + $0x331] sm:$0xff] }
 0x711   :  { %6245 = vst.msk [vmem:[#allocation3 + $0x350] sm:$0xff] %vm1953_vm5, %v6134_v51  ;;  %v10127_v18 = vpop.f32.mrb[118].mxu0  ;;  %7001 = vrot.lane.b32.xlu0 %v15446_v0, %s10309_s12 }
 0x712   :  { %7505 = vst.msk [vmem:[#allocation2 + $0x100] sm:$0xff] %vm1236_vm3, %v7346_v60  ;;  %v6149_v62 = vadd.f32 %v15536_v26, %v10127_v18  ;;  %v6143_v23 = vpop.f32.mrb[119].mxu0  ;;  %v6584_v25 = vpop.permute.xlu1 %6583  ;;  %v9295_v60 = vld [vmem:[%s16422_s0 + $0x352] sm:$0xff] }
 0x713   :  { %v6144_v42 = vadd.f32 %v15536_v26, %v6143_v23  ;;  %v6582_v12 = vpop.permute.xlu0 %6581  ;;  %6740 = vst.msk [vmem:[#allocation2 + $0x118] sm:$0xff] %vm466_vm1, %v6584_v25  ;;  %v9359_v25 = vld [vmem:[%s16422_s0 + $0x351] sm:$0xff] }
 0x714   :  { %6248 = vst.msk [vmem:[#allocation3 + $0x378] sm:$0xff] %vm1953_vm5, %v6149_v62  ;;  %7387 = vrot.lane.b32.xlu1 %v15908_v16, %s10310_s30 }
 0x715   :  { %6247 = vst.msk [vmem:[#allocation3 + $0x370] sm:$0xff] %vm1953_vm5, %v6144_v42  ;;  %v10130_v45 = vpop.f32.mrb[120].mxu0  ;;  %7385 = vrot.lane.b32.xlu0 %v15914_v56, %s10310_s30 }
 0x716   :  { %6739 = vst.msk [vmem:[#allocation2 + $0x110] sm:$0xff] %vm466_vm1, %v6582_v12  ;;  %v6159_v6 = vadd.f32 %v15536_v26, %v10130_v45  ;;  %v6153_v0 = vpop.f32.mrb[121].mxu0  ;;  %v6968_v48 = vpop.permute.xlu1 %6967  ;;  %v7570_v47 = vld [vmem:[#allocation2 + $0x108] sm:$0xff] }
 0x717   :  { %v6154_v20 = vadd.f32 %v15536_v26, %v6153_v0  ;;  %v6966_v63 = vpop.permute.xlu0 %6965  ;;  %7124 = vst.msk [vmem:[#allocation2 + $0x118] sm:$0xff] %vm851_vm2, %v6968_v48 }
 0x718   :  { %6250 = vst.msk [vmem:[#allocation3 + $0x398] sm:$0xff] %vm1953_vm5, %v6159_v6  ;;  %6623 = vrot.lane.b32.xlu1 %v15992_v13, %s10308_s16 }
 0x719   :  { %v7569_v4 = vld [vmem:[#allocation2 + $0x100] sm:$0xff]  ;;  %6249 = vst.msk [vmem:[#allocation3 + $0x390] sm:$0xff] %vm1953_vm5, %v6154_v20  ;;  %v10133_v19 = vpop.f32.mrb[122].mxu0  ;;  %6621 = vrot.lane.b32.xlu0 %v15998_v58, %s10308_s16 }
 0x71a   :  { %7123 = vst.msk [vmem:[#allocation2 + $0x110] sm:$0xff] %vm851_vm2, %v6966_v63  ;;  %10196 = vmatprep.mubr.msk.f32.mxu1 %vm1375_vm4, %v7569_v4  ;;  %v6169_v40 = vadd.f32 %v15536_v26, %v10133_v19  ;;  %v6163_v16 = vpop.f32.mrb[123].mxu0  ;;  %v7352_v37 = vpop.permute.xlu1 %7351 }
 0x71b   :  { %10197 = vmatmul.mubr.msk.f32.gmra.mrb[96].mxu1 %vm1375_vm4, %v7570_v47  ;;  %v6164_v31 = vadd.f32 %v15536_v26, %v6163_v16  ;;  %v7350_v56 = vpop.permute.xlu0 %7349  ;;  %7508 = vst.msk [vmem:[#allocation2 + $0x118] sm:$0xff] %vm1236_vm3, %v7352_v37 }
 0x71c   :  { %6252 = vst.msk [vmem:[#allocation3 + $0x3b8] sm:$0xff] %vm1953_vm5, %v6169_v40  ;;  %7007 = vrot.lane.b32.xlu1 %v15510_v49, %s10309_s12  ;;  %v16140_v40 = vld [vmem:[%s16424_s2] ss:$0 sm:$0xff]  ;;  %s10311_s2 = smov [#allocation3]  }
 0x71d   :  { %6251 = vst.msk [vmem:[#allocation3 + $0x3b0] sm:$0xff] %vm1953_vm5, %v6164_v31  ;;  %v10136_v57 = vpop.f32.mrb[124].mxu0  ;;  %7005 = vrot.lane.b32.xlu0 %v15499_v44, %s10309_s12 }
 0x71e   :  { %7507 = vst.msk [vmem:[#allocation2 + $0x110] sm:$0xff] %vm1236_vm3, %v7350_v56  ;;  %v6179_v53 = vadd.f32 %v15536_v26, %v10136_v57  ;;  %v6173_v28 = vpop.f32.mrb[125].mxu0  ;;  %v6588_v10 = vpop.permute.xlu1 %6587 }
 0x71f   :  { %v6174_v8 = vadd.f32 %v15536_v26, %v6173_v28  ;;  %v6586_v32 = vpop.permute.xlu0 %6585  ;;  %6742 = vst.msk [vmem:[#allocation2 + $0x128] sm:$0xff] %vm466_vm1, %v6588_v10 }
 0x720   :  { %6254 = vst.msk [vmem:[#allocation3 + $0x3d8] sm:$0xff] %vm1953_vm5, %v6179_v53  ;;  %7391 = vrot.lane.b32.xlu1 %v15950_v7, %s10310_s30 }
 0x721   :  { %6253 = vst.msk [vmem:[#allocation3 + $0x3d0] sm:$0xff] %vm1953_vm5, %v6174_v8  ;;  %v10139_v9 = vpop.f32.mrb[126].mxu0  ;;  %7389 = vrot.lane.b32.xlu0 %v15956_v43, %s10310_s30 }
 0x722   :  { %6741 = vst.msk [vmem:[#allocation2 + $0x120] sm:$0xff] %vm466_vm1, %v6586_v32  ;;  %v6189_v49 = vadd.f32 %v15536_v26, %v10139_v9  ;;  %v6183_v44 = vpop.f32.mrb[127].mxu0  ;;  %v6972_v46 = vpop.permute.xlu1 %6971  ;;  %v7572_v14 = vld [vmem:[#allocation2 + $0x118] sm:$0xff] }
 0x723   :  { %v6184_v38 = vadd.f32 %v15536_v26, %v6183_v44  ;;  %v6970_v41 = vpop.permute.xlu0 %6969  ;;  %7126 = vst.msk [vmem:[#allocation2 + $0x128] sm:$0xff] %vm851_vm2, %v6972_v46 }
 0x724   :  { %6256 = vst.msk [vmem:[#allocation3 + $0x3f8] sm:$0xff] %vm1953_vm5, %v6189_v49  ;;  %6627 = vrot.lane.b32.xlu1 %v9353_v15, %s10308_s16 }
 0x725   :  { %v7571_v5 = vld [vmem:[#allocation2 + $0x110] sm:$0xff]  ;;  %6255 = vst.msk [vmem:[#allocation3 + $0x3f0] sm:$0xff] %vm1953_vm5, %v6184_v38  ;;  %6625 = vrot.lane.b32.xlu0 %v9352_v52, %s10308_s16 }
 0x726   :  { %7125 = vst.msk [vmem:[#allocation2 + $0x120] sm:$0xff] %vm851_vm2, %v6970_v41  ;;  %10199 = vmatprep.mubr.msk.f32.mxu1 %vm1375_vm4, %v7571_v5  ;;  %v7356_v26 = vpop.permute.xlu1 %7355 }
 0x727   :  { %10200 = vmatmul.mubr.msk.f32.gmra.mrb[98].mxu1 %vm1375_vm4, %v7572_v14  ;;  %v7354_v3 = vpop.permute.xlu0 %7353  ;;  %7510 = vst.msk [vmem:[#allocation2 + $0x128] sm:$0xff] %vm1236_vm3, %v7356_v26 }
 0x728   :  { %7509 = vst.msk [vmem:[#allocation2 + $0x120] sm:$0xff] %vm1236_vm3, %v7354_v3  ;;  %7011 = vrot.lane.b32.xlu1 %v15565_v2, %s10309_s12 }
 0x729   :  { %7009 = vrot.lane.b32.xlu0 %v15552_v33, %s10309_s12  ;;  %v9354_v33 = vld [vmem:[%s16422_s0 + $0x319] sm:$0xff]  ;;  %6383 = vst.msk [vmem:[#allocation2 + $0x1f0] sm:$0xff] %vm81_vm0, %v9294_v11  ;;  %6384 = vst.msk [vmem:[#allocation2 + $0x1f8] sm:$0xff] %vm81_vm0, %v9295_v60 }
 0x72a   :  { %v6592_v1 = vpop.permute.xlu1 %6591 }
 0x72b   :  { %v6590_v30 = vpop.permute.xlu0 %6589  ;;  %6744 = vst.msk [vmem:[#allocation2 + $0x138] sm:$0xff] %vm466_vm1, %v6592_v1 }
 0x72c   :  { %6743 = vst.msk [vmem:[#allocation2 + $0x130] sm:$0xff] %vm466_vm1, %v6590_v30  ;;  %7395 = vrot.lane.b32.xlu1 %v15992_v13, %s10310_s30 }
 0x72d   :  { %7393 = vrot.lane.b32.xlu0 %v15998_v58, %s10310_s30 }
 0x72e   :  { %v6976_v2 = vpop.permute.xlu1 %6975  ;;  %v7574_v7 = vld [vmem:[#allocation2 + $0x128] sm:$0xff] }
 0x72f   :  { %v6974_v17 = vpop.permute.xlu0 %6973  ;;  %7128 = vst.msk [vmem:[#allocation2 + $0x138] sm:$0xff] %vm851_vm2, %v6976_v2  ;;  %v7573_v50 = vld [vmem:[#allocation2 + $0x120] sm:$0xff] }
 0x730   :  { %7127 = vst.msk [vmem:[#allocation2 + $0x130] sm:$0xff] %vm851_vm2, %v6974_v17  ;;  %10202 = vmatprep.mubr.msk.f32.mxu1 %vm1375_vm4, %v7573_v50  ;;  %6631 = vrot.lane.b32.xlu1 %v9355_v24, %s10308_s16 }
 0x731   :  { %6629 = vrot.lane.b32.xlu0 %v9354_v33, %s10308_s16  ;;  %10203 = vmatmul.mubr.msk.f32.gmra.mrb[100].mxu1 %vm1375_vm4, %v7574_v7 }
 0x732   :  { %v7360_v43 = vpop.permute.xlu1 %7359 }
 0x733   :  { %v7358_v29 = vpop.permute.xlu0 %7357  ;;  %7512 = vst.msk [vmem:[#allocation2 + $0x138] sm:$0xff] %vm1236_vm3, %v7360_v43 }
 0x734   :  { %7511 = vst.msk [vmem:[#allocation2 + $0x130] sm:$0xff] %vm1236_vm3, %v7358_v29  ;;  %7015 = vrot.lane.b32.xlu1 %v15622_v59, %s10309_s12  ;;  %v9357_v59 = vld [vmem:[%s16422_s0 + $0x339] sm:$0xff] }
 0x735   :  { %7013 = vrot.lane.b32.xlu0 %v15609_v39, %s10309_s12 }
 0x736   :  { %v6596_v54 = vpop.permute.xlu1 %6595 }
 0x737   :  { %v6594_v27 = vpop.permute.xlu0 %6593  ;;  %6746 = vst.msk [vmem:[#allocation2 + $0x148] sm:$0xff] %vm466_vm1, %v6596_v54 }
 0x738   :  { %6745 = vst.msk [vmem:[#allocation2 + $0x140] sm:$0xff] %vm466_vm1, %v6594_v27  ;;  %7399 = vrot.lane.b32.xlu1 %v9353_v15, %s10310_s30 }
 0x739   :  { %7397 = vrot.lane.b32.xlu0 %v9352_v52, %s10310_s30 }
 0x73a   :  { %v6980_v39 = vpop.permute.xlu1 %6979  ;;  %v7576_v36 = vld [vmem:[#allocation2 + $0x138] sm:$0xff] }
 0x73b   :  { %v6978_v51 = vpop.permute.xlu0 %6977  ;;  %7130 = vst.msk [vmem:[#allocation2 + $0x148] sm:$0xff] %vm851_vm2, %v6980_v39  ;;  %v7575_v22 = vld [vmem:[#allocation2 + $0x130] sm:$0xff] }
 0x73c   :  { %7129 = vst.msk [vmem:[#allocation2 + $0x140] sm:$0xff] %vm851_vm2, %v6978_v51  ;;  %10205 = vmatprep.mubr.msk.f32.mxu1 %vm1375_vm4, %v7575_v22  ;;  %6635 = vrot.lane.b32.xlu1 %v9357_v59, %s10308_s16 }
 0x73d   :  { %6633 = vrot.lane.b32.xlu0 %v9356_v34, %s10308_s16  ;;  %10206 = vmatmul.mubr.msk.f32.gmra.mrb[102].mxu1 %vm1375_vm4, %v7576_v36 }
 0x73e   :  { %v7364_v18 = vpop.permute.xlu1 %7363 }
 0x73f   :  { %v7362_v62 = vpop.permute.xlu0 %7361  ;;  %7514 = vst.msk [vmem:[#allocation2 + $0x148] sm:$0xff] %vm1236_vm3, %v7364_v18 }
 0x740   :  { %7513 = vst.msk [vmem:[#allocation2 + $0x140] sm:$0xff] %vm1236_vm3, %v7362_v62  ;;  %7019 = vrot.lane.b32.xlu1 %v15679_v21, %s10309_s12  ;;  %v9358_v21 = vld [vmem:[%s16422_s0 + $0x349] sm:$0xff] }
 0x741   :  { %7017 = vrot.lane.b32.xlu0 %v15666_v61, %s10309_s12 }
 0x742   :  { %v6600_v23 = vpop.permute.xlu1 %6599 }
 0x743   :  { %v6598_v42 = vpop.permute.xlu0 %6597  ;;  %6748 = vst.msk [vmem:[#allocation2 + $0x158] sm:$0xff] %vm466_vm1, %v6600_v23 }
 0x744   :  { %6747 = vst.msk [vmem:[#allocation2 + $0x150] sm:$0xff] %vm466_vm1, %v6598_v42  ;;  %7403 = vrot.lane.b32.xlu1 %v9355_v24, %s10310_s30 }
 0x745   :  { %7401 = vrot.lane.b32.xlu0 %v9354_v33, %s10310_s30 }
 0x746   :  { %v6984_v12 = vpop.permute.xlu1 %6983  ;;  %v7578_v61 = vld [vmem:[#allocation2 + $0x148] sm:$0xff] }
 0x747   :  { %v6982_v45 = vpop.permute.xlu0 %6981  ;;  %7132 = vst.msk [vmem:[#allocation2 + $0x158] sm:$0xff] %vm851_vm2, %v6984_v12  ;;  %v7577_v6 = vld [vmem:[#allocation2 + $0x140] sm:$0xff] }
 0x748   :  { %7131 = vst.msk [vmem:[#allocation2 + $0x150] sm:$0xff] %vm851_vm2, %v6982_v45  ;;  %10208 = vmatprep.mubr.msk.f32.mxu1 %vm1375_vm4, %v7577_v6  ;;  %6639 = vrot.lane.b32.xlu1 %v9359_v25, %s10308_s16 }
 0x749   :  { %6637 = vrot.lane.b32.xlu0 %v9358_v21, %s10308_s16  ;;  %10209 = vmatmul.mubr.msk.f32.gmra.mrb[104].mxu1 %vm1375_vm4, %v7578_v61 }
 0x74a   :  { %v7368_v0 = vpop.permute.xlu1 %7367 }
 0x74b   :  { %v7366_v13 = vpop.permute.xlu0 %7365  ;;  %7516 = vst.msk [vmem:[#allocation2 + $0x158] sm:$0xff] %vm1236_vm3, %v7368_v0 }
 0x74c   :  { %7515 = vst.msk [vmem:[#allocation2 + $0x150] sm:$0xff] %vm1236_vm3, %v7366_v13  ;;  %7023 = vrot.lane.b32.xlu1 %v15736_v35, %s10309_s12 }
 0x74d   :  { %7021 = vrot.lane.b32.xlu0 %v15723_v55, %s10309_s12 }
 0x74e   :  { %v6604_v20 = vpop.permute.xlu1 %6603 }
 0x74f   :  { %v6602_v48 = vpop.permute.xlu0 %6601  ;;  %6750 = vst.msk [vmem:[#allocation2 + $0x168] sm:$0xff] %vm466_vm1, %v6604_v20 }
 0x750   :  { %6749 = vst.msk [vmem:[#allocation2 + $0x160] sm:$0xff] %vm466_vm1, %v6602_v48  ;;  %7407 = vrot.lane.b32.xlu1 %v9357_v59, %s10310_s30 }
 0x751   :  { %7405 = vrot.lane.b32.xlu0 %v9356_v34, %s10310_s30 }
 0x752   :  { %v6988_v58 = vpop.permute.xlu1 %6987  ;;  %v7580_v47 = vld [vmem:[#allocation2 + $0x158] sm:$0xff] }
 0x753   :  { %v6986_v63 = vpop.permute.xlu0 %6985  ;;  %7134 = vst.msk [vmem:[#allocation2 + $0x168] sm:$0xff] %vm851_vm2, %v6988_v58  ;;  %v7579_v4 = vld [vmem:[#allocation2 + $0x150] sm:$0xff] }
 0x754   :  { %7133 = vst.msk [vmem:[#allocation2 + $0x160] sm:$0xff] %vm851_vm2, %v6986_v63  ;;  %10211 = vmatprep.mubr.msk.f32.mxu1 %vm1375_vm4, %v7579_v4 }
 0x755   :  { %10212 = vmatmul.mubr.msk.f32.gmra.mrb[106].mxu1 %vm1375_vm4, %v7580_v47 }
 0x756   :  { %v7372_v55 = vpop.permute.xlu1 %7371 }
 0x757   :  { %v10150_v35 = vpop.f32.mrb[64].mxu1  ;;  %v7370_v19 = vpop.permute.xlu0 %7369  ;;  %7518 = vst.msk [vmem:[#allocation2 + $0x168] sm:$0xff] %vm1236_vm3, %v7372_v55 }
 0x758   :  { %v7870_v16 = vadd.f32 %v16140_v40, %v10150_v35  ;;  %7517 = vst.msk [vmem:[#allocation2 + $0x160] sm:$0xff] %vm1236_vm3, %v7370_v19  ;;  %v7864_v31 = vpop.f32.mrb[65].mxu1 }
 0x759   :  { %v7865_v37 = vadd.f32 %v16140_v40, %v7864_v31 }
 0x75a   :  { %8249 = vrot.lane.b32.xlu1 %v7870_v16, %s10309_s12  ;;  %v6608_v56 = vpop.permute.xlu1 %6607 }
 0x75b   :  { %8247 = vrot.lane.b32.xlu0 %v7865_v37, %s10309_s12  ;;  %v6606_v57 = vpop.permute.xlu0 %6605  ;;  %6752 = vst.msk [vmem:[#allocation2 + $0x178] sm:$0xff] %vm466_vm1, %v6608_v56 }
 0x75c   :  { %6751 = vst.msk [vmem:[#allocation2 + $0x170] sm:$0xff] %vm466_vm1, %v6606_v57 }
 0x75e   :  { %v6992_v53 = vpop.permute.xlu1 %6991  ;;  %v7582_v28 = vld [vmem:[#allocation2 + $0x168] sm:$0xff] }
 0x75f   :  { %v10153_v8 = vpop.f32.mrb[66].mxu1  ;;  %v6990_v10 = vpop.permute.xlu0 %6989  ;;  %7136 = vst.msk [vmem:[#allocation2 + $0x178] sm:$0xff] %vm851_vm2, %v6992_v53  ;;  %v7581_v32 = vld [vmem:[#allocation2 + $0x160] sm:$0xff] }
 0x760   :  { %v7880_v9 = vadd.f32 %v16140_v40, %v10153_v8  ;;  %7135 = vst.msk [vmem:[#allocation2 + $0x170] sm:$0xff] %vm851_vm2, %v6990_v10  ;;  %v7874_v49 = vpop.f32.mrb[67].mxu1  ;;  %10214 = vmatprep.mubr.msk.f32.mxu1 %vm1375_vm4, %v7581_v32 }
 0x761   :  { %v7875_v44 = vadd.f32 %v16140_v40, %v7874_v49  ;;  %10215 = vmatmul.mubr.msk.f32.gmra.mrb[108].mxu1 %vm1375_vm4, %v7582_v28 }
 0x762   :  { %8253 = vrot.lane.b32.xlu1 %v7880_v9, %s10309_s12  ;;  %v7376_v15 = vpop.permute.xlu1 %7375 }
 0x763   :  { %8251 = vrot.lane.b32.xlu0 %v7875_v44, %s10309_s12  ;;  %v7374_v38 = vpop.permute.xlu0 %7373  ;;  %7520 = vst.msk [vmem:[#allocation2 + $0x178] sm:$0xff] %vm1236_vm3, %v7376_v15 }
 0x764   :  { %7519 = vst.msk [vmem:[#allocation2 + $0x170] sm:$0xff] %vm1236_vm3, %v7374_v38 }
 0x766   :  { %v6612_v46 = vpop.permute.xlu1 %6611 }
 0x767   :  { %v10156_v52 = vpop.f32.mrb[68].mxu1  ;;  %v6610_v14 = vpop.permute.xlu0 %6609  ;;  %6754 = vst.msk [vmem:[#allocation2 + $0x188] sm:$0xff] %vm466_vm1, %v6612_v46 }
 0x768   :  { %v7890_v41 = vadd.f32 %v16140_v40, %v10156_v52  ;;  %6753 = vst.msk [vmem:[#allocation2 + $0x180] sm:$0xff] %vm466_vm1, %v6610_v14  ;;  %v7884_v5 = vpop.f32.mrb[69].mxu1 }
 0x769   :  { %v7885_v26 = vadd.f32 %v16140_v40, %v7884_v5 }
 0x76a   :  { %8257 = vrot.lane.b32.xlu1 %v7890_v41, %s10309_s12  ;;  %v6996_v3 = vpop.permute.xlu1 %6995  ;;  %v7584_v1 = vld [vmem:[#allocation2 + $0x178] sm:$0xff] }
 0x76b   :  { %8255 = vrot.lane.b32.xlu0 %v7885_v26, %s10309_s12  ;;  %v6994_v30 = vpop.permute.xlu0 %6993  ;;  %7138 = vst.msk [vmem:[#allocation2 + $0x188] sm:$0xff] %vm851_vm2, %v6996_v3  ;;  %v7583_v24 = vld [vmem:[#allocation2 + $0x170] sm:$0xff] }
 0x76c   :  { %7137 = vst.msk [vmem:[#allocation2 + $0x180] sm:$0xff] %vm851_vm2, %v6994_v30  ;;  %10217 = vmatprep.mubr.msk.f32.mxu1 %vm1375_vm4, %v7583_v24 }
 0x76d   :  { %10218 = vmatmul.mubr.msk.f32.gmra.mrb[110].mxu1 %vm1375_vm4, %v7584_v1 }
 0x76e   :  { %v7380_v2 = vpop.permute.xlu1 %7379 }
 0x76f   :  { %v10159_v33 = vpop.f32.mrb[70].mxu1  ;;  %v7378_v7 = vpop.permute.xlu0 %7377  ;;  %7522 = vst.msk [vmem:[#allocation2 + $0x188] sm:$0xff] %vm1236_vm3, %v7380_v2 }
 0x770   :  { %v7900_v17 = vadd.f32 %v16140_v40, %v10159_v33  ;;  %7521 = vst.msk [vmem:[#allocation2 + $0x180] sm:$0xff] %vm1236_vm3, %v7378_v7  ;;  %v7894_v50 = vpop.f32.mrb[71].mxu1 }
 0x771   :  { %v7895_v43 = vadd.f32 %v16140_v40, %v7894_v50 }
 0x772   :  { %8261 = vrot.lane.b32.xlu1 %v7900_v17, %s10309_s12  ;;  %v6616_v29 = vpop.permute.xlu1 %6615 }
 0x773   :  { %8259 = vrot.lane.b32.xlu0 %v7895_v43, %s10309_s12  ;;  %v6614_v54 = vpop.permute.xlu0 %6613  ;;  %6756 = vst.msk [vmem:[#allocation2 + $0x198] sm:$0xff] %vm466_vm1, %v6616_v29 }
 0x774   :  { %6755 = vst.msk [vmem:[#allocation2 + $0x190] sm:$0xff] %vm466_vm1, %v6614_v54 }
 0x776   :  { %v7000_v27 = vpop.permute.xlu1 %6999  ;;  %v7586_v11 = vld [vmem:[#allocation2 + $0x188] sm:$0xff] }
 0x777   :  { %v10162_v59 = vpop.f32.mrb[72].mxu1  ;;  %v6998_v39 = vpop.permute.xlu0 %6997  ;;  %7140 = vst.msk [vmem:[#allocation2 + $0x198] sm:$0xff] %vm851_vm2, %v7000_v27  ;;  %v7585_v34 = vld [vmem:[#allocation2 + $0x180] sm:$0xff] }
 0x778   :  { %v7910_v36 = vadd.f32 %v16140_v40, %v10162_v59  ;;  %7139 = vst.msk [vmem:[#allocation2 + $0x190] sm:$0xff] %vm851_vm2, %v6998_v39  ;;  %v7904_v51 = vpop.f32.mrb[73].mxu1  ;;  %10220 = vmatprep.mubr.msk.f32.mxu1 %vm1375_vm4, %v7585_v34 }
 0x779   :  { %v7905_v22 = vadd.f32 %v16140_v40, %v7904_v51  ;;  %10221 = vmatmul.mubr.msk.f32.gmra.mrb[112].mxu1 %vm1375_vm4, %v7586_v11 }
 0x77a   :  { %8265 = vrot.lane.b32.xlu1 %v7910_v36, %s10309_s12  ;;  %v7384_v60 = vpop.permute.xlu1 %7383 }
 0x77b   :  { %8263 = vrot.lane.b32.xlu0 %v7905_v22, %s10309_s12  ;;  %v7382_v18 = vpop.permute.xlu0 %7381  ;;  %7524 = vst.msk [vmem:[#allocation2 + $0x198] sm:$0xff] %vm1236_vm3, %v7384_v60 }
 0x77c   :  { %7523 = vst.msk [vmem:[#allocation2 + $0x190] sm:$0xff] %vm1236_vm3, %v7382_v18 }
 0x77e   :  { %v6620_v62 = vpop.permute.xlu1 %6619 }
 0x77f   :  { %v10165_v23 = vpop.f32.mrb[74].mxu1  ;;  %v6618_v42 = vpop.permute.xlu0 %6617  ;;  %6758 = vst.msk [vmem:[#allocation2 + $0x1a8] sm:$0xff] %vm466_vm1, %v6620_v62 }
 0x780   :  { %v7920_v25 = vadd.f32 %v16140_v40, %v10165_v23  ;;  %6757 = vst.msk [vmem:[#allocation2 + $0x1a0] sm:$0xff] %vm466_vm1, %v6618_v42  ;;  %v7914_v12 = vpop.f32.mrb[75].mxu1 }
 0x781   :  { %v7915_v21 = vadd.f32 %v16140_v40, %v7914_v12 }
 0x782   :  { %8269 = vrot.lane.b32.xlu1 %v7920_v25, %s10309_s12  ;;  %v7004_v61 = vpop.permute.xlu1 %7003  ;;  %v7588_v45 = vld [vmem:[#allocation2 + $0x198] sm:$0xff] }
 0x783   :  { %8267 = vrot.lane.b32.xlu0 %v7915_v21, %s10309_s12  ;;  %v7002_v6 = vpop.permute.xlu0 %7001  ;;  %7142 = vst.msk [vmem:[#allocation2 + $0x1a8] sm:$0xff] %vm851_vm2, %v7004_v61  ;;  %v7587_v0 = vld [vmem:[#allocation2 + $0x190] sm:$0xff] }
 0x784   :  { %7141 = vst.msk [vmem:[#allocation2 + $0x1a0] sm:$0xff] %vm851_vm2, %v7002_v6  ;;  %10223 = vmatprep.mubr.msk.f32.mxu1 %vm1375_vm4, %v7587_v0 }
 0x785   :  { %10224 = vmatmul.mubr.msk.f32.gmra.mrb[114].mxu1 %vm1375_vm4, %v7588_v45 }
 0x786   :  { %v7388_v13 = vpop.permute.xlu1 %7387 }
 0x787   :  { %v7386_v48 = vpop.permute.xlu0 %7385  ;;  %7526 = vst.msk [vmem:[#allocation2 + $0x1a8] sm:$0xff] %vm1236_vm3, %v7388_v13 }
 0x788   :  { %7525 = vst.msk [vmem:[#allocation2 + $0x1a0] sm:$0xff] %vm1236_vm3, %v7386_v48 }
 0x789   :  { %v10168_v20 = vpop.f32.mrb[76].mxu1 }
 0x78a   :  { %v7930_v58 = vadd.f32 %v16140_v40, %v10168_v20  ;;  %v7924_v47 = vpop.f32.mrb[77].mxu1  ;;  %v6624_v4 = vpop.permute.xlu1 %6623 }
 0x78b   :  { %v7925_v63 = vadd.f32 %v16140_v40, %v7924_v47  ;;  %v6622_v55 = vpop.permute.xlu0 %6621  ;;  %6760 = vst.msk [vmem:[#allocation2 + $0x1b8] sm:$0xff] %vm466_vm1, %v6624_v4 }
 0x78c   :  { %8273 = vrot.lane.b32.xlu1 %v7930_v58, %s10309_s12  ;;  %6759 = vst.msk [vmem:[#allocation2 + $0x1b0] sm:$0xff] %vm466_vm1, %v6622_v55 }
 0x78d   :  { %8271 = vrot.lane.b32.xlu0 %v7925_v63, %s10309_s12 }
 0x78e   :  { %v7008_v35 = vpop.permute.xlu1 %7007  ;;  %v7590_v19 = vld [vmem:[#allocation2 + $0x1a8] sm:$0xff] }
 0x78f   :  { %v7006_v31 = vpop.permute.xlu0 %7005  ;;  %7144 = vst.msk [vmem:[#allocation2 + $0x1b8] sm:$0xff] %vm851_vm2, %v7008_v35  ;;  %v7589_v37 = vld [vmem:[#allocation2 + $0x1a0] sm:$0xff] }
 0x790   :  { %7143 = vst.msk [vmem:[#allocation2 + $0x1b0] sm:$0xff] %vm851_vm2, %v7006_v31  ;;  %10226 = vmatprep.mubr.msk.f32.mxu1 %vm1375_vm4, %v7589_v37 }
 0x791   :  { %v10171_v16 = vpop.f32.mrb[78].mxu1  ;;  %10227 = vmatmul.mubr.msk.f32.gmra.mrb[116].mxu1 %vm1375_vm4, %v7590_v19 }
 0x792   :  { %v7940_v56 = vadd.f32 %v16140_v40, %v10171_v16  ;;  %v7934_v57 = vpop.f32.mrb[79].mxu1  ;;  %v7392_v28 = vpop.permute.xlu1 %7391 }
 0x793   :  { %v7935_v53 = vadd.f32 %v16140_v40, %v7934_v57  ;;  %v7390_v8 = vpop.permute.xlu0 %7389  ;;  %7528 = vst.msk [vmem:[#allocation2 + $0x1b8] sm:$0xff] %vm1236_vm3, %v7392_v28 }
 0x794   :  { %8277 = vrot.lane.b32.xlu1 %v7940_v56, %s10309_s12  ;;  %7527 = vst.msk [vmem:[#allocation2 + $0x1b0] sm:$0xff] %vm1236_vm3, %v7390_v8 }
 0x795   :  { %8275 = vrot.lane.b32.xlu0 %v7935_v53, %s10309_s12 }
 0x796   :  { %v6628_v10 = vpop.permute.xlu1 %6627 }
 0x797   :  { %v6626_v9 = vpop.permute.xlu0 %6625  ;;  %6762 = vst.msk [vmem:[#allocation2 + $0x1c8] sm:$0xff] %vm466_vm1, %v6628_v10 }
 0x798   :  { %6761 = vst.msk [vmem:[#allocation2 + $0x1c0] sm:$0xff] %vm466_vm1, %v6626_v9 }
 0x799   :  { %v10174_v32 = vpop.f32.mrb[80].mxu1 }
 0x79a   :  { %v7950_v49 = vadd.f32 %v16140_v40, %v10174_v32  ;;  %v7944_v44 = vpop.f32.mrb[81].mxu1  ;;  %v7012_v38 = vpop.permute.xlu1 %7011  ;;  %v7592_v46 = vld [vmem:[#allocation2 + $0x1b8] sm:$0xff] }
 0x79b   :  { %v7945_v15 = vadd.f32 %v16140_v40, %v7944_v44  ;;  %v7010_v52 = vpop.permute.xlu0 %7009  ;;  %7146 = vst.msk [vmem:[#allocation2 + $0x1c8] sm:$0xff] %vm851_vm2, %v7012_v38  ;;  %v7591_v14 = vld [vmem:[#allocation2 + $0x1b0] sm:$0xff] }
 0x79c   :  { %8281 = vrot.lane.b32.xlu1 %v7950_v49, %s10309_s12  ;;  %7145 = vst.msk [vmem:[#allocation2 + $0x1c0] sm:$0xff] %vm851_vm2, %v7010_v52  ;;  %10229 = vmatprep.mubr.msk.f32.mxu1 %vm1375_vm4, %v7591_v14 }
 0x79d   :  { %8279 = vrot.lane.b32.xlu0 %v7945_v15, %s10309_s12  ;;  %10230 = vmatmul.mubr.msk.f32.gmra.mrb[118].mxu1 %vm1375_vm4, %v7592_v46 }
 0x79e   :  { %v7396_v41 = vpop.permute.xlu1 %7395 }
 0x79f   :  { %v7394_v26 = vpop.permute.xlu0 %7393  ;;  %7530 = vst.msk [vmem:[#allocation2 + $0x1c8] sm:$0xff] %vm1236_vm3, %v7396_v41 }
 0x7a0   :  { %7529 = vst.msk [vmem:[#allocation2 + $0x1c0] sm:$0xff] %vm1236_vm3, %v7394_v26 }
 0x7a2   :  { %v10177_v5 = vpop.f32.mrb[82].mxu1  ;;  %v6632_v24 = vpop.permute.xlu1 %6631 }
 0x7a3   :  { %v7960_v3 = vadd.f32 %v16140_v40, %v10177_v5  ;;  %v7954_v1 = vpop.f32.mrb[83].mxu1  ;;  %v6630_v2 = vpop.permute.xlu0 %6629  ;;  %6764 = vst.msk [vmem:[#allocation2 + $0x1d8] sm:$0xff] %vm466_vm1, %v6632_v24 }
 0x7a4   :  { %v7955_v30 = vadd.f32 %v16140_v40, %v7954_v1  ;;  %6763 = vst.msk [vmem:[#allocation2 + $0x1d0] sm:$0xff] %vm466_vm1, %v6630_v2 }
 0x7a5   :  { %8285 = vrot.lane.b32.xlu1 %v7960_v3, %s10309_s12 }
 0x7a6   :  { %8283 = vrot.lane.b32.xlu0 %v7955_v30, %s10309_s12  ;;  %v7016_v33 = vpop.permute.xlu1 %7015  ;;  %v7594_v7 = vld [vmem:[#allocation2 + $0x1c8] sm:$0xff] }
 0x7a7   :  { %v7014_v50 = vpop.permute.xlu0 %7013  ;;  %7148 = vst.msk [vmem:[#allocation2 + $0x1d8] sm:$0xff] %vm851_vm2, %v7016_v33  ;;  %v7593_v43 = vld [vmem:[#allocation2 + $0x1c0] sm:$0xff] }
 0x7a8   :  { %7147 = vst.msk [vmem:[#allocation2 + $0x1d0] sm:$0xff] %vm851_vm2, %v7014_v50  ;;  %10232 = vmatprep.mubr.msk.f32.mxu1 %vm1375_vm4, %v7593_v43 }
 0x7a9   :  { %v10180_v17 = vpop.f32.mrb[84].mxu1  ;;  %10233 = vmatmul.mubr.msk.f32.gmra.mrb[120].mxu1 %vm1375_vm4, %v7594_v7 }
 0x7aa   :  { %v7970_v29 = vadd.f32 %v16140_v40, %v10180_v17  ;;  %v7964_v54 = vpop.f32.mrb[85].mxu1  ;;  %v7400_v11 = vpop.permute.xlu1 %7399 }
 0x7ab   :  { %v7965_v27 = vadd.f32 %v16140_v40, %v7964_v54  ;;  %v7398_v59 = vpop.permute.xlu0 %7397  ;;  %7532 = vst.msk [vmem:[#allocation2 + $0x1d8] sm:$0xff] %vm1236_vm3, %v7400_v11 }
 0x7ac   :  { %8289 = vrot.lane.b32.xlu1 %v7970_v29, %s10309_s12  ;;  %7531 = vst.msk [vmem:[#allocation2 + $0x1d0] sm:$0xff] %vm1236_vm3, %v7398_v59 }
 0x7ad   :  { %8287 = vrot.lane.b32.xlu0 %v7965_v27, %s10309_s12 }
 0x7ae   :  { %v6636_v39 = vpop.permute.xlu1 %6635 }
 0x7af   :  { %v6634_v34 = vpop.permute.xlu0 %6633  ;;  %6766 = vst.msk [vmem:[#allocation2 + $0x1e8] sm:$0xff] %vm466_vm1, %v6636_v39 }
 0x7b0   :  { %6765 = vst.msk [vmem:[#allocation2 + $0x1e0] sm:$0xff] %vm466_vm1, %v6634_v34 }
 0x7b2   :  { %v10183_v36 = vpop.f32.mrb[86].mxu1  ;;  %v7020_v18 = vpop.permute.xlu1 %7019  ;;  %v7596_v62 = vld [vmem:[#allocation2 + $0x1d8] sm:$0xff] }
 0x7b3   :  { %v7980_v51 = vadd.f32 %v16140_v40, %v10183_v36  ;;  %v7974_v22 = vpop.f32.mrb[87].mxu1  ;;  %v7018_v23 = vpop.permute.xlu0 %7017  ;;  %7150 = vst.msk [vmem:[#allocation2 + $0x1e8] sm:$0xff] %vm851_vm2, %v7020_v18  ;;  %v7595_v42 = vld [vmem:[#allocation2 + $0x1d0] sm:$0xff] }
 0x7b4   :  { %v7975_v60 = vadd.f32 %v16140_v40, %v7974_v22  ;;  %7149 = vst.msk [vmem:[#allocation2 + $0x1e0] sm:$0xff] %vm851_vm2, %v7018_v23  ;;  %10235 = vmatprep.mubr.msk.f32.mxu1 %vm1375_vm4, %v7595_v42 }
 0x7b5   :  { %8293 = vrot.lane.b32.xlu1 %v7980_v51, %s10309_s12  ;;  %10236 = vmatmul.mubr.msk.f32.gmra.mrb[122].mxu1 %vm1375_vm4, %v7596_v62 }
 0x7b6   :  { %8291 = vrot.lane.b32.xlu0 %v7975_v60, %s10309_s12  ;;  %v7404_v25 = vpop.permute.xlu1 %7403 }
 0x7b7   :  { %v7402_v12 = vpop.permute.xlu0 %7401  ;;  %7534 = vst.msk [vmem:[#allocation2 + $0x1e8] sm:$0xff] %vm1236_vm3, %v7404_v25 }
 0x7b8   :  { %7533 = vst.msk [vmem:[#allocation2 + $0x1e0] sm:$0xff] %vm1236_vm3, %v7402_v12 }
 0x7ba   :  { %v6640_v21 = vpop.permute.xlu1 %6639 }
 0x7bb   :  { %v6638_v61 = vpop.permute.xlu0 %6637  ;;  %6768 = vst.msk [vmem:[#allocation2 + $0x1f8] sm:$0xff] %vm466_vm1, %v6640_v21 }
 0x7bc   :  { %6767 = vst.msk [vmem:[#allocation2 + $0x1f0] sm:$0xff] %vm466_vm1, %v6638_v61 }
 0x7be   :  { %v10186_v45 = vpop.f32.mrb[88].mxu1  ;;  %v7024_v20 = vpop.permute.xlu1 %7023  ;;  %v7598_v48 = vld [vmem:[#allocation2 + $0x1e8] sm:$0xff] }
 0x7bf   :  { %v7990_v6 = vadd.f32 %v16140_v40, %v10186_v45  ;;  %v7984_v0 = vpop.f32.mrb[89].mxu1  ;;  %v7022_v58 = vpop.permute.xlu0 %7021  ;;  %7152 = vst.msk [vmem:[#allocation2 + $0x1f8] sm:$0xff] %vm851_vm2, %v7024_v20  ;;  %v7597_v47 = vld [vmem:[#allocation2 + $0x1e0] sm:$0xff] }
 0x7c0   :  { %v7985_v13 = vadd.f32 %v16140_v40, %v7984_v0  ;;  %7151 = vst.msk [vmem:[#allocation2 + $0x1f0] sm:$0xff] %vm851_vm2, %v7022_v58  ;;  %10238 = vmatprep.mubr.msk.f32.mxu1 %vm1375_vm4, %v7597_v47 }
 0x7c1   :  { %8297 = vrot.lane.b32.xlu1 %v7990_v6, %s10309_s12  ;;  %10239 = vmatmul.mubr.msk.f32.gmra.mrb[124].mxu1 %vm1375_vm4, %v7598_v48 }
 0x7c2   :  { %8295 = vrot.lane.b32.xlu0 %v7985_v13, %s10309_s12  ;;  %v7408_v63 = vpop.permute.xlu1 %7407 }
 0x7c3   :  { %v7406_v4 = vpop.permute.xlu0 %7405  ;;  %7536 = vst.msk [vmem:[#allocation2 + $0x1f8] sm:$0xff] %vm1236_vm3, %v7408_v63 }
 0x7c4   :  { %7535 = vst.msk [vmem:[#allocation2 + $0x1f0] sm:$0xff] %vm1236_vm3, %v7406_v4 }
 0x7ca   :  { %v10189_v55 = vpop.f32.mrb[90].mxu1  ;;  %v7600_v31 = vld [vmem:[#allocation2 + $0x1f8] sm:$0xff] }
 0x7cb   :  { %v8000_v35 = vadd.f32 %v16140_v40, %v10189_v55  ;;  %v7994_v19 = vpop.f32.mrb[91].mxu1  ;;  %v7599_v37 = vld [vmem:[#allocation2 + $0x1f0] sm:$0xff] }
 0x7cc   :  { %v7995_v16 = vadd.f32 %v16140_v40, %v7994_v19  ;;  %v8250_v56 = vpop.permute.xlu1 %8249  ;;  %10241 = vmatprep.mubr.msk.f32.mxu1 %vm1375_vm4, %v7599_v37 }
 0x7cd   :  { %8301 = vrot.lane.b32.xlu1 %v8000_v35, %s10309_s12  ;;  %8440 = vst.msk [vmem:[#allocation3 + $0x18] sm:$0xff] %vm4200_vm6, %v8250_v56  ;;  %10242 = vmatmul.mubr.msk.f32.gmra.mrb[126].mxu1 %vm1375_vm4, %v7600_v31  ;;  %v8248_v57 = vpop.permute.xlu0 %8247 }
 0x7ce   :  { %8299 = vrot.lane.b32.xlu0 %v7995_v16, %s10309_s12  ;;  %8439 = vst.msk [vmem:[#allocation3 + $0x10] sm:$0xff] %vm4200_vm6, %v8248_v57 }
 0x7d4   :  { %v8254_v53 = vpop.permute.xlu1 %8253 }
 0x7d5   :  { %8442 = vst.msk [vmem:[#allocation3 + $0x38] sm:$0xff] %vm4200_vm6, %v8254_v53  ;;  %v8252_v32 = vpop.permute.xlu0 %8251 }
 0x7d6   :  { %v10192_v28 = vpop.f32.mrb[92].mxu1  ;;  %8441 = vst.msk [vmem:[#allocation3 + $0x30] sm:$0xff] %vm4200_vm6, %v8252_v32 }
 0x7d7   :  { %v8010_v8 = vadd.f32 %v16140_v40, %v10192_v28  ;;  %v8004_v10 = vpop.f32.mrb[93].mxu1 }
 0x7d8   :  { %v8005_v9 = vadd.f32 %v16140_v40, %v8004_v10 }
 0x7d9   :  { %8305 = vrot.lane.b32.xlu1 %v8010_v8, %s10309_s12 }
 0x7da   :  { %8303 = vrot.lane.b32.xlu0 %v8005_v9, %s10309_s12 }
 0x7dc   :  { %v8258_v49 = vpop.permute.xlu1 %8257 }
 0x7dd   :  { %8444 = vst.msk [vmem:[#allocation3 + $0x58] sm:$0xff] %vm4200_vm6, %v8258_v49  ;;  %v8256_v44 = vpop.permute.xlu0 %8255 }
 0x7de   :  { %8443 = vst.msk [vmem:[#allocation3 + $0x50] sm:$0xff] %vm4200_vm6, %v8256_v44 }
 0x7e2   :  { %v10195_v15 = vpop.f32.mrb[94].mxu1 }
 0x7e3   :  { %v8020_v38 = vadd.f32 %v16140_v40, %v10195_v15  ;;  %v8014_v46 = vpop.f32.mrb[95].mxu1 }
 0x7e4   :  { %v8015_v52 = vadd.f32 %v16140_v40, %v8014_v46  ;;  %v8262_v14 = vpop.permute.xlu1 %8261 }
 0x7e5   :  { %8309 = vrot.lane.b32.xlu1 %v8020_v38, %s10309_s12  ;;  %8446 = vst.msk [vmem:[#allocation3 + $0x78] sm:$0xff] %vm4200_vm6, %v8262_v14  ;;  %v8260_v41 = vpop.permute.xlu0 %8259 }
 0x7e6   :  { %8307 = vrot.lane.b32.xlu0 %v8015_v52, %s10309_s12  ;;  %8445 = vst.msk [vmem:[#allocation3 + $0x70] sm:$0xff] %vm4200_vm6, %v8260_v41 }
 0x7ec   :  { %v8266_v5 = vpop.permute.xlu1 %8265 }
 0x7ed   :  { %8448 = vst.msk [vmem:[#allocation3 + $0x98] sm:$0xff] %vm4200_vm6, %v8266_v5  ;;  %v8264_v30 = vpop.permute.xlu0 %8263 }
 0x7ee   :  { %v10198_v26 = vpop.f32.mrb[96].mxu1  ;;  %8447 = vst.msk [vmem:[#allocation3 + $0x90] sm:$0xff] %vm4200_vm6, %v8264_v30 }
 0x7ef   :  { %v8030_v3 = vadd.f32 %v16140_v40, %v10198_v26  ;;  %v8024_v1 = vpop.f32.mrb[97].mxu1 }
 0x7f0   :  { %v8025_v24 = vadd.f32 %v16140_v40, %v8024_v1 }
 0x7f1   :  { %8313 = vrot.lane.b32.xlu1 %v8030_v3, %s10309_s12 }
 0x7f2   :  { %8311 = vrot.lane.b32.xlu0 %v8025_v24, %s10309_s12 }
 0x7f4   :  { %v8270_v2 = vpop.permute.xlu1 %8269 }
 0x7f5   :  { %8450 = vst.msk [vmem:[#allocation3 + $0xb8] sm:$0xff] %vm4200_vm6, %v8270_v2  ;;  %v8268_v33 = vpop.permute.xlu0 %8267 }
 0x7f6   :  { %8449 = vst.msk [vmem:[#allocation3 + $0xb0] sm:$0xff] %vm4200_vm6, %v8268_v33 }
 0x7fa   :  { %v10201_v7 = vpop.f32.mrb[98].mxu1 }
 0x7fb   :  { %v8040_v17 = vadd.f32 %v16140_v40, %v10201_v7  ;;  %v8034_v50 = vpop.f32.mrb[99].mxu1 }
 0x7fc   :  { %v8035_v43 = vadd.f32 %v16140_v40, %v8034_v50 }
 0x7fd   :  { %8317 = vrot.lane.b32.xlu1 %v8040_v17, %s10309_s12 }
 0x7fe   :  { %v8274_v29 = vpop.permute.xlu1 %8273  ;;  %8315 = vrot.lane.b32.xlu0 %v8035_v43, %s10309_s12 }
 0x7ff   :  { %8452 = vst.msk [vmem:[#allocation3 + $0xd8] sm:$0xff] %vm4200_vm6, %v8274_v29  ;;  %v8272_v54 = vpop.permute.xlu0 %8271 }
 0x800   :  { %8451 = vst.msk [vmem:[#allocation3 + $0xd0] sm:$0xff] %vm4200_vm6, %v8272_v54 }
 0x804   :  { %v10204_v11 = vpop.f32.mrb[100].mxu1 }
 0x805   :  { %v8050_v59 = vadd.f32 %v16140_v40, %v10204_v11  ;;  %v8044_v39 = vpop.f32.mrb[101].mxu1 }
 0x806   :  { %v8278_v27 = vpop.permute.xlu1 %8277  ;;  %v8045_v36 = vadd.f32 %v16140_v40, %v8044_v39 }
 0x807   :  { %8454 = vst.msk [vmem:[#allocation3 + $0xf8] sm:$0xff] %vm4200_vm6, %v8278_v27  ;;  %v8276_v34 = vpop.permute.xlu0 %8275  ;;  %8321 = vrot.lane.b32.xlu1 %v8050_v59, %s10309_s12 }
 0x808   :  { %8453 = vst.msk [vmem:[#allocation3 + $0xf0] sm:$0xff] %vm4200_vm6, %v8276_v34  ;;  %8319 = vrot.lane.b32.xlu0 %v8045_v36, %s10309_s12 }
 0x80e   :  { %v8282_v51 = vpop.permute.xlu1 %8281 }
 0x80f   :  { %8456 = vst.msk [vmem:[#allocation3 + $0x118] sm:$0xff] %vm4200_vm6, %v8282_v51  ;;  %v8280_v22 = vpop.permute.xlu0 %8279 }
 0x810   :  { %8455 = vst.msk [vmem:[#allocation3 + $0x110] sm:$0xff] %vm4200_vm6, %v8280_v22  ;;  %v10207_v60 = vpop.f32.mrb[102].mxu1 }
 0x811   :  { %v8060_v18 = vadd.f32 %v16140_v40, %v10207_v60  ;;  %v8054_v62 = vpop.f32.mrb[103].mxu1 }
 0x812   :  { %v8055_v23 = vadd.f32 %v16140_v40, %v8054_v62 }
 0x813   :  { %8325 = vrot.lane.b32.xlu1 %v8060_v18, %s10309_s12 }
 0x814   :  { %8323 = vrot.lane.b32.xlu0 %v8055_v23, %s10309_s12 }
 0x817   :  { %v8286_v42 = vpop.permute.xlu1 %8285 }
 0x818   :  { %8458 = vst.msk [vmem:[#allocation3 + $0x138] sm:$0xff] %vm4200_vm6, %v8286_v42  ;;  %v8284_v25 = vpop.permute.xlu0 %8283 }
 0x819   :  { %8457 = vst.msk [vmem:[#allocation3 + $0x130] sm:$0xff] %vm4200_vm6, %v8284_v25 }
 0x81c   :  { %v10210_v21 = vpop.f32.mrb[104].mxu1 }
 0x81d   :  { %v8070_v61 = vadd.f32 %v16140_v40, %v10210_v21  ;;  %v8064_v45 = vpop.f32.mrb[105].mxu1 }
 0x81e   :  { %v8290_v12 = vpop.permute.xlu1 %8289  ;;  %v8065_v0 = vadd.f32 %v16140_v40, %v8064_v45 }
 0x81f   :  { %8460 = vst.msk [vmem:[#allocation3 + $0x158] sm:$0xff] %vm4200_vm6, %v8290_v12  ;;  %v8288_v6 = vpop.permute.xlu0 %8287  ;;  %8329 = vrot.lane.b32.xlu1 %v8070_v61, %s10309_s12 }
 0x820   :  { %8459 = vst.msk [vmem:[#allocation3 + $0x150] sm:$0xff] %vm4200_vm6, %v8288_v6  ;;  %8327 = vrot.lane.b32.xlu0 %v8065_v0, %s10309_s12 }
 0x827   :  { %v8294_v13 = vpop.permute.xlu1 %8293 }
 0x828   :  { %8462 = vst.msk [vmem:[#allocation3 + $0x178] sm:$0xff] %vm4200_vm6, %v8294_v13  ;;  %v8292_v20 = vpop.permute.xlu0 %8291  ;;  %v10213_v48 = vpop.f32.mrb[106].mxu1 }
 0x829   :  { %8461 = vst.msk [vmem:[#allocation3 + $0x170] sm:$0xff] %vm4200_vm6, %v8292_v20  ;;  %v8080_v58 = vadd.f32 %v16140_v40, %v10213_v48  ;;  %v8074_v47 = vpop.f32.mrb[107].mxu1 }
 0x82a   :  { %v8075_v63 = vadd.f32 %v16140_v40, %v8074_v47 }
 0x82b   :  { %8333 = vrot.lane.b32.xlu1 %v8080_v58, %s10309_s12 }
 0x82c   :  { %8331 = vrot.lane.b32.xlu0 %v8075_v63, %s10309_s12 }
 0x833   :  { %v8298_v4 = vpop.permute.xlu1 %8297 }
 0x834   :  { %8464 = vst.msk [vmem:[#allocation3 + $0x198] sm:$0xff] %vm4200_vm6, %v8298_v4  ;;  %v8296_v55 = vpop.permute.xlu0 %8295  ;;  %v10216_v35 = vpop.f32.mrb[108].mxu1 }
 0x835   :  { %8463 = vst.msk [vmem:[#allocation3 + $0x190] sm:$0xff] %vm4200_vm6, %v8296_v55  ;;  %v8090_v19 = vadd.f32 %v16140_v40, %v10216_v35  ;;  %v8084_v16 = vpop.f32.mrb[109].mxu1 }
 0x836   :  { %v8085_v31 = vadd.f32 %v16140_v40, %v8084_v16 }
 0x837   :  { %8337 = vrot.lane.b32.xlu1 %v8090_v19, %s10309_s12 }
 0x838   :  { %8335 = vrot.lane.b32.xlu0 %v8085_v31, %s10309_s12 }
 0x83f   :  { %v8302_v37 = vpop.permute.xlu1 %8301 }
 0x840   :  { %8466 = vst.msk [vmem:[#allocation3 + $0x1b8] sm:$0xff] %vm4200_vm6, %v8302_v37  ;;  %v8300_v56 = vpop.permute.xlu0 %8299  ;;  %v10219_v57 = vpop.f32.mrb[110].mxu1 }
 0x841   :  { %8465 = vst.msk [vmem:[#allocation3 + $0x1b0] sm:$0xff] %vm4200_vm6, %v8300_v56  ;;  %v8100_v53 = vadd.f32 %v16140_v40, %v10219_v57  ;;  %v8094_v28 = vpop.f32.mrb[111].mxu1 }
 0x842   :  { %v8095_v8 = vadd.f32 %v16140_v40, %v8094_v28 }
 0x843   :  { %8341 = vrot.lane.b32.xlu1 %v8100_v53, %s10309_s12 }
 0x844   :  { %8339 = vrot.lane.b32.xlu0 %v8095_v8, %s10309_s12 }
 0x84b   :  { %v8306_v10 = vpop.permute.xlu1 %8305 }
 0x84c   :  { %8468 = vst.msk [vmem:[#allocation3 + $0x1d8] sm:$0xff] %vm4200_vm6, %v8306_v10  ;;  %v8304_v32 = vpop.permute.xlu0 %8303  ;;  %v10222_v9 = vpop.f32.mrb[112].mxu1 }
 0x84d   :  { %8467 = vst.msk [vmem:[#allocation3 + $0x1d0] sm:$0xff] %vm4200_vm6, %v8304_v32  ;;  %v8110_v49 = vadd.f32 %v16140_v40, %v10222_v9  ;;  %v8104_v44 = vpop.f32.mrb[113].mxu1 }
 0x84e   :  { %v8105_v15 = vadd.f32 %v16140_v40, %v8104_v44 }
 0x84f   :  { %8345 = vrot.lane.b32.xlu1 %v8110_v49, %s10309_s12 }
 0x850   :  { %8343 = vrot.lane.b32.xlu0 %v8105_v15, %s10309_s12 }
 0x857   :  { %v8310_v38 = vpop.permute.xlu1 %8309 }
 0x858   :  { %8470 = vst.msk [vmem:[#allocation3 + $0x1f8] sm:$0xff] %vm4200_vm6, %v8310_v38  ;;  %v8308_v46 = vpop.permute.xlu0 %8307  ;;  %v10225_v52 = vpop.f32.mrb[114].mxu1 }
 0x859   :  { %8469 = vst.msk [vmem:[#allocation3 + $0x1f0] sm:$0xff] %vm4200_vm6, %v8308_v46  ;;  %v8120_v14 = vadd.f32 %v16140_v40, %v10225_v52  ;;  %v8114_v41 = vpop.f32.mrb[115].mxu1 }
 0x85a   :  { %v8115_v5 = vadd.f32 %v16140_v40, %v8114_v41 }
 0x85b   :  { %8349 = vrot.lane.b32.xlu1 %v8120_v14, %s10309_s12 }
 0x85c   :  { %8347 = vrot.lane.b32.xlu0 %v8115_v5, %s10309_s12 }
 0x863   :  { %v8314_v26 = vpop.permute.xlu1 %8313 }
 0x864   :  { %8472 = vst.msk [vmem:[#allocation3 + $0x218] sm:$0xff] %vm4200_vm6, %v8314_v26  ;;  %v8312_v3 = vpop.permute.xlu0 %8311  ;;  %v10228_v1 = vpop.f32.mrb[116].mxu1 }
 0x865   :  { %8471 = vst.msk [vmem:[#allocation3 + $0x210] sm:$0xff] %vm4200_vm6, %v8312_v3  ;;  %v8130_v30 = vadd.f32 %v16140_v40, %v10228_v1  ;;  %v8124_v24 = vpop.f32.mrb[117].mxu1 }
 0x866   :  { %v8125_v2 = vadd.f32 %v16140_v40, %v8124_v24 }
 0x867   :  { %8353 = vrot.lane.b32.xlu1 %v8130_v30, %s10309_s12 }
 0x868   :  { %8351 = vrot.lane.b32.xlu0 %v8125_v2, %s10309_s12 }
 0x86f   :  { %v8318_v33 = vpop.permute.xlu1 %8317 }
 0x870   :  { %8474 = vst.msk [vmem:[#allocation3 + $0x238] sm:$0xff] %vm4200_vm6, %v8318_v33  ;;  %v8316_v7 = vpop.permute.xlu0 %8315  ;;  %v10231_v17 = vpop.f32.mrb[118].mxu1 }
 0x871   :  { %8473 = vst.msk [vmem:[#allocation3 + $0x230] sm:$0xff] %vm4200_vm6, %v8316_v7  ;;  %v8140_v50 = vadd.f32 %v16140_v40, %v10231_v17  ;;  %v8134_v43 = vpop.f32.mrb[119].mxu1 }
 0x872   :  { %v8135_v29 = vadd.f32 %v16140_v40, %v8134_v43 }
 0x873   :  { %8357 = vrot.lane.b32.xlu1 %v8140_v50, %s10309_s12 }
 0x874   :  { %8355 = vrot.lane.b32.xlu0 %v8135_v29, %s10309_s12 }
 0x879   :  { %v8322_v54 = vpop.permute.xlu1 %8321 }
 0x87a   :  { %8476 = vst.msk [vmem:[#allocation3 + $0x258] sm:$0xff] %vm4200_vm6, %v8322_v54  ;;  %v8320_v27 = vpop.permute.xlu0 %8319 }
 0x87b   :  { %8475 = vst.msk [vmem:[#allocation3 + $0x250] sm:$0xff] %vm4200_vm6, %v8320_v27 }
 0x87c   :  { %v10234_v11 = vpop.f32.mrb[120].mxu1 }
 0x87d   :  { %v8150_v59 = vadd.f32 %v16140_v40, %v10234_v11  ;;  %v8144_v39 = vpop.f32.mrb[121].mxu1 }
 0x87e   :  { %v8145_v34 = vadd.f32 %v16140_v40, %v8144_v39 }
 0x87f   :  { %8361 = vrot.lane.b32.xlu1 %v8150_v59, %s10309_s12 }
 0x880   :  { %8359 = vrot.lane.b32.xlu0 %v8145_v34, %s10309_s12 }
 0x885   :  { %v8326_v36 = vpop.permute.xlu1 %8325 }
 0x886   :  { %8478 = vst.msk [vmem:[#allocation3 + $0x278] sm:$0xff] %vm4200_vm6, %v8326_v36  ;;  %v8324_v51 = vpop.permute.xlu0 %8323 }
 0x887   :  { %8477 = vst.msk [vmem:[#allocation3 + $0x270] sm:$0xff] %vm4200_vm6, %v8324_v51 }
 0x888   :  { %v10237_v22 = vpop.f32.mrb[122].mxu1 }
 0x889   :  { %v8160_v60 = vadd.f32 %v16140_v40, %v10237_v22  ;;  %v8154_v18 = vpop.f32.mrb[123].mxu1 }
 0x88a   :  { %v8155_v62 = vadd.f32 %v16140_v40, %v8154_v18 }
 0x88b   :  { %8365 = vrot.lane.b32.xlu1 %v8160_v60, %s10309_s12 }
 0x88c   :  { %8363 = vrot.lane.b32.xlu0 %v8155_v62, %s10309_s12 }
 0x891   :  { %v8330_v23 = vpop.permute.xlu1 %8329 }
 0x892   :  { %8480 = vst.msk [vmem:[#allocation3 + $0x298] sm:$0xff] %vm4200_vm6, %v8330_v23  ;;  %v8328_v42 = vpop.permute.xlu0 %8327 }
 0x893   :  { %8479 = vst.msk [vmem:[#allocation3 + $0x290] sm:$0xff] %vm4200_vm6, %v8328_v42 }
 0x894   :  { %v10240_v25 = vpop.f32.mrb[124].mxu1 }
 0x895   :  { %v8170_v12 = vadd.f32 %v16140_v40, %v10240_v25  ;;  %v8164_v21 = vpop.f32.mrb[125].mxu1 }
 0x896   :  { %v8165_v61 = vadd.f32 %v16140_v40, %v8164_v21 }
 0x897   :  { %8369 = vrot.lane.b32.xlu1 %v8170_v12, %s10309_s12 }
 0x898   :  { %8367 = vrot.lane.b32.xlu0 %v8165_v61, %s10309_s12 }
 0x89d   :  { %v8334_v45 = vpop.permute.xlu1 %8333 }
 0x89e   :  { %8482 = vst.msk [vmem:[#allocation3 + $0x2b8] sm:$0xff] %vm4200_vm6, %v8334_v45  ;;  %v8332_v6 = vpop.permute.xlu0 %8331 }
 0x89f   :  { %8481 = vst.msk [vmem:[#allocation3 + $0x2b0] sm:$0xff] %vm4200_vm6, %v8332_v6 }
 0x8a0   :  { %v10243_v0 = vpop.f32.mrb[126].mxu1 }
 0x8a1   :  { %v8180_v13 = vadd.f32 %v16140_v40, %v10243_v0  ;;  %v8174_v20 = vpop.f32.mrb[127].mxu1 }
 0x8a2   :  { %v8175_v48 = vadd.f32 %v16140_v40, %v8174_v20 }
 0x8a3   :  { %8373 = vrot.lane.b32.xlu1 %v8180_v13, %s10309_s12 }
 0x8a4   :  { %8371 = vrot.lane.b32.xlu0 %v8175_v48, %s10309_s12  ;;  %s8508_s12 = sshll.u32 %s10311_s2, 4  ;;  %s8509_s12 = int_to_ptr.vmem [resolvable:$true] %s8508_s12 }
 0x8a5   :  { %s10284_s30 = scalar_lea.vmem %s8509_s12, 16384  ;;  %p10289_p1 = scmp.lt.s32.totalorder %s8509_s12, %s8509_s12 }
 0x8a6   :  { %p10285_p0 = scmp.ne.s32.totalorder %s8509_s12, %s10284_s30  ;;  %p10290_p2 = scmp.lt.s32.totalorder %s10284_s30, %s10284_s30 }
 0x8a8   :  { %p10291_p3 = por %p10290_p2, %p10289_p1 }
 0x8a9   :  { %v8338_v58 = vpop.permute.xlu1 %8337 }
 0x8aa   :  { %8484 = vst.msk [vmem:[#allocation3 + $0x2d8] sm:$0xff] %vm4200_vm6, %v8338_v58  ;;  %v8336_v47 = vpop.permute.xlu0 %8335  ;;  %p10292_p4 = pnand %p10291_p3, %p10285_p0 }
 0x8ab   :  { %8483 = vst.msk [vmem:[#allocation3 + $0x2d0] sm:$0xff] %vm4200_vm6, %v8336_v47 }
 0x8b5   :  { %v8342_v63 = vpop.permute.xlu1 %8341 }
 0x8b6   :  { %8486 = vst.msk [vmem:[#allocation3 + $0x2f8] sm:$0xff] %vm4200_vm6, %v8342_v63  ;;  %v8340_v4 = vpop.permute.xlu0 %8339 }
 0x8b7   :  { %8485 = vst.msk [vmem:[#allocation3 + $0x2f0] sm:$0xff] %vm4200_vm6, %v8340_v4 }
 0x8c1   :  { %v8346_v55 = vpop.permute.xlu1 %8345 }
 0x8c2   :  { %8488 = vst.msk [vmem:[#allocation3 + $0x318] sm:$0xff] %vm4200_vm6, %v8346_v55  ;;  %v8344_v40 = vpop.permute.xlu0 %8343 }
 0x8c3   :  { %8487 = vst.msk [vmem:[#allocation3 + $0x310] sm:$0xff] %vm4200_vm6, %v8344_v40 }
 0x8cd   :  { %v8350_v35 = vpop.permute.xlu1 %8349 }
 0x8ce   :  { %8490 = vst.msk [vmem:[#allocation3 + $0x338] sm:$0xff] %vm4200_vm6, %v8350_v35  ;;  %v8348_v19 = vpop.permute.xlu0 %8347 }
 0x8cf   :  { %8489 = vst.msk [vmem:[#allocation3 + $0x330] sm:$0xff] %vm4200_vm6, %v8348_v19 }
 0x8d9   :  { %v8354_v16 = vpop.permute.xlu1 %8353 }
 0x8da   :  { %8492 = vst.msk [vmem:[#allocation3 + $0x358] sm:$0xff] %vm4200_vm6, %v8354_v16  ;;  %v8352_v31 = vpop.permute.xlu0 %8351 }
 0x8db   :  { %8491 = vst.msk [vmem:[#allocation3 + $0x350] sm:$0xff] %vm4200_vm6, %v8352_v31 }
 0x8e5   :  { %v8358_v37 = vpop.permute.xlu1 %8357 }
 0x8e6   :  { %8494 = vst.msk [vmem:[#allocation3 + $0x378] sm:$0xff] %vm4200_vm6, %v8358_v37  ;;  %v8356_v56 = vpop.permute.xlu0 %8355 }
 0x8e7   :  { %8493 = vst.msk [vmem:[#allocation3 + $0x370] sm:$0xff] %vm4200_vm6, %v8356_v56 }
 0x8f1   :  { %v8362_v57 = vpop.permute.xlu1 %8361 }
 0x8f2   :  { %8496 = vst.msk [vmem:[#allocation3 + $0x398] sm:$0xff] %vm4200_vm6, %v8362_v57  ;;  %v8360_v53 = vpop.permute.xlu0 %8359 }
 0x8f3   :  { %8495 = vst.msk [vmem:[#allocation3 + $0x390] sm:$0xff] %vm4200_vm6, %v8360_v53 }
 0x8fd   :  { %v8366_v28 = vpop.permute.xlu1 %8365 }
 0x8fe   :  { %8498 = vst.msk [vmem:[#allocation3 + $0x3b8] sm:$0xff] %vm4200_vm6, %v8366_v28  ;;  %v8364_v8 = vpop.permute.xlu0 %8363 }
 0x8ff   :  { %8497 = vst.msk [vmem:[#allocation3 + $0x3b0] sm:$0xff] %vm4200_vm6, %v8364_v8 }
 0x909   :  { %v8370_v10 = vpop.permute.xlu1 %8369 }
 0x90a   :  { %8500 = vst.msk [vmem:[#allocation3 + $0x3d8] sm:$0xff] %vm4200_vm6, %v8370_v10  ;;  %v8368_v32 = vpop.permute.xlu0 %8367 }
 0x90b   :  { %8499 = vst.msk [vmem:[#allocation3 + $0x3d0] sm:$0xff] %vm4200_vm6, %v8368_v32 }
 0x915   :  { %v8374_v9 = vpop.permute.xlu1 %8373 }
 0x916   :  { %8502 = vst.msk [vmem:[#allocation3 + $0x3f8] sm:$0xff] %vm4200_vm6, %v8374_v9  ;;  %v8372_v49 = vpop.permute.xlu0 %8371 }
 0x917   :  { %8501 = vst.msk [vmem:[#allocation3 + $0x3f0] sm:$0xff] %vm4200_vm6, %v8372_v49 }
 0x918   :  { %10295 = shalt.err (!%p10292_p4)
}
 0x919   :  { %s10296_s9 = scalar_lea.hbm %s16425_s3, 16384 }
 0x91a   :  { %p10297_p5 = scmp.ne.s32.totalorder %s16425_s3, %s10296_s9  ;;  %p10300_p6 = scmp.lt.u32.totalorder %s10296_s9, %s16425_s3 }
 0x91c   :  { %p10302_p7 = pnand %p10300_p6, %p10297_p5 }
 0x91e   :  { %10305 = shalt.err (!%p10302_p7)
}
 0x91f   :  { %s10312_s15 = smov 128  }
 0x920   :  { %8514 = dma.vmem_to_hbm [thread:$0]  %s8509_s12, 16384, %s16425_s3, [#allocation4], %s10312_s15, %s10312_s15, %s10308_s16  }
 0x921   :  { %10306 = dma.done.wait [#allocation4], 16384  }
 0x922   :  { %10307 = vsyncadd [#allocation4], 4294950912 }
 0x923   :  { %8518 = vsyncpa [#allocation4], 1 }

</bundles_post_ra>
